<compile_context>
chip_gen: v7x
topology: tpu7x:2x2x1
jax: 0.10.0
libtpu: 0.0.40
codegen_flags: <defaults>
</compile_context>

<pallas_src>
import numpy as np
import jax
import jax.numpy as jnp
from jax import lax
from jax.experimental import pallas as pl
from jax.experimental.pallas import tpu as pltpu

BOARD = 9      # CFG.board_size
BATCH = 2      # small example batch
CIN, C1, C2, C3 = 2, 32, 64, 64


def _ceil_to(x, m):
    return (x + m - 1) // m * m


# ----------------------------------------------------------------------------
# Fused kernel factory (shapes are compile-time constants)
# ----------------------------------------------------------------------------
def _make_kernel(batch, bs):
    P = bs + 2                          # padded spatial extent (11)
    NPP = _ceil_to(P * P, 8)            # rows per image, 121 -> 128 (aligned slices)
    MARGIN = 16                         # >= P+1 (max |tap row shift|), 8-aligned
    ROWS = batch * NPP                  # total activation rows (multiple of 8)
    BUF = ROWS + 2 * MARGIN             # buffer rows (shifted slices stay in-bounds)
    ROW_BLK = 64 if ROWS % 64 == 0 else 8
    NBLK = ROWS // ROW_BLK
    bf16 = jnp.bfloat16

    def kernel(x_ref, mask_ref,
               w1_ref, b1_ref, w2_ref, b2_ref, w3_ref, b3_ref,
               wpv_ref, bpv_ref,
               w0p_ref, w1p_ref, pfcb_ref,
               vfc1_ref, vfc1b_ref, vfc2w_ref, vfc2b_ref,
               p_t_ref, v_t_ref,
               pad1, pad2, pvbuf):
        # -- zero ONLY the margin rows (stale VMEM must not leak NaN/Inf into
        #    the shifted-slice reads); interior rows are overwritten below --
        for buf in (pad1, pad2):
            z = jnp.zeros((MARGIN, buf.shape[1]), buf.dtype)
            buf[0:MARGIN, :] = z
            buf[MARGIN + ROWS:BUF, :] = z

        # -- conv1: im2col built in the wrapper -> one K=18 matmul per block --
        for i in range(NBLK):
            r0 = i * ROW_BLK
            acc = jnp.dot(x_ref[r0:r0 + ROW_BLK, :], w1_ref[...],
                          preferred_element_type=jnp.float32)
            y = jnp.maximum(acc + b1_ref[...], 0.0) * mask_ref[r0:r0 + ROW_BLK, :]
            pad1[MARGIN + r0:MARGIN + r0 + ROW_BLK, :] = y

        # -- 3x3 conv (stride 1, pad 1) + ReLU: 9 shifted-slice matmuls,
        #    row-blocked so the f32 accumulator stays ~8 vregs; the
        #    acc += dot(...) chain lets v7x accumulate in the MRB --
        def conv3x3(src, w_ref, b_ref, emit):
            for i in range(NBLK):
                r0 = i * ROW_BLK
                acc = jnp.zeros((ROW_BLK, w_ref.shape[2]), jnp.float32)
                for t in range(9):
                    ky, kx = t // 3, t % 3
                    delta = (ky - 1) * P + (kx - 1)          # row offset of this tap
                    a = src[MARGIN + delta + r0:MARGIN + delta + r0 + ROW_BLK, :]
                    acc = acc + jnp.dot(a.astype(bf16), w_ref[t],
                                        preferred_element_type=jnp.float32)
                y = (jnp.maximum(acc + b_ref[...], 0.0)
                     * mask_ref[r0:r0 + ROW_BLK, :])
                emit(r0, y)

        def to_pad2(r0, y):
            pad2[MARGIN + r0:MARGIN + r0 + ROW_BLK, :] = y

        def to_heads(r0, y):
            # fused 1x1 policy/value head conv (merged into one (64,3) matmul);
            # conv3's activations never need to be stored.
            pv = jnp.maximum(
                jnp.dot(y.astype(bf16), wpv_ref[...],
                        preferred_element_type=jnp.float32) + bpv_ref[...], 0.0)
            pvbuf[r0:r0 + ROW_BLK, :] = pv

        conv3x3(pad1, w2_ref, b2_ref, to_pad2)
        conv3x3(pad2, w3_ref, b3_ref, to_heads)

        # -- heads, batched across images: single (82,NPP)x(NPP,B) policy dot,
        #    (128,NPP)x(NPP,B) + (1,128)x(128,B) value chain, one p_t store.
        #    Flatten permutation / border columns are folded into the weights.
        pv_img = [pvbuf[b * NPP:(b + 1) * NPP, :] for b in range(batch)]  # aligned
        lane_id = lax.broadcasted_iota(jnp.int32, (1, batch), 1)

        def gather_cols(c):
            # (NPP, batch) matrix, column b = channel-c plane of image b,
            # assembled with broadcasts (no minor-dim concatenate needed).
            m = jnp.zeros((NPP, batch), jnp.float32)
            for b in range(batch):
                sel = (lane_id == b).astype(jnp.float32)          # (1, batch)
                m = m + pv_img[b][:, c:c + 1] * sel
            return m.astype(bf16)

        p0, p1, vv = gather_cols(0), gather_cols(1), gather_cols(2)

        p_t = (jnp.dot(w0p_ref[...], p0, preferred_element_type=jnp.float32)
               + jnp.dot(w1p_ref[...], p1, preferred_element_type=jnp.float32)
               + pfcb_ref[...])                                   # (bs*bs+1, B)
        v1 = jnp.maximum(
            jnp.dot(vfc1_ref[...], vv, preferred_element_type=jnp.float32)
            + vfc1b_ref[...], 0.0)                                # (128, B)
        v2 = jnp.tanh(
            jnp.dot(vfc2w_ref[...], v1.astype(bf16),
                    preferred_element_type=jnp.float32) + vfc2b_ref[...])  # (1, B)

        p_t_ref[...] = p_t
        v_t_ref[...] = v2

    scratch = [
        pltpu.VMEM((BUF, C1), jnp.float32),
        pltpu.VMEM((BUF, C2), jnp.float32),
        pltpu.VMEM((ROWS, 3), jnp.float32),
    ]
    return kernel, scratch


# ----------------------------------------------------------------------------
# Wrapper-side (XLA) input preparation: im2col for conv1 + interior mask.
# ----------------------------------------------------------------------------
def _prep_input(x_nchw, bs):
    """NCHW input -> (batch*NPP, 9*Cin) bf16 im2col matrix for conv1.

    Row r = b*NPP + ph*(bs+2) + pw is padded output position (ph, pw) of image
    b; column t*Cin + c is input channel c at tap t = ky*3 + kx.  Rows
    P*P..NPP-1 of each image are zero padding."""
    batch, cin = x_nchw.shape[0], x_nchw.shape[1]
    P = bs + 2
    NPP = _ceil_to(P * P, 8)
    x = jnp.transpose(x_nchw, (0, 2, 3, 1)).astype(jnp.float32)      # (B,bs,bs,Cin)
    xp = jnp.pad(x, ((0, 0), (2, 2), (2, 2), (0, 0)))                # (B,bs+4,bs+4,Cin)
    taps = [xp[:, ky:ky + P, kx:kx + P, :] for ky in range(3) for kx in range(3)]
    col = jnp.stack(taps, axis=3)                                    # (B,P,P,9,Cin)
    col = col.reshape(batch, P * P, 9 * cin)
    col = jnp.pad(col, ((0, 0), (0, NPP - P * P), (0, 0)))
    return col.reshape(batch * NPP, 9 * cin).astype(jnp.bfloat16)


def _build_mask(batch, bs):
    """(ROWS, 1) f32 mask: 1 at interior padded positions, 0 at borders/pad."""
    P = bs + 2
    NPP = _ceil_to(P * P, 8)
    q = np.arange(NPP)
    ph, pw = q // P, q % P
    m = (q < P * P) & (ph >= 1) & (ph <= bs) & (pw >= 1) & (pw <= bs)
    m = np.tile(m.astype(np.float32), batch).reshape(batch * NPP, 1)
    return jnp.asarray(m)


# ----------------------------------------------------------------------------
# One-time (outside-jit) parameter preparation: fold layout permutations into
# the weights (bf16) so the kernel only does plain matmuls.
# ----------------------------------------------------------------------------
def prepare_params(params, bs=BOARD):
    P = bs + 2
    NPP = _ceil_to(P * P, 8)
    n_sq = bs * bs
    f32, bf16 = jnp.float32, jnp.bfloat16

    def conv_taps(w):   # (Cout,Cin,3,3) -> (9,Cin,Cout), tap index = ky*3+kx
        cout, cin = w.shape[0], w.shape[1]
        return jnp.transpose(w, (2, 3, 1, 0)).reshape(9, cin, cout).astype(bf16)

    def conv1_mat(w):   # (Cout,Cin,3,3) -> (9*Cin,Cout), row index = t*Cin + c
        cout, cin = w.shape[0], w.shape[1]
        return jnp.transpose(w, (2, 3, 1, 0)).reshape(9 * cin, cout).astype(bf16)

    def expand_spatial(w_rows):  # (N,bs*bs) -> (N,NPP), zero border / pad cols
        n = w_rows.shape[0]
        e = jnp.zeros((n, P, P), f32)
        e = e.at[:, 1:bs + 1, 1:bs + 1].set(w_rows.astype(f32).reshape(n, bs, bs))
        e = jnp.pad(e.reshape(n, P * P), ((0, 0), (0, NPP - P * P)))
        return e.astype(bf16)

    pfc = params["p_fc_w"]                                   # (bs*bs+1, 2*bs*bs)
    wpv = jnp.concatenate(
        [params["p_conv_w"].reshape(2, -1).T,
         params["v_conv_w"].reshape(1, -1).T], axis=1).astype(bf16)       # (64, 3)
    bpv = jnp.concatenate(
        [params["p_conv_b"], params["v_conv_b"]]).reshape(1, 3).astype(f32)

    return {
        "w1": conv1_mat(params["conv1_w"]), "b1": params["conv1_b"].reshape(1, -1).astype(f32),
        "w2": conv_taps(params["conv2_w"]), "b2": params["conv2_b"].reshape(1, -1).astype(f32),
        "w3": conv_taps(params["conv3_w"]), "b3": params["conv3_b"].reshape(1, -1).astype(f32),
        "wpv": wpv, "bpv": bpv,
        "w0p": expand_spatial(pfc[:, :n_sq]),                # policy FC, channel 0
        "w1p": expand_spatial(pfc[:, n_sq:]),                # policy FC, channel 1
        "pfc_b": params["p_fc_b"].reshape(-1, 1).astype(f32),
        "vfc1e": expand_spatial(params["v_fc1_w"]),          # (128, NPP)
        "vfc1_b": params["v_fc1_b"].reshape(-1, 1).astype(f32),
        "vfc2_w": params["v_fc2_w"].astype(bf16),            # (1, 128)
        "vfc2_b": params["v_fc2_b"].reshape(1, 1).astype(f32),
    }


# ----------------------------------------------------------------------------
# Fused forward pass (one pallas_call)
# ----------------------------------------------------------------------------
@jax.jit
def policy_value_forward(prep, x_nchw):
    batch, _, bs, _ = x_nchw.shape
    kernel, scratch = _make_kernel(batch, bs)
    npol = bs * bs + 1

    x_cols = _prep_input(x_nchw, bs)
    mask = _build_mask(batch, bs)
    vmem = pl.BlockSpec(memory_space=pltpu.MemorySpace.VMEM)

    p_t, v_t = pl.pallas_call(
        kernel,
        out_shape=(jax.ShapeDtypeStruct((npol, batch), jnp.float32),
                   jax.ShapeDtypeStruct((1, batch), jnp.float32)),
        in_specs=[vmem] * 17,
        out_specs=(vmem, vmem),
        scratch_shapes=scratch,
    )(x_cols, mask,
      prep["w1"], prep["b1"], prep["w2"], prep["b2"], prep["w3"], prep["b3"],
      prep["wpv"], prep["bpv"],
      prep["w0p"], prep["w1p"], prep["pfc_b"],
      prep["vfc1e"], prep["vfc1_b"], prep["vfc2_w"], prep["vfc2_b"])

    return p_t.T, v_t.T                  # (B, bs*bs+1), (B, 1)


# ----------------------------------------------------------------------------
# Deterministic synthetic parameters (PyTorch shapes: OIHW / (out,in))
# ----------------------------------------------------------------------------
def init_params(key, bs=BOARD):
    shapes = {
        "conv1_w": (C1, CIN, 3, 3), "conv1_b": (C1,),
        "conv2_w": (C2, C1, 3, 3),  "conv2_b": (C2,),
        "conv3_w": (C3, C2, 3, 3),  "conv3_b": (C3,),
        "p_conv_w": (2, C3, 1, 1),  "p_conv_b": (2,),
        "p_fc_w": (bs * bs + 1, 2 * bs * bs), "p_fc_b": (bs * bs + 1,),
        "v_conv_w": (1, C3, 1, 1),  "v_conv_b": (1,),
        "v_fc1_w": (128, bs * bs),  "v_fc1_b": (128,),
        "v_fc2_w": (1, 128),        "v_fc2_b": (1,),
    }
    params = {}
    keys = jax.random.split(key, len(shapes))
    for k, (name, shp) in zip(keys, shapes.items()):
        if name.endswith("_b"):
            params[name] = jnp.zeros(shp, jnp.float32) + 0.01
        else:
            fan_in = 1
            for d in shp[1:]:
                fan_in *= d
            params[name] = jax.random.normal(k, shp, jnp.float32) / jnp.sqrt(float(fan_in))
    return params


# ----------------------------------------------------------------------------
# Pure-JAX reference (numerical cross-check only)
# ----------------------------------------------------------------------------
def reference_forward(params, x_nchw):
    def conv(x, w, b):
        y = jax.lax.conv_general_dilated(
            x, w, (1, 1), "SAME", dimension_numbers=("NCHW", "OIHW", "NCHW"))
        return y + b[None, :, None, None]

    B = x_nchw.shape[0]
    h = jax.nn.relu(conv(x_nchw, params["conv1_w"], params["conv1_b"]))
    h = jax.nn.relu(conv(h, params["conv2_w"], params["conv2_b"]))
    h = jax.nn.relu(conv(h, params["conv3_w"], params["conv3_b"]))

    p = jax.nn.relu(conv(h, params["p_conv_w"], params["p_conv_b"]))
    p = p.reshape(B, -1) @ params["p_fc_w"].T + params["p_fc_b"]

    v = jax.nn.relu(conv(h, params["v_conv_w"], params["v_conv_b"]))
    v = jax.nn.relu(v.reshape(B, -1) @ params["v_fc1_w"].T + params["v_fc1_b"])
    v = jnp.tanh(v @ params["v_fc2_w"].T + params["v_fc2_b"])
    return p, v


if __name__ == "__main__":
    key = jax.random.PRNGKey(0)
    k_param, k_x = jax.random.split(key)
    params = init_params(k_param)
    prep = prepare_params(params)        # one-time weight re-layout, outside jit
    x = jax.random.normal(k_x, (BATCH, CIN, BOARD, BOARD), jnp.float32)  # NCHW

    p_out, v_out = policy_value_forward(prep, x)
    jax.block_until_ready((p_out, v_out))

    assert p_out.shape == (BATCH, BOARD * BOARD + 1)
    assert v_out.shape == (BATCH, 1)

    p_ref, v_ref = reference_forward(params, x)
    # bf16 MXU operands (f32 accumulation) vs. the full-f32 XLA reference.
    assert jnp.allclose(p_out, p_ref, rtol=2e-2, atol=2e-2), "policy mismatch"
    assert jnp.allclose(v_out, v_ref, rtol=2e-2, atol=2e-2), "value mismatch"

    print("KERNEL_OK")
</pallas_src>

<mosaic_0001>
module attributes {stable_mosaic.version = 11 : i64} {
  func.func @kernel(%arg0: memref<256x18xbf16, #tpu.memory_space<vmem>>, %arg1: memref<256x1xf32, #tpu.memory_space<vmem>>, %arg2: memref<18x32xbf16, #tpu.memory_space<vmem>>, %arg3: memref<1x32xf32, #tpu.memory_space<vmem>>, %arg4: memref<9x32x64xbf16, #tpu.memory_space<vmem>>, %arg5: memref<1x64xf32, #tpu.memory_space<vmem>>, %arg6: memref<9x64x64xbf16, #tpu.memory_space<vmem>>, %arg7: memref<1x64xf32, #tpu.memory_space<vmem>>, %arg8: memref<64x3xbf16, #tpu.memory_space<vmem>>, %arg9: memref<1x3xf32, #tpu.memory_space<vmem>>, %arg10: memref<82x128xbf16, #tpu.memory_space<vmem>>, %arg11: memref<82x128xbf16, #tpu.memory_space<vmem>>, %arg12: memref<82x1xf32, #tpu.memory_space<vmem>>, %arg13: memref<128x128xbf16, #tpu.memory_space<vmem>>, %arg14: memref<128x1xf32, #tpu.memory_space<vmem>>, %arg15: memref<1x128xbf16, #tpu.memory_space<vmem>>, %arg16: memref<1x1xf32, #tpu.memory_space<vmem>>, %arg17: memref<82x2xf32, #tpu.memory_space<vmem>>, %arg18: memref<1x2xf32, #tpu.memory_space<vmem>>, %arg19: memref<288x32xf32, #tpu.memory_space<vmem>>, %arg20: memref<288x64xf32, #tpu.memory_space<vmem>>, %arg21: memref<256x3xf32, #tpu.memory_space<vmem>>) attributes {dimension_semantics = [], scalar_prefetch = 0 : i64, scratch_operands = 3 : i64, tpu.core_type = #tpu.core_type<tc>} {
    %cst = arith.constant 0.000000e+00 : f32
    %0 = vector.broadcast %cst : f32 to vector<16x32xf32>
    %c0 = arith.constant 0 : index
    %c0_0 = arith.constant 0 : index
    %1 = vector.load %arg19[%c0, %c0_0] : memref<288x32xf32, #tpu.memory_space<vmem>>, vector<16x32xf32>
    tpu.vector_store %arg19[%c0, %c0_0], %0 {strides = array<i32>} : memref<288x32xf32, #tpu.memory_space<vmem>>, vector<16x32xf32>,
    %c272 = arith.constant 272 : index
    %c0_1 = arith.constant 0 : index
    %2 = vector.load %arg19[%c272, %c0_1] : memref<288x32xf32, #tpu.memory_space<vmem>>, vector<16x32xf32>
    tpu.vector_store %arg19[%c272, %c0_1], %0 {strides = array<i32>} : memref<288x32xf32, #tpu.memory_space<vmem>>, vector<16x32xf32>,
    %cst_2 = arith.constant 0.000000e+00 : f32
    %3 = vector.broadcast %cst_2 : f32 to vector<16x64xf32>
    %c0_3 = arith.constant 0 : index
    %c0_4 = arith.constant 0 : index
    %4 = vector.load %arg20[%c0_3, %c0_4] : memref<288x64xf32, #tpu.memory_space<vmem>>, vector<16x64xf32>
    tpu.vector_store %arg20[%c0_3, %c0_4], %3 {strides = array<i32>} : memref<288x64xf32, #tpu.memory_space<vmem>>, vector<16x64xf32>,
    %c272_5 = arith.constant 272 : index
    %c0_6 = arith.constant 0 : index
    %5 = vector.load %arg20[%c272_5, %c0_6] : memref<288x64xf32, #tpu.memory_space<vmem>>, vector<16x64xf32>
    tpu.vector_store %arg20[%c272_5, %c0_6], %3 {strides = array<i32>} : memref<288x64xf32, #tpu.memory_space<vmem>>, vector<16x64xf32>,
    %c0_7 = arith.constant 0 : index
    %c0_8 = arith.constant 0 : index
    %6 = vector.load %arg0[%c0_7, %c0_8] : memref<256x18xbf16, #tpu.memory_space<vmem>>, vector<64x18xbf16>
    %c0_9 = arith.constant 0 : index
    %c0_10 = arith.constant 0 : index
    %7 = vector.load %arg2[%c0_9, %c0_10] : memref<18x32xbf16, #tpu.memory_space<vmem>>, vector<18x32xbf16>
    %cst_11 = arith.constant dense<0.000000e+00> : vector<64x32xf32>
    %8 = tpu.matmul %6, %7, %cst_11 {dimension_numbers = #tpu.dot_dimension_numbers<[1], [0], [0], [1], [0, 0, 1, 1], [], []>} : vector<64x18xbf16>, vector<18x32xbf16>, vector<64x32xf32> -> vector<64x32xf32>
    %c0_12 = arith.constant 0 : index
    %c0_13 = arith.constant 0 : index
    %9 = vector.load %arg3[%c0_12, %c0_13] : memref<1x32xf32, #tpu.memory_space<vmem>>, vector<1x32xf32>
    %10 = vector.broadcast %9 : vector<1x32xf32> to vector<64x32xf32>
    %11 = arith.addf %8, %10 : vector<64x32xf32>
    %cst_14 = arith.constant 0.000000e+00 : f32
    %12 = vector.broadcast %cst_14 : f32 to vector<64x32xf32>
    %13 = arith.maximumf %11, %12 : vector<64x32xf32>
    %c0_15 = arith.constant 0 : index
    %c0_16 = arith.constant 0 : index
    %14 = vector.load %arg1[%c0_15, %c0_16] : memref<256x1xf32, #tpu.memory_space<vmem>>, vector<64x1xf32>
    %15 = vector.broadcast %14 : vector<64x1xf32> to vector<64x32xf32>
    %16 = arith.mulf %13, %15 : vector<64x32xf32>
    %c16 = arith.constant 16 : index
    %c0_17 = arith.constant 0 : index
    %17 = vector.load %arg19[%c16, %c0_17] : memref<288x32xf32, #tpu.memory_space<vmem>>, vector<64x32xf32>
    tpu.vector_store %arg19[%c16, %c0_17], %16 {strides = array<i32>} : memref<288x32xf32, #tpu.memory_space<vmem>>, vector<64x32xf32>,
    %c64 = arith.constant 64 : index
    %c0_18 = arith.constant 0 : index
    %18 = vector.load %arg0[%c64, %c0_18] : memref<256x18xbf16, #tpu.memory_space<vmem>>, vector<64x18xbf16>
    %c0_19 = arith.constant 0 : index
    %c0_20 = arith.constant 0 : index
    %19 = vector.load %arg2[%c0_19, %c0_20] : memref<18x32xbf16, #tpu.memory_space<vmem>>, vector<18x32xbf16>
    %cst_21 = arith.constant dense<0.000000e+00> : vector<64x32xf32>
    %20 = tpu.matmul %18, %19, %cst_21 {dimension_numbers = #tpu.dot_dimension_numbers<[1], [0], [0], [1], [0, 0, 1, 1], [], []>} : vector<64x18xbf16>, vector<18x32xbf16>, vector<64x32xf32> -> vector<64x32xf32>
    %c0_22 = arith.constant 0 : index
    %c0_23 = arith.constant 0 : index
    %21 = vector.load %arg3[%c0_22, %c0_23] : memref<1x32xf32, #tpu.memory_space<vmem>>, vector<1x32xf32>
    %22 = vector.broadcast %21 : vector<1x32xf32> to vector<64x32xf32>
    %23 = arith.addf %20, %22 : vector<64x32xf32>
    %cst_24 = arith.constant 0.000000e+00 : f32
    %24 = vector.broadcast %cst_24 : f32 to vector<64x32xf32>
    %25 = arith.maximumf %23, %24 : vector<64x32xf32>
    %c64_25 = arith.constant 64 : index
    %c0_26 = arith.constant 0 : index
    %26 = vector.load %arg1[%c64_25, %c0_26] : memref<256x1xf32, #tpu.memory_space<vmem>>, vector<64x1xf32>
    %27 = vector.broadcast %26 : vector<64x1xf32> to vector<64x32xf32>
    %28 = arith.mulf %25, %27 : vector<64x32xf32>
    %c80 = arith.constant 80 : index
    %c0_27 = arith.constant 0 : index
    %29 = vector.load %arg19[%c80, %c0_27] : memref<288x32xf32, #tpu.memory_space<vmem>>, vector<64x32xf32>
    tpu.vector_store %arg19[%c80, %c0_27], %28 {strides = array<i32>} : memref<288x32xf32, #tpu.memory_space<vmem>>, vector<64x32xf32>,
    %c128 = arith.constant 128 : index
    %c0_28 = arith.constant 0 : index
    %30 = vector.load %arg0[%c128, %c0_28] : memref<256x18xbf16, #tpu.memory_space<vmem>>, vector<64x18xbf16>
    %c0_29 = arith.constant 0 : index
    %c0_30 = arith.constant 0 : index
    %31 = vector.load %arg2[%c0_29, %c0_30] : memref<18x32xbf16, #tpu.memory_space<vmem>>, vector<18x32xbf16>
    %cst_31 = arith.constant dense<0.000000e+00> : vector<64x32xf32>
    %32 = tpu.matmul %30, %31, %cst_31 {dimension_numbers = #tpu.dot_dimension_numbers<[1], [0], [0], [1], [0, 0, 1, 1], [], []>} : vector<64x18xbf16>, vector<18x32xbf16>, vector<64x32xf32> -> vector<64x32xf32>
    %c0_32 = arith.constant 0 : index
    %c0_33 = arith.constant 0 : index
    %33 = vector.load %arg3[%c0_32, %c0_33] : memref<1x32xf32, #tpu.memory_space<vmem>>, vector<1x32xf32>
    %34 = vector.broadcast %33 : vector<1x32xf32> to vector<64x32xf32>
    %35 = arith.addf %32, %34 : vector<64x32xf32>
    %cst_34 = arith.constant 0.000000e+00 : f32
    %36 = vector.broadcast %cst_34 : f32 to vector<64x32xf32>
    %37 = arith.maximumf %35, %36 : vector<64x32xf32>
    %c128_35 = arith.constant 128 : index
    %c0_36 = arith.constant 0 : index
    %38 = vector.load %arg1[%c128_35, %c0_36] : memref<256x1xf32, #tpu.memory_space<vmem>>, vector<64x1xf32>
    %39 = vector.broadcast %38 : vector<64x1xf32> to vector<64x32xf32>
    %40 = arith.mulf %37, %39 : vector<64x32xf32>
    %c144 = arith.constant 144 : index
    %c0_37 = arith.constant 0 : index
    %41 = vector.load %arg19[%c144, %c0_37] : memref<288x32xf32, #tpu.memory_space<vmem>>, vector<64x32xf32>
    tpu.vector_store %arg19[%c144, %c0_37], %40 {strides = array<i32>} : memref<288x32xf32, #tpu.memory_space<vmem>>, vector<64x32xf32>,
    %c192 = arith.constant 192 : index
    %c0_38 = arith.constant 0 : index
    %42 = vector.load %arg0[%c192, %c0_38] : memref<256x18xbf16, #tpu.memory_space<vmem>>, vector<64x18xbf16>
    %c0_39 = arith.constant 0 : index
    %c0_40 = arith.constant 0 : index
    %43 = vector.load %arg2[%c0_39, %c0_40] : memref<18x32xbf16, #tpu.memory_space<vmem>>, vector<18x32xbf16>
    %cst_41 = arith.constant dense<0.000000e+00> : vector<64x32xf32>
    %44 = tpu.matmul %42, %43, %cst_41 {dimension_numbers = #tpu.dot_dimension_numbers<[1], [0], [0], [1], [0, 0, 1, 1], [], []>} : vector<64x18xbf16>, vector<18x32xbf16>, vector<64x32xf32> -> vector<64x32xf32>
    %c0_42 = arith.constant 0 : index
    %c0_43 = arith.constant 0 : index
    %45 = vector.load %arg3[%c0_42, %c0_43] : memref<1x32xf32, #tpu.memory_space<vmem>>, vector<1x32xf32>
    %46 = vector.broadcast %45 : vector<1x32xf32> to vector<64x32xf32>
    %47 = arith.addf %44, %46 : vector<64x32xf32>
    %cst_44 = arith.constant 0.000000e+00 : f32
    %48 = vector.broadcast %cst_44 : f32 to vector<64x32xf32>
    %49 = arith.maximumf %47, %48 : vector<64x32xf32>
    %c192_45 = arith.constant 192 : index
    %c0_46 = arith.constant 0 : index
    %50 = vector.load %arg1[%c192_45, %c0_46] : memref<256x1xf32, #tpu.memory_space<vmem>>, vector<64x1xf32>
    %51 = vector.broadcast %50 : vector<64x1xf32> to vector<64x32xf32>
    %52 = arith.mulf %49, %51 : vector<64x32xf32>
    %c208 = arith.constant 208 : index
    %c0_47 = arith.constant 0 : index
    %53 = vector.load %arg19[%c208, %c0_47] : memref<288x32xf32, #tpu.memory_space<vmem>>, vector<64x32xf32>
    tpu.vector_store %arg19[%c208, %c0_47], %52 {strides = array<i32>} : memref<288x32xf32, #tpu.memory_space<vmem>>, vector<64x32xf32>,
    %cst_48 = arith.constant 0.000000e+00 : f32
    %54 = vector.broadcast %cst_48 : f32 to vector<64x64xf32>
    %c4 = arith.constant 4 : index
    %c0_49 = arith.constant 0 : index
    %55 = vector.load %arg19[%c4, %c0_49] : memref<288x32xf32, #tpu.memory_space<vmem>>, vector<64x32xf32>
    %56 = arith.truncf %55 : vector<64x32xf32> to vector<64x32xbf16>
    %c0_50 = arith.constant 0 : index
    %c0_51 = arith.constant 0 : index
    %c0_52 = arith.constant 0 : index
    %57 = vector.load %arg4[%c0_50, %c0_51, %c0_52] : memref<9x32x64xbf16, #tpu.memory_space<vmem>>, vector<1x32x64xbf16>
    %58 = vector.shape_cast %57 : vector<1x32x64xbf16> to vector<32x64xbf16>
    %cst_53 = arith.constant dense<0.000000e+00> : vector<64x64xf32>
    %59 = tpu.matmul %56, %58, %cst_53 {dimension_numbers = #tpu.dot_dimension_numbers<[1], [0], [0], [1], [0, 0, 1, 1], [], []>} : vector<64x32xbf16>, vector<32x64xbf16>, vector<64x64xf32> -> vector<64x64xf32>
    %60 = arith.addf %54, %59 : vector<64x64xf32>
    %c5 = arith.constant 5 : index
    %c0_54 = arith.constant 0 : index
    %61 = vector.load %arg19[%c5, %c0_54] : memref<288x32xf32, #tpu.memory_space<vmem>>, vector<64x32xf32>
    %62 = arith.truncf %61 : vector<64x32xf32> to vector<64x32xbf16>
    %c1 = arith.constant 1 : index
    %c0_55 = arith.constant 0 : index
    %c0_56 = arith.constant 0 : index
    %63 = vector.load %arg4[%c1, %c0_55, %c0_56] : memref<9x32x64xbf16, #tpu.memory_space<vmem>>, vector<1x32x64xbf16>
    %64 = vector.shape_cast %63 : vector<1x32x64xbf16> to vector<32x64xbf16>
    %cst_57 = arith.constant dense<0.000000e+00> : vector<64x64xf32>
    %65 = tpu.matmul %62, %64, %cst_57 {dimension_numbers = #tpu.dot_dimension_numbers<[1], [0], [0], [1], [0, 0, 1, 1], [], []>} : vector<64x32xbf16>, vector<32x64xbf16>, vector<64x64xf32> -> vector<64x64xf32>
    %66 = arith.addf %60, %65 : vector<64x64xf32>
    %c6 = arith.constant 6 : index
    %c0_58 = arith.constant 0 : index
    %67 = vector.load %arg19[%c6, %c0_58] : memref<288x32xf32, #tpu.memory_space<vmem>>, vector<64x32xf32>
    %68 = arith.truncf %67 : vector<64x32xf32> to vector<64x32xbf16>
    %c2 = arith.constant 2 : index
    %c0_59 = arith.constant 0 : index
    %c0_60 = arith.constant 0 : index
    %69 = vector.load %arg4[%c2, %c0_59, %c0_60] : memref<9x32x64xbf16, #tpu.memory_space<vmem>>, vector<1x32x64xbf16>
    %70 = vector.shape_cast %69 : vector<1x32x64xbf16> to vector<32x64xbf16>
    %cst_61 = arith.constant dense<0.000000e+00> : vector<64x64xf32>
    %71 = tpu.matmul %68, %70, %cst_61 {dimension_numbers = #tpu.dot_dimension_numbers<[1], [0], [0], [1], [0, 0, 1, 1], [], []>} : vector<64x32xbf16>, vector<32x64xbf16>, vector<64x64xf32> -> vector<64x64xf32>
    %72 = arith.addf %66, %71 : vector<64x64xf32>
    %c15 = arith.constant 15 : index
    %c0_62 = arith.constant 0 : index
    %73 = vector.load %arg19[%c15, %c0_62] : memref<288x32xf32, #tpu.memory_space<vmem>>, vector<64x32xf32>
    %74 = arith.truncf %73 : vector<64x32xf32> to vector<64x32xbf16>
    %c3 = arith.constant 3 : index
    %c0_63 = arith.constant 0 : index
    %c0_64 = arith.constant 0 : index
    %75 = vector.load %arg4[%c3, %c0_63, %c0_64] : memref<9x32x64xbf16, #tpu.memory_space<vmem>>, vector<1x32x64xbf16>
    %76 = vector.shape_cast %75 : vector<1x32x64xbf16> to vector<32x64xbf16>
    %cst_65 = arith.constant dense<0.000000e+00> : vector<64x64xf32>
    %77 = tpu.matmul %74, %76, %cst_65 {dimension_numbers = #tpu.dot_dimension_numbers<[1], [0], [0], [1], [0, 0, 1, 1], [], []>} : vector<64x32xbf16>, vector<32x64xbf16>, vector<64x64xf32> -> vector<64x64xf32>
    %78 = arith.addf %72, %77 : vector<64x64xf32>
    %c16_66 = arith.constant 16 : index
    %c0_67 = arith.constant 0 : index
    %79 = vector.load %arg19[%c16_66, %c0_67] : memref<288x32xf32, #tpu.memory_space<vmem>>, vector<64x32xf32>
    %80 = arith.truncf %79 : vector<64x32xf32> to vector<64x32xbf16>
    %c4_68 = arith.constant 4 : index
    %c0_69 = arith.constant 0 : index
    %c0_70 = arith.constant 0 : index
    %81 = vector.load %arg4[%c4_68, %c0_69, %c0_70] : memref<9x32x64xbf16, #tpu.memory_space<vmem>>, vector<1x32x64xbf16>
    %82 = vector.shape_cast %81 : vector<1x32x64xbf16> to vector<32x64xbf16>
    %cst_71 = arith.constant dense<0.000000e+00> : vector<64x64xf32>
    %83 = tpu.matmul %80, %82, %cst_71 {dimension_numbers = #tpu.dot_dimension_numbers<[1], [0], [0], [1], [0, 0, 1, 1], [], []>} : vector<64x32xbf16>, vector<32x64xbf16>, vector<64x64xf32> -> vector<64x64xf32>
    %84 = arith.addf %78, %83 : vector<64x64xf32>
    %c17 = arith.constant 17 : index
    %c0_72 = arith.constant 0 : index
    %85 = vector.load %arg19[%c17, %c0_72] : memref<288x32xf32, #tpu.memory_space<vmem>>, vector<64x32xf32>
    %86 = arith.truncf %85 : vector<64x32xf32> to vector<64x32xbf16>
    %c5_73 = arith.constant 5 : index
    %c0_74 = arith.constant 0 : index
    %c0_75 = arith.constant 0 : index
    %87 = vector.load %arg4[%c5_73, %c0_74, %c0_75] : memref<9x32x64xbf16, #tpu.memory_space<vmem>>, vector<1x32x64xbf16>
    %88 = vector.shape_cast %87 : vector<1x32x64xbf16> to vector<32x64xbf16>
    %cst_76 = arith.constant dense<0.000000e+00> : vector<64x64xf32>
    %89 = tpu.matmul %86, %88, %cst_76 {dimension_numbers = #tpu.dot_dimension_numbers<[1], [0], [0], [1], [0, 0, 1, 1], [], []>} : vector<64x32xbf16>, vector<32x64xbf16>, vector<64x64xf32> -> vector<64x64xf32>
    %90 = arith.addf %84, %89 : vector<64x64xf32>
    %c26 = arith.constant 26 : index
    %c0_77 = arith.constant 0 : index
    %91 = vector.load %arg19[%c26, %c0_77] : memref<288x32xf32, #tpu.memory_space<vmem>>, vector<64x32xf32>
    %92 = arith.truncf %91 : vector<64x32xf32> to vector<64x32xbf16>
    %c6_78 = arith.constant 6 : index
    %c0_79 = arith.constant 0 : index
    %c0_80 = arith.constant 0 : index
    %93 = vector.load %arg4[%c6_78, %c0_79, %c0_80] : memref<9x32x64xbf16, #tpu.memory_space<vmem>>, vector<1x32x64xbf16>
    %94 = vector.shape_cast %93 : vector<1x32x64xbf16> to vector<32x64xbf16>
    %cst_81 = arith.constant dense<0.000000e+00> : vector<64x64xf32>
    %95 = tpu.matmul %92, %94, %cst_81 {dimension_numbers = #tpu.dot_dimension_numbers<[1], [0], [0], [1], [0, 0, 1, 1], [], []>} : vector<64x32xbf16>, vector<32x64xbf16>, vector<64x64xf32> -> vector<64x64xf32>
    %96 = arith.addf %90, %95 : vector<64x64xf32>
    %c27 = arith.constant 27 : index
    %c0_82 = arith.constant 0 : index
    %97 = vector.load %arg19[%c27, %c0_82] : memref<288x32xf32, #tpu.memory_space<vmem>>, vector<64x32xf32>
    %98 = arith.truncf %97 : vector<64x32xf32> to vector<64x32xbf16>
    %c7 = arith.constant 7 : index
    %c0_83 = arith.constant 0 : index
    %c0_84 = arith.constant 0 : index
    %99 = vector.load %arg4[%c7, %c0_83, %c0_84] : memref<9x32x64xbf16, #tpu.memory_space<vmem>>, vector<1x32x64xbf16>
    %100 = vector.shape_cast %99 : vector<1x32x64xbf16> to vector<32x64xbf16>
    %cst_85 = arith.constant dense<0.000000e+00> : vector<64x64xf32>
    %101 = tpu.matmul %98, %100, %cst_85 {dimension_numbers = #tpu.dot_dimension_numbers<[1], [0], [0], [1], [0, 0, 1, 1], [], []>} : vector<64x32xbf16>, vector<32x64xbf16>, vector<64x64xf32> -> vector<64x64xf32>
    %102 = arith.addf %96, %101 : vector<64x64xf32>
    %c28 = arith.constant 28 : index
    %c0_86 = arith.constant 0 : index
    %103 = vector.load %arg19[%c28, %c0_86] : memref<288x32xf32, #tpu.memory_space<vmem>>, vector<64x32xf32>
    %104 = arith.truncf %103 : vector<64x32xf32> to vector<64x32xbf16>
    %c8 = arith.constant 8 : index
    %c0_87 = arith.constant 0 : index
    %c0_88 = arith.constant 0 : index
    %105 = vector.load %arg4[%c8, %c0_87, %c0_88] : memref<9x32x64xbf16, #tpu.memory_space<vmem>>, vector<1x32x64xbf16>
    %106 = vector.shape_cast %105 : vector<1x32x64xbf16> to vector<32x64xbf16>
    %cst_89 = arith.constant dense<0.000000e+00> : vector<64x64xf32>
    %107 = tpu.matmul %104, %106, %cst_89 {dimension_numbers = #tpu.dot_dimension_numbers<[1], [0], [0], [1], [0, 0, 1, 1], [], []>} : vector<64x32xbf16>, vector<32x64xbf16>, vector<64x64xf32> -> vector<64x64xf32>
    %108 = arith.addf %102, %107 : vector<64x64xf32>
    %c0_90 = arith.constant 0 : index
    %c0_91 = arith.constant 0 : index
    %109 = vector.load %arg5[%c0_90, %c0_91] : memref<1x64xf32, #tpu.memory_space<vmem>>, vector<1x64xf32>
    %110 = vector.broadcast %109 : vector<1x64xf32> to vector<64x64xf32>
    %111 = arith.addf %108, %110 : vector<64x64xf32>
    %cst_92 = arith.constant 0.000000e+00 : f32
    %112 = vector.broadcast %cst_92 : f32 to vector<64x64xf32>
    %113 = arith.maximumf %111, %112 : vector<64x64xf32>
    %c0_93 = arith.constant 0 : index
    %c0_94 = arith.constant 0 : index
    %114 = vector.load %arg1[%c0_93, %c0_94] : memref<256x1xf32, #tpu.memory_space<vmem>>, vector<64x1xf32>
    %115 = vector.broadcast %114 : vector<64x1xf32> to vector<64x64xf32>
    %116 = arith.mulf %113, %115 : vector<64x64xf32>
    %c16_95 = arith.constant 16 : index
    %c0_96 = arith.constant 0 : index
    %117 = vector.load %arg20[%c16_95, %c0_96] : memref<288x64xf32, #tpu.memory_space<vmem>>, vector<64x64xf32>
    tpu.vector_store %arg20[%c16_95, %c0_96], %116 {strides = array<i32>} : memref<288x64xf32, #tpu.memory_space<vmem>>, vector<64x64xf32>,
    %cst_97 = arith.constant 0.000000e+00 : f32
    %118 = vector.broadcast %cst_97 : f32 to vector<64x64xf32>
    %c68 = arith.constant 68 : index
    %c0_98 = arith.constant 0 : index
    %119 = vector.load %arg19[%c68, %c0_98] : memref<288x32xf32, #tpu.memory_space<vmem>>, vector<64x32xf32>
    %120 = arith.truncf %119 : vector<64x32xf32> to vector<64x32xbf16>
    %c0_99 = arith.constant 0 : index
    %c0_100 = arith.constant 0 : index
    %c0_101 = arith.constant 0 : index
    %121 = vector.load %arg4[%c0_99, %c0_100, %c0_101] : memref<9x32x64xbf16, #tpu.memory_space<vmem>>, vector<1x32x64xbf16>
    %122 = vector.shape_cast %121 : vector<1x32x64xbf16> to vector<32x64xbf16>
    %cst_102 = arith.constant dense<0.000000e+00> : vector<64x64xf32>
    %123 = tpu.matmul %120, %122, %cst_102 {dimension_numbers = #tpu.dot_dimension_numbers<[1], [0], [0], [1], [0, 0, 1, 1], [], []>} : vector<64x32xbf16>, vector<32x64xbf16>, vector<64x64xf32> -> vector<64x64xf32>
    %124 = arith.addf %118, %123 : vector<64x64xf32>
    %c69 = arith.constant 69 : index
    %c0_103 = arith.constant 0 : index
    %125 = vector.load %arg19[%c69, %c0_103] : memref<288x32xf32, #tpu.memory_space<vmem>>, vector<64x32xf32>
    %126 = arith.truncf %125 : vector<64x32xf32> to vector<64x32xbf16>
    %c1_104 = arith.constant 1 : index
    %c0_105 = arith.constant 0 : index
    %c0_106 = arith.constant 0 : index
    %127 = vector.load %arg4[%c1_104, %c0_105, %c0_106] : memref<9x32x64xbf16, #tpu.memory_space<vmem>>, vector<1x32x64xbf16>
    %128 = vector.shape_cast %127 : vector<1x32x64xbf16> to vector<32x64xbf16>
    %cst_107 = arith.constant dense<0.000000e+00> : vector<64x64xf32>
    %129 = tpu.matmul %126, %128, %cst_107 {dimension_numbers = #tpu.dot_dimension_numbers<[1], [0], [0], [1], [0, 0, 1, 1], [], []>} : vector<64x32xbf16>, vector<32x64xbf16>, vector<64x64xf32> -> vector<64x64xf32>
    %130 = arith.addf %124, %129 : vector<64x64xf32>
    %c70 = arith.constant 70 : index
    %c0_108 = arith.constant 0 : index
    %131 = vector.load %arg19[%c70, %c0_108] : memref<288x32xf32, #tpu.memory_space<vmem>>, vector<64x32xf32>
    %132 = arith.truncf %131 : vector<64x32xf32> to vector<64x32xbf16>
    %c2_109 = arith.constant 2 : index
    %c0_110 = arith.constant 0 : index
    %c0_111 = arith.constant 0 : index
    %133 = vector.load %arg4[%c2_109, %c0_110, %c0_111] : memref<9x32x64xbf16, #tpu.memory_space<vmem>>, vector<1x32x64xbf16>
    %134 = vector.shape_cast %133 : vector<1x32x64xbf16> to vector<32x64xbf16>
    %cst_112 = arith.constant dense<0.000000e+00> : vector<64x64xf32>
    %135 = tpu.matmul %132, %134, %cst_112 {dimension_numbers = #tpu.dot_dimension_numbers<[1], [0], [0], [1], [0, 0, 1, 1], [], []>} : vector<64x32xbf16>, vector<32x64xbf16>, vector<64x64xf32> -> vector<64x64xf32>
    %136 = arith.addf %130, %135 : vector<64x64xf32>
    %c79 = arith.constant 79 : index
    %c0_113 = arith.constant 0 : index
    %137 = vector.load %arg19[%c79, %c0_113] : memref<288x32xf32, #tpu.memory_space<vmem>>, vector<64x32xf32>
    %138 = arith.truncf %137 : vector<64x32xf32> to vector<64x32xbf16>
    %c3_114 = arith.constant 3 : index
    %c0_115 = arith.constant 0 : index
    %c0_116 = arith.constant 0 : index
    %139 = vector.load %arg4[%c3_114, %c0_115, %c0_116] : memref<9x32x64xbf16, #tpu.memory_space<vmem>>, vector<1x32x64xbf16>
    %140 = vector.shape_cast %139 : vector<1x32x64xbf16> to vector<32x64xbf16>
    %cst_117 = arith.constant dense<0.000000e+00> : vector<64x64xf32>
    %141 = tpu.matmul %138, %140, %cst_117 {dimension_numbers = #tpu.dot_dimension_numbers<[1], [0], [0], [1], [0, 0, 1, 1], [], []>} : vector<64x32xbf16>, vector<32x64xbf16>, vector<64x64xf32> -> vector<64x64xf32>
    %142 = arith.addf %136, %141 : vector<64x64xf32>
    %c80_118 = arith.constant 80 : index
    %c0_119 = arith.constant 0 : index
    %143 = vector.load %arg19[%c80_118, %c0_119] : memref<288x32xf32, #tpu.memory_space<vmem>>, vector<64x32xf32>
    %144 = arith.truncf %143 : vector<64x32xf32> to vector<64x32xbf16>
    %c4_120 = arith.constant 4 : index
    %c0_121 = arith.constant 0 : index
    %c0_122 = arith.constant 0 : index
    %145 = vector.load %arg4[%c4_120, %c0_121, %c0_122] : memref<9x32x64xbf16, #tpu.memory_space<vmem>>, vector<1x32x64xbf16>
    %146 = vector.shape_cast %145 : vector<1x32x64xbf16> to vector<32x64xbf16>
    %cst_123 = arith.constant dense<0.000000e+00> : vector<64x64xf32>
    %147 = tpu.matmul %144, %146, %cst_123 {dimension_numbers = #tpu.dot_dimension_numbers<[1], [0], [0], [1], [0, 0, 1, 1], [], []>} : vector<64x32xbf16>, vector<32x64xbf16>, vector<64x64xf32> -> vector<64x64xf32>
    %148 = arith.addf %142, %147 : vector<64x64xf32>
    %c81 = arith.constant 81 : index
    %c0_124 = arith.constant 0 : index
    %149 = vector.load %arg19[%c81, %c0_124] : memref<288x32xf32, #tpu.memory_space<vmem>>, vector<64x32xf32>
    %150 = arith.truncf %149 : vector<64x32xf32> to vector<64x32xbf16>
    %c5_125 = arith.constant 5 : index
    %c0_126 = arith.constant 0 : index
    %c0_127 = arith.constant 0 : index
    %151 = vector.load %arg4[%c5_125, %c0_126, %c0_127] : memref<9x32x64xbf16, #tpu.memory_space<vmem>>, vector<1x32x64xbf16>
    %152 = vector.shape_cast %151 : vector<1x32x64xbf16> to vector<32x64xbf16>
    %cst_128 = arith.constant dense<0.000000e+00> : vector<64x64xf32>
    %153 = tpu.matmul %150, %152, %cst_128 {dimension_numbers = #tpu.dot_dimension_numbers<[1], [0], [0], [1], [0, 0, 1, 1], [], []>} : vector<64x32xbf16>, vector<32x64xbf16>, vector<64x64xf32> -> vector<64x64xf32>
    %154 = arith.addf %148, %153 : vector<64x64xf32>
    %c90 = arith.constant 90 : index
    %c0_129 = arith.constant 0 : index
    %155 = vector.load %arg19[%c90, %c0_129] : memref<288x32xf32, #tpu.memory_space<vmem>>, vector<64x32xf32>
    %156 = arith.truncf %155 : vector<64x32xf32> to vector<64x32xbf16>
    %c6_130 = arith.constant 6 : index
    %c0_131 = arith.constant 0 : index
    %c0_132 = arith.constant 0 : index
    %157 = vector.load %arg4[%c6_130, %c0_131, %c0_132] : memref<9x32x64xbf16, #tpu.memory_space<vmem>>, vector<1x32x64xbf16>
    %158 = vector.shape_cast %157 : vector<1x32x64xbf16> to vector<32x64xbf16>
    %cst_133 = arith.constant dense<0.000000e+00> : vector<64x64xf32>
    %159 = tpu.matmul %156, %158, %cst_133 {dimension_numbers = #tpu.dot_dimension_numbers<[1], [0], [0], [1], [0, 0, 1, 1], [], []>} : vector<64x32xbf16>, vector<32x64xbf16>, vector<64x64xf32> -> vector<64x64xf32>
    %160 = arith.addf %154, %159 : vector<64x64xf32>
    %c91 = arith.constant 91 : index
    %c0_134 = arith.constant 0 : index
    %161 = vector.load %arg19[%c91, %c0_134] : memref<288x32xf32, #tpu.memory_space<vmem>>, vector<64x32xf32>
    %162 = arith.truncf %161 : vector<64x32xf32> to vector<64x32xbf16>
    %c7_135 = arith.constant 7 : index
    %c0_136 = arith.constant 0 : index
    %c0_137 = arith.constant 0 : index
    %163 = vector.load %arg4[%c7_135, %c0_136, %c0_137] : memref<9x32x64xbf16, #tpu.memory_space<vmem>>, vector<1x32x64xbf16>
    %164 = vector.shape_cast %163 : vector<1x32x64xbf16> to vector<32x64xbf16>
    %cst_138 = arith.constant dense<0.000000e+00> : vector<64x64xf32>
    %165 = tpu.matmul %162, %164, %cst_138 {dimension_numbers = #tpu.dot_dimension_numbers<[1], [0], [0], [1], [0, 0, 1, 1], [], []>} : vector<64x32xbf16>, vector<32x64xbf16>, vector<64x64xf32> -> vector<64x64xf32>
    %166 = arith.addf %160, %165 : vector<64x64xf32>
    %c92 = arith.constant 92 : index
    %c0_139 = arith.constant 0 : index
    %167 = vector.load %arg19[%c92, %c0_139] : memref<288x32xf32, #tpu.memory_space<vmem>>, vector<64x32xf32>
    %168 = arith.truncf %167 : vector<64x32xf32> to vector<64x32xbf16>
    %c8_140 = arith.constant 8 : index
    %c0_141 = arith.constant 0 : index
    %c0_142 = arith.constant 0 : index
    %169 = vector.load %arg4[%c8_140, %c0_141, %c0_142] : memref<9x32x64xbf16, #tpu.memory_space<vmem>>, vector<1x32x64xbf16>
    %170 = vector.shape_cast %169 : vector<1x32x64xbf16> to vector<32x64xbf16>
    %cst_143 = arith.constant dense<0.000000e+00> : vector<64x64xf32>
    %171 = tpu.matmul %168, %170, %cst_143 {dimension_numbers = #tpu.dot_dimension_numbers<[1], [0], [0], [1], [0, 0, 1, 1], [], []>} : vector<64x32xbf16>, vector<32x64xbf16>, vector<64x64xf32> -> vector<64x64xf32>
    %172 = arith.addf %166, %171 : vector<64x64xf32>
    %c0_144 = arith.constant 0 : index
    %c0_145 = arith.constant 0 : index
    %173 = vector.load %arg5[%c0_144, %c0_145] : memref<1x64xf32, #tpu.memory_space<vmem>>, vector<1x64xf32>
    %174 = vector.broadcast %173 : vector<1x64xf32> to vector<64x64xf32>
    %175 = arith.addf %172, %174 : vector<64x64xf32>
    %cst_146 = arith.constant 0.000000e+00 : f32
    %176 = vector.broadcast %cst_146 : f32 to vector<64x64xf32>
    %177 = arith.maximumf %175, %176 : vector<64x64xf32>
    %c64_147 = arith.constant 64 : index
    %c0_148 = arith.constant 0 : index
    %178 = vector.load %arg1[%c64_147, %c0_148] : memref<256x1xf32, #tpu.memory_space<vmem>>, vector<64x1xf32>
    %179 = vector.broadcast %178 : vector<64x1xf32> to vector<64x64xf32>
    %180 = arith.mulf %177, %179 : vector<64x64xf32>
    %c80_149 = arith.constant 80 : index
    %c0_150 = arith.constant 0 : index
    %181 = vector.load %arg20[%c80_149, %c0_150] : memref<288x64xf32, #tpu.memory_space<vmem>>, vector<64x64xf32>
    tpu.vector_store %arg20[%c80_149, %c0_150], %180 {strides = array<i32>} : memref<288x64xf32, #tpu.memory_space<vmem>>, vector<64x64xf32>,
    %cst_151 = arith.constant 0.000000e+00 : f32
    %182 = vector.broadcast %cst_151 : f32 to vector<64x64xf32>
    %c132 = arith.constant 132 : index
    %c0_152 = arith.constant 0 : index
    %183 = vector.load %arg19[%c132, %c0_152] : memref<288x32xf32, #tpu.memory_space<vmem>>, vector<64x32xf32>
    %184 = arith.truncf %183 : vector<64x32xf32> to vector<64x32xbf16>
    %c0_153 = arith.constant 0 : index
    %c0_154 = arith.constant 0 : index
    %c0_155 = arith.constant 0 : index
    %185 = vector.load %arg4[%c0_153, %c0_154, %c0_155] : memref<9x32x64xbf16, #tpu.memory_space<vmem>>, vector<1x32x64xbf16>
    %186 = vector.shape_cast %185 : vector<1x32x64xbf16> to vector<32x64xbf16>
    %cst_156 = arith.constant dense<0.000000e+00> : vector<64x64xf32>
    %187 = tpu.matmul %184, %186, %cst_156 {dimension_numbers = #tpu.dot_dimension_numbers<[1], [0], [0], [1], [0, 0, 1, 1], [], []>} : vector<64x32xbf16>, vector<32x64xbf16>, vector<64x64xf32> -> vector<64x64xf32>
    %188 = arith.addf %182, %187 : vector<64x64xf32>
    %c133 = arith.constant 133 : index
    %c0_157 = arith.constant 0 : index
    %189 = vector.load %arg19[%c133, %c0_157] : memref<288x32xf32, #tpu.memory_space<vmem>>, vector<64x32xf32>
    %190 = arith.truncf %189 : vector<64x32xf32> to vector<64x32xbf16>
    %c1_158 = arith.constant 1 : index
    %c0_159 = arith.constant 0 : index
    %c0_160 = arith.constant 0 : index
    %191 = vector.load %arg4[%c1_158, %c0_159, %c0_160] : memref<9x32x64xbf16, #tpu.memory_space<vmem>>, vector<1x32x64xbf16>
    %192 = vector.shape_cast %191 : vector<1x32x64xbf16> to vector<32x64xbf16>
    %cst_161 = arith.constant dense<0.000000e+00> : vector<64x64xf32>
    %193 = tpu.matmul %190, %192, %cst_161 {dimension_numbers = #tpu.dot_dimension_numbers<[1], [0], [0], [1], [0, 0, 1, 1], [], []>} : vector<64x32xbf16>, vector<32x64xbf16>, vector<64x64xf32> -> vector<64x64xf32>
    %194 = arith.addf %188, %193 : vector<64x64xf32>
    %c134 = arith.constant 134 : index
    %c0_162 = arith.constant 0 : index
    %195 = vector.load %arg19[%c134, %c0_162] : memref<288x32xf32, #tpu.memory_space<vmem>>, vector<64x32xf32>
    %196 = arith.truncf %195 : vector<64x32xf32> to vector<64x32xbf16>
    %c2_163 = arith.constant 2 : index
    %c0_164 = arith.constant 0 : index
    %c0_165 = arith.constant 0 : index
    %197 = vector.load %arg4[%c2_163, %c0_164, %c0_165] : memref<9x32x64xbf16, #tpu.memory_space<vmem>>, vector<1x32x64xbf16>
    %198 = vector.shape_cast %197 : vector<1x32x64xbf16> to vector<32x64xbf16>
    %cst_166 = arith.constant dense<0.000000e+00> : vector<64x64xf32>
    %199 = tpu.matmul %196, %198, %cst_166 {dimension_numbers = #tpu.dot_dimension_numbers<[1], [0], [0], [1], [0, 0, 1, 1], [], []>} : vector<64x32xbf16>, vector<32x64xbf16>, vector<64x64xf32> -> vector<64x64xf32>
    %200 = arith.addf %194, %199 : vector<64x64xf32>
    %c143 = arith.constant 143 : index
    %c0_167 = arith.constant 0 : index
    %201 = vector.load %arg19[%c143, %c0_167] : memref<288x32xf32, #tpu.memory_space<vmem>>, vector<64x32xf32>
    %202 = arith.truncf %201 : vector<64x32xf32> to vector<64x32xbf16>
    %c3_168 = arith.constant 3 : index
    %c0_169 = arith.constant 0 : index
    %c0_170 = arith.constant 0 : index
    %203 = vector.load %arg4[%c3_168, %c0_169, %c0_170] : memref<9x32x64xbf16, #tpu.memory_space<vmem>>, vector<1x32x64xbf16>
    %204 = vector.shape_cast %203 : vector<1x32x64xbf16> to vector<32x64xbf16>
    %cst_171 = arith.constant dense<0.000000e+00> : vector<64x64xf32>
    %205 = tpu.matmul %202, %204, %cst_171 {dimension_numbers = #tpu.dot_dimension_numbers<[1], [0], [0], [1], [0, 0, 1, 1], [], []>} : vector<64x32xbf16>, vector<32x64xbf16>, vector<64x64xf32> -> vector<64x64xf32>
    %206 = arith.addf %200, %205 : vector<64x64xf32>
    %c144_172 = arith.constant 144 : index
    %c0_173 = arith.constant 0 : index
    %207 = vector.load %arg19[%c144_172, %c0_173] : memref<288x32xf32, #tpu.memory_space<vmem>>, vector<64x32xf32>
    %208 = arith.truncf %207 : vector<64x32xf32> to vector<64x32xbf16>
    %c4_174 = arith.constant 4 : index
    %c0_175 = arith.constant 0 : index
    %c0_176 = arith.constant 0 : index
    %209 = vector.load %arg4[%c4_174, %c0_175, %c0_176] : memref<9x32x64xbf16, #tpu.memory_space<vmem>>, vector<1x32x64xbf16>
    %210 = vector.shape_cast %209 : vector<1x32x64xbf16> to vector<32x64xbf16>
    %cst_177 = arith.constant dense<0.000000e+00> : vector<64x64xf32>
    %211 = tpu.matmul %208, %210, %cst_177 {dimension_numbers = #tpu.dot_dimension_numbers<[1], [0], [0], [1], [0, 0, 1, 1], [], []>} : vector<64x32xbf16>, vector<32x64xbf16>, vector<64x64xf32> -> vector<64x64xf32>
    %212 = arith.addf %206, %211 : vector<64x64xf32>
    %c145 = arith.constant 145 : index
    %c0_178 = arith.constant 0 : index
    %213 = vector.load %arg19[%c145, %c0_178] : memref<288x32xf32, #tpu.memory_space<vmem>>, vector<64x32xf32>
    %214 = arith.truncf %213 : vector<64x32xf32> to vector<64x32xbf16>
    %c5_179 = arith.constant 5 : index
    %c0_180 = arith.constant 0 : index
    %c0_181 = arith.constant 0 : index
    %215 = vector.load %arg4[%c5_179, %c0_180, %c0_181] : memref<9x32x64xbf16, #tpu.memory_space<vmem>>, vector<1x32x64xbf16>
    %216 = vector.shape_cast %215 : vector<1x32x64xbf16> to vector<32x64xbf16>
    %cst_182 = arith.constant dense<0.000000e+00> : vector<64x64xf32>
    %217 = tpu.matmul %214, %216, %cst_182 {dimension_numbers = #tpu.dot_dimension_numbers<[1], [0], [0], [1], [0, 0, 1, 1], [], []>} : vector<64x32xbf16>, vector<32x64xbf16>, vector<64x64xf32> -> vector<64x64xf32>
    %218 = arith.addf %212, %217 : vector<64x64xf32>
    %c154 = arith.constant 154 : index
    %c0_183 = arith.constant 0 : index
    %219 = vector.load %arg19[%c154, %c0_183] : memref<288x32xf32, #tpu.memory_space<vmem>>, vector<64x32xf32>
    %220 = arith.truncf %219 : vector<64x32xf32> to vector<64x32xbf16>
    %c6_184 = arith.constant 6 : index
    %c0_185 = arith.constant 0 : index
    %c0_186 = arith.constant 0 : index
    %221 = vector.load %arg4[%c6_184, %c0_185, %c0_186] : memref<9x32x64xbf16, #tpu.memory_space<vmem>>, vector<1x32x64xbf16>
    %222 = vector.shape_cast %221 : vector<1x32x64xbf16> to vector<32x64xbf16>
    %cst_187 = arith.constant dense<0.000000e+00> : vector<64x64xf32>
    %223 = tpu.matmul %220, %222, %cst_187 {dimension_numbers = #tpu.dot_dimension_numbers<[1], [0], [0], [1], [0, 0, 1, 1], [], []>} : vector<64x32xbf16>, vector<32x64xbf16>, vector<64x64xf32> -> vector<64x64xf32>
    %224 = arith.addf %218, %223 : vector<64x64xf32>
    %c155 = arith.constant 155 : index
    %c0_188 = arith.constant 0 : index
    %225 = vector.load %arg19[%c155, %c0_188] : memref<288x32xf32, #tpu.memory_space<vmem>>, vector<64x32xf32>
    %226 = arith.truncf %225 : vector<64x32xf32> to vector<64x32xbf16>
    %c7_189 = arith.constant 7 : index
    %c0_190 = arith.constant 0 : index
    %c0_191 = arith.constant 0 : index
    %227 = vector.load %arg4[%c7_189, %c0_190, %c0_191] : memref<9x32x64xbf16, #tpu.memory_space<vmem>>, vector<1x32x64xbf16>
    %228 = vector.shape_cast %227 : vector<1x32x64xbf16> to vector<32x64xbf16>
    %cst_192 = arith.constant dense<0.000000e+00> : vector<64x64xf32>
    %229 = tpu.matmul %226, %228, %cst_192 {dimension_numbers = #tpu.dot_dimension_numbers<[1], [0], [0], [1], [0, 0, 1, 1], [], []>} : vector<64x32xbf16>, vector<32x64xbf16>, vector<64x64xf32> -> vector<64x64xf32>
    %230 = arith.addf %224, %229 : vector<64x64xf32>
    %c156 = arith.constant 156 : index
    %c0_193 = arith.constant 0 : index
    %231 = vector.load %arg19[%c156, %c0_193] : memref<288x32xf32, #tpu.memory_space<vmem>>, vector<64x32xf32>
    %232 = arith.truncf %231 : vector<64x32xf32> to vector<64x32xbf16>
    %c8_194 = arith.constant 8 : index
    %c0_195 = arith.constant 0 : index
    %c0_196 = arith.constant 0 : index
    %233 = vector.load %arg4[%c8_194, %c0_195, %c0_196] : memref<9x32x64xbf16, #tpu.memory_space<vmem>>, vector<1x32x64xbf16>
    %234 = vector.shape_cast %233 : vector<1x32x64xbf16> to vector<32x64xbf16>
    %cst_197 = arith.constant dense<0.000000e+00> : vector<64x64xf32>
    %235 = tpu.matmul %232, %234, %cst_197 {dimension_numbers = #tpu.dot_dimension_numbers<[1], [0], [0], [1], [0, 0, 1, 1], [], []>} : vector<64x32xbf16>, vector<32x64xbf16>, vector<64x64xf32> -> vector<64x64xf32>
    %236 = arith.addf %230, %235 : vector<64x64xf32>
    %c0_198 = arith.constant 0 : index
    %c0_199 = arith.constant 0 : index
    %237 = vector.load %arg5[%c0_198, %c0_199] : memref<1x64xf32, #tpu.memory_space<vmem>>, vector<1x64xf32>
    %238 = vector.broadcast %237 : vector<1x64xf32> to vector<64x64xf32>
    %239 = arith.addf %236, %238 : vector<64x64xf32>
    %cst_200 = arith.constant 0.000000e+00 : f32
    %240 = vector.broadcast %cst_200 : f32 to vector<64x64xf32>
    %241 = arith.maximumf %239, %240 : vector<64x64xf32>
    %c128_201 = arith.constant 128 : index
    %c0_202 = arith.constant 0 : index
    %242 = vector.load %arg1[%c128_201, %c0_202] : memref<256x1xf32, #tpu.memory_space<vmem>>, vector<64x1xf32>
    %243 = vector.broadcast %242 : vector<64x1xf32> to vector<64x64xf32>
    %244 = arith.mulf %241, %243 : vector<64x64xf32>
    %c144_203 = arith.constant 144 : index
    %c0_204 = arith.constant 0 : index
    %245 = vector.load %arg20[%c144_203, %c0_204] : memref<288x64xf32, #tpu.memory_space<vmem>>, vector<64x64xf32>
    tpu.vector_store %arg20[%c144_203, %c0_204], %244 {strides = array<i32>} : memref<288x64xf32, #tpu.memory_space<vmem>>, vector<64x64xf32>,
    %cst_205 = arith.constant 0.000000e+00 : f32
    %246 = vector.broadcast %cst_205 : f32 to vector<64x64xf32>
    %c196 = arith.constant 196 : index
    %c0_206 = arith.constant 0 : index
    %247 = vector.load %arg19[%c196, %c0_206] : memref<288x32xf32, #tpu.memory_space<vmem>>, vector<64x32xf32>
    %248 = arith.truncf %247 : vector<64x32xf32> to vector<64x32xbf16>
    %c0_207 = arith.constant 0 : index
    %c0_208 = arith.constant 0 : index
    %c0_209 = arith.constant 0 : index
    %249 = vector.load %arg4[%c0_207, %c0_208, %c0_209] : memref<9x32x64xbf16, #tpu.memory_space<vmem>>, vector<1x32x64xbf16>
    %250 = vector.shape_cast %249 : vector<1x32x64xbf16> to vector<32x64xbf16>
    %cst_210 = arith.constant dense<0.000000e+00> : vector<64x64xf32>
    %251 = tpu.matmul %248, %250, %cst_210 {dimension_numbers = #tpu.dot_dimension_numbers<[1], [0], [0], [1], [0, 0, 1, 1], [], []>} : vector<64x32xbf16>, vector<32x64xbf16>, vector<64x64xf32> -> vector<64x64xf32>
    %252 = arith.addf %246, %251 : vector<64x64xf32>
    %c197 = arith.constant 197 : index
    %c0_211 = arith.constant 0 : index
    %253 = vector.load %arg19[%c197, %c0_211] : memref<288x32xf32, #tpu.memory_space<vmem>>, vector<64x32xf32>
    %254 = arith.truncf %253 : vector<64x32xf32> to vector<64x32xbf16>
    %c1_212 = arith.constant 1 : index
    %c0_213 = arith.constant 0 : index
    %c0_214 = arith.constant 0 : index
    %255 = vector.load %arg4[%c1_212, %c0_213, %c0_214] : memref<9x32x64xbf16, #tpu.memory_space<vmem>>, vector<1x32x64xbf16>
    %256 = vector.shape_cast %255 : vector<1x32x64xbf16> to vector<32x64xbf16>
    %cst_215 = arith.constant dense<0.000000e+00> : vector<64x64xf32>
    %257 = tpu.matmul %254, %256, %cst_215 {dimension_numbers = #tpu.dot_dimension_numbers<[1], [0], [0], [1], [0, 0, 1, 1], [], []>} : vector<64x32xbf16>, vector<32x64xbf16>, vector<64x64xf32> -> vector<64x64xf32>
    %258 = arith.addf %252, %257 : vector<64x64xf32>
    %c198 = arith.constant 198 : index
    %c0_216 = arith.constant 0 : index
    %259 = vector.load %arg19[%c198, %c0_216] : memref<288x32xf32, #tpu.memory_space<vmem>>, vector<64x32xf32>
    %260 = arith.truncf %259 : vector<64x32xf32> to vector<64x32xbf16>
    %c2_217 = arith.constant 2 : index
    %c0_218 = arith.constant 0 : index
    %c0_219 = arith.constant 0 : index
    %261 = vector.load %arg4[%c2_217, %c0_218, %c0_219] : memref<9x32x64xbf16, #tpu.memory_space<vmem>>, vector<1x32x64xbf16>
    %262 = vector.shape_cast %261 : vector<1x32x64xbf16> to vector<32x64xbf16>
    %cst_220 = arith.constant dense<0.000000e+00> : vector<64x64xf32>
    %263 = tpu.matmul %260, %262, %cst_220 {dimension_numbers = #tpu.dot_dimension_numbers<[1], [0], [0], [1], [0, 0, 1, 1], [], []>} : vector<64x32xbf16>, vector<32x64xbf16>, vector<64x64xf32> -> vector<64x64xf32>
    %264 = arith.addf %258, %263 : vector<64x64xf32>
    %c207 = arith.constant 207 : index
    %c0_221 = arith.constant 0 : index
    %265 = vector.load %arg19[%c207, %c0_221] : memref<288x32xf32, #tpu.memory_space<vmem>>, vector<64x32xf32>
    %266 = arith.truncf %265 : vector<64x32xf32> to vector<64x32xbf16>
    %c3_222 = arith.constant 3 : index
    %c0_223 = arith.constant 0 : index
    %c0_224 = arith.constant 0 : index
    %267 = vector.load %arg4[%c3_222, %c0_223, %c0_224] : memref<9x32x64xbf16, #tpu.memory_space<vmem>>, vector<1x32x64xbf16>
    %268 = vector.shape_cast %267 : vector<1x32x64xbf16> to vector<32x64xbf16>
    %cst_225 = arith.constant dense<0.000000e+00> : vector<64x64xf32>
    %269 = tpu.matmul %266, %268, %cst_225 {dimension_numbers = #tpu.dot_dimension_numbers<[1], [0], [0], [1], [0, 0, 1, 1], [], []>} : vector<64x32xbf16>, vector<32x64xbf16>, vector<64x64xf32> -> vector<64x64xf32>
    %270 = arith.addf %264, %269 : vector<64x64xf32>
    %c208_226 = arith.constant 208 : index
    %c0_227 = arith.constant 0 : index
    %271 = vector.load %arg19[%c208_226, %c0_227] : memref<288x32xf32, #tpu.memory_space<vmem>>, vector<64x32xf32>
    %272 = arith.truncf %271 : vector<64x32xf32> to vector<64x32xbf16>
    %c4_228 = arith.constant 4 : index
    %c0_229 = arith.constant 0 : index
    %c0_230 = arith.constant 0 : index
    %273 = vector.load %arg4[%c4_228, %c0_229, %c0_230] : memref<9x32x64xbf16, #tpu.memory_space<vmem>>, vector<1x32x64xbf16>
    %274 = vector.shape_cast %273 : vector<1x32x64xbf16> to vector<32x64xbf16>
    %cst_231 = arith.constant dense<0.000000e+00> : vector<64x64xf32>
    %275 = tpu.matmul %272, %274, %cst_231 {dimension_numbers = #tpu.dot_dimension_numbers<[1], [0], [0], [1], [0, 0, 1, 1], [], []>} : vector<64x32xbf16>, vector<32x64xbf16>, vector<64x64xf32> -> vector<64x64xf32>
    %276 = arith.addf %270, %275 : vector<64x64xf32>
    %c209 = arith.constant 209 : index
    %c0_232 = arith.constant 0 : index
    %277 = vector.load %arg19[%c209, %c0_232] : memref<288x32xf32, #tpu.memory_space<vmem>>, vector<64x32xf32>
    %278 = arith.truncf %277 : vector<64x32xf32> to vector<64x32xbf16>
    %c5_233 = arith.constant 5 : index
    %c0_234 = arith.constant 0 : index
    %c0_235 = arith.constant 0 : index
    %279 = vector.load %arg4[%c5_233, %c0_234, %c0_235] : memref<9x32x64xbf16, #tpu.memory_space<vmem>>, vector<1x32x64xbf16>
    %280 = vector.shape_cast %279 : vector<1x32x64xbf16> to vector<32x64xbf16>
    %cst_236 = arith.constant dense<0.000000e+00> : vector<64x64xf32>
    %281 = tpu.matmul %278, %280, %cst_236 {dimension_numbers = #tpu.dot_dimension_numbers<[1], [0], [0], [1], [0, 0, 1, 1], [], []>} : vector<64x32xbf16>, vector<32x64xbf16>, vector<64x64xf32> -> vector<64x64xf32>
    %282 = arith.addf %276, %281 : vector<64x64xf32>
    %c218 = arith.constant 218 : index
    %c0_237 = arith.constant 0 : index
    %283 = vector.load %arg19[%c218, %c0_237] : memref<288x32xf32, #tpu.memory_space<vmem>>, vector<64x32xf32>
    %284 = arith.truncf %283 : vector<64x32xf32> to vector<64x32xbf16>
    %c6_238 = arith.constant 6 : index
    %c0_239 = arith.constant 0 : index
    %c0_240 = arith.constant 0 : index
    %285 = vector.load %arg4[%c6_238, %c0_239, %c0_240] : memref<9x32x64xbf16, #tpu.memory_space<vmem>>, vector<1x32x64xbf16>
    %286 = vector.shape_cast %285 : vector<1x32x64xbf16> to vector<32x64xbf16>
    %cst_241 = arith.constant dense<0.000000e+00> : vector<64x64xf32>
    %287 = tpu.matmul %284, %286, %cst_241 {dimension_numbers = #tpu.dot_dimension_numbers<[1], [0], [0], [1], [0, 0, 1, 1], [], []>} : vector<64x32xbf16>, vector<32x64xbf16>, vector<64x64xf32> -> vector<64x64xf32>
    %288 = arith.addf %282, %287 : vector<64x64xf32>
    %c219 = arith.constant 219 : index
    %c0_242 = arith.constant 0 : index
    %289 = vector.load %arg19[%c219, %c0_242] : memref<288x32xf32, #tpu.memory_space<vmem>>, vector<64x32xf32>
    %290 = arith.truncf %289 : vector<64x32xf32> to vector<64x32xbf16>
    %c7_243 = arith.constant 7 : index
    %c0_244 = arith.constant 0 : index
    %c0_245 = arith.constant 0 : index
    %291 = vector.load %arg4[%c7_243, %c0_244, %c0_245] : memref<9x32x64xbf16, #tpu.memory_space<vmem>>, vector<1x32x64xbf16>
    %292 = vector.shape_cast %291 : vector<1x32x64xbf16> to vector<32x64xbf16>
    %cst_246 = arith.constant dense<0.000000e+00> : vector<64x64xf32>
    %293 = tpu.matmul %290, %292, %cst_246 {dimension_numbers = #tpu.dot_dimension_numbers<[1], [0], [0], [1], [0, 0, 1, 1], [], []>} : vector<64x32xbf16>, vector<32x64xbf16>, vector<64x64xf32> -> vector<64x64xf32>
    %294 = arith.addf %288, %293 : vector<64x64xf32>
    %c220 = arith.constant 220 : index
    %c0_247 = arith.constant 0 : index
    %295 = vector.load %arg19[%c220, %c0_247] : memref<288x32xf32, #tpu.memory_space<vmem>>, vector<64x32xf32>
    %296 = arith.truncf %295 : vector<64x32xf32> to vector<64x32xbf16>
    %c8_248 = arith.constant 8 : index
    %c0_249 = arith.constant 0 : index
    %c0_250 = arith.constant 0 : index
    %297 = vector.load %arg4[%c8_248, %c0_249, %c0_250] : memref<9x32x64xbf16, #tpu.memory_space<vmem>>, vector<1x32x64xbf16>
    %298 = vector.shape_cast %297 : vector<1x32x64xbf16> to vector<32x64xbf16>
    %cst_251 = arith.constant dense<0.000000e+00> : vector<64x64xf32>
    %299 = tpu.matmul %296, %298, %cst_251 {dimension_numbers = #tpu.dot_dimension_numbers<[1], [0], [0], [1], [0, 0, 1, 1], [], []>} : vector<64x32xbf16>, vector<32x64xbf16>, vector<64x64xf32> -> vector<64x64xf32>
    %300 = arith.addf %294, %299 : vector<64x64xf32>
    %c0_252 = arith.constant 0 : index
    %c0_253 = arith.constant 0 : index
    %301 = vector.load %arg5[%c0_252, %c0_253] : memref<1x64xf32, #tpu.memory_space<vmem>>, vector<1x64xf32>
    %302 = vector.broadcast %301 : vector<1x64xf32> to vector<64x64xf32>
    %303 = arith.addf %300, %302 : vector<64x64xf32>
    %cst_254 = arith.constant 0.000000e+00 : f32
    %304 = vector.broadcast %cst_254 : f32 to vector<64x64xf32>
    %305 = arith.maximumf %303, %304 : vector<64x64xf32>
    %c192_255 = arith.constant 192 : index
    %c0_256 = arith.constant 0 : index
    %306 = vector.load %arg1[%c192_255, %c0_256] : memref<256x1xf32, #tpu.memory_space<vmem>>, vector<64x1xf32>
    %307 = vector.broadcast %306 : vector<64x1xf32> to vector<64x64xf32>
    %308 = arith.mulf %305, %307 : vector<64x64xf32>
    %c208_257 = arith.constant 208 : index
    %c0_258 = arith.constant 0 : index
    %309 = vector.load %arg20[%c208_257, %c0_258] : memref<288x64xf32, #tpu.memory_space<vmem>>, vector<64x64xf32>
    tpu.vector_store %arg20[%c208_257, %c0_258], %308 {strides = array<i32>} : memref<288x64xf32, #tpu.memory_space<vmem>>, vector<64x64xf32>,
    %cst_259 = arith.constant 0.000000e+00 : f32
    %310 = vector.broadcast %cst_259 : f32 to vector<64x64xf32>
    %c4_260 = arith.constant 4 : index
    %c0_261 = arith.constant 0 : index
    %311 = vector.load %arg20[%c4_260, %c0_261] : memref<288x64xf32, #tpu.memory_space<vmem>>, vector<64x64xf32>
    %312 = arith.truncf %311 : vector<64x64xf32> to vector<64x64xbf16>
    %c0_262 = arith.constant 0 : index
    %c0_263 = arith.constant 0 : index
    %c0_264 = arith.constant 0 : index
    %313 = vector.load %arg6[%c0_262, %c0_263, %c0_264] : memref<9x64x64xbf16, #tpu.memory_space<vmem>>, vector<1x64x64xbf16>
    %314 = vector.shape_cast %313 : vector<1x64x64xbf16> to vector<64x64xbf16>
    %cst_265 = arith.constant dense<0.000000e+00> : vector<64x64xf32>
    %315 = tpu.matmul %312, %314, %cst_265 {dimension_numbers = #tpu.dot_dimension_numbers<[1], [0], [0], [1], [0, 0, 1, 1], [], []>} : vector<64x64xbf16>, vector<64x64xbf16>, vector<64x64xf32> -> vector<64x64xf32>
    %316 = arith.addf %310, %315 : vector<64x64xf32>
    %c5_266 = arith.constant 5 : index
    %c0_267 = arith.constant 0 : index
    %317 = vector.load %arg20[%c5_266, %c0_267] : memref<288x64xf32, #tpu.memory_space<vmem>>, vector<64x64xf32>
    %318 = arith.truncf %317 : vector<64x64xf32> to vector<64x64xbf16>
    %c1_268 = arith.constant 1 : index
    %c0_269 = arith.constant 0 : index
    %c0_270 = arith.constant 0 : index
    %319 = vector.load %arg6[%c1_268, %c0_269, %c0_270] : memref<9x64x64xbf16, #tpu.memory_space<vmem>>, vector<1x64x64xbf16>
    %320 = vector.shape_cast %319 : vector<1x64x64xbf16> to vector<64x64xbf16>
    %cst_271 = arith.constant dense<0.000000e+00> : vector<64x64xf32>
    %321 = tpu.matmul %318, %320, %cst_271 {dimension_numbers = #tpu.dot_dimension_numbers<[1], [0], [0], [1], [0, 0, 1, 1], [], []>} : vector<64x64xbf16>, vector<64x64xbf16>, vector<64x64xf32> -> vector<64x64xf32>
    %322 = arith.addf %316, %321 : vector<64x64xf32>
    %c6_272 = arith.constant 6 : index
    %c0_273 = arith.constant 0 : index
    %323 = vector.load %arg20[%c6_272, %c0_273] : memref<288x64xf32, #tpu.memory_space<vmem>>, vector<64x64xf32>
    %324 = arith.truncf %323 : vector<64x64xf32> to vector<64x64xbf16>
    %c2_274 = arith.constant 2 : index
    %c0_275 = arith.constant 0 : index
    %c0_276 = arith.constant 0 : index
    %325 = vector.load %arg6[%c2_274, %c0_275, %c0_276] : memref<9x64x64xbf16, #tpu.memory_space<vmem>>, vector<1x64x64xbf16>
    %326 = vector.shape_cast %325 : vector<1x64x64xbf16> to vector<64x64xbf16>
    %cst_277 = arith.constant dense<0.000000e+00> : vector<64x64xf32>
    %327 = tpu.matmul %324, %326, %cst_277 {dimension_numbers = #tpu.dot_dimension_numbers<[1], [0], [0], [1], [0, 0, 1, 1], [], []>} : vector<64x64xbf16>, vector<64x64xbf16>, vector<64x64xf32> -> vector<64x64xf32>
    %328 = arith.addf %322, %327 : vector<64x64xf32>
    %c15_278 = arith.constant 15 : index
    %c0_279 = arith.constant 0 : index
    %329 = vector.load %arg20[%c15_278, %c0_279] : memref<288x64xf32, #tpu.memory_space<vmem>>, vector<64x64xf32>
    %330 = arith.truncf %329 : vector<64x64xf32> to vector<64x64xbf16>
    %c3_280 = arith.constant 3 : index
    %c0_281 = arith.constant 0 : index
    %c0_282 = arith.constant 0 : index
    %331 = vector.load %arg6[%c3_280, %c0_281, %c0_282] : memref<9x64x64xbf16, #tpu.memory_space<vmem>>, vector<1x64x64xbf16>
    %332 = vector.shape_cast %331 : vector<1x64x64xbf16> to vector<64x64xbf16>
    %cst_283 = arith.constant dense<0.000000e+00> : vector<64x64xf32>
    %333 = tpu.matmul %330, %332, %cst_283 {dimension_numbers = #tpu.dot_dimension_numbers<[1], [0], [0], [1], [0, 0, 1, 1], [], []>} : vector<64x64xbf16>, vector<64x64xbf16>, vector<64x64xf32> -> vector<64x64xf32>
    %334 = arith.addf %328, %333 : vector<64x64xf32>
    %c16_284 = arith.constant 16 : index
    %c0_285 = arith.constant 0 : index
    %335 = vector.load %arg20[%c16_284, %c0_285] : memref<288x64xf32, #tpu.memory_space<vmem>>, vector<64x64xf32>
    %336 = arith.truncf %335 : vector<64x64xf32> to vector<64x64xbf16>
    %c4_286 = arith.constant 4 : index
    %c0_287 = arith.constant 0 : index
    %c0_288 = arith.constant 0 : index
    %337 = vector.load %arg6[%c4_286, %c0_287, %c0_288] : memref<9x64x64xbf16, #tpu.memory_space<vmem>>, vector<1x64x64xbf16>
    %338 = vector.shape_cast %337 : vector<1x64x64xbf16> to vector<64x64xbf16>
    %cst_289 = arith.constant dense<0.000000e+00> : vector<64x64xf32>
    %339 = tpu.matmul %336, %338, %cst_289 {dimension_numbers = #tpu.dot_dimension_numbers<[1], [0], [0], [1], [0, 0, 1, 1], [], []>} : vector<64x64xbf16>, vector<64x64xbf16>, vector<64x64xf32> -> vector<64x64xf32>
    %340 = arith.addf %334, %339 : vector<64x64xf32>
    %c17_290 = arith.constant 17 : index
    %c0_291 = arith.constant 0 : index
    %341 = vector.load %arg20[%c17_290, %c0_291] : memref<288x64xf32, #tpu.memory_space<vmem>>, vector<64x64xf32>
    %342 = arith.truncf %341 : vector<64x64xf32> to vector<64x64xbf16>
    %c5_292 = arith.constant 5 : index
    %c0_293 = arith.constant 0 : index
    %c0_294 = arith.constant 0 : index
    %343 = vector.load %arg6[%c5_292, %c0_293, %c0_294] : memref<9x64x64xbf16, #tpu.memory_space<vmem>>, vector<1x64x64xbf16>
    %344 = vector.shape_cast %343 : vector<1x64x64xbf16> to vector<64x64xbf16>
    %cst_295 = arith.constant dense<0.000000e+00> : vector<64x64xf32>
    %345 = tpu.matmul %342, %344, %cst_295 {dimension_numbers = #tpu.dot_dimension_numbers<[1], [0], [0], [1], [0, 0, 1, 1], [], []>} : vector<64x64xbf16>, vector<64x64xbf16>, vector<64x64xf32> -> vector<64x64xf32>
    %346 = arith.addf %340, %345 : vector<64x64xf32>
    %c26_296 = arith.constant 26 : index
    %c0_297 = arith.constant 0 : index
    %347 = vector.load %arg20[%c26_296, %c0_297] : memref<288x64xf32, #tpu.memory_space<vmem>>, vector<64x64xf32>
    %348 = arith.truncf %347 : vector<64x64xf32> to vector<64x64xbf16>
    %c6_298 = arith.constant 6 : index
    %c0_299 = arith.constant 0 : index
    %c0_300 = arith.constant 0 : index
    %349 = vector.load %arg6[%c6_298, %c0_299, %c0_300] : memref<9x64x64xbf16, #tpu.memory_space<vmem>>, vector<1x64x64xbf16>
    %350 = vector.shape_cast %349 : vector<1x64x64xbf16> to vector<64x64xbf16>
    %cst_301 = arith.constant dense<0.000000e+00> : vector<64x64xf32>
    %351 = tpu.matmul %348, %350, %cst_301 {dimension_numbers = #tpu.dot_dimension_numbers<[1], [0], [0], [1], [0, 0, 1, 1], [], []>} : vector<64x64xbf16>, vector<64x64xbf16>, vector<64x64xf32> -> vector<64x64xf32>
    %352 = arith.addf %346, %351 : vector<64x64xf32>
    %c27_302 = arith.constant 27 : index
    %c0_303 = arith.constant 0 : index
    %353 = vector.load %arg20[%c27_302, %c0_303] : memref<288x64xf32, #tpu.memory_space<vmem>>, vector<64x64xf32>
    %354 = arith.truncf %353 : vector<64x64xf32> to vector<64x64xbf16>
    %c7_304 = arith.constant 7 : index
    %c0_305 = arith.constant 0 : index
    %c0_306 = arith.constant 0 : index
    %355 = vector.load %arg6[%c7_304, %c0_305, %c0_306] : memref<9x64x64xbf16, #tpu.memory_space<vmem>>, vector<1x64x64xbf16>
    %356 = vector.shape_cast %355 : vector<1x64x64xbf16> to vector<64x64xbf16>
    %cst_307 = arith.constant dense<0.000000e+00> : vector<64x64xf32>
    %357 = tpu.matmul %354, %356, %cst_307 {dimension_numbers = #tpu.dot_dimension_numbers<[1], [0], [0], [1], [0, 0, 1, 1], [], []>} : vector<64x64xbf16>, vector<64x64xbf16>, vector<64x64xf32> -> vector<64x64xf32>
    %358 = arith.addf %352, %357 : vector<64x64xf32>
    %c28_308 = arith.constant 28 : index
    %c0_309 = arith.constant 0 : index
    %359 = vector.load %arg20[%c28_308, %c0_309] : memref<288x64xf32, #tpu.memory_space<vmem>>, vector<64x64xf32>
    %360 = arith.truncf %359 : vector<64x64xf32> to vector<64x64xbf16>
    %c8_310 = arith.constant 8 : index
    %c0_311 = arith.constant 0 : index
    %c0_312 = arith.constant 0 : index
    %361 = vector.load %arg6[%c8_310, %c0_311, %c0_312] : memref<9x64x64xbf16, #tpu.memory_space<vmem>>, vector<1x64x64xbf16>
    %362 = vector.shape_cast %361 : vector<1x64x64xbf16> to vector<64x64xbf16>
    %cst_313 = arith.constant dense<0.000000e+00> : vector<64x64xf32>
    %363 = tpu.matmul %360, %362, %cst_313 {dimension_numbers = #tpu.dot_dimension_numbers<[1], [0], [0], [1], [0, 0, 1, 1], [], []>} : vector<64x64xbf16>, vector<64x64xbf16>, vector<64x64xf32> -> vector<64x64xf32>
    %364 = arith.addf %358, %363 : vector<64x64xf32>
    %c0_314 = arith.constant 0 : index
    %c0_315 = arith.constant 0 : index
    %365 = vector.load %arg7[%c0_314, %c0_315] : memref<1x64xf32, #tpu.memory_space<vmem>>, vector<1x64xf32>
    %366 = vector.broadcast %365 : vector<1x64xf32> to vector<64x64xf32>
    %367 = arith.addf %364, %366 : vector<64x64xf32>
    %cst_316 = arith.constant 0.000000e+00 : f32
    %368 = vector.broadcast %cst_316 : f32 to vector<64x64xf32>
    %369 = arith.maximumf %367, %368 : vector<64x64xf32>
    %c0_317 = arith.constant 0 : index
    %c0_318 = arith.constant 0 : index
    %370 = vector.load %arg1[%c0_317, %c0_318] : memref<256x1xf32, #tpu.memory_space<vmem>>, vector<64x1xf32>
    %371 = vector.broadcast %370 : vector<64x1xf32> to vector<64x64xf32>
    %372 = arith.mulf %369, %371 : vector<64x64xf32>
    %373 = arith.truncf %372 : vector<64x64xf32> to vector<64x64xbf16>
    %c0_319 = arith.constant 0 : index
    %c0_320 = arith.constant 0 : index
    %374 = vector.load %arg8[%c0_319, %c0_320] : memref<64x3xbf16, #tpu.memory_space<vmem>>, vector<64x3xbf16>
    %cst_321 = arith.constant dense<0.000000e+00> : vector<64x3xf32>
    %375 = tpu.matmul %373, %374, %cst_321 {dimension_numbers = #tpu.dot_dimension_numbers<[1], [0], [0], [1], [0, 0, 1, 1], [], []>} : vector<64x64xbf16>, vector<64x3xbf16>, vector<64x3xf32> -> vector<64x3xf32>
    %c0_322 = arith.constant 0 : index
    %c0_323 = arith.constant 0 : index
    %376 = vector.load %arg9[%c0_322, %c0_323] : memref<1x3xf32, #tpu.memory_space<vmem>>, vector<1x3xf32>
    %377 = vector.broadcast %376 : vector<1x3xf32> to vector<64x3xf32>
    %378 = arith.addf %375, %377 : vector<64x3xf32>
    %cst_324 = arith.constant 0.000000e+00 : f32
    %379 = vector.broadcast %cst_324 : f32 to vector<64x3xf32>
    %380 = arith.maximumf %378, %379 : vector<64x3xf32>
    %c0_325 = arith.constant 0 : index
    %c0_326 = arith.constant 0 : index
    %381 = vector.load %arg21[%c0_325, %c0_326] : memref<256x3xf32, #tpu.memory_space<vmem>>, vector<64x3xf32>
    tpu.vector_store %arg21[%c0_325, %c0_326], %380 {strides = array<i32>} : memref<256x3xf32, #tpu.memory_space<vmem>>, vector<64x3xf32>,
    %cst_327 = arith.constant 0.000000e+00 : f32
    %382 = vector.broadcast %cst_327 : f32 to vector<64x64xf32>
    %c68_328 = arith.constant 68 : index
    %c0_329 = arith.constant 0 : index
    %383 = vector.load %arg20[%c68_328, %c0_329] : memref<288x64xf32, #tpu.memory_space<vmem>>, vector<64x64xf32>
    %384 = arith.truncf %383 : vector<64x64xf32> to vector<64x64xbf16>
    %c0_330 = arith.constant 0 : index
    %c0_331 = arith.constant 0 : index
    %c0_332 = arith.constant 0 : index
    %385 = vector.load %arg6[%c0_330, %c0_331, %c0_332] : memref<9x64x64xbf16, #tpu.memory_space<vmem>>, vector<1x64x64xbf16>
    %386 = vector.shape_cast %385 : vector<1x64x64xbf16> to vector<64x64xbf16>
    %cst_333 = arith.constant dense<0.000000e+00> : vector<64x64xf32>
    %387 = tpu.matmul %384, %386, %cst_333 {dimension_numbers = #tpu.dot_dimension_numbers<[1], [0], [0], [1], [0, 0, 1, 1], [], []>} : vector<64x64xbf16>, vector<64x64xbf16>, vector<64x64xf32> -> vector<64x64xf32>
    %388 = arith.addf %382, %387 : vector<64x64xf32>
    %c69_334 = arith.constant 69 : index
    %c0_335 = arith.constant 0 : index
    %389 = vector.load %arg20[%c69_334, %c0_335] : memref<288x64xf32, #tpu.memory_space<vmem>>, vector<64x64xf32>
    %390 = arith.truncf %389 : vector<64x64xf32> to vector<64x64xbf16>
    %c1_336 = arith.constant 1 : index
    %c0_337 = arith.constant 0 : index
    %c0_338 = arith.constant 0 : index
    %391 = vector.load %arg6[%c1_336, %c0_337, %c0_338] : memref<9x64x64xbf16, #tpu.memory_space<vmem>>, vector<1x64x64xbf16>
    %392 = vector.shape_cast %391 : vector<1x64x64xbf16> to vector<64x64xbf16>
    %cst_339 = arith.constant dense<0.000000e+00> : vector<64x64xf32>
    %393 = tpu.matmul %390, %392, %cst_339 {dimension_numbers = #tpu.dot_dimension_numbers<[1], [0], [0], [1], [0, 0, 1, 1], [], []>} : vector<64x64xbf16>, vector<64x64xbf16>, vector<64x64xf32> -> vector<64x64xf32>
    %394 = arith.addf %388, %393 : vector<64x64xf32>
    %c70_340 = arith.constant 70 : index
    %c0_341 = arith.constant 0 : index
    %395 = vector.load %arg20[%c70_340, %c0_341] : memref<288x64xf32, #tpu.memory_space<vmem>>, vector<64x64xf32>
    %396 = arith.truncf %395 : vector<64x64xf32> to vector<64x64xbf16>
    %c2_342 = arith.constant 2 : index
    %c0_343 = arith.constant 0 : index
    %c0_344 = arith.constant 0 : index
    %397 = vector.load %arg6[%c2_342, %c0_343, %c0_344] : memref<9x64x64xbf16, #tpu.memory_space<vmem>>, vector<1x64x64xbf16>
    %398 = vector.shape_cast %397 : vector<1x64x64xbf16> to vector<64x64xbf16>
    %cst_345 = arith.constant dense<0.000000e+00> : vector<64x64xf32>
    %399 = tpu.matmul %396, %398, %cst_345 {dimension_numbers = #tpu.dot_dimension_numbers<[1], [0], [0], [1], [0, 0, 1, 1], [], []>} : vector<64x64xbf16>, vector<64x64xbf16>, vector<64x64xf32> -> vector<64x64xf32>
    %400 = arith.addf %394, %399 : vector<64x64xf32>
    %c79_346 = arith.constant 79 : index
    %c0_347 = arith.constant 0 : index
    %401 = vector.load %arg20[%c79_346, %c0_347] : memref<288x64xf32, #tpu.memory_space<vmem>>, vector<64x64xf32>
    %402 = arith.truncf %401 : vector<64x64xf32> to vector<64x64xbf16>
    %c3_348 = arith.constant 3 : index
    %c0_349 = arith.constant 0 : index
    %c0_350 = arith.constant 0 : index
    %403 = vector.load %arg6[%c3_348, %c0_349, %c0_350] : memref<9x64x64xbf16, #tpu.memory_space<vmem>>, vector<1x64x64xbf16>
    %404 = vector.shape_cast %403 : vector<1x64x64xbf16> to vector<64x64xbf16>
    %cst_351 = arith.constant dense<0.000000e+00> : vector<64x64xf32>
    %405 = tpu.matmul %402, %404, %cst_351 {dimension_numbers = #tpu.dot_dimension_numbers<[1], [0], [0], [1], [0, 0, 1, 1], [], []>} : vector<64x64xbf16>, vector<64x64xbf16>, vector<64x64xf32> -> vector<64x64xf32>
    %406 = arith.addf %400, %405 : vector<64x64xf32>
    %c80_352 = arith.constant 80 : index
    %c0_353 = arith.constant 0 : index
    %407 = vector.load %arg20[%c80_352, %c0_353] : memref<288x64xf32, #tpu.memory_space<vmem>>, vector<64x64xf32>
    %408 = arith.truncf %407 : vector<64x64xf32> to vector<64x64xbf16>
    %c4_354 = arith.constant 4 : index
    %c0_355 = arith.constant 0 : index
    %c0_356 = arith.constant 0 : index
    %409 = vector.load %arg6[%c4_354, %c0_355, %c0_356] : memref<9x64x64xbf16, #tpu.memory_space<vmem>>, vector<1x64x64xbf16>
    %410 = vector.shape_cast %409 : vector<1x64x64xbf16> to vector<64x64xbf16>
    %cst_357 = arith.constant dense<0.000000e+00> : vector<64x64xf32>
    %411 = tpu.matmul %408, %410, %cst_357 {dimension_numbers = #tpu.dot_dimension_numbers<[1], [0], [0], [1], [0, 0, 1, 1], [], []>} : vector<64x64xbf16>, vector<64x64xbf16>, vector<64x64xf32> -> vector<64x64xf32>
    %412 = arith.addf %406, %411 : vector<64x64xf32>
    %c81_358 = arith.constant 81 : index
    %c0_359 = arith.constant 0 : index
    %413 = vector.load %arg20[%c81_358, %c0_359] : memref<288x64xf32, #tpu.memory_space<vmem>>, vector<64x64xf32>
    %414 = arith.truncf %413 : vector<64x64xf32> to vector<64x64xbf16>
    %c5_360 = arith.constant 5 : index
    %c0_361 = arith.constant 0 : index
    %c0_362 = arith.constant 0 : index
    %415 = vector.load %arg6[%c5_360, %c0_361, %c0_362] : memref<9x64x64xbf16, #tpu.memory_space<vmem>>, vector<1x64x64xbf16>
    %416 = vector.shape_cast %415 : vector<1x64x64xbf16> to vector<64x64xbf16>
    %cst_363 = arith.constant dense<0.000000e+00> : vector<64x64xf32>
    %417 = tpu.matmul %414, %416, %cst_363 {dimension_numbers = #tpu.dot_dimension_numbers<[1], [0], [0], [1], [0, 0, 1, 1], [], []>} : vector<64x64xbf16>, vector<64x64xbf16>, vector<64x64xf32> -> vector<64x64xf32>
    %418 = arith.addf %412, %417 : vector<64x64xf32>
    %c90_364 = arith.constant 90 : index
    %c0_365 = arith.constant 0 : index
    %419 = vector.load %arg20[%c90_364, %c0_365] : memref<288x64xf32, #tpu.memory_space<vmem>>, vector<64x64xf32>
    %420 = arith.truncf %419 : vector<64x64xf32> to vector<64x64xbf16>
    %c6_366 = arith.constant 6 : index
    %c0_367 = arith.constant 0 : index
    %c0_368 = arith.constant 0 : index
    %421 = vector.load %arg6[%c6_366, %c0_367, %c0_368] : memref<9x64x64xbf16, #tpu.memory_space<vmem>>, vector<1x64x64xbf16>
    %422 = vector.shape_cast %421 : vector<1x64x64xbf16> to vector<64x64xbf16>
    %cst_369 = arith.constant dense<0.000000e+00> : vector<64x64xf32>
    %423 = tpu.matmul %420, %422, %cst_369 {dimension_numbers = #tpu.dot_dimension_numbers<[1], [0], [0], [1], [0, 0, 1, 1], [], []>} : vector<64x64xbf16>, vector<64x64xbf16>, vector<64x64xf32> -> vector<64x64xf32>
    %424 = arith.addf %418, %423 : vector<64x64xf32>
    %c91_370 = arith.constant 91 : index
    %c0_371 = arith.constant 0 : index
    %425 = vector.load %arg20[%c91_370, %c0_371] : memref<288x64xf32, #tpu.memory_space<vmem>>, vector<64x64xf32>
    %426 = arith.truncf %425 : vector<64x64xf32> to vector<64x64xbf16>
    %c7_372 = arith.constant 7 : index
    %c0_373 = arith.constant 0 : index
    %c0_374 = arith.constant 0 : index
    %427 = vector.load %arg6[%c7_372, %c0_373, %c0_374] : memref<9x64x64xbf16, #tpu.memory_space<vmem>>, vector<1x64x64xbf16>
    %428 = vector.shape_cast %427 : vector<1x64x64xbf16> to vector<64x64xbf16>
    %cst_375 = arith.constant dense<0.000000e+00> : vector<64x64xf32>
    %429 = tpu.matmul %426, %428, %cst_375 {dimension_numbers = #tpu.dot_dimension_numbers<[1], [0], [0], [1], [0, 0, 1, 1], [], []>} : vector<64x64xbf16>, vector<64x64xbf16>, vector<64x64xf32> -> vector<64x64xf32>
    %430 = arith.addf %424, %429 : vector<64x64xf32>
    %c92_376 = arith.constant 92 : index
    %c0_377 = arith.constant 0 : index
    %431 = vector.load %arg20[%c92_376, %c0_377] : memref<288x64xf32, #tpu.memory_space<vmem>>, vector<64x64xf32>
    %432 = arith.truncf %431 : vector<64x64xf32> to vector<64x64xbf16>
    %c8_378 = arith.constant 8 : index
    %c0_379 = arith.constant 0 : index
    %c0_380 = arith.constant 0 : index
    %433 = vector.load %arg6[%c8_378, %c0_379, %c0_380] : memref<9x64x64xbf16, #tpu.memory_space<vmem>>, vector<1x64x64xbf16>
    %434 = vector.shape_cast %433 : vector<1x64x64xbf16> to vector<64x64xbf16>
    %cst_381 = arith.constant dense<0.000000e+00> : vector<64x64xf32>
    %435 = tpu.matmul %432, %434, %cst_381 {dimension_numbers = #tpu.dot_dimension_numbers<[1], [0], [0], [1], [0, 0, 1, 1], [], []>} : vector<64x64xbf16>, vector<64x64xbf16>, vector<64x64xf32> -> vector<64x64xf32>
    %436 = arith.addf %430, %435 : vector<64x64xf32>
    %c0_382 = arith.constant 0 : index
    %c0_383 = arith.constant 0 : index
    %437 = vector.load %arg7[%c0_382, %c0_383] : memref<1x64xf32, #tpu.memory_space<vmem>>, vector<1x64xf32>
    %438 = vector.broadcast %437 : vector<1x64xf32> to vector<64x64xf32>
    %439 = arith.addf %436, %438 : vector<64x64xf32>
    %cst_384 = arith.constant 0.000000e+00 : f32
    %440 = vector.broadcast %cst_384 : f32 to vector<64x64xf32>
    %441 = arith.maximumf %439, %440 : vector<64x64xf32>
    %c64_385 = arith.constant 64 : index
    %c0_386 = arith.constant 0 : index
    %442 = vector.load %arg1[%c64_385, %c0_386] : memref<256x1xf32, #tpu.memory_space<vmem>>, vector<64x1xf32>
    %443 = vector.broadcast %442 : vector<64x1xf32> to vector<64x64xf32>
    %444 = arith.mulf %441, %443 : vector<64x64xf32>
    %445 = arith.truncf %444 : vector<64x64xf32> to vector<64x64xbf16>
    %c0_387 = arith.constant 0 : index
    %c0_388 = arith.constant 0 : index
    %446 = vector.load %arg8[%c0_387, %c0_388] : memref<64x3xbf16, #tpu.memory_space<vmem>>, vector<64x3xbf16>
    %cst_389 = arith.constant dense<0.000000e+00> : vector<64x3xf32>
    %447 = tpu.matmul %445, %446, %cst_389 {dimension_numbers = #tpu.dot_dimension_numbers<[1], [0], [0], [1], [0, 0, 1, 1], [], []>} : vector<64x64xbf16>, vector<64x3xbf16>, vector<64x3xf32> -> vector<64x3xf32>
    %c0_390 = arith.constant 0 : index
    %c0_391 = arith.constant 0 : index
    %448 = vector.load %arg9[%c0_390, %c0_391] : memref<1x3xf32, #tpu.memory_space<vmem>>, vector<1x3xf32>
    %449 = vector.broadcast %448 : vector<1x3xf32> to vector<64x3xf32>
    %450 = arith.addf %447, %449 : vector<64x3xf32>
    %cst_392 = arith.constant 0.000000e+00 : f32
    %451 = vector.broadcast %cst_392 : f32 to vector<64x3xf32>
    %452 = arith.maximumf %450, %451 : vector<64x3xf32>
    %c64_393 = arith.constant 64 : index
    %c0_394 = arith.constant 0 : index
    %453 = vector.load %arg21[%c64_393, %c0_394] : memref<256x3xf32, #tpu.memory_space<vmem>>, vector<64x3xf32>
    tpu.vector_store %arg21[%c64_393, %c0_394], %452 {strides = array<i32>} : memref<256x3xf32, #tpu.memory_space<vmem>>, vector<64x3xf32>,
    %cst_395 = arith.constant 0.000000e+00 : f32
    %454 = vector.broadcast %cst_395 : f32 to vector<64x64xf32>
    %c132_396 = arith.constant 132 : index
    %c0_397 = arith.constant 0 : index
    %455 = vector.load %arg20[%c132_396, %c0_397] : memref<288x64xf32, #tpu.memory_space<vmem>>, vector<64x64xf32>
    %456 = arith.truncf %455 : vector<64x64xf32> to vector<64x64xbf16>
    %c0_398 = arith.constant 0 : index
    %c0_399 = arith.constant 0 : index
    %c0_400 = arith.constant 0 : index
    %457 = vector.load %arg6[%c0_398, %c0_399, %c0_400] : memref<9x64x64xbf16, #tpu.memory_space<vmem>>, vector<1x64x64xbf16>
    %458 = vector.shape_cast %457 : vector<1x64x64xbf16> to vector<64x64xbf16>
    %cst_401 = arith.constant dense<0.000000e+00> : vector<64x64xf32>
    %459 = tpu.matmul %456, %458, %cst_401 {dimension_numbers = #tpu.dot_dimension_numbers<[1], [0], [0], [1], [0, 0, 1, 1], [], []>} : vector<64x64xbf16>, vector<64x64xbf16>, vector<64x64xf32> -> vector<64x64xf32>
    %460 = arith.addf %454, %459 : vector<64x64xf32>
    %c133_402 = arith.constant 133 : index
    %c0_403 = arith.constant 0 : index
    %461 = vector.load %arg20[%c133_402, %c0_403] : memref<288x64xf32, #tpu.memory_space<vmem>>, vector<64x64xf32>
    %462 = arith.truncf %461 : vector<64x64xf32> to vector<64x64xbf16>
    %c1_404 = arith.constant 1 : index
    %c0_405 = arith.constant 0 : index
    %c0_406 = arith.constant 0 : index
    %463 = vector.load %arg6[%c1_404, %c0_405, %c0_406] : memref<9x64x64xbf16, #tpu.memory_space<vmem>>, vector<1x64x64xbf16>
    %464 = vector.shape_cast %463 : vector<1x64x64xbf16> to vector<64x64xbf16>
    %cst_407 = arith.constant dense<0.000000e+00> : vector<64x64xf32>
    %465 = tpu.matmul %462, %464, %cst_407 {dimension_numbers = #tpu.dot_dimension_numbers<[1], [0], [0], [1], [0, 0, 1, 1], [], []>} : vector<64x64xbf16>, vector<64x64xbf16>, vector<64x64xf32> -> vector<64x64xf32>
    %466 = arith.addf %460, %465 : vector<64x64xf32>
    %c134_408 = arith.constant 134 : index
    %c0_409 = arith.constant 0 : index
    %467 = vector.load %arg20[%c134_408, %c0_409] : memref<288x64xf32, #tpu.memory_space<vmem>>, vector<64x64xf32>
    %468 = arith.truncf %467 : vector<64x64xf32> to vector<64x64xbf16>
    %c2_410 = arith.constant 2 : index
    %c0_411 = arith.constant 0 : index
    %c0_412 = arith.constant 0 : index
    %469 = vector.load %arg6[%c2_410, %c0_411, %c0_412] : memref<9x64x64xbf16, #tpu.memory_space<vmem>>, vector<1x64x64xbf16>
    %470 = vector.shape_cast %469 : vector<1x64x64xbf16> to vector<64x64xbf16>
    %cst_413 = arith.constant dense<0.000000e+00> : vector<64x64xf32>
    %471 = tpu.matmul %468, %470, %cst_413 {dimension_numbers = #tpu.dot_dimension_numbers<[1], [0], [0], [1], [0, 0, 1, 1], [], []>} : vector<64x64xbf16>, vector<64x64xbf16>, vector<64x64xf32> -> vector<64x64xf32>
    %472 = arith.addf %466, %471 : vector<64x64xf32>
    %c143_414 = arith.constant 143 : index
    %c0_415 = arith.constant 0 : index
    %473 = vector.load %arg20[%c143_414, %c0_415] : memref<288x64xf32, #tpu.memory_space<vmem>>, vector<64x64xf32>
    %474 = arith.truncf %473 : vector<64x64xf32> to vector<64x64xbf16>
    %c3_416 = arith.constant 3 : index
    %c0_417 = arith.constant 0 : index
    %c0_418 = arith.constant 0 : index
    %475 = vector.load %arg6[%c3_416, %c0_417, %c0_418] : memref<9x64x64xbf16, #tpu.memory_space<vmem>>, vector<1x64x64xbf16>
    %476 = vector.shape_cast %475 : vector<1x64x64xbf16> to vector<64x64xbf16>
    %cst_419 = arith.constant dense<0.000000e+00> : vector<64x64xf32>
    %477 = tpu.matmul %474, %476, %cst_419 {dimension_numbers = #tpu.dot_dimension_numbers<[1], [0], [0], [1], [0, 0, 1, 1], [], []>} : vector<64x64xbf16>, vector<64x64xbf16>, vector<64x64xf32> -> vector<64x64xf32>
    %478 = arith.addf %472, %477 : vector<64x64xf32>
    %c144_420 = arith.constant 144 : index
    %c0_421 = arith.constant 0 : index
    %479 = vector.load %arg20[%c144_420, %c0_421] : memref<288x64xf32, #tpu.memory_space<vmem>>, vector<64x64xf32>
    %480 = arith.truncf %479 : vector<64x64xf32> to vector<64x64xbf16>
    %c4_422 = arith.constant 4 : index
    %c0_423 = arith.constant 0 : index
    %c0_424 = arith.constant 0 : index
    %481 = vector.load %arg6[%c4_422, %c0_423, %c0_424] : memref<9x64x64xbf16, #tpu.memory_space<vmem>>, vector<1x64x64xbf16>
    %482 = vector.shape_cast %481 : vector<1x64x64xbf16> to vector<64x64xbf16>
    %cst_425 = arith.constant dense<0.000000e+00> : vector<64x64xf32>
    %483 = tpu.matmul %480, %482, %cst_425 {dimension_numbers = #tpu.dot_dimension_numbers<[1], [0], [0], [1], [0, 0, 1, 1], [], []>} : vector<64x64xbf16>, vector<64x64xbf16>, vector<64x64xf32> -> vector<64x64xf32>
    %484 = arith.addf %478, %483 : vector<64x64xf32>
    %c145_426 = arith.constant 145 : index
    %c0_427 = arith.constant 0 : index
    %485 = vector.load %arg20[%c145_426, %c0_427] : memref<288x64xf32, #tpu.memory_space<vmem>>, vector<64x64xf32>
    %486 = arith.truncf %485 : vector<64x64xf32> to vector<64x64xbf16>
    %c5_428 = arith.constant 5 : index
    %c0_429 = arith.constant 0 : index
    %c0_430 = arith.constant 0 : index
    %487 = vector.load %arg6[%c5_428, %c0_429, %c0_430] : memref<9x64x64xbf16, #tpu.memory_space<vmem>>, vector<1x64x64xbf16>
    %488 = vector.shape_cast %487 : vector<1x64x64xbf16> to vector<64x64xbf16>
    %cst_431 = arith.constant dense<0.000000e+00> : vector<64x64xf32>
    %489 = tpu.matmul %486, %488, %cst_431 {dimension_numbers = #tpu.dot_dimension_numbers<[1], [0], [0], [1], [0, 0, 1, 1], [], []>} : vector<64x64xbf16>, vector<64x64xbf16>, vector<64x64xf32> -> vector<64x64xf32>
    %490 = arith.addf %484, %489 : vector<64x64xf32>
    %c154_432 = arith.constant 154 : index
    %c0_433 = arith.constant 0 : index
    %491 = vector.load %arg20[%c154_432, %c0_433] : memref<288x64xf32, #tpu.memory_space<vmem>>, vector<64x64xf32>
    %492 = arith.truncf %491 : vector<64x64xf32> to vector<64x64xbf16>
    %c6_434 = arith.constant 6 : index
    %c0_435 = arith.constant 0 : index
    %c0_436 = arith.constant 0 : index
    %493 = vector.load %arg6[%c6_434, %c0_435, %c0_436] : memref<9x64x64xbf16, #tpu.memory_space<vmem>>, vector<1x64x64xbf16>
    %494 = vector.shape_cast %493 : vector<1x64x64xbf16> to vector<64x64xbf16>
    %cst_437 = arith.constant dense<0.000000e+00> : vector<64x64xf32>
    %495 = tpu.matmul %492, %494, %cst_437 {dimension_numbers = #tpu.dot_dimension_numbers<[1], [0], [0], [1], [0, 0, 1, 1], [], []>} : vector<64x64xbf16>, vector<64x64xbf16>, vector<64x64xf32> -> vector<64x64xf32>
    %496 = arith.addf %490, %495 : vector<64x64xf32>
    %c155_438 = arith.constant 155 : index
    %c0_439 = arith.constant 0 : index
    %497 = vector.load %arg20[%c155_438, %c0_439] : memref<288x64xf32, #tpu.memory_space<vmem>>, vector<64x64xf32>
    %498 = arith.truncf %497 : vector<64x64xf32> to vector<64x64xbf16>
    %c7_440 = arith.constant 7 : index
    %c0_441 = arith.constant 0 : index
    %c0_442 = arith.constant 0 : index
    %499 = vector.load %arg6[%c7_440, %c0_441, %c0_442] : memref<9x64x64xbf16, #tpu.memory_space<vmem>>, vector<1x64x64xbf16>
    %500 = vector.shape_cast %499 : vector<1x64x64xbf16> to vector<64x64xbf16>
    %cst_443 = arith.constant dense<0.000000e+00> : vector<64x64xf32>
    %501 = tpu.matmul %498, %500, %cst_443 {dimension_numbers = #tpu.dot_dimension_numbers<[1], [0], [0], [1], [0, 0, 1, 1], [], []>} : vector<64x64xbf16>, vector<64x64xbf16>, vector<64x64xf32> -> vector<64x64xf32>
    %502 = arith.addf %496, %501 : vector<64x64xf32>
    %c156_444 = arith.constant 156 : index
    %c0_445 = arith.constant 0 : index
    %503 = vector.load %arg20[%c156_444, %c0_445] : memref<288x64xf32, #tpu.memory_space<vmem>>, vector<64x64xf32>
    %504 = arith.truncf %503 : vector<64x64xf32> to vector<64x64xbf16>
    %c8_446 = arith.constant 8 : index
    %c0_447 = arith.constant 0 : index
    %c0_448 = arith.constant 0 : index
    %505 = vector.load %arg6[%c8_446, %c0_447, %c0_448] : memref<9x64x64xbf16, #tpu.memory_space<vmem>>, vector<1x64x64xbf16>
    %506 = vector.shape_cast %505 : vector<1x64x64xbf16> to vector<64x64xbf16>
    %cst_449 = arith.constant dense<0.000000e+00> : vector<64x64xf32>
    %507 = tpu.matmul %504, %506, %cst_449 {dimension_numbers = #tpu.dot_dimension_numbers<[1], [0], [0], [1], [0, 0, 1, 1], [], []>} : vector<64x64xbf16>, vector<64x64xbf16>, vector<64x64xf32> -> vector<64x64xf32>
    %508 = arith.addf %502, %507 : vector<64x64xf32>
    %c0_450 = arith.constant 0 : index
    %c0_451 = arith.constant 0 : index
    %509 = vector.load %arg7[%c0_450, %c0_451] : memref<1x64xf32, #tpu.memory_space<vmem>>, vector<1x64xf32>
    %510 = vector.broadcast %509 : vector<1x64xf32> to vector<64x64xf32>
    %511 = arith.addf %508, %510 : vector<64x64xf32>
    %cst_452 = arith.constant 0.000000e+00 : f32
    %512 = vector.broadcast %cst_452 : f32 to vector<64x64xf32>
    %513 = arith.maximumf %511, %512 : vector<64x64xf32>
    %c128_453 = arith.constant 128 : index
    %c0_454 = arith.constant 0 : index
    %514 = vector.load %arg1[%c128_453, %c0_454] : memref<256x1xf32, #tpu.memory_space<vmem>>, vector<64x1xf32>
    %515 = vector.broadcast %514 : vector<64x1xf32> to vector<64x64xf32>
    %516 = arith.mulf %513, %515 : vector<64x64xf32>
    %517 = arith.truncf %516 : vector<64x64xf32> to vector<64x64xbf16>
    %c0_455 = arith.constant 0 : index
    %c0_456 = arith.constant 0 : index
    %518 = vector.load %arg8[%c0_455, %c0_456] : memref<64x3xbf16, #tpu.memory_space<vmem>>, vector<64x3xbf16>
    %cst_457 = arith.constant dense<0.000000e+00> : vector<64x3xf32>
    %519 = tpu.matmul %517, %518, %cst_457 {dimension_numbers = #tpu.dot_dimension_numbers<[1], [0], [0], [1], [0, 0, 1, 1], [], []>} : vector<64x64xbf16>, vector<64x3xbf16>, vector<64x3xf32> -> vector<64x3xf32>
    %c0_458 = arith.constant 0 : index
    %c0_459 = arith.constant 0 : index
    %520 = vector.load %arg9[%c0_458, %c0_459] : memref<1x3xf32, #tpu.memory_space<vmem>>, vector<1x3xf32>
    %521 = vector.broadcast %520 : vector<1x3xf32> to vector<64x3xf32>
    %522 = arith.addf %519, %521 : vector<64x3xf32>
    %cst_460 = arith.constant 0.000000e+00 : f32
    %523 = vector.broadcast %cst_460 : f32 to vector<64x3xf32>
    %524 = arith.maximumf %522, %523 : vector<64x3xf32>
    %c128_461 = arith.constant 128 : index
    %c0_462 = arith.constant 0 : index
    %525 = vector.load %arg21[%c128_461, %c0_462] : memref<256x3xf32, #tpu.memory_space<vmem>>, vector<64x3xf32>
    tpu.vector_store %arg21[%c128_461, %c0_462], %524 {strides = array<i32>} : memref<256x3xf32, #tpu.memory_space<vmem>>, vector<64x3xf32>,
    %cst_463 = arith.constant 0.000000e+00 : f32
    %526 = vector.broadcast %cst_463 : f32 to vector<64x64xf32>
    %c196_464 = arith.constant 196 : index
    %c0_465 = arith.constant 0 : index
    %527 = vector.load %arg20[%c196_464, %c0_465] : memref<288x64xf32, #tpu.memory_space<vmem>>, vector<64x64xf32>
    %528 = arith.truncf %527 : vector<64x64xf32> to vector<64x64xbf16>
    %c0_466 = arith.constant 0 : index
    %c0_467 = arith.constant 0 : index
    %c0_468 = arith.constant 0 : index
    %529 = vector.load %arg6[%c0_466, %c0_467, %c0_468] : memref<9x64x64xbf16, #tpu.memory_space<vmem>>, vector<1x64x64xbf16>
    %530 = vector.shape_cast %529 : vector<1x64x64xbf16> to vector<64x64xbf16>
    %cst_469 = arith.constant dense<0.000000e+00> : vector<64x64xf32>
    %531 = tpu.matmul %528, %530, %cst_469 {dimension_numbers = #tpu.dot_dimension_numbers<[1], [0], [0], [1], [0, 0, 1, 1], [], []>} : vector<64x64xbf16>, vector<64x64xbf16>, vector<64x64xf32> -> vector<64x64xf32>
    %532 = arith.addf %526, %531 : vector<64x64xf32>
    %c197_470 = arith.constant 197 : index
    %c0_471 = arith.constant 0 : index
    %533 = vector.load %arg20[%c197_470, %c0_471] : memref<288x64xf32, #tpu.memory_space<vmem>>, vector<64x64xf32>
    %534 = arith.truncf %533 : vector<64x64xf32> to vector<64x64xbf16>
    %c1_472 = arith.constant 1 : index
    %c0_473 = arith.constant 0 : index
    %c0_474 = arith.constant 0 : index
    %535 = vector.load %arg6[%c1_472, %c0_473, %c0_474] : memref<9x64x64xbf16, #tpu.memory_space<vmem>>, vector<1x64x64xbf16>
    %536 = vector.shape_cast %535 : vector<1x64x64xbf16> to vector<64x64xbf16>
    %cst_475 = arith.constant dense<0.000000e+00> : vector<64x64xf32>
    %537 = tpu.matmul %534, %536, %cst_475 {dimension_numbers = #tpu.dot_dimension_numbers<[1], [0], [0], [1], [0, 0, 1, 1], [], []>} : vector<64x64xbf16>, vector<64x64xbf16>, vector<64x64xf32> -> vector<64x64xf32>
    %538 = arith.addf %532, %537 : vector<64x64xf32>
    %c198_476 = arith.constant 198 : index
    %c0_477 = arith.constant 0 : index
    %539 = vector.load %arg20[%c198_476, %c0_477] : memref<288x64xf32, #tpu.memory_space<vmem>>, vector<64x64xf32>
    %540 = arith.truncf %539 : vector<64x64xf32> to vector<64x64xbf16>
    %c2_478 = arith.constant 2 : index
    %c0_479 = arith.constant 0 : index
    %c0_480 = arith.constant 0 : index
    %541 = vector.load %arg6[%c2_478, %c0_479, %c0_480] : memref<9x64x64xbf16, #tpu.memory_space<vmem>>, vector<1x64x64xbf16>
    %542 = vector.shape_cast %541 : vector<1x64x64xbf16> to vector<64x64xbf16>
    %cst_481 = arith.constant dense<0.000000e+00> : vector<64x64xf32>
    %543 = tpu.matmul %540, %542, %cst_481 {dimension_numbers = #tpu.dot_dimension_numbers<[1], [0], [0], [1], [0, 0, 1, 1], [], []>} : vector<64x64xbf16>, vector<64x64xbf16>, vector<64x64xf32> -> vector<64x64xf32>
    %544 = arith.addf %538, %543 : vector<64x64xf32>
    %c207_482 = arith.constant 207 : index
    %c0_483 = arith.constant 0 : index
    %545 = vector.load %arg20[%c207_482, %c0_483] : memref<288x64xf32, #tpu.memory_space<vmem>>, vector<64x64xf32>
    %546 = arith.truncf %545 : vector<64x64xf32> to vector<64x64xbf16>
    %c3_484 = arith.constant 3 : index
    %c0_485 = arith.constant 0 : index
    %c0_486 = arith.constant 0 : index
    %547 = vector.load %arg6[%c3_484, %c0_485, %c0_486] : memref<9x64x64xbf16, #tpu.memory_space<vmem>>, vector<1x64x64xbf16>
    %548 = vector.shape_cast %547 : vector<1x64x64xbf16> to vector<64x64xbf16>
    %cst_487 = arith.constant dense<0.000000e+00> : vector<64x64xf32>
    %549 = tpu.matmul %546, %548, %cst_487 {dimension_numbers = #tpu.dot_dimension_numbers<[1], [0], [0], [1], [0, 0, 1, 1], [], []>} : vector<64x64xbf16>, vector<64x64xbf16>, vector<64x64xf32> -> vector<64x64xf32>
    %550 = arith.addf %544, %549 : vector<64x64xf32>
    %c208_488 = arith.constant 208 : index
    %c0_489 = arith.constant 0 : index
    %551 = vector.load %arg20[%c208_488, %c0_489] : memref<288x64xf32, #tpu.memory_space<vmem>>, vector<64x64xf32>
    %552 = arith.truncf %551 : vector<64x64xf32> to vector<64x64xbf16>
    %c4_490 = arith.constant 4 : index
    %c0_491 = arith.constant 0 : index
    %c0_492 = arith.constant 0 : index
    %553 = vector.load %arg6[%c4_490, %c0_491, %c0_492] : memref<9x64x64xbf16, #tpu.memory_space<vmem>>, vector<1x64x64xbf16>
    %554 = vector.shape_cast %553 : vector<1x64x64xbf16> to vector<64x64xbf16>
    %cst_493 = arith.constant dense<0.000000e+00> : vector<64x64xf32>
    %555 = tpu.matmul %552, %554, %cst_493 {dimension_numbers = #tpu.dot_dimension_numbers<[1], [0], [0], [1], [0, 0, 1, 1], [], []>} : vector<64x64xbf16>, vector<64x64xbf16>, vector<64x64xf32> -> vector<64x64xf32>
    %556 = arith.addf %550, %555 : vector<64x64xf32>
    %c209_494 = arith.constant 209 : index
    %c0_495 = arith.constant 0 : index
    %557 = vector.load %arg20[%c209_494, %c0_495] : memref<288x64xf32, #tpu.memory_space<vmem>>, vector<64x64xf32>
    %558 = arith.truncf %557 : vector<64x64xf32> to vector<64x64xbf16>
    %c5_496 = arith.constant 5 : index
    %c0_497 = arith.constant 0 : index
    %c0_498 = arith.constant 0 : index
    %559 = vector.load %arg6[%c5_496, %c0_497, %c0_498] : memref<9x64x64xbf16, #tpu.memory_space<vmem>>, vector<1x64x64xbf16>
    %560 = vector.shape_cast %559 : vector<1x64x64xbf16> to vector<64x64xbf16>
    %cst_499 = arith.constant dense<0.000000e+00> : vector<64x64xf32>
    %561 = tpu.matmul %558, %560, %cst_499 {dimension_numbers = #tpu.dot_dimension_numbers<[1], [0], [0], [1], [0, 0, 1, 1], [], []>} : vector<64x64xbf16>, vector<64x64xbf16>, vector<64x64xf32> -> vector<64x64xf32>
    %562 = arith.addf %556, %561 : vector<64x64xf32>
    %c218_500 = arith.constant 218 : index
    %c0_501 = arith.constant 0 : index
    %563 = vector.load %arg20[%c218_500, %c0_501] : memref<288x64xf32, #tpu.memory_space<vmem>>, vector<64x64xf32>
    %564 = arith.truncf %563 : vector<64x64xf32> to vector<64x64xbf16>
    %c6_502 = arith.constant 6 : index
    %c0_503 = arith.constant 0 : index
    %c0_504 = arith.constant 0 : index
    %565 = vector.load %arg6[%c6_502, %c0_503, %c0_504] : memref<9x64x64xbf16, #tpu.memory_space<vmem>>, vector<1x64x64xbf16>
    %566 = vector.shape_cast %565 : vector<1x64x64xbf16> to vector<64x64xbf16>
    %cst_505 = arith.constant dense<0.000000e+00> : vector<64x64xf32>
    %567 = tpu.matmul %564, %566, %cst_505 {dimension_numbers = #tpu.dot_dimension_numbers<[1], [0], [0], [1], [0, 0, 1, 1], [], []>} : vector<64x64xbf16>, vector<64x64xbf16>, vector<64x64xf32> -> vector<64x64xf32>
    %568 = arith.addf %562, %567 : vector<64x64xf32>
    %c219_506 = arith.constant 219 : index
    %c0_507 = arith.constant 0 : index
    %569 = vector.load %arg20[%c219_506, %c0_507] : memref<288x64xf32, #tpu.memory_space<vmem>>, vector<64x64xf32>
    %570 = arith.truncf %569 : vector<64x64xf32> to vector<64x64xbf16>
    %c7_508 = arith.constant 7 : index
    %c0_509 = arith.constant 0 : index
    %c0_510 = arith.constant 0 : index
    %571 = vector.load %arg6[%c7_508, %c0_509, %c0_510] : memref<9x64x64xbf16, #tpu.memory_space<vmem>>, vector<1x64x64xbf16>
    %572 = vector.shape_cast %571 : vector<1x64x64xbf16> to vector<64x64xbf16>
    %cst_511 = arith.constant dense<0.000000e+00> : vector<64x64xf32>
    %573 = tpu.matmul %570, %572, %cst_511 {dimension_numbers = #tpu.dot_dimension_numbers<[1], [0], [0], [1], [0, 0, 1, 1], [], []>} : vector<64x64xbf16>, vector<64x64xbf16>, vector<64x64xf32> -> vector<64x64xf32>
    %574 = arith.addf %568, %573 : vector<64x64xf32>
    %c220_512 = arith.constant 220 : index
    %c0_513 = arith.constant 0 : index
    %575 = vector.load %arg20[%c220_512, %c0_513] : memref<288x64xf32, #tpu.memory_space<vmem>>, vector<64x64xf32>
    %576 = arith.truncf %575 : vector<64x64xf32> to vector<64x64xbf16>
    %c8_514 = arith.constant 8 : index
    %c0_515 = arith.constant 0 : index
    %c0_516 = arith.constant 0 : index
    %577 = vector.load %arg6[%c8_514, %c0_515, %c0_516] : memref<9x64x64xbf16, #tpu.memory_space<vmem>>, vector<1x64x64xbf16>
    %578 = vector.shape_cast %577 : vector<1x64x64xbf16> to vector<64x64xbf16>
    %cst_517 = arith.constant dense<0.000000e+00> : vector<64x64xf32>
    %579 = tpu.matmul %576, %578, %cst_517 {dimension_numbers = #tpu.dot_dimension_numbers<[1], [0], [0], [1], [0, 0, 1, 1], [], []>} : vector<64x64xbf16>, vector<64x64xbf16>, vector<64x64xf32> -> vector<64x64xf32>
    %580 = arith.addf %574, %579 : vector<64x64xf32>
    %c0_518 = arith.constant 0 : index
    %c0_519 = arith.constant 0 : index
    %581 = vector.load %arg7[%c0_518, %c0_519] : memref<1x64xf32, #tpu.memory_space<vmem>>, vector<1x64xf32>
    %582 = vector.broadcast %581 : vector<1x64xf32> to vector<64x64xf32>
    %583 = arith.addf %580, %582 : vector<64x64xf32>
    %cst_520 = arith.constant 0.000000e+00 : f32
    %584 = vector.broadcast %cst_520 : f32 to vector<64x64xf32>
    %585 = arith.maximumf %583, %584 : vector<64x64xf32>
    %c192_521 = arith.constant 192 : index
    %c0_522 = arith.constant 0 : index
    %586 = vector.load %arg1[%c192_521, %c0_522] : memref<256x1xf32, #tpu.memory_space<vmem>>, vector<64x1xf32>
    %587 = vector.broadcast %586 : vector<64x1xf32> to vector<64x64xf32>
    %588 = arith.mulf %585, %587 : vector<64x64xf32>
    %589 = arith.truncf %588 : vector<64x64xf32> to vector<64x64xbf16>
    %c0_523 = arith.constant 0 : index
    %c0_524 = arith.constant 0 : index
    %590 = vector.load %arg8[%c0_523, %c0_524] : memref<64x3xbf16, #tpu.memory_space<vmem>>, vector<64x3xbf16>
    %cst_525 = arith.constant dense<0.000000e+00> : vector<64x3xf32>
    %591 = tpu.matmul %589, %590, %cst_525 {dimension_numbers = #tpu.dot_dimension_numbers<[1], [0], [0], [1], [0, 0, 1, 1], [], []>} : vector<64x64xbf16>, vector<64x3xbf16>, vector<64x3xf32> -> vector<64x3xf32>
    %c0_526 = arith.constant 0 : index
    %c0_527 = arith.constant 0 : index
    %592 = vector.load %arg9[%c0_526, %c0_527] : memref<1x3xf32, #tpu.memory_space<vmem>>, vector<1x3xf32>
    %593 = vector.broadcast %592 : vector<1x3xf32> to vector<64x3xf32>
    %594 = arith.addf %591, %593 : vector<64x3xf32>
    %cst_528 = arith.constant 0.000000e+00 : f32
    %595 = vector.broadcast %cst_528 : f32 to vector<64x3xf32>
    %596 = arith.maximumf %594, %595 : vector<64x3xf32>
    %c192_529 = arith.constant 192 : index
    %c0_530 = arith.constant 0 : index
    %597 = vector.load %arg21[%c192_529, %c0_530] : memref<256x3xf32, #tpu.memory_space<vmem>>, vector<64x3xf32>
    tpu.vector_store %arg21[%c192_529, %c0_530], %596 {strides = array<i32>} : memref<256x3xf32, #tpu.memory_space<vmem>>, vector<64x3xf32>,
    %c0_531 = arith.constant 0 : index
    %c0_532 = arith.constant 0 : index
    %598 = vector.load %arg21[%c0_531, %c0_532] : memref<256x3xf32, #tpu.memory_space<vmem>>, vector<128x3xf32>
    %c128_533 = arith.constant 128 : index
    %c0_534 = arith.constant 0 : index
    %599 = vector.load %arg21[%c128_533, %c0_534] : memref<256x3xf32, #tpu.memory_space<vmem>>, vector<128x3xf32>
    %600 = tpu.iota {dimensions = array<i32: 1>} : vector<1x2xi32>
    %cst_535 = arith.constant 0.000000e+00 : f32
    %601 = vector.broadcast %cst_535 : f32 to vector<128x2xf32>
    %c0_i32 = arith.constant 0 : i32
    %602 = vector.broadcast %c0_i32 : i32 to vector<1x2xi32>
    %603 = arith.cmpi eq, %600, %602 : vector<1x2xi32>
    %604 = arith.extui %603 : vector<1x2xi1> to vector<1x2xi32>
    %605 = arith.sitofp %604 : vector<1x2xi32> to vector<1x2xf32>
    %606 = vector.extract_strided_slice %598 {offsets = [0, 0], sizes = [128, 1], strides = [1, 1]} : vector<128x3xf32> to vector<128x1xf32>
    %607 = vector.broadcast %606 : vector<128x1xf32> to vector<128x2xf32>
    %608 = vector.broadcast %605 : vector<1x2xf32> to vector<128x2xf32>
    %609 = arith.mulf %607, %608 : vector<128x2xf32>
    %610 = arith.addf %601, %609 : vector<128x2xf32>
    %c1_i32 = arith.constant 1 : i32
    %611 = vector.broadcast %c1_i32 : i32 to vector<1x2xi32>
    %612 = arith.cmpi eq, %600, %611 : vector<1x2xi32>
    %613 = arith.extui %612 : vector<1x2xi1> to vector<1x2xi32>
    %614 = arith.sitofp %613 : vector<1x2xi32> to vector<1x2xf32>
    %615 = vector.extract_strided_slice %599 {offsets = [0, 0], sizes = [128, 1], strides = [1, 1]} : vector<128x3xf32> to vector<128x1xf32>
    %616 = vector.broadcast %615 : vector<128x1xf32> to vector<128x2xf32>
    %617 = vector.broadcast %614 : vector<1x2xf32> to vector<128x2xf32>
    %618 = arith.mulf %616, %617 : vector<128x2xf32>
    %619 = arith.addf %610, %618 : vector<128x2xf32>
    %620 = arith.truncf %619 : vector<128x2xf32> to vector<128x2xbf16>
    %cst_536 = arith.constant 0.000000e+00 : f32
    %621 = vector.broadcast %cst_536 : f32 to vector<128x2xf32>
    %c0_i32_537 = arith.constant 0 : i32
    %622 = vector.broadcast %c0_i32_537 : i32 to vector<1x2xi32>
    %623 = arith.cmpi eq, %600, %622 : vector<1x2xi32>
    %624 = arith.extui %623 : vector<1x2xi1> to vector<1x2xi32>
    %625 = arith.sitofp %624 : vector<1x2xi32> to vector<1x2xf32>
    %626 = vector.extract_strided_slice %598 {offsets = [0, 1], sizes = [128, 1], strides = [1, 1]} : vector<128x3xf32> to vector<128x1xf32>
    %627 = vector.broadcast %626 : vector<128x1xf32> to vector<128x2xf32>
    %628 = vector.broadcast %625 : vector<1x2xf32> to vector<128x2xf32>
    %629 = arith.mulf %627, %628 : vector<128x2xf32>
    %630 = arith.addf %621, %629 : vector<128x2xf32>
    %c1_i32_538 = arith.constant 1 : i32
    %631 = vector.broadcast %c1_i32_538 : i32 to vector<1x2xi32>
    %632 = arith.cmpi eq, %600, %631 : vector<1x2xi32>
    %633 = arith.extui %632 : vector<1x2xi1> to vector<1x2xi32>
    %634 = arith.sitofp %633 : vector<1x2xi32> to vector<1x2xf32>
    %635 = vector.extract_strided_slice %599 {offsets = [0, 1], sizes = [128, 1], strides = [1, 1]} : vector<128x3xf32> to vector<128x1xf32>
    %636 = vector.broadcast %635 : vector<128x1xf32> to vector<128x2xf32>
    %637 = vector.broadcast %634 : vector<1x2xf32> to vector<128x2xf32>
    %638 = arith.mulf %636, %637 : vector<128x2xf32>
    %639 = arith.addf %630, %638 : vector<128x2xf32>
    %640 = arith.truncf %639 : vector<128x2xf32> to vector<128x2xbf16>
    %cst_539 = arith.constant 0.000000e+00 : f32
    %641 = vector.broadcast %cst_539 : f32 to vector<128x2xf32>
    %c0_i32_540 = arith.constant 0 : i32
    %642 = vector.broadcast %c0_i32_540 : i32 to vector<1x2xi32>
    %643 = arith.cmpi eq, %600, %642 : vector<1x2xi32>
    %644 = arith.extui %643 : vector<1x2xi1> to vector<1x2xi32>
    %645 = arith.sitofp %644 : vector<1x2xi32> to vector<1x2xf32>
    %646 = vector.extract_strided_slice %598 {offsets = [0, 2], sizes = [128, 1], strides = [1, 1]} : vector<128x3xf32> to vector<128x1xf32>
    %647 = vector.broadcast %646 : vector<128x1xf32> to vector<128x2xf32>
    %648 = vector.broadcast %645 : vector<1x2xf32> to vector<128x2xf32>
    %649 = arith.mulf %647, %648 : vector<128x2xf32>
    %650 = arith.addf %641, %649 : vector<128x2xf32>
    %c1_i32_541 = arith.constant 1 : i32
    %651 = vector.broadcast %c1_i32_541 : i32 to vector<1x2xi32>
    %652 = arith.cmpi eq, %600, %651 : vector<1x2xi32>
    %653 = arith.extui %652 : vector<1x2xi1> to vector<1x2xi32>
    %654 = arith.sitofp %653 : vector<1x2xi32> to vector<1x2xf32>
    %655 = vector.extract_strided_slice %599 {offsets = [0, 2], sizes = [128, 1], strides = [1, 1]} : vector<128x3xf32> to vector<128x1xf32>
    %656 = vector.broadcast %655 : vector<128x1xf32> to vector<128x2xf32>
    %657 = vector.broadcast %654 : vector<1x2xf32> to vector<128x2xf32>
    %658 = arith.mulf %656, %657 : vector<128x2xf32>
    %659 = arith.addf %650, %658 : vector<128x2xf32>
    %660 = arith.truncf %659 : vector<128x2xf32> to vector<128x2xbf16>
    %c0_542 = arith.constant 0 : index
    %c0_543 = arith.constant 0 : index
    %661 = vector.load %arg10[%c0_542, %c0_543] : memref<82x128xbf16, #tpu.memory_space<vmem>>, vector<82x128xbf16>
    %cst_544 = arith.constant dense<0.000000e+00> : vector<82x2xf32>
    %662 = tpu.matmul %661, %620, %cst_544 {dimension_numbers = #tpu.dot_dimension_numbers<[1], [0], [0], [1], [0, 0, 1, 1], [], []>} : vector<82x128xbf16>, vector<128x2xbf16>, vector<82x2xf32> -> vector<82x2xf32>
    %c0_545 = arith.constant 0 : index
    %c0_546 = arith.constant 0 : index
    %663 = vector.load %arg11[%c0_545, %c0_546] : memref<82x128xbf16, #tpu.memory_space<vmem>>, vector<82x128xbf16>
    %cst_547 = arith.constant dense<0.000000e+00> : vector<82x2xf32>
    %664 = tpu.matmul %663, %640, %cst_547 {dimension_numbers = #tpu.dot_dimension_numbers<[1], [0], [0], [1], [0, 0, 1, 1], [], []>} : vector<82x128xbf16>, vector<128x2xbf16>, vector<82x2xf32> -> vector<82x2xf32>
    %665 = arith.addf %662, %664 : vector<82x2xf32>
    %c0_548 = arith.constant 0 : index
    %c0_549 = arith.constant 0 : index
    %666 = vector.load %arg12[%c0_548, %c0_549] : memref<82x1xf32, #tpu.memory_space<vmem>>, vector<82x1xf32>
    %667 = vector.broadcast %666 : vector<82x1xf32> to vector<82x2xf32>
    %668 = arith.addf %665, %667 : vector<82x2xf32>
    %c0_550 = arith.constant 0 : index
    %c0_551 = arith.constant 0 : index
    %669 = vector.load %arg13[%c0_550, %c0_551] : memref<128x128xbf16, #tpu.memory_space<vmem>>, vector<128x128xbf16>
    %cst_552 = arith.constant dense<0.000000e+00> : vector<128x2xf32>
    %670 = tpu.matmul %669, %660, %cst_552 {dimension_numbers = #tpu.dot_dimension_numbers<[1], [0], [0], [1], [0, 0, 1, 1], [], []>} : vector<128x128xbf16>, vector<128x2xbf16>, vector<128x2xf32> -> vector<128x2xf32>
    %c0_553 = arith.constant 0 : index
    %c0_554 = arith.constant 0 : index
    %671 = vector.load %arg14[%c0_553, %c0_554] : memref<128x1xf32, #tpu.memory_space<vmem>>, vector<128x1xf32>
    %672 = vector.broadcast %671 : vector<128x1xf32> to vector<128x2xf32>
    %673 = arith.addf %670, %672 : vector<128x2xf32>
    %cst_555 = arith.constant 0.000000e+00 : f32
    %674 = vector.broadcast %cst_555 : f32 to vector<128x2xf32>
    %675 = arith.maximumf %673, %674 : vector<128x2xf32>
    %c0_556 = arith.constant 0 : index
    %c0_557 = arith.constant 0 : index
    %676 = vector.load %arg15[%c0_556, %c0_557] : memref<1x128xbf16, #tpu.memory_space<vmem>>, vector<1x128xbf16>
    %677 = arith.truncf %675 : vector<128x2xf32> to vector<128x2xbf16>
    %cst_558 = arith.constant dense<0.000000e+00> : vector<1x2xf32>
    %678 = tpu.matmul %676, %677, %cst_558 {dimension_numbers = #tpu.dot_dimension_numbers<[1], [0], [0], [1], [0, 0, 1, 1], [], []>} : vector<1x128xbf16>, vector<128x2xbf16>, vector<1x2xf32> -> vector<1x2xf32>
    %c0_559 = arith.constant 0 : index
    %c0_560 = arith.constant 0 : index
    %679 = vector.load %arg16[%c0_559, %c0_560] : memref<1x1xf32, #tpu.memory_space<vmem>>, vector<1x1xf32>
    %680 = vector.broadcast %679 : vector<1x1xf32> to vector<1x2xf32>
    %681 = arith.addf %678, %680 : vector<1x2xf32>
    %682 = math.tanh %681 : vector<1x2xf32>
    %c0_561 = arith.constant 0 : index
    %c0_562 = arith.constant 0 : index
    %683 = vector.load %arg17[%c0_561, %c0_562] : memref<82x2xf32, #tpu.memory_space<vmem>>, vector<82x2xf32>
    tpu.vector_store %arg17[%c0_561, %c0_562], %668 {strides = array<i32>} : memref<82x2xf32, #tpu.memory_space<vmem>>, vector<82x2xf32>,
    %c0_563 = arith.constant 0 : index
    %c0_564 = arith.constant 0 : index
    %684 = vector.load %arg18[%c0_563, %c0_564] : memref<1x2xf32, #tpu.memory_space<vmem>>, vector<1x2xf32>
    tpu.vector_store %arg18[%c0_563, %c0_564], %682 {strides = array<i32>} : memref<1x2xf32, #tpu.memory_space<vmem>>, vector<1x2xf32>,
    return
  }
}

</mosaic_0001>

<bundles_post_ra>
// kernel: policy_value_forward.1
= control target key start
LH: loop header
LB: loop body
LE: loop exit
PB: predicated region body
PF: predicated region fallthrough
CT: control target
= control target key end

     0   :  { %s18499_s0 = inlined_call_operand.vmem [shape: bf16[256,18], index: 0, kind: input, shape index: {}]   ;;  %s18500_s1 = inlined_call_operand.vmem [shape: f32[256,1], index: 1, kind: input, shape index: {}]   ;;  %s18501_s2 = inlined_call_operand.vmem [shape: bf16[18,32], index: 2, kind: input, shape index: {}]   ;;  %s18502_s3 = inlined_call_operand.vmem [shape: f32[1,32], index: 3, kind: input, shape index: {}]   ;;  %s18503_s4 = inlined_call_operand.vmem [shape: bf16[9,32,64], index: 4, kind: input, shape index: {}]   ;;  %s18504_s5 = inlined_call_operand.vmem [shape: f32[1,64], index: 5, kind: input, shape index: {}]   ;;  %s18505_s6 = inlined_call_operand.vmem [shape: bf16[9,64,64], index: 6, kind: input, shape index: {}]   ;;  %s18506_s7 = inlined_call_operand.vmem [shape: f32[1,64], index: 7, kind: input, shape index: {}]   ;;  %s18507_s8 = inlined_call_operand.vmem [shape: bf16[64,3], index: 8, kind: input, shape index: {}]   ;;  %s18508_s9 = inlined_call_operand.vmem [shape: f32[1,3], index: 9, kind: input, shape index: {}]   ;;  %s18509_s10 = inlined_call_operand.vmem [shape: bf16[82,128], index: 10, kind: input, shape index: {}]   ;;  %s18510_s11 = inlined_call_operand.vmem [shape: bf16[82,128], index: 11, kind: input, shape index: {}]   ;;  %s18511_s12 = inlined_call_operand.vmem [shape: f32[82,1], index: 12, kind: input, shape index: {}]   ;;  %s18512_s13 = inlined_call_operand.vmem [shape: bf16[128,128], index: 13, kind: input, shape index: {}]   ;;  %s18513_s14 = inlined_call_operand.vmem [shape: f32[128,1], index: 14, kind: input, shape index: {}]   ;;  %s18514_s15 = inlined_call_operand.vmem [shape: bf16[1,128], index: 15, kind: input, shape index: {}]   ;;  %s18515_s16 = inlined_call_operand.<no memory space> [shape: f32[1,1], index: 16, kind: input, shape index: {}]   ;;  %s18516_s17 = inlined_call_operand.vmem [shape: f32[82,2], index: 17, kind: output, shape index: {0}]   ;;  %s18517_s18 = inlined_call_operand.hbm [shape: f32[1,2], index: 18, kind: output, shape index: {1}]  }
   0x1   :  { %18525 = sst [smem:[#allocation9_spill]] %s18499_s0  ;;  %v24_v0 = vstv %s18515_s16 }
   0x2   :  { %18526 = sst [smem:[#allocation10_spill]] %s18500_s1  ;;  %25 = vst [vmem:[#allocation5] sm:$0x1] %v24_v0 }
   0x3   :  { %18527 = sst [smem:[#allocation11_spill]] %s18501_s2 }
   0x4   :  { %s18528_s0 = sld [smem:[#allocation10_spill]]  ;;  %v18521_v3 = vmov 0   ;;  %s18529_s22 = sld [smem:[#allocation11_spill]]  ;;  %vm132_vm0 = vcmask 1040384   ;;  %vm119_vm1 = vcmask 146432   ;;  %vm62_vm2 = vcmask 261120  }
   0x5   :  { %15419 = vset.pattern.permute.xlu1 %v18521_v3  ;;  %15418 = vset.pattern.permute.xlu0 %v18521_v3  ;;  %s18530_s29 = sld [smem:[#allocation9_spill]]  ;;  %v18523_v62 = vmov 0.0   ;;  %v15452_v63 = vld [vmem:[%s18503_s4 + $0x10] sm:$0xff]   ;;  %v15453_v0 = vld [vmem:[%s18503_s4 + $0x18] sm:$0xff]  }
   0x6   :  { %63 = vst.msk [vmem:[#allocation2] sm:$0xff] %vm62_vm2, %v18523_v62  ;;  %64 = vst.msk [vmem:[#allocation2 + $0x8] sm:$0xff] %vm62_vm2, %v18523_v62 }
   0x7   :  { %65 = vst.msk [vmem:[#allocation2 + $0x110] sm:$0xff] %vm62_vm2, %v18523_v62  ;;  %66 = vst.msk [vmem:[#allocation2 + $0x118] sm:$0xff] %vm62_vm2, %v18523_v62 }
   0xa   :  { %v15857_v1 = vld [vmem:[%s18528_s0 + $0x10] sm:$0xff]  ;;  %v15862_v2 = vld [vmem:[%s18528_s0] sm:$0xff]  ;;  %v15429_v5 = vld [vmem:[%s18529_s22 + $0x8] ss:$0 sps:$4 sm:$0x11]  }
   0xb   :  { %v15428_v4 = vld [vmem:[%s18529_s22] sm:$0xff]   ;;  %229 = vperm.xlu1 %15419, %v15857_v1   ;;  %219 = vperm.xlu0 %15418, %v15862_v2   ;;  %v15877_v6 = vld [vmem:[%s18528_s0 + $0x18] sm:$0xff]  ;;  %v15882_v7 = vld [vmem:[%s18528_s0 + $0x8] sm:$0xff]  ;;  %v134_v9 = vsel %vm132_vm0, %v15429_v5, 0 }
   0xc   :  { %13655 = vmatprep.subr.bf16.mxu0 %v15428_v4  ;;  %14883 = vmatprep.subr.bf16.mxu1 %v15428_v4  ;;  %v15430_v8 = vld [vmem:[%s18530_s29] sm:$0xff]   ;;  %v15893_v10 = vld [vmem:[%s18528_s0 + $0x28] sm:$0xff]  ;;  %v15431_v12 = vld [vmem:[%s18530_s29 + $0x10] sm:$0xff]  }
   0xd   :  { %13656 = vmatpush3.bf16.msra.mxu0 %v15428_v4  ;;  %14885 = vmatpush3.bf16.msra.mxu1 %v15428_v4  ;;  %v15898_v11 = vld [vmem:[%s18528_s0 + $0x20] sm:$0xff]  ;;  %v15432_v13 = vld [vmem:[%s18530_s29 + $0x8] sm:$0xff]   ;;  %v15433_v14 = vld [vmem:[%s18530_s29 + $0x18] sm:$0xff]  }
   0xe   :  { %15407 = vmatprep.subr.msk.bf16.mxu0 %vm132_vm0, %v15429_v5  ;;  %15408 = vmatprep.subr.msk.bf16.mxu1 %vm132_vm0, %v15429_v5  ;;  %v15434_v15 = vld [vmem:[%s18529_s22] sm:$0xff]   ;;  %v15924_v17 = vld [vmem:[%s18528_s0 + $0x38] sm:$0xff]  ;;  %v15436_v18 = vld [vmem:[%s18529_s22 + $0x8] ss:$0 sps:$4 sm:$0x11]  }
   0xf   :  { %234 = vperm.xlu1 %15419, %v15877_v6   ;;  %224 = vperm.xlu0 %15418, %v15882_v7   ;;  %v15435_v16 = vld [vmem:[%s18529_s22] sm:$0xff]   ;;  %v15934_v19 = vld [vmem:[%s18528_s0 + $0x30] sm:$0xff]  ;;  %v15437_v20 = vld [vmem:[%s18529_s22 + $0x8] ss:$0 sps:$4 sm:$0x11]   ;;  %v333_v21 = vsel %vm132_vm0, %v15436_v18, 0 }
  0x10   :  { %13659 = vmatprep.mubr.msk.bf16.mxu0 %vm119_vm1, %v15430_v8  ;;  %13663 = vmatprep.mubr.msk.bf16.mxu1 %vm119_vm1, %v15431_v12  ;;  %v15943_v22 = vld [vmem:[%s18528_s0 + $0x48] sm:$0xff]  ;;  %v15438_v23 = vld [vmem:[%s18530_s29 + $0x20] sm:$0xff]   ;;  %v532_v24 = vsel %vm132_vm0, %v15437_v20, 0  ;;  %v15972_v29 = vld [vmem:[%s18528_s0 + $0x58] sm:$0xff] }
  0x11   :  { %13658 = vmatpush3.bf16.msra.mxu0 %v134_v9  ;;  %14886 = vmatpush3.bf16.msra.mxu1 %v134_v9  ;;  %v15439_v25 = vld [vmem:[%s18530_s29 + $0x40] sm:$0xff]   ;;  %v15440_v27 = vld [vmem:[%s18530_s29 + $0x28] sm:$0xff]   ;;  %v15977_v30 = vld [vmem:[%s18528_s0 + $0x50] sm:$0xff] }
  0x12   :  { %13667 = vmatprep.subr.bf16.mxu1 %v15434_v15  ;;  %13679 = vmatprep.subr.bf16.mxu0 %v15435_v16  ;;  %v15959_v26 = vld [vmem:[%s18528_s0 + $0x40] sm:$0xff]  ;;  %v15441_v28 = vld [vmem:[%s18530_s29 + $0x48] sm:$0xff]   ;;  %v15442_v31 = vld [vmem:[%s18530_s29 + $0x30] sm:$0xff]  }
  0x13   :  { %244 = vperm.xlu1 %15419, %v15893_v10   ;;  %239 = vperm.xlu0 %15418, %v15898_v11   ;;  %v15443_v32 = vld [vmem:[%s18530_s29 + $0x50] sm:$0xff]   ;;  %v15996_v33 = vld [vmem:[%s18528_s0 + $0x68] sm:$0xff]  ;;  %v15446_v34 = vld [vmem:[%s18529_s22] sm:$0xff]  }
  0x14   :  { %13660 = vmatmul.mubr.msk.bf16.vlgmr.msra.gmra.mrb[0].mxu0 %vm119_vm1, %v15432_v13  ;;  %13664 = vmatmul.mubr.msk.bf16.vlgmr.msra.gmra.mrb[0].mxu1 %vm119_vm1, %v15433_v14  ;;  %v16004_v35 = vld [vmem:[%s18528_s0 + $0x60] sm:$0xff]  ;;  %v15447_v36 = vld [vmem:[%s18529_s22 + $0x8] ss:$0 sps:$4 sm:$0x11]   ;;  %v15444_v37 = vld [vmem:[%s18530_s29 + $0x38] sm:$0xff]  }
  0x15   :  { %13668 = vmatpush3.bf16.msra.mxu1 %v15434_v15  ;;  %13680 = vmatpush3.bf16.msra.mxu0 %v15435_v16  ;;  %v15445_v38 = vld [vmem:[%s18530_s29 + $0x58] sm:$0xff]   ;;  %v15448_v39 = vld [vmem:[%s18530_s29 + $0x60] sm:$0xff]   ;;  %v731_v40 = vsel %vm132_vm0, %v15447_v36, 0  ;;  %v16029_v42 = vld [vmem:[%s18528_s0 + $0x70] sm:$0xff] }
  0x16   :  { %15409 = vmatprep.subr.msk.bf16.mxu1 %vm132_vm0, %v15436_v18  ;;  %15410 = vmatprep.subr.msk.bf16.mxu0 %vm132_vm0, %v15437_v20  ;;  %v16024_v41 = vld [vmem:[%s18528_s0 + $0x78] sm:$0xff]  ;;  %v16040_v43 = vld [vmem:[%s18528_s0 + $0x88] sm:$0xff]  ;;  %v16045_v44 = vld [vmem:[%s18528_s0 + $0x80] sm:$0xff] }
  0x17   :  { %254 = vperm.xlu1 %15419, %v15924_v17   ;;  %249 = vperm.xlu0 %15418, %v15934_v19   ;;  %v15449_v45 = vld [vmem:[%s18530_s29 + $0x68] sm:$0xff]   ;;  %v16053_v46 = vld [vmem:[%s18528_s0 + $0x98] sm:$0xff]  ;;  %v16058_v47 = vld [vmem:[%s18528_s0 + $0x90] sm:$0xff] }
  0x18   :  { %13671 = vmatprep.mubr.msk.bf16.mxu1 %vm119_vm1, %v15438_v23  ;;  %13683 = vmatprep.mubr.msk.bf16.mxu0 %vm119_vm1, %v15439_v25  ;;  %v15450_v48 = vld [vmem:[%s18530_s29 + $0x70] sm:$0xff]   ;;  %v16069_v49 = vld [vmem:[%s18528_s0 + $0xa8] sm:$0xff]  ;;  %v16074_v50 = vld [vmem:[%s18528_s0 + $0xa0] sm:$0xff] }
  0x19   :  { %13670 = vmatpush3.bf16.msra.mxu1 %v333_v21  ;;  %13682 = vmatpush3.bf16.msra.mxu0 %v532_v24  ;;  %v15451_v51 = vld [vmem:[%s18530_s29 + $0x78] sm:$0xff]   ;;  %v16090_v53 = vld [vmem:[%s18528_s0 + $0xb0] sm:$0xff]  ;;  %v16098_v54 = vld [vmem:[%s18528_s0 + $0xc8] sm:$0xff] }
  0x1a   :  { %13691 = vmatprep.subr.bf16.mxu1 %v15446_v34  ;;  %v16085_v52 = vld [vmem:[%s18528_s0 + $0xb8] sm:$0xff]  ;;  %v16103_v55 = vld [vmem:[%s18528_s0 + $0xc0] sm:$0xff]  ;;  %v16125_v57 = vld [vmem:[%s18528_s0 + $0xd0] sm:$0xff]  ;;  %13703 = vmatprep.subr.bf16.mxu0 %v15452_v63 }
  0x1b   :  { %423 = vperm.xlu1 %15419, %v15943_v22   ;;  %418 = vperm.xlu0 %15418, %v15959_v26   ;;  %v16120_v56 = vld [vmem:[%s18528_s0 + $0xd8] sm:$0xff]  ;;  %v16132_v58 = vld [vmem:[%s18528_s0 + $0xe8] sm:$0xff]  ;;  %v16137_v59 = vld [vmem:[%s18528_s0 + $0xe0] sm:$0xff] }
  0x1c   :  { %13672 = vmatmul.mubr.msk.bf16.vlgmr.msra.gmra.mrb[4].mxu1 %vm119_vm1, %v15440_v27  ;;  %13684 = vmatmul.mubr.msk.bf16.vlgmr.msra.gmra.mrb[4].mxu0 %vm119_vm1, %v15441_v28  ;;  %v16144_v60 = vld [vmem:[%s18528_s0 + $0xf8] sm:$0xff]  ;;  %v16149_v61 = vld [vmem:[%s18528_s0 + $0xf0] sm:$0xff]  ;;  %v16198_v4 = vld [vmem:[%s18503_s4] sm:$0xff]  }
  0x1d   :  { %13675 = vmatprep.mubr.msk.bf16.mxu1 %vm119_vm1, %v15442_v31  ;;  %13687 = vmatprep.mubr.msk.bf16.mxu0 %vm119_vm1, %v15443_v32 }
  0x1e   :  { %13692 = vmatpush3.bf16.msra.mxu1 %v15446_v34  ;;  %13704 = vmatpush3.bf16.msra.mxu0 %v15452_v63 }
  0x1f   :  { %433 = vperm.xlu1 %15419, %v15972_v29   ;;  %428 = vperm.xlu0 %15418, %v15977_v30  }
  0x20   :  { %15411 = vmatprep.subr.msk.bf16.mxu1 %vm132_vm0, %v15447_v36  ;;  %13705 = vmatprep.subr.bf16.mxu0 %v15453_v0 }
  0x22   :  { %13694 = vmatpush3.bf16.msra.mxu1 %v731_v40  ;;  %13706 = vmatpush3.bf16.msra.mxu0 %v15453_v0 }
  0x23   :  { %443 = vperm.xlu1 %15419, %v15996_v33   ;;  %438 = vperm.xlu0 %15418, %v16004_v35  }
  0x24   :  { %13676 = vmatmul.mubr.msk.bf16.gmra.mrb[8].mxu1 %vm119_vm1, %v15444_v37  ;;  %13688 = vmatmul.mubr.msk.bf16.gmra.mrb[8].mxu0 %vm119_vm1, %v15445_v38 }
  0x25   :  { %13695 = vmatprep.mubr.msk.bf16.mxu1 %vm119_vm1, %v15448_v39  ;;  %13715 = vmatprep.subr.bf16.mxu0 %v16198_v4 }
  0x27   :  { %453 = vperm.xlu1 %15419, %v16024_v41   ;;  %448 = vperm.xlu0 %15418, %v16029_v42  }
  0x2b   :  { %622 = vperm.xlu1 %15419, %v16040_v43   ;;  %617 = vperm.xlu0 %15418, %v16045_v44  }
  0x2c   :  { %13696 = vmatmul.mubr.msk.bf16.vlgmr.msra.gmra.mrb[12].mxu1 %vm119_vm1, %v15449_v45 }
  0x2d   :  { %13699 = vmatprep.mubr.msk.bf16.mxu1 %vm119_vm1, %v15450_v48 }
  0x2f   :  { %632 = vperm.xlu1 %15419, %v16053_v46   ;;  %627 = vperm.xlu0 %15418, %v16058_v47  }
  0x33   :  { %642 = vperm.xlu1 %15419, %v16069_v49   ;;  %637 = vperm.xlu0 %15418, %v16074_v50  }
  0x34   :  { %13700 = vmatmul.mubr.msk.bf16.gmra.mrb[16].mxu1 %vm119_vm1, %v15451_v51 }
  0x37   :  { %652 = vperm.xlu1 %15419, %v16085_v52   ;;  %647 = vperm.xlu0 %15418, %v16090_v53  }
  0x3b   :  { %821 = vperm.xlu1 %15419, %v16098_v54   ;;  %816 = vperm.xlu0 %15418, %v16103_v55  }
  0x3f   :  { %1917 = vperm.xlu1 %15419, %v15882_v7   ;;  %1912 = vperm.xlu0 %15418, %v15862_v2  }
  0x43   :  { %1927 = vperm.xlu1 %15419, %v15877_v6   ;;  %1922 = vperm.xlu0 %15418, %v15857_v1  }
  0x47   :  { %1937 = vperm.xlu1 %15419, %v15893_v10   ;;  %1932 = vperm.xlu0 %15418, %v15898_v11  }
  0x4b   :  { %1947 = vperm.xlu1 %15419, %v15924_v17   ;;  %1942 = vperm.xlu0 %15418, %v15934_v19  }
  0x4f   :  { %3005 = vperm.xlu1 %15419, %v15943_v22   ;;  %3000 = vperm.xlu0 %15418, %v15959_v26  }
  0x53   :  { %831 = vperm.xlu1 %15419, %v16120_v56   ;;  %826 = vperm.xlu0 %15418, %v16125_v57  }
  0x57   :  { %841 = vperm.xlu1 %15419, %v16132_v58   ;;  %836 = vperm.xlu0 %15418, %v16137_v59  }
  0x5b   :  { %851 = vperm.xlu1 %15419, %v16144_v60   ;;  %846 = vperm.xlu0 %15418, %v16149_v61  }
  0x5f   :  { %6421 = vperm.xlu1 %15419, %v15882_v7   ;;  %6416 = vperm.xlu0 %15418, %v15862_v2   ;;  %v15456_v2 = vld [vmem:[%s18503_s4 + $0x18] sm:$0xff]  }
  0x63   :  { %6431 = vperm.xlu1 %15419, %v15877_v6   ;;  %6426 = vperm.xlu0 %15418, %v15857_v1   ;;  %v15455_v1 = vld [vmem:[%s18503_s4 + $0x10] sm:$0xff]   ;;  %v16212_v6 = vld [vmem:[%s18503_s4] sm:$0xff]  }
  0x64   :  { %13811 = vmatprep.subr.bf16.mxu1 %v15455_v1 }
  0x65   :  { %13812 = vmatpush3.bf16.msra.mxu1 %v15455_v1 }
  0x66   :  { %13813 = vmatprep.subr.bf16.mxu1 %v15456_v2 }
  0x67   :  { %6441 = vperm.xlu1 %15419, %v15893_v10   ;;  %6436 = vperm.xlu0 %15418, %v15898_v11  }
  0x69   :  { %13814 = vmatpush3.bf16.msra.mxu1 %v15456_v2 }
  0x6a   :  { %13823 = vmatprep.subr.bf16.mxu1 %v16212_v6 }
  0x6b   :  { %6446 = vperm.xlu1 %15419, %v15934_v19   ;;  %3010 = vperm.xlu0 %15418, %v15977_v30  }
  0x6f   :  { %3015 = vperm.xlu1 %15419, %v15972_v29   ;;  %6451 = vperm.xlu0 %15418, %v15924_v17  }
  0x73   :  { %3025 = vperm.xlu1 %15419, %v15996_v33   ;;  %3020 = vperm.xlu0 %15418, %v16004_v35  }
  0x77   :  { %3035 = vperm.xlu1 %15419, %v16024_v41   ;;  %3030 = vperm.xlu0 %15418, %v16029_v42  }
  0x7b   :  { %4093 = vperm.xlu1 %15419, %v16040_v43   ;;  %4088 = vperm.xlu0 %15418, %v16045_v44  }
  0x7f   :  { %7782 = vperm.xlu1 %15419, %v15943_v22   ;;  %7777 = vperm.xlu0 %15418, %v15959_v26  }
  0x83   :  { %7792 = vperm.xlu1 %15419, %v15972_v29   ;;  %7787 = vperm.xlu0 %15418, %v15977_v30  }
  0x87   :  { %7802 = vperm.xlu1 %15419, %v15996_v33   ;;  %7797 = vperm.xlu0 %15418, %v16004_v35  }
  0x8a   :  { %v16205_v5 = vpop.permute.xlu0 %219  ;;  %v16215_v7 = vpop.permute.xlu1 %229 }
  0x8b   :  { %7807 = vperm.xlu1 %15419, %v16029_v42   ;;  %4098 = vperm.xlu0 %15418, %v16058_v47  }
  0x8e   :  { %v16217_v8 = vpop.permute.xlu0 %224  ;;  %v16223_v9 = vpop.permute.xlu1 %234 }
  0x8f   :  { %4103 = vperm.xlu1 %15419, %v16053_v46   ;;  %7812 = vperm.xlu0 %15418, %v16024_v41  }
  0x92   :  { %v16225_v10 = vpop.permute.xlu0 %239  ;;  %v16229_v11 = vpop.permute.xlu1 %244 }
  0x93   :  { %4113 = vperm.xlu1 %15419, %v16069_v49   ;;  %4108 = vperm.xlu0 %15418, %v16074_v50  }
  0x96   :  { %v16231_v12 = vpop.permute.xlu0 %249  ;;  %v16237_v13 = vpop.permute.xlu1 %254 }
  0x97   :  { %4123 = vperm.xlu1 %15419, %v16085_v52   ;;  %4118 = vperm.xlu0 %15418, %v16090_v53  }
  0x9a   :  { %v16239_v14 = vpop.permute.xlu0 %418  ;;  %v16243_v15 = vpop.permute.xlu1 %423 }
  0x9b   :  { %5181 = vperm.xlu1 %15419, %v16098_v54   ;;  %5176 = vperm.xlu0 %15418, %v16103_v55  }
  0x9e   :  { %v16245_v16 = vpop.permute.xlu0 %428  ;;  %v16251_v17 = vpop.permute.xlu1 %433 }
  0x9f   :  { %9142 = vperm.xlu1 %15419, %v16040_v43   ;;  %9137 = vperm.xlu0 %15418, %v16045_v44  }
  0xa2   :  { %v16253_v18 = vpop.permute.xlu0 %438  ;;  %v16257_v19 = vpop.permute.xlu1 %443 }
  0xa3   :  { %9152 = vperm.xlu1 %15419, %v16053_v46   ;;  %9147 = vperm.xlu0 %15418, %v16058_v47  }
  0xa6   :  { %v16259_v20 = vpop.permute.xlu0 %448  ;;  %v16265_v21 = vpop.permute.xlu1 %453 }
  0xa7   :  { %9162 = vperm.xlu1 %15419, %v16069_v49   ;;  %9157 = vperm.xlu0 %15418, %v16074_v50  }
  0xaa   :  { %v16267_v22 = vpop.permute.xlu0 %617  ;;  %v16271_v23 = vpop.permute.xlu1 %622 }
  0xab   :  { %9167 = vperm.xlu1 %15419, %v16090_v53   ;;  %5186 = vperm.xlu0 %15418, %v16125_v57  }
  0xae   :  { %v16273_v24 = vpop.permute.xlu0 %627  ;;  %v16279_v25 = vpop.permute.xlu1 %632 }
  0xaf   :  { %5191 = vperm.xlu1 %15419, %v16120_v56   ;;  %9172 = vperm.xlu0 %15418, %v16085_v52  }
  0xb2   :  { %v16281_v26 = vpop.permute.xlu0 %637  ;;  %v16283_v27 = vpop.permute.xlu1 %642 }
  0xb3   :  { %5201 = vperm.xlu1 %15419, %v16132_v58   ;;  %5196 = vperm.xlu0 %15418, %v16137_v59  }
  0xb6   :  { %v16285_v28 = vpop.permute.xlu0 %647  ;;  %v16287_v29 = vpop.permute.xlu1 %652 }
  0xb7   :  { %5211 = vperm.xlu1 %15419, %v16144_v60   ;;  %5206 = vperm.xlu0 %15418, %v16149_v61  }
  0xba   :  { %v16289_v30 = vpop.permute.xlu0 %816  ;;  %v16291_v31 = vpop.permute.xlu1 %821 }
  0xbb   :  { %10502 = vperm.xlu1 %15419, %v16098_v54   ;;  %10497 = vperm.xlu0 %15418, %v16103_v55  }
  0xbe   :  { %v16293_v32 = vpop.permute.xlu0 %1912 }
  0xbf   :  { %10512 = vperm.xlu1 %15419, %v16120_v56   ;;  %10507 = vperm.xlu0 %15418, %v16125_v57  }
  0xc3   :  { %10522 = vperm.xlu1 %15419, %v16132_v58   ;;  %10517 = vperm.xlu0 %15418, %v16137_v59  }
  0xc7   :  { %10532 = vperm.xlu1 %15419, %v16144_v60   ;;  %10527 = vperm.xlu0 %15418, %v16149_v61  }
  0xc8   :  { %26 = vsyncpa [#allocation7], 0  ;;  %v16295_v33 = vpop.permute.xlu1 %1917  ;;  %v16297_v34 = vpop.permute.xlu0 %1922  ;;  %v16302_v35 = vld [vmem:[%s18502_s3] ss:$0 sm:$0xff]  ;;  %v15472_v3 = vld [vmem:[%s18503_s4 + $0x48] sm:$0xff]   ;;  %vm67_vm3 = vcmask 523264  }
  0xc9   :  { %68 = vst.msk [vmem:[#allocation3] sm:$0xff] %vm67_vm3, %v18523_v62  ;;  %69 = vst.msk [vmem:[#allocation3 + $0x8] sm:$0xff] %vm67_vm3, %v18523_v62  ;;  %vm6590_vm4 = vcmask 23552   ;;  %vm15754_vm7 = vmmov 0   ;;  %vm12011_vm8 = vcmask 15360   ;;  %vm12022_vm9 = vcmask 9216  }
  0xca   :  { %70 = vst.msk [vmem:[#allocation3 + $0x110] sm:$0xff] %vm67_vm3, %v18523_v62  ;;  %71 = vst.msk [vmem:[#allocation3 + $0x118] sm:$0xff] %vm67_vm3, %v18523_v62  ;;  %vm12024_vm10 = vcmask 8192  }
  0xcc   :  { %v16304_v36 = vpop.permute.xlu1 %1927  ;;  %v16306_v37 = vpop.permute.xlu0 %1932 }
  0xe7   :  { %v13661_v38 = vpop.f32.mrb[0].mxu0  ;;  %v13665_v39 = vpop.f32.mrb[0].mxu1 }
  0xe8   :  { %v179_v40 = vadd.f32 %v13661_v38, %v16302_v35  ;;  %v195_v41 = vadd.f32 %v13665_v39, %v16302_v35  ;;  %v170_v42 = vpop.f32.mrb[1].mxu0  ;;  %v186_v43 = vpop.f32.mrb[1].mxu1 }
  0xe9   :  { %v171_v44 = vadd.f32 %v16302_v35, %v170_v42  ;;  %v187_v45 = vadd.f32 %v16302_v35, %v186_v43  ;;  %v13662_v46 = vpop.f32.mrb[2].mxu0  ;;  %v13666_v47 = vpop.f32.mrb[2].mxu1 }
  0xea   :  { %v203_v48 = vmax.f32 %v179_v40, 0.0  ;;  %v207_v49 = vmax.f32 %v195_v41, 0.0  ;;  %v182_v50 = vadd.f32 %v13662_v46, %v16302_v35  ;;  %v198_v51 = vadd.f32 %v13666_v47, %v16302_v35  ;;  %v173_v54 = vpop.f32.mrb[3].mxu0  ;;  %v189_v55 = vpop.f32.mrb[3].mxu1 }
  0xeb   :  { %v201_v52 = vmax.f32 %v171_v44, 0.0  ;;  %v205_v53 = vmax.f32 %v187_v45, 0.0  ;;  %v174_v63 = vadd.f32 %v16302_v35, %v173_v54  ;;  %v190_v0 = vadd.f32 %v16302_v35, %v189_v55  ;;  %v886_v54 = vld [vmem:[#allocation2 + $0x5] sm:$0xff] }
  0xec   :  { %v259_v56 = vmul.f32 %v16215_v7, %v203_v48  ;;  %v263_v57 = vmul.f32 %v16231_v12, %v207_v49  ;;  %v204_v58 = vmax.f32 %v182_v50, 0.0  ;;  %v208_v59 = vmax.f32 %v198_v51, 0.0  ;;  %v16324_v7 = vpop.permute.xlu1 %1937  ;;  %v16326_v12 = vpop.permute.xlu0 %1942 }
  0xed   :  { %v257_v60 = vmul.f32 %v16205_v5, %v201_v52  ;;  %v261_v61 = vmul.f32 %v16225_v10, %v205_v53  ;;  %v202_v5 = vmax.f32 %v174_v63, 0.0  ;;  %v206_v10 = vmax.f32 %v190_v0, 0.0 }
  0xee   :  { %267 = vst.msk [vmem:[#allocation2 + $0x20] sm:$0xff] %vm62_vm2, %v259_v56  ;;  %271 = vst.msk [vmem:[#allocation2 + $0x40] sm:$0xff] %vm62_vm2, %v263_v57  ;;  %v260_v1 = vmul.f32 %v16223_v9, %v204_v58  ;;  %v264_v2 = vmul.f32 %v16237_v13, %v208_v59 }
  0xef   :  { %265 = vst.msk [vmem:[#allocation2 + $0x10] sm:$0xff] %vm62_vm2, %v257_v60  ;;  %269 = vst.msk [vmem:[#allocation2 + $0x30] sm:$0xff] %vm62_vm2, %v261_v61  ;;  %v13673_v38 = vpop.f32.mrb[4].mxu1  ;;  %v13685_v39 = vpop.f32.mrb[4].mxu0  ;;  %v258_v9 = vmul.f32 %v16217_v8, %v202_v5  ;;  %v262_v13 = vmul.f32 %v16229_v11, %v206_v10 }
  0xf0   :  { %268 = vst.msk [vmem:[#allocation2 + $0x28] sm:$0xff] %vm62_vm2, %v260_v1  ;;  %272 = vst.msk [vmem:[#allocation2 + $0x48] sm:$0xff] %vm62_vm2, %v264_v2  ;;  %v378_v40 = vadd.f32 %v13673_v38, %v16302_v35  ;;  %v577_v41 = vadd.f32 %v13685_v39, %v16302_v35  ;;  %v369_v42 = vpop.f32.mrb[5].mxu1  ;;  %v568_v43 = vpop.f32.mrb[5].mxu0 }
  0xf1   :  { %v370_v44 = vadd.f32 %v16302_v35, %v369_v42  ;;  %v569_v45 = vadd.f32 %v16302_v35, %v568_v43  ;;  %v13674_v46 = vpop.f32.mrb[6].mxu1  ;;  %v13686_v47 = vpop.f32.mrb[6].mxu0  ;;  %266 = vst.msk [vmem:[#allocation2 + $0x18] sm:$0xff] %vm62_vm2, %v258_v9  ;;  %270 = vst.msk [vmem:[#allocation2 + $0x38] sm:$0xff] %vm62_vm2, %v262_v13 }
  0xf2   :  { %v402_v48 = vmax.f32 %v378_v40, 0.0  ;;  %v601_v8 = vmax.f32 %v577_v41, 0.0  ;;  %v381_v11 = vadd.f32 %v13674_v46, %v16302_v35  ;;  %v580_v49 = vadd.f32 %v13686_v47, %v16302_v35  ;;  %v372_v52 = vpop.f32.mrb[7].mxu1  ;;  %v571_v53 = vpop.f32.mrb[7].mxu0 }
  0xf3   :  { %v400_v50 = vmax.f32 %v370_v44, 0.0  ;;  %v599_v51 = vmax.f32 %v569_v45, 0.0  ;;  %v16342_v55 = vpop.permute.xlu1 %1947  ;;  %v373_v63 = vadd.f32 %v16302_v35, %v372_v52  ;;  %v572_v0 = vadd.f32 %v16302_v35, %v571_v53  ;;  %v16350_v2 = vpop.permute.xlu0 %3000 }
  0xf4   :  { %v458_v56 = vmul.f32 %v16245_v16, %v402_v48  ;;  %v657_v57 = vmul.f32 %v16273_v24, %v601_v8  ;;  %v403_v58 = vmax.f32 %v381_v11, 0.0  ;;  %v602_v59 = vmax.f32 %v580_v49, 0.0 }
  0xf5   :  { %v456_v60 = vmul.f32 %v16239_v14, %v400_v50  ;;  %v655_v61 = vmul.f32 %v16267_v22, %v599_v51  ;;  %v401_v14 = vmax.f32 %v373_v63, 0.0  ;;  %v600_v22 = vmax.f32 %v572_v0, 0.0 }
  0xf6   :  { %v887_v1 = vld [vmem:[#allocation2 + $0xd] sm:$0xff]  ;;  %466 = vst.msk [vmem:[#allocation2 + $0x60] sm:$0xff] %vm62_vm2, %v458_v56  ;;  %665 = vst.msk [vmem:[#allocation2 + $0xa0] sm:$0xff] %vm62_vm2, %v657_v57  ;;  %v459_v16 = vmul.f32 %v16251_v17, %v403_v58  ;;  %v658_v24 = vmul.f32 %v16279_v25, %v602_v59 }
  0xf7   :  { %v894_v5 = vpack.c.bf16 %v887_v1, %v886_v54  ;;  %464 = vst.msk [vmem:[#allocation2 + $0x50] sm:$0xff] %vm62_vm2, %v456_v60  ;;  %663 = vst.msk [vmem:[#allocation2 + $0x90] sm:$0xff] %vm62_vm2, %v655_v61  ;;  %v13677_v10 = vpop.f32.mrb[8].mxu1  ;;  %v13689_v38 = vpop.f32.mrb[8].mxu0  ;;  %v890_v25 = vld [vmem:[#allocation2 + $0x25] sm:$0xff]  ;;  %v891_v40 = vld [vmem:[#allocation2 + $0x2d] sm:$0xff]  ;;  %v457_v41 = vmul.f32 %v16243_v15, %v401_v14  ;;  %v656_v42 = vmul.f32 %v16271_v23, %v600_v22 }
  0xf8   :  { %467 = vst.msk [vmem:[#allocation2 + $0x68] sm:$0xff] %vm62_vm2, %v459_v16  ;;  %666 = vst.msk [vmem:[#allocation2 + $0xa8] sm:$0xff] %vm62_vm2, %v658_v24  ;;  %v394_v39 = vadd.f32 %v13677_v10, %v16302_v35  ;;  %v593_v9 = vadd.f32 %v13689_v38, %v16302_v35  ;;  %v385_v17 = vpop.f32.mrb[9].mxu1  ;;  %v584_v13 = vpop.f32.mrb[9].mxu0  ;;  %v888_v47 = vld [vmem:[#allocation2 + $0x15] sm:$0xff]  ;;  %v889_v48 = vld [vmem:[#allocation2 + $0x1d] sm:$0xff]  ;;  %v896_v56 = vpack.c.bf16 %v891_v40, %v890_v25 }
  0xf9   :  { %13707 = vmatprep.mubr.msk.bf16.mxu0 %vm62_vm2, %v894_v5  ;;  %v386_v43 = vadd.f32 %v16302_v35, %v385_v17  ;;  %v585_v44 = vadd.f32 %v16302_v35, %v584_v13  ;;  %v13678_v45 = vpop.f32.mrb[10].mxu1  ;;  %v13690_v46 = vpop.f32.mrb[10].mxu0  ;;  %465 = vst.msk [vmem:[#allocation2 + $0x58] sm:$0xff] %vm62_vm2, %v457_v41  ;;  %664 = vst.msk [vmem:[#allocation2 + $0x98] sm:$0xff] %vm62_vm2, %v656_v42  ;;  %v895_v54 = vpack.c.bf16 %v889_v48, %v888_v47  ;;  %v15457_v57 = vld [vmem:[%s18503_s4 + $0x8] sm:$0xff]   ;;  %v892_v38 = vld [vmem:[#allocation2 + $0x35] sm:$0xff] }
  0xfa   :  { %v16367_v8 = vpop.permute.xlu1 %3005  ;;  %v406_v11 = vmax.f32 %v394_v39, 0.0  ;;  %v605_v49 = vmax.f32 %v593_v9, 0.0  ;;  %v397_v50 = vadd.f32 %v13678_v45, %v16302_v35  ;;  %v596_v51 = vadd.f32 %v13690_v46, %v16302_v35  ;;  %v388_v52 = vpop.f32.mrb[11].mxu1  ;;  %v893_v39 = vld [vmem:[#allocation2 + $0x3d] sm:$0xff]  ;;  %v871_v42 = vld [vmem:[#allocation2 + $0xc] sm:$0xff] }
  0xfb   :  { %v404_v15 = vmax.f32 %v386_v43, 0.0  ;;  %v603_v23 = vmax.f32 %v585_v44, 0.0  ;;  %v587_v53 = vpop.f32.mrb[11].mxu0  ;;  %v389_v1 = vadd.f32 %v16302_v35, %v388_v52  ;;  %13708 = vmatmul.mubr.msk.bf16.vlgmr.msra.gmra.mrb[12].mxu0 %vm62_vm2, %v895_v54  ;;  %v827_v24 = vpop.permute.xlu0 %826  ;;  %v870_v41 = vld [vmem:[#allocation2 + $0x4] sm:$0xff] }
  0xfc   :  { %v462_v58 = vmul.f32 %v16259_v20, %v406_v11  ;;  %v661_v59 = vmul.f32 %v16285_v28, %v605_v49  ;;  %v407_v60 = vmax.f32 %v397_v50, 0.0  ;;  %v606_v61 = vmax.f32 %v596_v51, 0.0  ;;  %13711 = vmatprep.mubr.msk.bf16.mxu0 %vm62_vm2, %v896_v56  ;;  %13716 = vmatpush3.bf16.msra.mxu0 %v16198_v4  ;;  %v15460_v11 = vld [vmem:[%s18503_s4 + $0x8] sm:$0xff]  }
  0xfd   :  { %v460_v63 = vmul.f32 %v16253_v18, %v404_v15  ;;  %v659_v0 = vmul.f32 %v16281_v26, %v603_v23  ;;  %v588_v16 = vadd.f32 %v16302_v35, %v587_v53  ;;  %v1982_v18 = vld [vmem:[#allocation2 + $0x45] sm:$0xff]  ;;  %v405_v5 = vmax.f32 %v389_v1, 0.0  ;;  %13717 = vmatprep.subr.bf16.mxu0 %v15457_v57  ;;  %v16411_v23 = vld [vmem:[#allocation2 + $0x1c] sm:$0xff] }
  0xfe   :  { %470 = vst.msk [vmem:[#allocation2 + $0x80] sm:$0xff] %vm62_vm2, %v462_v58  ;;  %669 = vst.msk [vmem:[#allocation2 + $0xc0] sm:$0xff] %vm62_vm2, %v661_v59  ;;  %v463_v20 = vmul.f32 %v16265_v21, %v407_v60  ;;  %v662_v28 = vmul.f32 %v16287_v29, %v606_v61  ;;  %v1983_v26 = vld [vmem:[#allocation2 + $0x4d] sm:$0xff]  ;;  %v16394_v21 = vld [vmem:[%s18503_s4 + $0x20] sm:$0xff]   ;;  %v832_v9 = vpop.permute.xlu1 %831  ;;  %v878_v15 = vpack.c.bf16 %v871_v42, %v870_v41 }
  0xff   :  { %468 = vst.msk [vmem:[#allocation2 + $0x70] sm:$0xff] %vm62_vm2, %v460_v63  ;;  %667 = vst.msk [vmem:[#allocation2 + $0xb0] sm:$0xff] %vm62_vm2, %v659_v0  ;;  %v604_v14 = vmax.f32 %v588_v16, 0.0  ;;  %v13697_v22 = vpop.f32.mrb[12].mxu1  ;;  %v1990_v10 = vpack.c.bf16 %v1983_v26, %v1982_v18  ;;  %v461_v17 = vmul.f32 %v16257_v19, %v405_v5  ;;  %v16413_v52 = vld [vmem:[#allocation2 + $0x24] sm:$0xff]  ;;  %v837_v53 = vpop.permute.xlu0 %836  ;;  %v16418_v56 = vld [vmem:[#allocation2 + $0x2c] sm:$0xff] }
 0x100   :  { %471 = vst.msk [vmem:[#allocation2 + $0x88] sm:$0xff] %vm62_vm2, %v463_v20  ;;  %670 = vst.msk [vmem:[#allocation2 + $0xc8] sm:$0xff] %vm62_vm2, %v662_v28  ;;  %v776_v4 = vadd.f32 %v13697_v22, %v16302_v35  ;;  %v767_v29 = vpop.f32.mrb[13].mxu1  ;;  %v1984_v45 = vld [vmem:[#allocation2 + $0x55] sm:$0xff]  ;;  %v1985_v46 = vld [vmem:[#allocation2 + $0x5d] sm:$0xff]  ;;  %13718 = vmatpush3.bf16.msra.mxu0 %v15457_v57  ;;  %v1773_v18 = vpack.c.bf16 %v16413_v52, %v16411_v23 }
 0x101   :  { %v660_v13 = vmul.f32 %v16283_v27, %v604_v14  ;;  %v768_v25 = vadd.f32 %v16302_v35, %v767_v29  ;;  %v13698_v40 = vpop.f32.mrb[14].mxu1  ;;  %13815 = vmatprep.mubr.msk.bf16.mxu1 %vm62_vm2, %v1990_v10  ;;  %469 = vst.msk [vmem:[#allocation2 + $0x78] sm:$0xff] %vm62_vm2, %v461_v17  ;;  %v897_v27 = vpack.c.bf16 %v893_v39, %v892_v38  ;;  %v16420_v57 = vld [vmem:[#allocation2 + $0x44] sm:$0xff]  ;;  %v16422_v58 = vld [vmem:[#allocation2 + $0x34] sm:$0xff]  ;;  %v16442_v14 = vld [vmem:[#allocation2 + $0x5c] sm:$0xff] }
 0x102   :  { %v800_v43 = vmax.f32 %v776_v4, 0.0  ;;  %v779_v44 = vadd.f32 %v13698_v40, %v16302_v35  ;;  %v770_v47 = vpop.f32.mrb[15].mxu1  ;;  %v1991_v48 = vpack.c.bf16 %v1985_v46, %v1984_v45  ;;  %13727 = vmatprep.subr.bf16.mxu0 %v16394_v21  ;;  %v1986_v61 = vld [vmem:[#allocation2 + $0x65] sm:$0xff]  ;;  %v842_v0 = vpop.permute.xlu1 %841  ;;  %v872_v20 = vld [vmem:[#allocation2 + $0x14] sm:$0xff]  ;;  %v1774_v29 = vpack.c.bf16 %v16422_v58, %v16418_v56 }
 0x103   :  { %668 = vst.msk [vmem:[#allocation2 + $0xb8] sm:$0xff] %vm62_vm2, %v660_v13  ;;  %v798_v19 = vmax.f32 %v768_v25, 0.0  ;;  %v771_v51 = vadd.f32 %v16302_v35, %v770_v47  ;;  %13712 = vmatmul.mubr.msk.bf16.gmra.mrb[16].mxu0 %vm62_vm2, %v897_v27  ;;  %v16433_v28 = vld [vmem:[%s18503_s4 + $0x20] sm:$0xff]   ;;  %v16440_v5 = vld [vmem:[#allocation2 + $0x54] sm:$0xff]  ;;  %v16455_v25 = vld [vmem:[#allocation2 + $0x4c] sm:$0xff]  ;;  %v847_v40 = vpop.permute.xlu0 %846 }
 0x104   :  { %v856_v49 = vmul.f32 %v827_v24, %v800_v43  ;;  %v801_v50 = vmax.f32 %v779_v44, 0.0  ;;  %13816 = vmatmul.mubr.msk.bf16.vlgmr.msra.gmra.mrb[20].mxu1 %vm62_vm2, %v1991_v48  ;;  %13719 = vmatprep.mubr.msk.bf16.mxu0 %vm62_vm2, %v878_v15  ;;  %v16444_v22 = vld [vmem:[#allocation2 + $0x64] sm:$0xff]  ;;  %v1776_v46 = vpack.c.bf16 %v16440_v5, %v16455_v25  ;;  %v880_v48 = vpack.c.bf16 %v16418_v56, %v16413_v52 }
 0x105   :  { %v854_v54 = vmul.f32 %v16289_v30, %v798_v19  ;;  %v799_v60 = vmax.f32 %v771_v51, 0.0  ;;  %13824 = vmatpush3.bf16.msra.mxu1 %v16212_v6  ;;  %v16427_v30 = vld [vmem:[#allocation2 + $0x3c] sm:$0xff]  ;;  %v15461_v44 = vld [vmem:[%s18503_s4 + $0x28] sm:$0xff]   ;;  %v2862_v45 = vpack.c.bf16 %v16444_v22, %v16442_v14  ;;  %v1974_v51 = vpack.c.bf16 %v16455_v25, %v16420_v57 }
 0x106   :  { %864 = vst.msk [vmem:[#allocation2 + $0xe0] sm:$0xff] %vm62_vm2, %v856_v49  ;;  %v857_v59 = vmul.f32 %v832_v9, %v801_v50  ;;  %v1987_v63 = vld [vmem:[#allocation2 + $0x6d] sm:$0xff]  ;;  %13825 = vmatprep.subr.bf16.mxu1 %v15460_v11  ;;  %v879_v9 = vpack.c.bf16 %v16411_v23, %v872_v20  ;;  %v852_v49 = vpop.permute.xlu1 %851  ;;  %v15492_v23 = vld [vmem:[%s18503_s4] sm:$0xff]  }
 0x107   :  { %862 = vst.msk [vmem:[#allocation2 + $0xd0] sm:$0xff] %vm62_vm2, %v854_v54  ;;  %v13701_v1 = vpop.f32.mrb[16].mxu1  ;;  %v1992_v16 = vpack.c.bf16 %v1987_v63, %v1986_v61  ;;  %v855_v6 = vmul.f32 %v16291_v31, %v799_v60  ;;  %v1775_v31 = vpack.c.bf16 %v16420_v57, %v16427_v30  ;;  %v1081_v61 = vld [vmem:[#allocation2 + $0x6] sm:$0xff]  ;;  %v1082_v63 = vld [vmem:[#allocation2 + $0xe] sm:$0xff] }
 0x108   :  { %865 = vst.msk [vmem:[#allocation2 + $0xe8] sm:$0xff] %vm62_vm2, %v857_v59  ;;  %v792_v26 = vadd.f32 %v13701_v1, %v16302_v35  ;;  %v783_v24 = vpop.f32.mrb[17].mxu1  ;;  %v1988_v17 = vld [vmem:[#allocation2 + $0x75] sm:$0xff]  ;;  %v1989_v13 = vld [vmem:[#allocation2 + $0x7d] sm:$0xff]  ;;  %v1975_v1 = vpack.c.bf16 %v16442_v14, %v16440_v5  ;;  %v3070_v56 = vld [vmem:[#allocation2 + $0x85] sm:$0xff] }
 0x109   :  { %v784_v10 = vadd.f32 %v16302_v35, %v783_v24  ;;  %v13702_v4 = vpop.f32.mrb[18].mxu1  ;;  %13819 = vmatprep.mubr.msk.bf16.mxu1 %vm62_vm2, %v1992_v16  ;;  %863 = vst.msk [vmem:[#allocation2 + $0xd8] sm:$0xff] %vm62_vm2, %v855_v6  ;;  %13826 = vmatpush3.bf16.msra.mxu1 %v15460_v11  ;;  %v1993_v43 = vpack.c.bf16 %v1989_v13, %v1988_v17  ;;  %v16468_v11 = vld [vmem:[#allocation2 + $0x74] sm:$0xff]  ;;  %v1084_v24 = vld [vmem:[#allocation2 + $0x1e] sm:$0xff]  ;;  %v2860_v14 = vld [vmem:[#allocation2 + $0x8c] sm:$0xff] }
 0x10a   :  { %v804_v38 = vmax.f32 %v792_v26, 0.0  ;;  %v795_v39 = vadd.f32 %v13702_v4, %v16302_v35  ;;  %v786_v42 = vpop.f32.mrb[19].mxu1  ;;  %13835 = vmatprep.subr.bf16.mxu1 %v16433_v28  ;;  %v1089_v16 = vpack.c.bf16 %v1082_v63, %v1081_v61  ;;  %v15467_v6 = vld [vmem:[%s18503_s4 + $0x30] sm:$0xff]   ;;  %v1085_v4 = vld [vmem:[#allocation2 + $0x26] sm:$0xff] }
 0x10b   :  { %v802_v41 = vmax.f32 %v784_v10, 0.0  ;;  %v787_v27 = vadd.f32 %v16302_v35, %v786_v42  ;;  %13720 = vmatmul.mubr.msk.bf16.vlgmr.msra.gmra.mrb[12].mxu0 %vm62_vm2, %v879_v9  ;;  %v16477_v35 = vld [vmem:[#allocation2 + $0x6c] sm:$0xff]  ;;  %v1083_v26 = vld [vmem:[#allocation2 + $0x16] sm:$0xff]  ;;  %v1197_v61 = vld [vmem:[#allocation2 + $0x1f] sm:$0xff] }
 0x10c   :  { %v860_v19 = vmul.f32 %v847_v40, %v804_v38  ;;  %v805_v47 = vmax.f32 %v795_v39, 0.0  ;;  %13820 = vmatmul.mubr.msk.bf16.gmra.mrb[24].mxu1 %vm62_vm2, %v1993_v43  ;;  %13723 = vmatprep.mubr.msk.bf16.mxu0 %vm62_vm2, %v880_v48  ;;  %v2863_v59 = vpack.c.bf16 %v16468_v11, %v16477_v35  ;;  %v1976_v20 = vpack.c.bf16 %v16477_v35, %v16444_v22  ;;  %v16505_v10 = vld [vmem:[#allocation2 + $0x7c] sm:$0xff]  ;;  %v1086_v38 = vld [vmem:[#allocation2 + $0x2e] sm:$0xff]  ;;  %v2176_v40 = vld [vmem:[#allocation2 + $0x46] sm:$0xff] }
 0x10d   :  { %v858_v50 = vmul.f32 %v837_v53, %v802_v41  ;;  %v803_v54 = vmax.f32 %v787_v27, 0.0  ;;  %13728 = vmatpush3.bf16.msra.mxu0 %v16394_v21  ;;  %13827 = vmatprep.mubr.msk.bf16.mxu1 %vm62_vm2, %v1974_v51  ;;  %v15462_v53 = vld [vmem:[%s18503_s4 + $0x30] sm:$0xff]   ;;  %v881_v21 = vpack.c.bf16 %v16427_v30, %v16422_v58  ;;  %v1090_v9 = vpack.c.bf16 %v1084_v24, %v1083_v26  ;;  %v15466_v43 = vld [vmem:[%s18503_s4 + $0x40] sm:$0xff]   ;;  %v15491_v30 = vld [vmem:[%s18503_s4 + $0x18] sm:$0xff]  }
 0x10e   :  { %868 = vst.msk [vmem:[#allocation2 + $0x100] sm:$0xff] %vm62_vm2, %v860_v19  ;;  %v861_v15 = vmul.f32 %v852_v49, %v805_v47  ;;  %13729 = vmatprep.subr.bf16.mxu0 %v15461_v44  ;;  %v2177_v39 = vld [vmem:[#allocation2 + $0x4e] sm:$0xff]  ;;  %v1977_v17 = vpack.c.bf16 %v16505_v10, %v16468_v11  ;;  %v1091_v13 = vpack.c.bf16 %v1086_v38, %v1085_v4  ;;  %v1087_v42 = vld [vmem:[#allocation2 + $0x36] sm:$0xff]  ;;  %v2179_v47 = vld [vmem:[#allocation2 + $0x5e] sm:$0xff] }
 0x10f   :  { %866 = vst.msk [vmem:[#allocation2 + $0xf0] sm:$0xff] %vm62_vm2, %v858_v50  ;;  %v859_v60 = vmul.f32 %v842_v0, %v803_v54  ;;  %v15464_v0 = vld [vmem:[%s18503_s4 + $0x28] sm:$0xff]   ;;  %v2184_v41 = vpack.c.bf16 %v2177_v39, %v2176_v40  ;;  %v2178_v19 = vld [vmem:[#allocation2 + $0x56] sm:$0xff]  ;;  %v15471_v63 = vld [vmem:[%s18503_s4 + $0x40] sm:$0xff]  }
 0x110   :  { %869 = vst.msk [vmem:[#allocation2 + $0x108] sm:$0xff] %vm62_vm2, %v861_v15  ;;  %v1196_v27 = vld [vmem:[#allocation2 + $0x17] sm:$0xff]  ;;  %v2181_v48 = vld [vmem:[#allocation2 + $0x6e] sm:$0xff]  ;;  %v2185_v50 = vpack.c.bf16 %v2179_v47, %v2178_v19  ;;  %v2180_v15 = vld [vmem:[#allocation2 + $0x66] sm:$0xff] }
 0x111   :  { %867 = vst.msk [vmem:[#allocation2 + $0xf8] sm:$0xff] %vm62_vm2, %v859_v60  ;;  %13730 = vmatpush3.bf16.msra.mxu0 %v15461_v44  ;;  %v1088_v44 = vld [vmem:[#allocation2 + $0x3e] sm:$0xff]  ;;  %v1195_v51 = vld [vmem:[#allocation2 + $0xf] sm:$0xff] }
 0x112   :  { %13739 = vmatprep.subr.bf16.mxu0 %v15462_v53  ;;  %v1092_v49 = vpack.c.bf16 %v1088_v44, %v1087_v42  ;;  %v1203_v54 = vpack.c.bf16 %v1196_v27, %v1195_v51  ;;  %v15468_v60 = vld [vmem:[%s18503_s4 + $0x38] sm:$0xff]   ;;  %v16531_v26 = vld [vmem:[#allocation2 + $0xa4] sm:$0xff]  ;;  %v3071_v58 = vld [vmem:[#allocation2 + $0x8d] sm:$0xff] }
 0x113   :  { %13724 = vmatmul.mubr.msk.bf16.gmra.mrb[16].mxu0 %vm62_vm2, %v881_v21  ;;  %v1198_v21 = vld [vmem:[#allocation2 + $0x27] sm:$0xff]  ;;  %v1200_v24 = vld [vmem:[#allocation2 + $0x37] sm:$0xff]  ;;  %v3078_v57 = vpack.c.bf16 %v3071_v58, %v3070_v56 }
 0x114   :  { %13828 = vmatmul.mubr.msk.bf16.vlgmr.msra.gmra.mrb[20].mxu1 %vm62_vm2, %v1975_v1  ;;  %13731 = vmatprep.mubr.msk.bf16.mxu0 %vm62_vm2, %v1089_v16  ;;  %v1199_v1 = vld [vmem:[#allocation2 + $0x2f] sm:$0xff]  ;;  %v16529_v16 = vld [vmem:[#allocation2 + $0x9c] sm:$0xff]  ;;  %v16536_v39 = vld [vmem:[#allocation2 + $0xc4] sm:$0xff] }
 0x115   :  { %13831 = vmatprep.mubr.msk.bf16.mxu1 %vm62_vm2, %v1976_v20  ;;  %13836 = vmatpush3.bf16.msra.mxu1 %v16433_v28  ;;  %v15465_v28 = vld [vmem:[%s18503_s4 + $0x38] sm:$0xff]   ;;  %v15469_v38 = vld [vmem:[%s18503_s4 + $0x48] sm:$0xff]   ;;  %v1205_v27 = vpack.c.bf16 %v1200_v24, %v1199_v1  ;;  %v15494_v5 = vld [vmem:[%s18503_s4] sm:$0xff]  }
 0x116   :  { %13837 = vmatprep.subr.bf16.mxu1 %v15464_v0  ;;  %v2182_v20 = vld [vmem:[#allocation2 + $0x76] sm:$0xff]  ;;  %v1202_v1 = vld [vmem:[#allocation2 + $0x47] sm:$0xff] }
 0x117   :  { %v2290_v4 = vld [vmem:[#allocation2 + $0x57] sm:$0xff]  ;;  %v2859_v52 = vld [vmem:[#allocation2 + $0x84] sm:$0xff]  ;;  %v4159_v25 = vld [vmem:[#allocation2 + $0xcd] sm:$0xff] }
 0x118   :  { %v16548_v42 = vld [vmem:[#allocation2 + $0xd4] sm:$0xff]  ;;  %v16550_v44 = vld [vmem:[#allocation2 + $0xdc] sm:$0xff]  ;;  %v3074_v35 = vld [vmem:[#allocation2 + $0xa5] sm:$0xff] }
 0x119   :  { %13838 = vmatpush3.bf16.msra.mxu1 %v15464_v0  ;;  %v2183_v0 = vld [vmem:[#allocation2 + $0x7e] sm:$0xff]  ;;  %v3072_v22 = vld [vmem:[#allocation2 + $0x95] sm:$0xff] }
 0x11a   :  { %13847 = vmatprep.subr.bf16.mxu1 %v15467_v6  ;;  %v2187_v40 = vpack.c.bf16 %v2183_v0, %v2182_v20  ;;  %v2291_v20 = vld [vmem:[#allocation2 + $0x5f] sm:$0xff]  ;;  %v2292_v0 = vld [vmem:[#allocation2 + $0x67] sm:$0xff] }
 0x11b   :  { %13732 = vmatmul.mubr.msk.bf16.vlgmr.msra.gmra.mrb[12].mxu0 %vm62_vm2, %v1090_v9  ;;  %v3950_v9 = vpack.c.bf16 %v16531_v26, %v16529_v16  ;;  %v1310_v24 = vld [vmem:[#allocation2 + $0x18] sm:$0xff] }
 0x11c   :  { %13832 = vmatmul.mubr.msk.bf16.gmra.mrb[24].mxu1 %vm62_vm2, %v1977_v17  ;;  %13735 = vmatprep.mubr.msk.bf16.mxu0 %vm62_vm2, %v1091_v13  ;;  %v16540_v17 = vld [vmem:[#allocation2 + $0xac] sm:$0xff]  ;;  %v1204_v13 = vpack.c.bf16 %v1198_v21, %v1197_v61  ;;  %v2517_v21 = vld [vmem:[#allocation2 + $0x61] sm:$0xff] }
 0x11d   :  { %13740 = vmatpush3.bf16.msra.mxu0 %v15462_v53  ;;  %13839 = vmatprep.mubr.msk.bf16.mxu1 %vm62_vm2, %v2184_v41  ;;  %v2186_v53 = vpack.c.bf16 %v2181_v48, %v2180_v15  ;;  %v16546_v41 = vld [vmem:[#allocation2 + $0xcc] sm:$0xff]  ;;  %v3064_v56 = vpack.c.bf16 %v16540_v17, %v16531_v26  ;;  %v5035_v26 = vld [vmem:[#allocation2 + $0x104] sm:$0xff] }
 0x11e   :  { %13741 = vmatprep.subr.bf16.mxu0 %v15465_v28  ;;  %v2289_v48 = vld [vmem:[#allocation2 + $0x4f] sm:$0xff]  ;;  %v4150_v58 = vpack.c.bf16 %v16546_v41, %v16536_v39 }
 0x11f   :  { %v2297_v51 = vpack.c.bf16 %v2290_v4, %v2289_v48  ;;  %v15470_v61 = vld [vmem:[%s18503_s4 + $0x50] sm:$0xff]  }
 0x121   :  { %13742 = vmatpush3.bf16.msra.mxu0 %v15465_v28  ;;  %v16544_v28 = vld [vmem:[#allocation2 + $0xbc] sm:$0xff] }
 0x122   :  { %13751 = vmatprep.subr.bf16.mxu0 %v15466_v43  ;;  %v3952_v47 = vpack.c.bf16 %v16536_v39, %v16544_v28  ;;  %v15527_v39 = vld [vmem:[%s18505_s6 + $0x38] sm:$0xff]  }
 0x123   :  { %13736 = vmatmul.mubr.msk.bf16.gmra.mrb[16].mxu0 %vm62_vm2, %v1092_v49  ;;  %v16556_v49 = vld [vmem:[#allocation2 + $0xe4] sm:$0xff] }
 0x124   :  { %13840 = vmatmul.mubr.msk.bf16.vlgmr.msra.gmra.mrb[20].mxu1 %vm62_vm2, %v2185_v50  ;;  %13743 = vmatprep.mubr.msk.bf16.mxu0 %vm62_vm2, %v1203_v54  ;;  %v3953_v50 = vpack.c.bf16 %v16548_v42, %v16546_v41  ;;  %v5038_v15 = vpack.c.bf16 %v16556_v49, %v16550_v44  ;;  %v16565_v54 = vld [vmem:[#allocation2 + $0xec] sm:$0xff]  ;;  %v16926_v41 = vpop.permute.xlu1 %6421 }
 0x125   :  { %13843 = vmatprep.mubr.msk.bf16.mxu1 %vm62_vm2, %v2186_v53  ;;  %13848 = vmatpush3.bf16.msra.mxu1 %v15467_v6  ;;  %v16542_v6 = vld [vmem:[#allocation2 + $0xb4] sm:$0xff] }
 0x126   :  { %13849 = vmatprep.subr.bf16.mxu1 %v15468_v60  ;;  %v3951_v19 = vpack.c.bf16 %v16542_v6, %v16540_v17  ;;  %v16567_v53 = vld [vmem:[#allocation2 + $0xf4] sm:$0xff] }
 0x127   :  { %v18531_v17 = vpack.c.bf16 %v16567_v53, %v16565_v54 }
 0x129   :  { %13850 = vmatpush3.bf16.msra.mxu1 %v15468_v60  ;;  %v1201_v60 = vld [vmem:[#allocation2 + $0x3f] sm:$0xff] }
 0x12a   :  { %13859 = vmatprep.subr.bf16.mxu1 %v15471_v63  ;;  %v1206_v4 = vpack.c.bf16 %v1202_v1, %v1201_v60  ;;  %v1312_v60 = vld [vmem:[#allocation2 + $0x28] sm:$0xff]  ;;  %v2295_v1 = vld [vmem:[#allocation2 + $0x7f] sm:$0xff] }
 0x12b   :  { %13744 = vmatmul.mubr.msk.bf16.vlgmr.msra.gmra.mrb[12].mxu0 %vm62_vm2, %v1204_v13  ;;  %v2298_v13 = vpack.c.bf16 %v2292_v0, %v2291_v20  ;;  %v2296_v20 = vld [vmem:[#allocation2 + $0x87] sm:$0xff]  ;;  %v1314_v0 = vld [vmem:[#allocation2 + $0x38] sm:$0xff] }
 0x12c   :  { %13844 = vmatmul.mubr.msk.bf16.gmra.mrb[24].mxu1 %vm62_vm2, %v2187_v40  ;;  %13747 = vmatprep.mubr.msk.bf16.mxu0 %vm62_vm2, %v1205_v27  ;;  %v1309_v40 = vld [vmem:[#allocation2 + $0x10] sm:$0xff] }
 0x12d   :  { %13752 = vmatpush3.bf16.msra.mxu0 %v15466_v43  ;;  %13851 = vmatprep.mubr.msk.bf16.mxu1 %vm62_vm2, %v2297_v51  ;;  %v2294_v43 = vld [vmem:[#allocation2 + $0x77] sm:$0xff]  ;;  %v2293_v27 = vld [vmem:[#allocation2 + $0x6f] sm:$0xff]  ;;  %v1317_v48 = vpack.c.bf16 %v1310_v24, %v1309_v40  ;;  %v1311_v24 = vld [vmem:[#allocation2 + $0x20] sm:$0xff] }
 0x12e   :  { %13753 = vmatprep.subr.bf16.mxu0 %v15469_v38  ;;  %v2299_v51 = vpack.c.bf16 %v2294_v43, %v2293_v27  ;;  %v2403_v43 = vld [vmem:[#allocation2 + $0x58] sm:$0xff]  ;;  %v1318_v40 = vpack.c.bf16 %v1312_v60, %v1311_v24  ;;  %v1313_v27 = vld [vmem:[#allocation2 + $0x30] sm:$0xff]  ;;  %v1316_v60 = vld [vmem:[#allocation2 + $0x48] sm:$0xff] }
 0x12f   :  { %v2407_v24 = vld [vmem:[#allocation2 + $0x78] sm:$0xff] }
 0x131   :  { %13754 = vmatpush3.bf16.msra.mxu0 %v15469_v38  ;;  %v15475_v38 = vld [vmem:[%s18503_s4 + $0x50] sm:$0xff]  }
 0x132   :  { %13763 = vmatprep.subr.bf16.mxu0 %v15470_v61 }
 0x133   :  { %13748 = vmatmul.mubr.msk.bf16.gmra.mrb[16].mxu0 %vm62_vm2, %v1206_v4  ;;  %v2300_v4 = vpack.c.bf16 %v2296_v20, %v2295_v1  ;;  %v2405_v1 = vld [vmem:[#allocation2 + $0x68] sm:$0xff]  ;;  %v1423_v20 = vld [vmem:[#allocation2 + $0x11] sm:$0xff] }
 0x134   :  { %13852 = vmatmul.mubr.msk.bf16.vlgmr.msra.gmra.mrb[20].mxu1 %vm62_vm2, %v2298_v13  ;;  %13755 = vmatprep.mubr.msk.bf16.mxu0 %vm62_vm2, %v1317_v48  ;;  %v15473_v13 = vld [vmem:[%s18503_s4 + $0x58] sm:$0xff]   ;;  %v2402_v48 = vld [vmem:[#allocation2 + $0x50] sm:$0xff] }
 0x135   :  { %13855 = vmatprep.mubr.msk.bf16.mxu1 %vm62_vm2, %v2299_v51  ;;  %13860 = vmatpush3.bf16.msra.mxu1 %v15471_v63  ;;  %v1319_v63 = vpack.c.bf16 %v1314_v0, %v1313_v27  ;;  %v2410_v51 = vpack.c.bf16 %v2403_v43, %v2402_v48  ;;  %v1424_v0 = vld [vmem:[#allocation2 + $0x19] sm:$0xff]  ;;  %v2406_v48 = vld [vmem:[#allocation2 + $0x70] sm:$0xff] }
 0x136   :  { %13861 = vmatprep.subr.bf16.mxu1 %v15472_v3  ;;  %v1315_v27 = vld [vmem:[#allocation2 + $0x40] sm:$0xff] }
 0x139   :  { %13862 = vmatpush3.bf16.msra.mxu1 %v15472_v3  ;;  %v15474_v3 = vld [vmem:[%s18503_s4 + $0x60] sm:$0xff]  }
 0x13a   :  { %13871 = vmatprep.subr.bf16.mxu1 %v15475_v38 }
 0x13b   :  { %13756 = vmatmul.mubr.msk.bf16.vlgmr.msra.gmra.mrb[12].mxu0 %vm62_vm2, %v1318_v40  ;;  %v2404_v40 = vld [vmem:[#allocation2 + $0x60] sm:$0xff] }
 0x13c   :  { %13856 = vmatmul.mubr.msk.bf16.gmra.mrb[24].mxu1 %vm62_vm2, %v2300_v4  ;;  %13759 = vmatprep.mubr.msk.bf16.mxu0 %vm62_vm2, %v1319_v63  ;;  %v1320_v4 = vpack.c.bf16 %v1316_v60, %v1315_v27  ;;  %v2411_v43 = vpack.c.bf16 %v2405_v1, %v2404_v40  ;;  %v2412_v63 = vpack.c.bf16 %v2407_v24, %v2406_v48  ;;  %v1425_v60 = vld [vmem:[#allocation2 + $0x21] sm:$0xff]  ;;  %v1426_v1 = vld [vmem:[#allocation2 + $0x29] sm:$0xff]  ;;  %v1428_v24 = vld [vmem:[#allocation2 + $0x39] sm:$0xff] }
 0x13d   :  { %13764 = vmatpush3.bf16.msra.mxu0 %v15470_v61  ;;  %13863 = vmatprep.mubr.msk.bf16.mxu1 %vm62_vm2, %v2410_v51  ;;  %v1431_v61 = vpack.c.bf16 %v1424_v0, %v1423_v20  ;;  %v15476_v51 = vld [vmem:[%s18503_s4 + $0x58] sm:$0xff]   ;;  %v2409_v20 = vld [vmem:[#allocation2 + $0x88] sm:$0xff]  ;;  %v2408_v27 = vld [vmem:[#allocation2 + $0x80] sm:$0xff]  ;;  %v1432_v48 = vpack.c.bf16 %v1426_v1, %v1425_v60 }
 0x13e   :  { %13765 = vmatprep.subr.bf16.mxu0 %v15473_v13  ;;  %v1427_v0 = vld [vmem:[#allocation2 + $0x31] sm:$0xff]  ;;  %v1430_v60 = vld [vmem:[#allocation2 + $0x49] sm:$0xff] }
 0x13f   :  { %v2515_v40 = vld [vmem:[#allocation2 + $0x51] sm:$0xff]  ;;  %v2518_v1 = vld [vmem:[#allocation2 + $0x69] sm:$0xff] }
 0x141   :  { %13766 = vmatpush3.bf16.msra.mxu0 %v15473_v13  ;;  %v15479_v13 = vld [vmem:[%s18503_s4 + $0x60] sm:$0xff]  }
 0x142   :  { %13775 = vmatprep.subr.bf16.mxu0 %v15474_v3 }
 0x143   :  { %13760 = vmatmul.mubr.msk.bf16.gmra.mrb[16].mxu0 %vm62_vm2, %v1320_v4  ;;  %v2516_v4 = vld [vmem:[#allocation2 + $0x59] sm:$0xff] }
 0x144   :  { %13864 = vmatmul.mubr.msk.bf16.vlgmr.msra.gmra.mrb[20].mxu1 %vm62_vm2, %v2411_v43  ;;  %13767 = vmatprep.mubr.msk.bf16.mxu0 %vm62_vm2, %v1431_v61  ;;  %v2413_v43 = vpack.c.bf16 %v2409_v20, %v2408_v27  ;;  %v1433_v61 = vpack.c.bf16 %v1428_v24, %v1427_v0  ;;  %v1537_v20 = vld [vmem:[#allocation2 + $0x1a] sm:$0xff]  ;;  %v1538_v0 = vld [vmem:[#allocation2 + $0x22] sm:$0xff]  ;;  %v2519_v24 = vld [vmem:[#allocation2 + $0x71] sm:$0xff] }
 0x145   :  { %13867 = vmatprep.mubr.msk.bf16.mxu1 %vm62_vm2, %v2412_v63  ;;  %13872 = vmatpush3.bf16.msra.mxu1 %v15475_v38  ;;  %v15477_v38 = vld [vmem:[%s18503_s4 + $0x68] sm:$0xff]   ;;  %v2523_v63 = vpack.c.bf16 %v2516_v4, %v2515_v40  ;;  %v2520_v27 = vld [vmem:[#allocation2 + $0x79] sm:$0xff]  ;;  %v2524_v4 = vpack.c.bf16 %v2518_v1, %v2517_v21  ;;  %v15483_v21 = vld [vmem:[%s18503_s4 + $0x70] sm:$0xff]  }
 0x146   :  { %13873 = vmatprep.subr.bf16.mxu1 %v15476_v51  ;;  %v2522_v1 = vld [vmem:[#allocation2 + $0x89] sm:$0xff] }
 0x149   :  { %13874 = vmatpush3.bf16.msra.mxu1 %v15476_v51  ;;  %v15478_v51 = vld [vmem:[%s18503_s4 + $0x70] sm:$0xff]  }
 0x14a   :  { %13883 = vmatprep.subr.bf16.mxu1 %v15479_v13 }
 0x14b   :  { %13768 = vmatmul.mubr.msk.bf16.vlgmr.msra.gmra.mrb[12].mxu0 %vm62_vm2, %v1432_v48  ;;  %v1429_v48 = vld [vmem:[#allocation2 + $0x41] sm:$0xff] }
 0x14c   :  { %13868 = vmatmul.mubr.msk.bf16.gmra.mrb[24].mxu1 %vm62_vm2, %v2413_v43  ;;  %13771 = vmatprep.mubr.msk.bf16.mxu0 %vm62_vm2, %v1433_v61  ;;  %v1434_v40 = vpack.c.bf16 %v1430_v60, %v1429_v48  ;;  %v2525_v43 = vpack.c.bf16 %v2520_v27, %v2519_v24  ;;  %v15480_v61 = vld [vmem:[%s18503_s4 + $0x68] sm:$0xff]   ;;  %v2628_v24 = vld [vmem:[#allocation2 + $0x5a] sm:$0xff] }
 0x14d   :  { %13776 = vmatpush3.bf16.msra.mxu0 %v15474_v3  ;;  %13875 = vmatprep.mubr.msk.bf16.mxu1 %vm62_vm2, %v2523_v63  ;;  %v1545_v3 = vpack.c.bf16 %v1538_v0, %v1537_v20  ;;  %v1539_v63 = vld [vmem:[#allocation2 + $0x2a] sm:$0xff]  ;;  %v2521_v60 = vld [vmem:[#allocation2 + $0x81] sm:$0xff] }
 0x14e   :  { %13777 = vmatprep.subr.bf16.mxu0 %v15477_v38  ;;  %v1541_v20 = vld [vmem:[#allocation2 + $0x3a] sm:$0xff]  ;;  %v1542_v0 = vld [vmem:[#allocation2 + $0x42] sm:$0xff] }
 0x14f   :  { %v2629_v27 = vld [vmem:[#allocation2 + $0x62] sm:$0xff] }
 0x151   :  { %13778 = vmatpush3.bf16.msra.mxu0 %v15477_v38  ;;  %v1540_v38 = vld [vmem:[#allocation2 + $0x32] sm:$0xff] }
 0x152   :  { %13787 = vmatprep.subr.bf16.mxu0 %v15478_v51  ;;  %v1546_v48 = vpack.c.bf16 %v1540_v38, %v1539_v63  ;;  %v2631_v63 = vld [vmem:[#allocation2 + $0x72] sm:$0xff]  ;;  %v1651_v38 = vld [vmem:[#allocation2 + $0x1b] sm:$0xff] }
 0x153   :  { %13772 = vmatmul.mubr.msk.bf16.gmra.mrb[16].mxu0 %vm62_vm2, %v1434_v40  ;;  %v2526_v40 = vpack.c.bf16 %v2522_v1, %v2521_v60  ;;  %v1652_v60 = vld [vmem:[#allocation2 + $0x23] sm:$0xff]  ;;  %v2632_v1 = vld [vmem:[#allocation2 + $0x7a] sm:$0xff] }
 0x154   :  { %13876 = vmatmul.mubr.msk.bf16.vlgmr.msra.gmra.mrb[20].mxu1 %vm62_vm2, %v2524_v4  ;;  %13779 = vmatprep.mubr.msk.bf16.mxu0 %vm62_vm2, %v1545_v3  ;;  %v15481_v4 = vld [vmem:[%s18503_s4 + $0x78] sm:$0xff]   ;;  %v2636_v3 = vpack.c.bf16 %v2629_v27, %v2628_v24 }
 0x155   :  { %13879 = vmatprep.mubr.msk.bf16.mxu1 %vm62_vm2, %v2525_v43  ;;  %13884 = vmatpush3.bf16.msra.mxu1 %v15479_v13  ;;  %v1547_v13 = vpack.c.bf16 %v1542_v0, %v1541_v20  ;;  %v15482_v43 = vld [vmem:[%s18503_s4 + $0x80] sm:$0xff]   ;;  %v1543_v0 = vld [vmem:[#allocation2 + $0x4a] sm:$0xff] }
 0x156   :  { %13885 = vmatprep.subr.bf16.mxu1 %v15480_v61  ;;  %v2633_v20 = vld [vmem:[#allocation2 + $0x82] sm:$0xff] }
 0x159   :  { %13886 = vmatpush3.bf16.msra.mxu1 %v15480_v61  ;;  %v1544_v61 = vld [vmem:[#allocation2 + $0x52] sm:$0xff] }
 0x15a   :  { %13895 = vmatprep.subr.bf16.mxu1 %v15483_v21  ;;  %v1548_v24 = vpack.c.bf16 %v1544_v61, %v1543_v0  ;;  %v2634_v61 = vld [vmem:[#allocation2 + $0x8a] sm:$0xff] }
 0x15b   :  { %13780 = vmatmul.mubr.msk.bf16.vlgmr.msra.gmra.mrb[12].mxu0 %vm62_vm2, %v1546_v48  ;;  %v2630_v48 = vld [vmem:[#allocation2 + $0x6a] sm:$0xff] }
 0x15c   :  { %13880 = vmatmul.mubr.msk.bf16.gmra.mrb[24].mxu1 %vm62_vm2, %v2526_v40  ;;  %13783 = vmatprep.mubr.msk.bf16.mxu0 %vm62_vm2, %v1547_v13  ;;  %v2637_v27 = vpack.c.bf16 %v2631_v63, %v2630_v48  ;;  %v2638_v40 = vpack.c.bf16 %v2633_v20, %v2632_v1  ;;  %v15484_v13 = vld [vmem:[%s18503_s4 + $0x78] sm:$0xff]   ;;  %v15486_v63 = vld [vmem:[%s18503_s4 + $0x80] sm:$0xff]  }
 0x15d   :  { %13788 = vmatpush3.bf16.msra.mxu0 %v15478_v51  ;;  %13887 = vmatprep.mubr.msk.bf16.mxu1 %vm62_vm2, %v2636_v3  ;;  %v1659_v51 = vpack.c.bf16 %v1652_v60, %v1651_v38  ;;  %v1653_v3 = vld [vmem:[#allocation2 + $0x2b] sm:$0xff]  ;;  %v1655_v38 = vld [vmem:[#allocation2 + $0x3b] sm:$0xff]  ;;  %v1656_v60 = vld [vmem:[#allocation2 + $0x43] sm:$0xff] }
 0x15e   :  { %13789 = vmatprep.subr.bf16.mxu0 %v15481_v4  ;;  %v2635_v1 = vld [vmem:[#allocation2 + $0x92] sm:$0xff]  ;;  %v2741_v20 = vld [vmem:[#allocation2 + $0x5b] sm:$0xff]  ;;  %v2742_v0 = vld [vmem:[#allocation2 + $0x63] sm:$0xff] }
 0x161   :  { %13790 = vmatpush3.bf16.msra.mxu0 %v15481_v4  ;;  %v1654_v4 = vld [vmem:[#allocation2 + $0x33] sm:$0xff] }
 0x162   :  { %13799 = vmatprep.subr.bf16.mxu0 %v15482_v43  ;;  %v1660_v48 = vpack.c.bf16 %v1654_v4, %v1653_v3  ;;  %v2744_v3 = vld [vmem:[#allocation2 + $0x73] sm:$0xff]  ;;  %v2745_v4 = vld [vmem:[#allocation2 + $0x7b] sm:$0xff] }
 0x163   :  { %13784 = vmatmul.mubr.msk.bf16.gmra.mrb[16].mxu0 %vm62_vm2, %v1548_v24  ;;  %v2639_v24 = vpack.c.bf16 %v2635_v1, %v2634_v61  ;;  %v2746_v61 = vld [vmem:[#allocation2 + $0x83] sm:$0xff] }
 0x164   :  { %13888 = vmatmul.mubr.msk.bf16.vlgmr.msra.gmra.mrb[20].mxu1 %vm62_vm2, %v2637_v27  ;;  %13791 = vmatprep.mubr.msk.bf16.mxu0 %vm62_vm2, %v1659_v51  ;;  %v15485_v27 = vld [vmem:[%s18503_s4 + $0x88] sm:$0xff]   ;;  %v2749_v51 = vpack.c.bf16 %v2742_v0, %v2741_v20  ;;  %v2751_v20 = vpack.c.bf16 %v2746_v61, %v2745_v4  ;;  %v4160_v4 = vld [vmem:[#allocation2 + $0xd5] sm:$0xff]  ;;  %v4161_v61 = vld [vmem:[#allocation2 + $0xdd] sm:$0xff] }
 0x165   :  { %13891 = vmatprep.mubr.msk.bf16.mxu1 %vm62_vm2, %v2638_v40  ;;  %13896 = vmatpush3.bf16.msra.mxu1 %v15483_v21  ;;  %v1661_v21 = vpack.c.bf16 %v1656_v60, %v1655_v38  ;;  %v15488_v40 = vld [vmem:[%s18503_s4 + $0x10] sm:$0xff]  }
 0x166   :  { %13897 = vmatprep.subr.bf16.mxu1 %v15484_v13  ;;  %v1657_v38 = vld [vmem:[#allocation2 + $0x4b] sm:$0xff] }
 0x167   :  { %v2743_v60 = vld [vmem:[#allocation2 + $0x6b] sm:$0xff] }
 0x168   :  { %v2747_v0 = vld [vmem:[#allocation2 + $0x8b] sm:$0xff] }
 0x169   :  { %13898 = vmatpush3.bf16.msra.mxu1 %v15484_v13  ;;  %v1658_v13 = vld [vmem:[#allocation2 + $0x53] sm:$0xff] }
 0x16a   :  { %13907 = vmatprep.subr.bf16.mxu1 %v15486_v63  ;;  %v1662_v1 = vpack.c.bf16 %v1658_v13, %v1657_v38  ;;  %v3076_v13 = vld [vmem:[#allocation2 + $0xb5] sm:$0xff]  ;;  %v15496_v38 = vld [vmem:[%s18503_s4 + $0x20] sm:$0xff]  }
 0x16b   :  { %13792 = vmatmul.mubr.msk.bf16.vlgmr.msra.gmra.mrb[12].mxu0 %vm62_vm2, %v1660_v48  ;;  %v2750_v48 = vpack.c.bf16 %v2744_v3, %v2743_v60  ;;  %v3077_v3 = vld [vmem:[#allocation2 + $0xbd] sm:$0xff]  ;;  %v4163_v60 = vld [vmem:[#allocation2 + $0xed] sm:$0xff] }
 0x16c   :  { %13892 = vmatmul.mubr.msk.bf16.gmra.mrb[24].mxu1 %vm62_vm2, %v2639_v24  ;;  %13795 = vmatprep.mubr.msk.bf16.mxu0 %vm62_vm2, %v1661_v21  ;;  %v15490_v24 = vld [vmem:[%s18503_s4 + $0x10] sm:$0xff]  }
 0x16d   :  { %13800 = vmatpush3.bf16.msra.mxu0 %v15482_v43  ;;  %13899 = vmatprep.mubr.msk.bf16.mxu1 %vm62_vm2, %v2749_v51  ;;  %v15487_v43 = vld [vmem:[%s18503_s4 + $0x88] sm:$0xff]   ;;  %v15489_v51 = vld [vmem:[%s18503_s4 + $0x18] sm:$0xff]  }
 0x16e   :  { %13801 = vmatprep.subr.bf16.mxu0 %v15485_v27 }
 0x171   :  { %13802 = vmatpush3.bf16.msra.mxu0 %v15485_v27  ;;  %v2748_v27 = vld [vmem:[#allocation2 + $0x93] sm:$0xff] }
 0x172   :  { %13919 = vmatprep.subr.bf16.mxu0 %v15488_v40  ;;  %v2752_v21 = vpack.c.bf16 %v2748_v27, %v2747_v0  ;;  %v4164_v27 = vld [vmem:[#allocation2 + $0xf5] sm:$0xff] }
 0x173   :  { %13796 = vmatmul.mubr.msk.bf16.gmra.mrb[16].mxu0 %vm62_vm2, %v1662_v1  ;;  %v3081_v1 = vpack.c.bf16 %v3077_v3, %v3076_v13  ;;  %v3268_v13 = vld [vmem:[#allocation2 + $0xa6] sm:$0xff] }
 0x174   :  { %13900 = vmatmul.mubr.msk.bf16.vlgmr.msra.gmra.mrb[20].mxu1 %vm62_vm2, %v2750_v48  ;;  %13803 = vmatprep.mubr.msk.bf16.mxu0 %vm62_vm2, %v1773_v18  ;;  %v2864_v18 = vpack.c.bf16 %v2859_v52, %v16505_v10  ;;  %v4167_v48 = vpack.c.bf16 %v4161_v61, %v4160_v4  ;;  %v4352_v3 = vld [vmem:[#allocation2 + $0xc6] sm:$0xff] }
 0x175   :  { %13903 = vmatprep.mubr.msk.bf16.mxu1 %vm62_vm2, %v2751_v20  ;;  %13908 = vmatpush3.bf16.msra.mxu1 %v15486_v63  ;;  %v4162_v20 = vld [vmem:[#allocation2 + $0xe5] sm:$0xff] }
 0x176   :  { %13909 = vmatprep.subr.bf16.mxu1 %v15487_v43  ;;  %v4168_v0 = vpack.c.bf16 %v4163_v60, %v4162_v20  ;;  %v3270_v60 = vld [vmem:[#allocation2 + $0xb6] sm:$0xff]  ;;  %v4355_v20 = vld [vmem:[#allocation2 + $0xde] sm:$0xff] }
 0x179   :  { %13910 = vmatpush3.bf16.msra.mxu1 %v15487_v43  ;;  %v3062_v43 = vpack.c.bf16 %v2860_v14, %v2859_v52 }
 0x17a   :  { %14027 = vmatprep.subr.bf16.mxu1 %v15490_v24 }
 0x17b   :  { %13804 = vmatmul.mubr.msk.bf16.vlgmr.msra.gmra.mrb[12].mxu0 %vm62_vm2, %v1774_v29  ;;  %v3073_v29 = vld [vmem:[#allocation2 + $0x9d] sm:$0xff] }
 0x17c   :  { %13904 = vmatmul.mubr.msk.bf16.gmra.mrb[24].mxu1 %vm62_vm2, %v2752_v21  ;;  %13807 = vmatprep.mubr.msk.bf16.mxu0 %vm62_vm2, %v1775_v31  ;;  %v3075_v31 = vld [vmem:[#allocation2 + $0xad] sm:$0xff]  ;;  %v3079_v11 = vpack.c.bf16 %v3073_v29, %v3072_v22  ;;  %v4165_v21 = vld [vmem:[#allocation2 + $0xfd] sm:$0xff]  ;;  %v3065_v22 = vpack.c.bf16 %v16544_v28, %v16542_v6  ;;  %v4151_v29 = vpack.c.bf16 %v16550_v44, %v16548_v42  ;;  %v16928_v42 = vpop.permute.xlu0 %6416 }
 0x17d   :  { %13911 = vmatprep.mubr.msk.bf16.mxu1 %vm62_vm2, %v2862_v45  ;;  %13920 = vmatpush3.bf16.msra.mxu0 %v15488_v40  ;;  %v2861_v45 = vld [vmem:[#allocation2 + $0x94] sm:$0xff]  ;;  %v3080_v10 = vpack.c.bf16 %v3075_v31, %v3074_v35  ;;  %v15493_v40 = vld [vmem:[%s18503_s4 + $0x8] sm:$0xff]   ;;  %v4169_v52 = vpack.c.bf16 %v4165_v21, %v4164_v27  ;;  %v4152_v31 = vpack.c.bf16 %v16565_v54, %v16556_v49  ;;  %v16922_v44 = vld [vmem:[%s18505_s6] sm:$0xff]  }
 0x17e   :  { %13921 = vmatprep.subr.bf16.mxu0 %v15489_v51  ;;  %v15502_v35 = vld [vmem:[%s18503_s4 + $0x30] sm:$0xff]   ;;  %v16941_v54 = vld [vmem:[%s18504_s5] ss:$0 sm:$0xff]  ;;  %s15755_s5 = smov [#allocation6]  }
 0x17f   :  { %v5036_v6 = vld [vmem:[#allocation2 + $0x10c] sm:$0xff]  ;;  %v5037_v28 = vld [vmem:[#allocation2 + $0x114] sm:$0xff] }
 0x180   :  { %v16932_v49 = vpop.permute.xlu0 %6426 }
 0x181   :  { %13922 = vmatpush3.bf16.msra.mxu0 %v15489_v51  ;;  %v15498_v51 = vld [vmem:[%s18503_s4 + $0x20] sm:$0xff]  }
 0x182   :  { %13931 = vmatprep.subr.bf16.mxu0 %v15492_v23 }
 0x183   :  { %13808 = vmatmul.mubr.msk.bf16.gmra.mrb[16].mxu0 %vm62_vm2, %v1776_v46  ;;  %v2865_v46 = vpack.c.bf16 %v2861_v45, %v2860_v14  ;;  %v3265_v14 = vld [vmem:[#allocation2 + $0x8e] sm:$0xff] }
 0x184   :  { %13912 = vmatmul.mubr.msk.bf16.vlgmr.msra.gmra.mrb[20].mxu1 %vm62_vm2, %v2863_v59  ;;  %13923 = vmatprep.mubr.msk.bf16.mxu0 %vm62_vm2, %v3078_v57  ;;  %v4158_v59 = vld [vmem:[#allocation2 + $0xc5] sm:$0xff]  ;;  %v15500_v57 = vld [vmem:[%s18503_s4 + $0x30] sm:$0xff]  }
 0x185   :  { %13915 = vmatprep.mubr.msk.bf16.mxu1 %vm62_vm2, %v2864_v18  ;;  %14028 = vmatpush3.bf16.msra.mxu1 %v15490_v24  ;;  %v4166_v63 = vpack.c.bf16 %v4159_v25, %v4158_v59  ;;  %v15495_v24 = vld [vmem:[%s18503_s4 + $0x8] sm:$0xff]  }
 0x186   :  { %14029 = vmatprep.subr.bf16.mxu1 %v15491_v30  ;;  %v15497_v18 = vld [vmem:[%s18503_s4 + $0x28] sm:$0xff]  }
 0x187   :  { %v15499_v25 = vld [vmem:[%s18503_s4 + $0x28] sm:$0xff]  }
 0x188   :  { %v3269_v59 = vld [vmem:[#allocation2 + $0xae] sm:$0xff] }
 0x189   :  { %14030 = vmatpush3.bf16.msra.mxu1 %v15491_v30  ;;  %v3264_v30 = vld [vmem:[#allocation2 + $0x86] sm:$0xff]  ;;  %v3274_v4 = vpack.c.bf16 %v3269_v59, %v3268_v13 }
 0x18a   :  { %14039 = vmatprep.subr.bf16.mxu1 %v15494_v5  ;;  %v4467_v13 = vld [vmem:[#allocation2 + $0xdf] sm:$0xff] }
 0x18b   :  { %13924 = vmatmul.mubr.msk.bf16.vlgmr.msra.gmra.mrb[20].mxu0 %vm62_vm2, %v3079_v11  ;;  %v16760_v11 = vld [vmem:[#allocation2 + $0xfc] sm:$0xff] }
 0x18c   :  { %13916 = vmatmul.mubr.msk.bf16.gmra.mrb[24].mxu1 %vm62_vm2, %v2865_v46  ;;  %13927 = vmatprep.mubr.msk.bf16.mxu0 %vm62_vm2, %v3080_v10  ;;  %v3267_v46 = vld [vmem:[#allocation2 + $0x9e] sm:$0xff]  ;;  %v4353_v10 = vld [vmem:[#allocation2 + $0xce] sm:$0xff] }
 0x18d   :  { %14031 = vmatprep.mubr.msk.bf16.mxu1 %vm62_vm2, %v4166_v63  ;;  %13932 = vmatpush3.bf16.msra.mxu0 %v15492_v23  ;;  %v3063_v23 = vpack.c.bf16 %v16529_v16, %v2861_v45  ;;  %v3266_v45 = vld [vmem:[#allocation2 + $0x96] sm:$0xff]  ;;  %v4360_v61 = vpack.c.bf16 %v4353_v10, %v4352_v3  ;;  %v4468_v3 = vld [vmem:[#allocation2 + $0xe7] sm:$0xff] }
 0x18e   :  { %13933 = vmatprep.subr.bf16.mxu0 %v15493_v40  ;;  %v3273_v63 = vpack.c.bf16 %v3267_v46, %v3266_v45  ;;  %v3381_v45 = vld [vmem:[#allocation2 + $0xaf] sm:$0xff] }
 0x18f   :  { %v4465_v46 = vld [vmem:[#allocation2 + $0xcf] sm:$0xff] }
 0x190   :  { %v15526_v16 = vld [vmem:[%s18505_s6 + $0x30] sm:$0xff]  }
 0x191   :  { %13934 = vmatpush3.bf16.msra.mxu0 %v15493_v40  ;;  %v4153_v40 = vpack.c.bf16 %v16760_v11, %v16567_v53 }
 0x192   :  { %13943 = vmatprep.subr.bf16.mxu0 %v15496_v38 }
 0x193   :  { %13928 = vmatmul.mubr.msk.bf16.gmra.mrb[24].mxu0 %vm62_vm2, %v3081_v1  ;;  %v3271_v1 = vld [vmem:[#allocation2 + $0xbe] sm:$0xff] }
 0x194   :  { %14032 = vmatmul.mubr.msk.bf16.vlgmr.msra.gmra.mrb[28].mxu1 %vm62_vm2, %v4167_v48  ;;  %13935 = vmatprep.mubr.msk.bf16.mxu0 %vm62_vm2, %v3062_v43  ;;  %v4354_v48 = vld [vmem:[#allocation2 + $0xd6] sm:$0xff]  ;;  %v15504_v43 = vld [vmem:[%s18503_s4 + $0x40] sm:$0xff]   ;;  %v3275_v27 = vpack.c.bf16 %v3271_v1, %v3270_v60  ;;  %v4474_v1 = vpack.c.bf16 %v4468_v3, %v4467_v13 }
 0x195   :  { %14035 = vmatprep.mubr.msk.bf16.mxu1 %vm62_vm2, %v4168_v0  ;;  %14040 = vmatpush3.bf16.msra.mxu1 %v15494_v5  ;;  %v3272_v5 = vpack.c.bf16 %v3265_v14, %v3264_v30  ;;  %v3377_v0 = vld [vmem:[#allocation2 + $0x8f] sm:$0xff]  ;;  %v4361_v21 = vpack.c.bf16 %v4355_v20, %v4354_v48  ;;  %v4359_v14 = vld [vmem:[#allocation2 + $0xfe] sm:$0xff] }
 0x196   :  { %14041 = vmatprep.subr.bf16.mxu1 %v15495_v24  ;;  %v4358_v30 = vld [vmem:[#allocation2 + $0xf6] sm:$0xff] }
 0x197   :  { %v3490_v48 = vld [vmem:[#allocation2 + $0x90] sm:$0xff] }
 0x198   :  { %v4469_v20 = vld [vmem:[#allocation2 + $0xef] sm:$0xff] }
 0x199   :  { %14042 = vmatpush3.bf16.msra.mxu1 %v15495_v24  ;;  %v4357_v24 = vld [vmem:[#allocation2 + $0xee] sm:$0xff] }
 0x19a   :  { %14051 = vmatprep.subr.bf16.mxu1 %v15498_v51  ;;  %v4582_v3 = vld [vmem:[#allocation2 + $0xf0] sm:$0xff] }
 0x19b   :  { %13936 = vmatmul.mubr.msk.bf16.vlgmr.msra.gmra.mrb[20].mxu0 %vm62_vm2, %v3063_v23  ;;  %v4356_v23 = vld [vmem:[#allocation2 + $0xe6] sm:$0xff] }
 0x19c   :  { %14036 = vmatmul.mubr.msk.bf16.gmra.mrb[32].mxu1 %vm62_vm2, %v4169_v52  ;;  %13939 = vmatprep.mubr.msk.bf16.mxu0 %vm62_vm2, %v3064_v56  ;;  %v4362_v56 = vpack.c.bf16 %v4357_v24, %v4356_v23  ;;  %v15510_v23 = vld [vmem:[%s18503_s4 + $0x50] sm:$0xff]  }
 0x19d   :  { %14043 = vmatprep.mubr.msk.bf16.mxu1 %vm62_vm2, %v4150_v58  ;;  %13944 = vmatpush3.bf16.msra.mxu0 %v15496_v38  ;;  %v15501_v38 = vld [vmem:[%s18503_s4 + $0x38] sm:$0xff]  }
 0x19e   :  { %13945 = vmatprep.subr.bf16.mxu0 %v15497_v18  ;;  %v15503_v58 = vld [vmem:[%s18503_s4 + $0x38] sm:$0xff]  }
 0x1a1   :  { %13946 = vmatpush3.bf16.msra.mxu0 %v15497_v18  ;;  %v3379_v18 = vld [vmem:[#allocation2 + $0x9f] sm:$0xff] }
 0x1a2   :  { %13955 = vmatprep.subr.bf16.mxu0 %v15500_v57 }
 0x1a3   :  { %13940 = vmatmul.mubr.msk.bf16.gmra.mrb[24].mxu0 %vm62_vm2, %v3065_v22  ;;  %v15506_v22 = vld [vmem:[%s18503_s4 + $0x40] sm:$0xff]  }
 0x1a4   :  { %14044 = vmatmul.mubr.msk.bf16.vlgmr.msra.gmra.mrb[28].mxu1 %vm62_vm2, %v4151_v29  ;;  %13947 = vmatprep.mubr.msk.bf16.mxu0 %vm62_vm2, %v3272_v5  ;;  %v3382_v29 = vld [vmem:[#allocation2 + $0xb7] sm:$0xff] }
 0x1a5   :  { %14047 = vmatprep.mubr.msk.bf16.mxu1 %vm62_vm2, %v4152_v31  ;;  %14052 = vmatpush3.bf16.msra.mxu1 %v15498_v51  ;;  %v3378_v51 = vld [vmem:[#allocation2 + $0x97] sm:$0xff]  ;;  %v3387_v59 = vpack.c.bf16 %v3382_v29, %v3381_v45  ;;  %v15512_v45 = vld [vmem:[%s18503_s4 + $0x60] sm:$0xff]  }
 0x1a6   :  { %14053 = vmatprep.subr.bf16.mxu1 %v15499_v25  ;;  %v3385_v52 = vpack.c.bf16 %v3378_v51, %v3377_v0  ;;  %v4466_v5 = vld [vmem:[#allocation2 + $0xd7] sm:$0xff]  ;;  %v4472_v51 = vld [vmem:[#allocation2 + $0x107] sm:$0xff] }
 0x1a7   :  { %v4473_v10 = vpack.c.bf16 %v4466_v5, %v4465_v46  ;;  %v3603_v46 = vld [vmem:[#allocation2 + $0x91] sm:$0xff] }
 0x1a9   :  { %14054 = vmatpush3.bf16.msra.mxu1 %v15499_v25  ;;  %v4363_v25 = vpack.c.bf16 %v4359_v14, %v4358_v30  ;;  %v3494_v30 = vld [vmem:[#allocation2 + $0xb0] sm:$0xff] }
 0x1aa   :  { %14063 = vmatprep.subr.bf16.mxu1 %v15502_v35  ;;  %v4578_v14 = vld [vmem:[#allocation2 + $0xd0] sm:$0xff] }
 0x1ab   :  { %13948 = vmatmul.mubr.msk.bf16.vlgmr.msra.gmra.mrb[20].mxu0 %vm62_vm2, %v3273_v63  ;;  %v3383_v63 = vld [vmem:[#allocation2 + $0xbf] sm:$0xff] }
 0x1ac   :  { %14048 = vmatmul.mubr.msk.bf16.gmra.mrb[32].mxu1 %vm62_vm2, %v4153_v40  ;;  %13951 = vmatprep.mubr.msk.bf16.mxu0 %vm62_vm2, %v3274_v4  ;;  %v3384_v40 = vld [vmem:[#allocation2 + $0xc7] sm:$0xff]  ;;  %v15508_v4 = vld [vmem:[%s18503_s4 + $0x50] sm:$0xff]  }
 0x1ad   :  { %14055 = vmatprep.mubr.msk.bf16.mxu1 %vm62_vm2, %v4360_v61  ;;  %13956 = vmatpush3.bf16.msra.mxu0 %v15500_v57  ;;  %v3380_v57 = vld [vmem:[#allocation2 + $0xa7] sm:$0xff]  ;;  %v3491_v61 = vld [vmem:[#allocation2 + $0x98] sm:$0xff]  ;;  %v3388_v60 = vpack.c.bf16 %v3384_v40, %v3383_v63 }
 0x1ae   :  { %13957 = vmatprep.subr.bf16.mxu0 %v15501_v38  ;;  %v3386_v31 = vpack.c.bf16 %v3380_v57, %v3379_v18  ;;  %v3498_v0 = vpack.c.bf16 %v3491_v61, %v3490_v48  ;;  %v4580_v63 = vld [vmem:[#allocation2 + $0xe0] sm:$0xff]  ;;  %v3607_v48 = vld [vmem:[#allocation2 + $0xb1] sm:$0xff] }
 0x1b1   :  { %13958 = vmatpush3.bf16.msra.mxu0 %v15501_v38  ;;  %v4470_v38 = vld [vmem:[#allocation2 + $0xf7] sm:$0xff] }
 0x1b2   :  { %13967 = vmatprep.subr.bf16.mxu0 %v15504_v43  ;;  %v4475_v24 = vpack.c.bf16 %v4470_v38, %v4469_v20  ;;  %v15514_v20 = vld [vmem:[%s18503_s4 + $0x60] sm:$0xff]  }
 0x1b3   :  { %13952 = vmatmul.mubr.msk.bf16.gmra.mrb[24].mxu0 %vm62_vm2, %v3275_v27  ;;  %v3493_v27 = vld [vmem:[#allocation2 + $0xa8] sm:$0xff] }
 0x1b4   :  { %14056 = vmatmul.mubr.msk.bf16.vlgmr.msra.gmra.mrb[28].mxu1 %vm62_vm2, %v4361_v21  ;;  %13959 = vmatprep.mubr.msk.bf16.mxu0 %vm62_vm2, %v3385_v52  ;;  %v4471_v21 = vld [vmem:[#allocation2 + $0xff] sm:$0xff] }
 0x1b5   :  { %14059 = vmatprep.mubr.msk.bf16.mxu1 %vm62_vm2, %v4362_v56  ;;  %14064 = vmatpush3.bf16.msra.mxu1 %v15502_v35  ;;  %v15505_v35 = vld [vmem:[%s18503_s4 + $0x48] sm:$0xff]   ;;  %v3495_v52 = vld [vmem:[#allocation2 + $0xb8] sm:$0xff]  ;;  %v4476_v57 = vpack.c.bf16 %v4472_v51, %v4471_v21  ;;  %v4584_v21 = vld [vmem:[#allocation2 + $0x100] sm:$0xff] }
 0x1b6   :  { %14065 = vmatprep.subr.bf16.mxu1 %v15503_v58  ;;  %v4579_v56 = vld [vmem:[#allocation2 + $0xd8] sm:$0xff]  ;;  %v3500_v29 = vpack.c.bf16 %v3495_v52, %v3494_v30 }
 0x1b7   :  { %v4586_v5 = vpack.c.bf16 %v4579_v56, %v4578_v14  ;;  %v3716_v30 = vld [vmem:[#allocation2 + $0x9a] sm:$0xff]  ;;  %v15516_v14 = vld [vmem:[%s18503_s4 + $0x70] sm:$0xff]  }
 0x1b9   :  { %14066 = vmatpush3.bf16.msra.mxu1 %v15503_v58  ;;  %v3492_v58 = vld [vmem:[#allocation2 + $0xa0] sm:$0xff] }
 0x1ba   :  { %14075 = vmatprep.subr.bf16.mxu1 %v15506_v22  ;;  %v3499_v18 = vpack.c.bf16 %v3493_v27, %v3492_v58  ;;  %v3605_v27 = vld [vmem:[#allocation2 + $0xa1] sm:$0xff] }
 0x1bb   :  { %13960 = vmatmul.mubr.msk.bf16.vlgmr.msra.gmra.mrb[20].mxu0 %vm62_vm2, %v3386_v31  ;;  %v3497_v31 = vld [vmem:[#allocation2 + $0xc8] sm:$0xff] }
 0x1bc   :  { %14060 = vmatmul.mubr.msk.bf16.gmra.mrb[32].mxu1 %vm62_vm2, %v4363_v25  ;;  %13963 = vmatprep.mubr.msk.bf16.mxu0 %vm62_vm2, %v3387_v59  ;;  %v4581_v25 = vld [vmem:[#allocation2 + $0xe8] sm:$0xff]  ;;  %v3604_v59 = vld [vmem:[#allocation2 + $0x99] sm:$0xff] }
 0x1bd   :  { %14067 = vmatprep.mubr.msk.bf16.mxu1 %vm62_vm2, %v4473_v10  ;;  %13968 = vmatpush3.bf16.msra.mxu0 %v15504_v43  ;;  %v15507_v43 = vld [vmem:[%s18503_s4 + $0x48] sm:$0xff]   ;;  %v4583_v10 = vld [vmem:[#allocation2 + $0xf8] sm:$0xff]  ;;  %v4587_v13 = vpack.c.bf16 %v4581_v25, %v4580_v63  ;;  %v3611_v61 = vpack.c.bf16 %v3604_v59, %v3603_v46 }
 0x1be   :  { %13969 = vmatprep.subr.bf16.mxu0 %v15505_v35  ;;  %v4588_v38 = vpack.c.bf16 %v4583_v10, %v4582_v3  ;;  %v4693_v25 = vld [vmem:[#allocation2 + $0xe1] sm:$0xff]  ;;  %v3719_v63 = vld [vmem:[#allocation2 + $0xb2] sm:$0xff] }
 0x1bf   :  { %v3720_v3 = vld [vmem:[#allocation2 + $0xba] sm:$0xff] }
 0x1c1   :  { %13970 = vmatpush3.bf16.msra.mxu0 %v15505_v35  ;;  %v3496_v35 = vld [vmem:[#allocation2 + $0xc0] sm:$0xff] }
 0x1c2   :  { %13979 = vmatprep.subr.bf16.mxu0 %v15508_v4  ;;  %v3501_v40 = vpack.c.bf16 %v3497_v31, %v3496_v35  ;;  %v3609_v31 = vld [vmem:[#allocation2 + $0xc1] sm:$0xff] }
 0x1c3   :  { %13964 = vmatmul.mubr.msk.bf16.gmra.mrb[24].mxu0 %vm62_vm2, %v3388_v60  ;;  %v3606_v60 = vld [vmem:[#allocation2 + $0xa9] sm:$0xff] }
 0x1c4   :  { %14068 = vmatmul.mubr.msk.bf16.vlgmr.msra.gmra.mrb[28].mxu1 %vm62_vm2, %v4474_v1  ;;  %13971 = vmatprep.mubr.msk.bf16.mxu0 %vm62_vm2, %v3498_v0  ;;  %v4585_v1 = vld [vmem:[#allocation2 + $0x108] sm:$0xff]  ;;  %v3608_v0 = vld [vmem:[#allocation2 + $0xb9] sm:$0xff]  ;;  %v3612_v51 = vpack.c.bf16 %v3606_v60, %v3605_v27 }
 0x1c5   :  { %14071 = vmatprep.mubr.msk.bf16.mxu1 %vm62_vm2, %v4475_v24  ;;  %14076 = vmatpush3.bf16.msra.mxu1 %v15506_v22  ;;  %v15509_v22 = vld [vmem:[%s18503_s4 + $0x58] sm:$0xff]   ;;  %v4589_v52 = vpack.c.bf16 %v4585_v1, %v4584_v21  ;;  %v3613_v56 = vpack.c.bf16 %v3608_v0, %v3607_v48  ;;  %v4805_v60 = vld [vmem:[#allocation2 + $0xe2] sm:$0xff]  ;;  %v3718_v1 = vld [vmem:[#allocation2 + $0xaa] sm:$0xff] }
 0x1c6   :  { %14077 = vmatprep.subr.bf16.mxu1 %v15507_v43  ;;  %v4691_v24 = vld [vmem:[#allocation2 + $0xd1] sm:$0xff]  ;;  %v3725_v48 = vpack.c.bf16 %v3719_v63, %v3718_v1  ;;  %v4918_v63 = vld [vmem:[#allocation2 + $0xe3] sm:$0xff] }
 0x1c7   :  { %v3723_v27 = vld [vmem:[#allocation2 + $0xd2] sm:$0xff] }
 0x1c8   :  { %v4807_v21 = vld [vmem:[#allocation2 + $0xf2] sm:$0xff] }
 0x1c9   :  { %14078 = vmatpush3.bf16.msra.mxu1 %v15507_v43  ;;  %v4692_v43 = vld [vmem:[#allocation2 + $0xd9] sm:$0xff] }
 0x1ca   :  { %14087 = vmatprep.subr.bf16.mxu1 %v15510_v23  ;;  %v4699_v58 = vpack.c.bf16 %v4692_v43, %v4691_v24  ;;  %v4920_v1 = vld [vmem:[#allocation2 + $0xf3] sm:$0xff] }
 0x1cb   :  { %13972 = vmatmul.mubr.msk.bf16.vlgmr.msra.gmra.mrb[20].mxu0 %vm62_vm2, %v3499_v18  ;;  %v3610_v18 = vld [vmem:[#allocation2 + $0xc9] sm:$0xff] }
 0x1cc   :  { %14072 = vmatmul.mubr.msk.bf16.gmra.mrb[32].mxu1 %vm62_vm2, %v4476_v57  ;;  %13975 = vmatprep.mubr.msk.bf16.mxu0 %vm62_vm2, %v3500_v29  ;;  %v4694_v57 = vld [vmem:[#allocation2 + $0xe9] sm:$0xff]  ;;  %v3614_v46 = vpack.c.bf16 %v3610_v18, %v3609_v31  ;;  %v3832_v31 = vld [vmem:[#allocation2 + $0xb3] sm:$0xff] }
 0x1cd   :  { %14079 = vmatprep.mubr.msk.bf16.mxu1 %vm62_vm2, %v4586_v5  ;;  %13980 = vmatpush3.bf16.msra.mxu0 %v15508_v4  ;;  %v15511_v4 = vld [vmem:[%s18503_s4 + $0x58] sm:$0xff]   ;;  %v3717_v29 = vld [vmem:[#allocation2 + $0xa2] sm:$0xff]  ;;  %v4700_v59 = vpack.c.bf16 %v4694_v57, %v4693_v25  ;;  %v3722_v18 = vld [vmem:[#allocation2 + $0xca] sm:$0xff] }
 0x1ce   :  { %13981 = vmatprep.subr.bf16.mxu0 %v15509_v22  ;;  %v4695_v5 = vld [vmem:[#allocation2 + $0xf1] sm:$0xff]  ;;  %v3724_v10 = vpack.c.bf16 %v3717_v29, %v3716_v30  ;;  %v3727_v30 = vpack.c.bf16 %v3723_v27, %v3722_v18  ;;  %v15525_v18 = vld [vmem:[%s18505_s6 + $0x28] sm:$0xff]  }
 0x1cf   :  { %v4806_v57 = vld [vmem:[#allocation2 + $0xea] sm:$0xff]  ;;  %v4811_v25 = vld [vmem:[#allocation2 + $0x112] sm:$0xff] }
 0x1d0   :  { %v4813_v29 = vpack.c.bf16 %v4807_v21, %v4806_v57 }
 0x1d1   :  { %13982 = vmatpush3.bf16.msra.mxu0 %v15509_v22  ;;  %v4696_v22 = vld [vmem:[#allocation2 + $0xf9] sm:$0xff] }
 0x1d2   :  { %13991 = vmatprep.subr.bf16.mxu0 %v15512_v45  ;;  %v4701_v35 = vpack.c.bf16 %v4696_v22, %v4695_v5 }
 0x1d3   :  { %13976 = vmatmul.mubr.msk.bf16.gmra.mrb[24].mxu0 %vm62_vm2, %v3501_v40  ;;  %v4697_v40 = vld [vmem:[#allocation2 + $0x101] sm:$0xff] }
 0x1d4   :  { %14080 = vmatmul.mubr.msk.bf16.vlgmr.msra.gmra.mrb[28].mxu1 %vm62_vm2, %v4587_v13  ;;  %13983 = vmatprep.mubr.msk.bf16.mxu0 %vm62_vm2, %v3611_v61  ;;  %v4698_v13 = vld [vmem:[#allocation2 + $0x109] sm:$0xff] }
 0x1d5   :  { %14083 = vmatprep.mubr.msk.bf16.mxu1 %vm62_vm2, %v4588_v38  ;;  %14088 = vmatpush3.bf16.msra.mxu1 %v15510_v23  ;;  %v15513_v23 = vld [vmem:[%s18503_s4 + $0x68] sm:$0xff]   ;;  %v15518_v61 = vld [vmem:[%s18503_s4 + $0x70] sm:$0xff]   ;;  %v4702_v0 = vpack.c.bf16 %v4698_v13, %v4697_v40 }
 0x1d6   :  { %14089 = vmatprep.subr.bf16.mxu1 %v15511_v4  ;;  %v3721_v38 = vld [vmem:[#allocation2 + $0xc2] sm:$0xff]  ;;  %v3831_v40 = vld [vmem:[#allocation2 + $0xab] sm:$0xff] }
 0x1d7   :  { %v3726_v24 = vpack.c.bf16 %v3721_v38, %v3720_v3  ;;  %v3838_v13 = vpack.c.bf16 %v3832_v31, %v3831_v40 }
 0x1d9   :  { %14090 = vmatpush3.bf16.msra.mxu1 %v15511_v4  ;;  %v4804_v4 = vld [vmem:[#allocation2 + $0xda] sm:$0xff] }
 0x1da   :  { %14099 = vmatprep.subr.bf16.mxu1 %v15514_v20  ;;  %v4812_v43 = vpack.c.bf16 %v4805_v60, %v4804_v4  ;;  %v3836_v60 = vld [vmem:[#allocation2 + $0xd3] sm:$0xff] }
 0x1db   :  { %13984 = vmatmul.mubr.msk.bf16.vlgmr.msra.gmra.mrb[20].mxu0 %vm62_vm2, %v3612_v51  ;;  %v3829_v51 = vld [vmem:[#allocation2 + $0x9b] sm:$0xff] }
 0x1dc   :  { %14084 = vmatmul.mubr.msk.bf16.gmra.mrb[32].mxu1 %vm62_vm2, %v4589_v52  ;;  %13987 = vmatprep.mubr.msk.bf16.mxu0 %vm62_vm2, %v3613_v56  ;;  %v15520_v52 = vld [vmem:[%s18503_s4 + $0x80] sm:$0xff]  }
 0x1dd   :  { %14091 = vmatprep.mubr.msk.bf16.mxu1 %vm62_vm2, %v4699_v58  ;;  %13992 = vmatpush3.bf16.msra.mxu0 %v15512_v45  ;;  %v15515_v45 = vld [vmem:[%s18503_s4 + $0x68] sm:$0xff]   ;;  %v4808_v58 = vld [vmem:[#allocation2 + $0xfa] sm:$0xff] }
 0x1de   :  { %13993 = vmatprep.subr.bf16.mxu0 %v15513_v23  ;;  %v3830_v56 = vld [vmem:[#allocation2 + $0xa3] sm:$0xff] }
 0x1df   :  { %v3837_v5 = vpack.c.bf16 %v3830_v56, %v3829_v51  ;;  %v15523_v56 = vld [vmem:[%s18503_s4 + $0x88] sm:$0xff]  }
 0x1e1   :  { %13994 = vmatpush3.bf16.msra.mxu0 %v15513_v23  ;;  %v4809_v23 = vld [vmem:[#allocation2 + $0x102] sm:$0xff] }
 0x1e2   :  { %14003 = vmatprep.subr.bf16.mxu0 %v15516_v14  ;;  %v4814_v22 = vpack.c.bf16 %v4809_v23, %v4808_v58  ;;  %v4924_v58 = vld [vmem:[#allocation2 + $0x113] sm:$0xff] }
 0x1e3   :  { %13988 = vmatmul.mubr.msk.bf16.gmra.mrb[24].mxu0 %vm62_vm2, %v3614_v46  ;;  %v4810_v46 = vld [vmem:[#allocation2 + $0x10a] sm:$0xff] }
 0x1e4   :  { %14092 = vmatmul.mubr.msk.bf16.vlgmr.msra.gmra.mrb[28].mxu1 %vm62_vm2, %v4700_v59  ;;  %13995 = vmatprep.mubr.msk.bf16.mxu0 %vm62_vm2, %v3724_v10  ;;  %v3833_v59 = vld [vmem:[#allocation2 + $0xbb] sm:$0xff]  ;;  %v4815_v3 = vpack.c.bf16 %v4811_v25, %v4810_v46 }
 0x1e5   :  { %14095 = vmatprep.mubr.msk.bf16.mxu1 %vm62_vm2, %v4701_v35  ;;  %14100 = vmatpush3.bf16.msra.mxu1 %v15514_v20  ;;  %v15517_v20 = vld [vmem:[%s18503_s4 + $0x78] sm:$0xff]   ;;  %v15522_v10 = vld [vmem:[%s18503_s4 + $0x80] sm:$0xff]  }
 0x1e6   :  { %14101 = vmatprep.subr.bf16.mxu1 %v15515_v45  ;;  %v3834_v35 = vld [vmem:[#allocation2 + $0xc3] sm:$0xff] }
 0x1e7   :  { %v3839_v38 = vpack.c.bf16 %v3834_v35, %v3833_v59 }
 0x1e9   :  { %14102 = vmatpush3.bf16.msra.mxu1 %v15515_v45  ;;  %v4917_v45 = vld [vmem:[#allocation2 + $0xdb] sm:$0xff] }
 0x1ea   :  { %14111 = vmatprep.subr.bf16.mxu1 %v15518_v61  ;;  %v4925_v4 = vpack.c.bf16 %v4918_v63, %v4917_v45 }
 0x1eb   :  { %13996 = vmatmul.mubr.msk.bf16.vlgmr.msra.gmra.mrb[20].mxu0 %vm62_vm2, %v3725_v48  ;;  %v15524_v48 = vld [vmem:[%s18505_s6 + $0x20] sm:$0xff]  }
 0x1ec   :  { %14096 = vmatmul.mubr.msk.bf16.gmra.mrb[32].mxu1 %vm62_vm2, %v4702_v0  ;;  %13999 = vmatprep.mubr.msk.bf16.mxu0 %vm62_vm2, %v3726_v24  ;;  %v4921_v0 = vld [vmem:[#allocation2 + $0xfb] sm:$0xff]  ;;  %v4922_v24 = vld [vmem:[#allocation2 + $0x103] sm:$0xff] }
 0x1ed   :  { %14103 = vmatprep.mubr.msk.bf16.mxu1 %vm62_vm2, %v4812_v43  ;;  %14004 = vmatpush3.bf16.msra.mxu0 %v15516_v14  ;;  %v15519_v14 = vld [vmem:[%s18503_s4 + $0x78] sm:$0xff]   ;;  %v3835_v43 = vld [vmem:[#allocation2 + $0xcb] sm:$0xff]  ;;  %v4927_v51 = vpack.c.bf16 %v4922_v24, %v4921_v0 }
 0x1ee   :  { %14005 = vmatprep.subr.bf16.mxu0 %v15517_v20  ;;  %v3840_v27 = vpack.c.bf16 %v3836_v60, %v3835_v43 }
 0x1f1   :  { %14006 = vmatpush3.bf16.msra.mxu0 %v15517_v20  ;;  %v4919_v20 = vld [vmem:[#allocation2 + $0xeb] sm:$0xff] }
 0x1f2   :  { %14015 = vmatprep.subr.bf16.mxu0 %v15520_v52  ;;  %v4926_v21 = vpack.c.bf16 %v4920_v1, %v4919_v20 }
 0x1f3   :  { %14000 = vmatmul.mubr.msk.bf16.gmra.mrb[24].mxu0 %vm62_vm2, %v3727_v30 }
 0x1f4   :  { %14104 = vmatmul.mubr.msk.bf16.vlgmr.msra.gmra.mrb[28].mxu1 %vm62_vm2, %v4813_v29  ;;  %14007 = vmatprep.mubr.msk.bf16.mxu0 %vm62_vm2, %v3837_v5 }
 0x1f5   :  { %14107 = vmatprep.mubr.msk.bf16.mxu1 %vm62_vm2, %v4814_v22  ;;  %14112 = vmatpush3.bf16.msra.mxu1 %v15518_v61  ;;  %v15521_v61 = vld [vmem:[%s18503_s4 + $0x88] sm:$0xff]  }
 0x1f6   :  { %14113 = vmatprep.subr.bf16.mxu1 %v15519_v14 }
 0x1f9   :  { %14114 = vmatpush3.bf16.msra.mxu1 %v15519_v14 }
 0x1fa   :  { %14123 = vmatprep.subr.bf16.mxu1 %v15522_v10 }
 0x1fb   :  { %14008 = vmatmul.mubr.msk.bf16.vlgmr.msra.gmra.mrb[20].mxu0 %vm62_vm2, %v3838_v13 }
 0x1fc   :  { %14108 = vmatmul.mubr.msk.bf16.gmra.mrb[32].mxu1 %vm62_vm2, %v4815_v3  ;;  %14011 = vmatprep.mubr.msk.bf16.mxu0 %vm62_vm2, %v3839_v38 }
 0x1fd   :  { %14115 = vmatprep.mubr.msk.bf16.mxu1 %vm62_vm2, %v4925_v4  ;;  %14016 = vmatpush3.bf16.msra.mxu0 %v15520_v52  ;;  %v4923_v52 = vld [vmem:[#allocation2 + $0x10b] sm:$0xff] }
 0x1fe   :  { %14017 = vmatprep.subr.bf16.mxu0 %v15521_v61  ;;  %v4928_v23 = vpack.c.bf16 %v4924_v58, %v4923_v52 }
 0x201   :  { %14018 = vmatpush3.bf16.msra.mxu0 %v15521_v61 }
 0x202   :  { %14135 = vmatprep.subr.bf16.mxu0 %v15524_v48 }
 0x203   :  { %14012 = vmatmul.mubr.msk.bf16.gmra.mrb[24].mxu0 %vm62_vm2, %v3840_v27 }
 0x204   :  { %14116 = vmatmul.mubr.msk.bf16.vlgmr.msra.gmra.mrb[28].mxu1 %vm62_vm2, %v4926_v21  ;;  %14019 = vmatprep.mubr.msk.bf16.mxu0 %vm62_vm2, %v3950_v9  ;;  %v5040_v9 = vpack.c.bf16 %v5035_v26, %v16760_v11 }
 0x205   :  { %14119 = vmatprep.mubr.msk.bf16.mxu1 %vm62_vm2, %v4927_v51  ;;  %14124 = vmatpush3.bf16.msra.mxu1 %v15522_v10 }
 0x206   :  { %14125 = vmatprep.subr.bf16.mxu1 %v15523_v56 }
 0x209   :  { %14126 = vmatpush3.bf16.msra.mxu1 %v15523_v56 }
 0x20b   :  { %14020 = vmatmul.mubr.msk.bf16.vlgmr.msra.gmra.mrb[20].mxu0 %vm62_vm2, %v3951_v19  ;;  %v5041_v19 = vpack.c.bf16 %v5037_v28, %v5036_v6 }
 0x20c   :  { %14120 = vmatmul.mubr.msk.bf16.gmra.mrb[32].mxu1 %vm62_vm2, %v4928_v23  ;;  %14023 = vmatprep.mubr.msk.bf16.mxu0 %vm62_vm2, %v3952_v47  ;;  %v16930_v47 = vpop.permute.xlu1 %6431 }
 0x20d   :  { %14127 = vmatprep.mubr.msk.bf16.mxu1 %vm62_vm2, %v5038_v15  ;;  %14136 = vmatpush3.bf16.msra.mxu0 %v15524_v48  ;;  %v16936_v15 = vpop.permute.xlu0 %6436 }
 0x20e   :  { %14137 = vmatprep.subr.bf16.mxu0 %v15525_v18 }
 0x211   :  { %14138 = vmatpush3.bf16.msra.mxu0 %v15525_v18  ;;  %v3011_v57 = vpop.permute.xlu0 %3010 }
 0x212   :  { %14139 = vmatprep.subr.bf16.mxu0 %v15526_v16 }
 0x213   :  { %14024 = vmatmul.mubr.msk.bf16.gmra.mrb[24].mxu0 %vm62_vm2, %v3953_v50  ;;  %v16934_v50 = vpop.permute.xlu1 %6441 }
 0x214   :  { %14128 = vmatmul.mubr.msk.bf16.vlgmr.msra.gmra.mrb[28].mxu1 %vm62_vm2, %v18531_v17 }
 0x215   :  { %14131 = vmatprep.mubr.msk.bf16.mxu1 %vm62_vm2, %v5040_v9  ;;  %14140 = vmatpush3.bf16.msra.mxu0 %v15526_v16  ;;  %v16951_v13 = vpop.permute.xlu0 %6451 }
 0x216   :  { %14141 = vmatprep.subr.bf16.mxu0 %v15527_v39 }
 0x217   :  { %v16943_v53 = vpop.permute.xlu1 %6446 }
 0x219   :  { %14142 = vmatpush3.bf16.msra.mxu0 %v15527_v39  ;;  %v5250_v39 = vld [vmem:[#allocation3 + $0x5] sm:$0xff]  ;;  %v3021_v17 = vpop.permute.xlu0 %3020 }
 0x21a   :  { %14151 = vmatprep.subr.bf16.mxu0 %v16922_v44 }
 0x21b   :  { %v3016_v40 = vpop.permute.xlu1 %3015 }
 0x21c   :  { %14132 = vmatmul.mubr.msk.bf16.gmra.mrb[32].mxu1 %vm62_vm2, %v5041_v19 }
 0x24e   :  { %v13805_v11 = vpop.f32.mrb[12].mxu0 }
 0x24f   :  { %v1888_v30 = vadd.f32 %v13805_v11, %v16941_v54  ;;  %v1840_v29 = vpop.f32.mrb[13].mxu0 }
 0x250   :  { %v1886_v5 = vadd.f32 %v16941_v54, %v1840_v29  ;;  %v13806_v22 = vpop.f32.mrb[14].mxu0 }
 0x251   :  { %v1896_v14 = vmax.f32 %v1888_v30, 0.0  ;;  %v1889_v31 = vadd.f32 %v13806_v22, %v16941_v54  ;;  %v1843_v25 = vpop.f32.mrb[15].mxu0 }
 0x252   :  { %v1894_v46 = vmax.f32 %v1886_v5, 0.0  ;;  %v1887_v59 = vadd.f32 %v16941_v54, %v1843_v25 }
 0x253   :  { %v1952_v10 = vmul.f32 %v16297_v34, %v1896_v14  ;;  %v1897_v35 = vmax.f32 %v1889_v31, 0.0 }
 0x254   :  { %v1950_v45 = vmul.f32 %v16293_v32, %v1894_v46  ;;  %v1895_v63 = vmax.f32 %v1887_v59, 0.0 }
 0x255   :  { %1960 = vst.msk [vmem:[#allocation3 + $0x20] sm:$0xff] %vm67_vm3, %v1952_v10  ;;  %v1953_v3 = vmul.f32 %v16304_v36, %v1897_v35  ;;  %v15529_v10 = vld [vmem:[%s18505_s6 + $0x8] sm:$0xff]  }
 0x256   :  { %1958 = vst.msk [vmem:[#allocation3 + $0x10] sm:$0xff] %vm67_vm3, %v1950_v45  ;;  %v1951_v38 = vmul.f32 %v16295_v33, %v1895_v63  ;;  %v13809_v4 = vpop.f32.mrb[16].mxu0 }
 0x257   :  { %v13913_v61 = vpop.f32.mrb[20].mxu1  ;;  %1961 = vst.msk [vmem:[#allocation3 + $0x28] sm:$0xff] %vm67_vm3, %v1953_v3  ;;  %v1892_v34 = vadd.f32 %v13809_v4, %v16941_v54  ;;  %v1856_v60 = vpop.f32.mrb[17].mxu0 }
 0x258   :  { %v2976_v32 = vadd.f32 %v13913_v61, %v16941_v54  ;;  %v2928_v1 = vpop.f32.mrb[21].mxu1  ;;  %1959 = vst.msk [vmem:[#allocation3 + $0x18] sm:$0xff] %vm67_vm3, %v1951_v38  ;;  %v1890_v48 = vadd.f32 %v16941_v54, %v1856_v60  ;;  %v13810_v0 = vpop.f32.mrb[18].mxu0 }
 0x259   :  { %v2974_v36 = vadd.f32 %v16941_v54, %v2928_v1  ;;  %v13914_v24 = vpop.f32.mrb[22].mxu1  ;;  %v1900_v43 = vmax.f32 %v1892_v34, 0.0  ;;  %v1893_v20 = vadd.f32 %v13810_v0, %v16941_v54  ;;  %v1859_v21 = vpop.f32.mrb[19].mxu0 }
 0x25a   :  { %v2984_v33 = vmax.f32 %v2976_v32, 0.0  ;;  %v2977_v27 = vadd.f32 %v13914_v24, %v16941_v54  ;;  %v2931_v51 = vpop.f32.mrb[23].mxu1  ;;  %v1898_v56 = vmax.f32 %v1890_v48, 0.0  ;;  %v1891_v58 = vadd.f32 %v16941_v54, %v1859_v21  ;;  %v3031_v3 = vpop.permute.xlu0 %3030 }
 0x25b   :  { %v2982_v52 = vmax.f32 %v2974_v36, 0.0  ;;  %v2975_v23 = vadd.f32 %v16941_v54, %v2931_v51  ;;  %v1956_v18 = vmul.f32 %v16326_v12, %v1900_v43  ;;  %v1901_v26 = vmax.f32 %v1893_v20, 0.0  ;;  %v3026_v12 = vpop.permute.xlu1 %3025  ;;  %v15530_v36 = vld [vmem:[%s18505_s6 + $0x10] sm:$0xff]  }
 0x25c   :  { %v3040_v16 = vmul.f32 %v3011_v57, %v2984_v33  ;;  %v2985_v9 = vmax.f32 %v2977_v27, 0.0  ;;  %v1954_v6 = vmul.f32 %v16306_v37, %v1898_v56  ;;  %v1899_v19 = vmax.f32 %v1891_v58, 0.0  ;;  %v5230_v27 = vld [vmem:[#allocation3 + $0x4] sm:$0xff] }
 0x25d   :  { %v3038_v28 = vmul.f32 %v16350_v2, %v2982_v52  ;;  %v2983_v11 = vmax.f32 %v2975_v23, 0.0  ;;  %1964 = vst.msk [vmem:[#allocation3 + $0x40] sm:$0xff] %vm67_vm3, %v1956_v18  ;;  %v1957_v30 = vmul.f32 %v16342_v55, %v1901_v26  ;;  %v5251_v5 = vld [vmem:[#allocation3 + $0xd] sm:$0xff]  ;;  %v15531_v23 = vld [vmem:[%s18505_s6 + $0x18] sm:$0xff]   ;;  %v15532_v26 = vld [vmem:[%s18505_s6 + $0x40] sm:$0xff]  }
 0x25e   :  { %3048 = vst.msk [vmem:[#allocation3 + $0x60] sm:$0xff] %vm67_vm3, %v3040_v16  ;;  %v3041_v29 = vmul.f32 %v3016_v40, %v2985_v9  ;;  %1962 = vst.msk [vmem:[#allocation3 + $0x30] sm:$0xff] %vm67_vm3, %v1954_v6  ;;  %v1955_v57 = vmul.f32 %v16324_v7, %v1899_v19  ;;  %v5258_v22 = vpack.c.bf16 %v5251_v5, %v5250_v39  ;;  %v16980_v46 = vld [vmem:[#allocation3 + $0x24] sm:$0xff]  ;;  %v5231_v21 = vld [vmem:[#allocation3 + $0xc] sm:$0xff] }
 0x25f   :  { %3046 = vst.msk [vmem:[#allocation3 + $0x50] sm:$0xff] %vm67_vm3, %v3038_v28  ;;  %v3039_v37 = vmul.f32 %v16367_v8, %v2983_v11  ;;  %v13917_v2 = vpop.f32.mrb[24].mxu1  ;;  %1965 = vst.msk [vmem:[#allocation3 + $0x48] sm:$0xff] %vm67_vm3, %v1957_v30  ;;  %v5252_v31 = vld [vmem:[#allocation3 + $0x15] sm:$0xff]  ;;  %v5253_v25 = vld [vmem:[#allocation3 + $0x1d] sm:$0xff]  ;;  %v3036_v60 = vpop.permute.xlu1 %3035  ;;  %v5238_v16 = vpack.c.bf16 %v5231_v21, %v5230_v27 }
 0x260   :  { %3049 = vst.msk [vmem:[#allocation3 + $0x68] sm:$0xff] %vm67_vm3, %v3041_v29  ;;  %v2980_v14 = vadd.f32 %v13917_v2, %v16941_v54  ;;  %v2944_v55 = vpop.f32.mrb[25].mxu1  ;;  %1963 = vst.msk [vmem:[#allocation3 + $0x38] sm:$0xff] %vm67_vm3, %v1955_v57  ;;  %14143 = vmatprep.mubr.msk.bf16.mxu0 %vm67_vm3, %v5258_v22  ;;  %v5259_v59 = vpack.c.bf16 %v5253_v25, %v5252_v31  ;;  %v16989_v35 = vld [vmem:[#allocation3 + $0x1c] sm:$0xff]  ;;  %v5254_v24 = vld [vmem:[#allocation3 + $0x25] sm:$0xff] }
 0x261   :  { %3047 = vst.msk [vmem:[#allocation3 + $0x58] sm:$0xff] %vm67_vm3, %v3039_v37  ;;  %v2978_v7 = vadd.f32 %v16941_v54, %v2944_v55  ;;  %v13918_v8 = vpop.f32.mrb[26].mxu1  ;;  %v6261_v61 = vpack.c.bf16 %v16980_v46, %v16989_v35  ;;  %v5232_v9 = vld [vmem:[#allocation3 + $0x14] sm:$0xff]  ;;  %v5473_v29 = vld [vmem:[#allocation3 + $0x6] sm:$0xff] }
 0x262   :  { %v2988_v45 = vmax.f32 %v2980_v14, 0.0  ;;  %v2981_v63 = vadd.f32 %v13918_v8, %v16941_v54  ;;  %v2947_v40 = vpop.f32.mrb[27].mxu1  ;;  %14144 = vmatmul.mubr.msk.bf16.vlgmr.msra.gmra.mrb[28].mxu0 %vm67_vm3, %v5259_v59  ;;  %v5239_v39 = vpack.c.bf16 %v16989_v35, %v5232_v9  ;;  %v15534_v30 = vld [vmem:[%s18505_s6 + $0x50] sm:$0xff]   ;;  %v15535_v25 = vld [vmem:[%s18505_s6 + $0x58] sm:$0xff]   ;;  %v15536_v59 = vld [vmem:[%s18505_s6 + $0x60] sm:$0xff]  }
 0x263   :  { %v2986_v38 = vmax.f32 %v2978_v7, 0.0  ;;  %v2979_v4 = vadd.f32 %v16941_v54, %v2947_v40  ;;  %14152 = vmatpush3.bf16.msra.mxu0 %v16922_v44  ;;  %v5474_v37 = vld [vmem:[#allocation3 + $0xe] sm:$0xff]  ;;  %v15560_v7 = vld [vmem:[%s18507_s8] sm:$0xff]   ;;  %v17087_v9 = vpop.permute.xlu1 %4093 }
 0x264   :  { %v3044_v34 = vmul.f32 %v3031_v3, %v2988_v45  ;;  %v2989_v32 = vmax.f32 %v2981_v63, 0.0  ;;  %14153 = vmatprep.subr.bf16.mxu0 %v15529_v10  ;;  %v5481_v8 = vpack.c.bf16 %v5474_v37, %v5473_v29  ;;  %14279 = vmatprep.subr.bf16.mxu1 %v15560_v7  ;;  %v5476_v45 = vld [vmem:[#allocation3 + $0x1e] sm:$0xff]  ;;  %v5477_v3 = vld [vmem:[#allocation3 + $0x26] sm:$0xff] }
 0x265   :  { %v3042_v1 = vmul.f32 %v3021_v17, %v2986_v38  ;;  %v2987_v48 = vmax.f32 %v2979_v4, 0.0  ;;  %v5255_v43 = vld [vmem:[#allocation3 + $0x2d] sm:$0xff]  ;;  %14280 = vmatpush3.bf16.msra.mxu1 %v15560_v7  ;;  %v15543_v29 = vld [vmem:[%s18505_s6 + $0x98] sm:$0xff]  }
 0x266   :  { %3052 = vst.msk [vmem:[#allocation3 + $0x80] sm:$0xff] %vm67_vm3, %v3044_v34  ;;  %v3045_v0 = vmul.f32 %v3036_v60, %v2989_v32  ;;  %v5260_v20 = vpack.c.bf16 %v5255_v43, %v5254_v24  ;;  %v17002_v44 = vld [vmem:[#allocation3 + $0x2c] sm:$0xff]  ;;  %v17025_v28 = vld [vmem:[#allocation3 + $0x44] sm:$0xff] }
 0x267   :  { %3050 = vst.msk [vmem:[#allocation3 + $0x70] sm:$0xff] %vm67_vm3, %v3042_v1  ;;  %v3043_v33 = vmul.f32 %v3026_v12, %v2987_v48  ;;  %14154 = vmatpush3.bf16.msra.mxu0 %v15529_v10  ;;  %v5256_v51 = vld [vmem:[#allocation3 + $0x35] sm:$0xff]  ;;  %v5257_v56 = vld [vmem:[#allocation3 + $0x3d] sm:$0xff]  ;;  %v15533_v17 = vld [vmem:[%s18505_s6 + $0x48] sm:$0xff]   ;;  %v5240_v6 = vpack.c.bf16 %v17002_v44, %v16980_v46 }
 0x268   :  { %3053 = vst.msk [vmem:[#allocation3 + $0x88] sm:$0xff] %vm67_vm3, %v3045_v0  ;;  %v17005_v52 = vld [vmem:[#allocation3 + $0x34] sm:$0xff]  ;;  %14147 = vmatprep.mubr.msk.bf16.mxu0 %vm67_vm3, %v5260_v20  ;;  %v5261_v58 = vpack.c.bf16 %v5257_v56, %v5256_v51  ;;  %14155 = vmatprep.subr.bf16.mxu0 %v15530_v36  ;;  %v17027_v19 = vld [vmem:[#allocation3 + $0x4c] sm:$0xff]  ;;  %v17036_v5 = vld [vmem:[#allocation3 + $0x3c] sm:$0xff] }
 0x269   :  { %3051 = vst.msk [vmem:[#allocation3 + $0x78] sm:$0xff] %vm67_vm3, %v3043_v33  ;;  %v6262_v18 = vpack.c.bf16 %v17005_v52, %v17002_v44  ;;  %v6607_v11 = vpack.c.bf16 %v17027_v19, %v17025_v28  ;;  %v17038_v12 = vld [vmem:[#allocation3 + $0x5c] sm:$0xff]  ;;  %v17040_v57 = vld [vmem:[#allocation3 + $0x64] sm:$0xff]  ;;  %v5241_v31 = vpack.c.bf16 %v17036_v5, %v17005_v52  ;;  %v5478_v63 = vld [vmem:[#allocation3 + $0x2e] sm:$0xff]  ;;  %v6263_v46 = vpack.c.bf16 %v17025_v28, %v17036_v5 }
 0x26a   :  { %14148 = vmatmul.mubr.msk.bf16.gmra.mrb[32].mxu0 %vm67_vm3, %v5261_v58  ;;  %v7623_v14 = vpack.c.bf16 %v17040_v57, %v17038_v12  ;;  %v5475_v10 = vld [vmem:[#allocation3 + $0x16] sm:$0xff]  ;;  %v15537_v38 = vld [vmem:[%s18505_s6 + $0x68] sm:$0xff]   ;;  %v5483_v4 = vpack.c.bf16 %v5478_v63, %v5477_v3  ;;  %v5480_v60 = vld [vmem:[#allocation3 + $0x3e] sm:$0xff] }
 0x26b   :  { %14156 = vmatpush3.bf16.msra.mxu0 %v15530_v36  ;;  %14159 = vmatprep.mubr.msk.bf16.mxu0 %vm67_vm3, %v5238_v16  ;;  %v5482_v40 = vpack.c.bf16 %v5476_v45, %v5475_v10  ;;  %v15538_v34 = vld [vmem:[%s18505_s6 + $0x70] sm:$0xff]   ;;  %v15539_v0 = vld [vmem:[%s18505_s6 + $0x78] sm:$0xff]   ;;  %v15540_v43 = vld [vmem:[%s18505_s6 + $0x80] sm:$0xff]  }
 0x26c   :  { %14157 = vmatprep.subr.bf16.mxu0 %v15531_v23  ;;  %v5479_v32 = vld [vmem:[#allocation3 + $0x36] sm:$0xff]  ;;  %v5605_v33 = vld [vmem:[#allocation3 + $0x1f] sm:$0xff]  ;;  %v5606_v20 = vld [vmem:[#allocation3 + $0x27] sm:$0xff] }
 0x26d   :  { %v5604_v1 = vld [vmem:[#allocation3 + $0x17] sm:$0xff]  ;;  %v5484_v48 = vpack.c.bf16 %v5480_v60, %v5479_v32  ;;  %v5603_v36 = vld [vmem:[#allocation3 + $0xf] sm:$0xff]  ;;  %v5612_v21 = vpack.c.bf16 %v5606_v20, %v5605_v33  ;;  %v5609_v16 = vld [vmem:[#allocation3 + $0x3f] sm:$0xff] }
 0x26e   :  { %v17042_v2 = vld [vmem:[#allocation3 + $0x6c] sm:$0xff]  ;;  %v5611_v24 = vpack.c.bf16 %v5604_v1, %v5603_v36  ;;  %v5608_v27 = vld [vmem:[#allocation3 + $0x37] sm:$0xff]  ;;  %v5735_v10 = vld [vmem:[#allocation3 + $0x20] sm:$0xff] }
 0x26f   :  { %14158 = vmatpush3.bf16.msra.mxu0 %v15531_v23  ;;  %v5607_v51 = vld [vmem:[#allocation3 + $0x2f] sm:$0xff]  ;;  %v5864_v1 = vld [vmem:[#allocation3 + $0x19] sm:$0xff] }
 0x270   :  { %14167 = vmatprep.subr.bf16.mxu0 %v15532_v26  ;;  %v17044_v22 = vld [vmem:[#allocation3 + $0x74] sm:$0xff]  ;;  %v15541_v56 = vld [vmem:[%s18505_s6 + $0x88] sm:$0xff]   ;;  %v5613_v58 = vpack.c.bf16 %v5608_v27, %v5607_v51  ;;  %v15548_v20 = vld [vmem:[%s18505_s6 + $0xc0] sm:$0xff]  }
 0x271   :  { %v15542_v23 = vld [vmem:[%s18505_s6 + $0x90] sm:$0xff]   ;;  %v5740_v32 = vld [vmem:[#allocation3 + $0x48] sm:$0xff] }
 0x272   :  { %14160 = vmatmul.mubr.msk.bf16.vlgmr.msra.gmra.mrb[28].mxu0 %vm67_vm3, %v5239_v39  ;;  %v5734_v39 = vld [vmem:[#allocation3 + $0x18] sm:$0xff]  ;;  %v5737_v63 = vld [vmem:[#allocation3 + $0x30] sm:$0xff] }
 0x273   :  { %14163 = vmatprep.mubr.msk.bf16.mxu0 %vm67_vm3, %v5240_v6  ;;  %14168 = vmatpush3.bf16.msra.mxu0 %v15532_v26  ;;  %v5610_v26 = vld [vmem:[#allocation3 + $0x47] sm:$0xff]  ;;  %v5863_v60 = vld [vmem:[#allocation3 + $0x11] sm:$0xff] }
 0x274   :  { %14169 = vmatprep.subr.bf16.mxu0 %v15533_v17  ;;  %v5614_v6 = vpack.c.bf16 %v5610_v26, %v5609_v16  ;;  %v5871_v33 = vpack.c.bf16 %v5864_v1, %v5863_v60  ;;  %v5866_v27 = vld [vmem:[#allocation3 + $0x29] sm:$0xff]  ;;  %v5867_v51 = vld [vmem:[#allocation3 + $0x31] sm:$0xff]  ;;  %v5997_v60 = vld [vmem:[#allocation3 + $0x3a] sm:$0xff] }
 0x275   :  { %v15549_v26 = vld [vmem:[%s18505_s6 + $0xc8] sm:$0xff]   ;;  %v15574_v28 = vld [vmem:[%s18505_s6 + $0x50] sm:$0xff]  }
 0x276   :  { %v5998_v1 = vld [vmem:[#allocation3 + $0x42] sm:$0xff] }
 0x277   :  { %14170 = vmatpush3.bf16.msra.mxu0 %v15533_v17  ;;  %v17089_v17 = vpop.permute.xlu0 %4088 }
 0x278   :  { %14171 = vmatprep.subr.bf16.mxu0 %v15534_v30 }
 0x27a   :  { %14164 = vmatmul.mubr.msk.bf16.gmra.mrb[32].mxu0 %vm67_vm3, %v5241_v31  ;;  %v17096_v31 = vpop.permute.xlu1 %7782 }
 0x27b   :  { %14172 = vmatpush3.bf16.msra.mxu0 %v15534_v30  ;;  %14175 = vmatprep.mubr.msk.bf16.mxu0 %vm67_vm3, %v5481_v8  ;;  %v5733_v30 = vld [vmem:[#allocation3 + $0x10] sm:$0xff]  ;;  %v17101_v7 = vpop.permute.xlu0 %7777  ;;  %v5736_v8 = vld [vmem:[#allocation3 + $0x28] sm:$0xff] }
 0x27c   :  { %14173 = vmatprep.subr.bf16.mxu0 %v15535_v25  ;;  %v5741_v37 = vpack.c.bf16 %v5734_v39, %v5733_v30  ;;  %v5742_v45 = vpack.c.bf16 %v5736_v8, %v5735_v10  ;;  %v15550_v30 = vld [vmem:[%s18505_s6 + $0xd0] sm:$0xff]   ;;  %v5993_v8 = vld [vmem:[#allocation3 + $0x1a] sm:$0xff] }
 0x27f   :  { %14174 = vmatpush3.bf16.msra.mxu0 %v15535_v25  ;;  %v15544_v25 = vld [vmem:[%s18505_s6 + $0xa0] sm:$0xff]  }
 0x280   :  { %14183 = vmatprep.subr.bf16.mxu0 %v15536_v59 }
 0x282   :  { %14176 = vmatmul.mubr.msk.bf16.vlgmr.msra.gmra.mrb[28].mxu0 %vm67_vm3, %v5482_v40  ;;  %v15545_v40 = vld [vmem:[%s18505_s6 + $0xa8] sm:$0xff]  }
 0x283   :  { %14179 = vmatprep.mubr.msk.bf16.mxu0 %vm67_vm3, %v5483_v4  ;;  %14184 = vmatpush3.bf16.msra.mxu0 %v15536_v59  ;;  %v5738_v59 = vld [vmem:[#allocation3 + $0x38] sm:$0xff]  ;;  %v17109_v4 = vpop.permute.xlu0 %7787 }
 0x284   :  { %14185 = vmatprep.subr.bf16.mxu0 %v15537_v38  ;;  %v5743_v3 = vpack.c.bf16 %v5738_v59, %v5737_v63  ;;  %v5994_v59 = vld [vmem:[#allocation3 + $0x22] sm:$0xff] }
 0x285   :  { %v6001_v63 = vpack.c.bf16 %v5994_v59, %v5993_v8 }
 0x287   :  { %14186 = vmatpush3.bf16.msra.mxu0 %v15537_v38  ;;  %v17106_v38 = vpop.permute.xlu1 %7792 }
 0x288   :  { %14187 = vmatprep.subr.bf16.mxu0 %v15538_v34 }
 0x28a   :  { %14180 = vmatmul.mubr.msk.bf16.gmra.mrb[32].mxu0 %vm67_vm3, %v5484_v48  ;;  %v5739_v48 = vld [vmem:[#allocation3 + $0x40] sm:$0xff] }
 0x28b   :  { %14188 = vmatpush3.bf16.msra.mxu0 %v15538_v34  ;;  %14191 = vmatprep.mubr.msk.bf16.mxu0 %vm67_vm3, %v5611_v24  ;;  %v15546_v34 = vld [vmem:[%s18505_s6 + $0xb0] sm:$0xff]   ;;  %v17115_v36 = vpop.permute.xlu1 %7802  ;;  %v15547_v24 = vld [vmem:[%s18505_s6 + $0xb8] sm:$0xff]  }
 0x28c   :  { %14189 = vmatprep.subr.bf16.mxu0 %v15539_v0 }
 0x28f   :  { %14190 = vmatpush3.bf16.msra.mxu0 %v15539_v0  ;;  %v5744_v0 = vpack.c.bf16 %v5740_v32, %v5739_v48  ;;  %v5996_v32 = vld [vmem:[#allocation3 + $0x32] sm:$0xff]  ;;  %v5995_v48 = vld [vmem:[#allocation3 + $0x2a] sm:$0xff] }
 0x290   :  { %14199 = vmatprep.subr.bf16.mxu0 %v15540_v43 }
 0x292   :  { %14192 = vmatmul.mubr.msk.bf16.vlgmr.msra.gmra.mrb[28].mxu0 %vm67_vm3, %v5612_v21  ;;  %v17127_v21 = vpop.permute.xlu1 %7807 }
 0x293   :  { %14195 = vmatprep.mubr.msk.bf16.mxu0 %vm67_vm3, %v5613_v58  ;;  %14200 = vmatpush3.bf16.msra.mxu0 %v15540_v43  ;;  %v17120_v43 = vpop.permute.xlu0 %7797 }
 0x294   :  { %14201 = vmatprep.subr.bf16.mxu0 %v15541_v56 }
 0x297   :  { %14202 = vmatpush3.bf16.msra.mxu0 %v15541_v56  ;;  %v5868_v56 = vld [vmem:[#allocation3 + $0x39] sm:$0xff]  ;;  %v17129_v58 = vpop.permute.xlu0 %4098 }
 0x298   :  { %14203 = vmatprep.subr.bf16.mxu0 %v15542_v23  ;;  %v5873_v39 = vpack.c.bf16 %v5868_v56, %v5867_v51  ;;  %v15554_v51 = vld [vmem:[%s18505_s6 + $0xf0] sm:$0xff]  }
 0x299   :  { %v5999_v56 = vld [vmem:[#allocation3 + $0x4a] sm:$0xff] }
 0x29a   :  { %14196 = vmatmul.mubr.msk.bf16.gmra.mrb[32].mxu0 %vm67_vm3, %v5614_v6  ;;  %v17136_v6 = vpop.permute.xlu1 %4103 }
 0x29b   :  { %14204 = vmatpush3.bf16.msra.mxu0 %v15542_v23  ;;  %14207 = vmatprep.mubr.msk.bf16.mxu0 %vm67_vm3, %v5741_v37  ;;  %v5865_v23 = vld [vmem:[#allocation3 + $0x21] sm:$0xff] }
 0x29c   :  { %14205 = vmatprep.subr.bf16.mxu0 %v15543_v29  ;;  %v5872_v16 = vpack.c.bf16 %v5866_v27, %v5865_v23  ;;  %v5869_v37 = vld [vmem:[#allocation3 + $0x41] sm:$0xff]  ;;  %v6003_v27 = vpack.c.bf16 %v5998_v1, %v5997_v60  ;;  %v6000_v23 = vld [vmem:[#allocation3 + $0x52] sm:$0xff] }
 0x29d   :  { %v6125_v60 = vld [vmem:[#allocation3 + $0x2b] sm:$0xff] }
 0x29f   :  { %14206 = vmatpush3.bf16.msra.mxu0 %v15543_v29  ;;  %v17141_v29 = vpop.permute.xlu0 %7812 }
 0x2a0   :  { %14215 = vmatprep.subr.bf16.mxu0 %v15544_v25 }
 0x2a2   :  { %14208 = vmatmul.mubr.msk.bf16.vlgmr.msra.gmra.mrb[28].mxu0 %vm67_vm3, %v5742_v45  ;;  %v15551_v45 = vld [vmem:[%s18505_s6 + $0xd8] sm:$0xff]  }
 0x2a3   :  { %14211 = vmatprep.mubr.msk.bf16.mxu0 %vm67_vm3, %v5743_v3  ;;  %14216 = vmatpush3.bf16.msra.mxu0 %v15544_v25  ;;  %v5870_v25 = vld [vmem:[#allocation3 + $0x49] sm:$0xff]  ;;  %v17149_v3 = vpop.permute.xlu0 %4108 }
 0x2a4   :  { %14217 = vmatprep.subr.bf16.mxu0 %v15545_v40  ;;  %v5874_v10 = vpack.c.bf16 %v5870_v25, %v5869_v37  ;;  %v6004_v37 = vpack.c.bf16 %v6000_v23, %v5999_v56  ;;  %v15555_v25 = vld [vmem:[%s18505_s6 + $0xf8] sm:$0xff]   ;;  %v6129_v56 = vld [vmem:[#allocation3 + $0x4b] sm:$0xff] }
 0x2a5   :  { %v6130_v23 = vld [vmem:[#allocation3 + $0x53] sm:$0xff] }
 0x2a7   :  { %14218 = vmatpush3.bf16.msra.mxu0 %v15545_v40  ;;  %v17146_v40 = vpop.permute.xlu1 %4113 }
 0x2a8   :  { %14219 = vmatprep.subr.bf16.mxu0 %v15546_v34 }
 0x2aa   :  { %14212 = vmatmul.mubr.msk.bf16.gmra.mrb[32].mxu0 %vm67_vm3, %v5744_v0 }
 0x2ab   :  { %14220 = vmatpush3.bf16.msra.mxu0 %v15546_v34  ;;  %14223 = vmatprep.mubr.msk.bf16.mxu0 %vm67_vm3, %v5871_v33  ;;  %v15552_v34 = vld [vmem:[%s18505_s6 + $0xe0] sm:$0xff]   ;;  %v17155_v0 = vpop.permute.xlu1 %4123  ;;  %v15553_v33 = vld [vmem:[%s18505_s6 + $0xe8] sm:$0xff]  }
 0x2ac   :  { %14221 = vmatprep.subr.bf16.mxu0 %v15547_v24 }
 0x2af   :  { %14222 = vmatpush3.bf16.msra.mxu0 %v15547_v24  ;;  %v6002_v24 = vpack.c.bf16 %v5996_v32, %v5995_v48  ;;  %v6128_v32 = vld [vmem:[#allocation3 + $0x43] sm:$0xff] }
 0x2b0   :  { %14231 = vmatprep.subr.bf16.mxu0 %v15548_v20  ;;  %v15557_v48 = vld [vmem:[%s18505_s6 + $0x108] sm:$0xff]  }
 0x2b2   :  { %14224 = vmatmul.mubr.msk.bf16.vlgmr.msra.gmra.mrb[28].mxu0 %vm67_vm3, %v5872_v16  ;;  %v17167_v16 = vpop.permute.xlu1 %5181 }
 0x2b3   :  { %14227 = vmatprep.mubr.msk.bf16.mxu0 %vm67_vm3, %v5873_v39  ;;  %14232 = vmatpush3.bf16.msra.mxu0 %v15548_v20  ;;  %v17160_v20 = vpop.permute.xlu0 %4118  ;;  %v6124_v39 = vld [vmem:[#allocation3 + $0x23] sm:$0xff] }
 0x2b4   :  { %14233 = vmatprep.subr.bf16.mxu0 %v15549_v26 }
 0x2b6   :  { %v17176_v59 = vpop.permute.xlu1 %9142 }
 0x2b7   :  { %14234 = vmatpush3.bf16.msra.mxu0 %v15549_v26  ;;  %v6123_v26 = vld [vmem:[#allocation3 + $0x1b] sm:$0xff] }
 0x2b8   :  { %14235 = vmatprep.subr.bf16.mxu0 %v15550_v30  ;;  %v6131_v8 = vpack.c.bf16 %v6124_v39, %v6123_v26  ;;  %v6134_v39 = vpack.c.bf16 %v6130_v23, %v6129_v56 }
 0x2ba   :  { %14228 = vmatmul.mubr.msk.bf16.gmra.mrb[32].mxu0 %vm67_vm3, %v5874_v10  ;;  %v15556_v10 = vld [vmem:[%s18505_s6 + $0x100] sm:$0xff]  }
 0x2bb   :  { %14236 = vmatpush3.bf16.msra.mxu0 %v15550_v30  ;;  %14239 = vmatprep.mubr.msk.bf16.mxu0 %vm67_vm3, %v6001_v63  ;;  %v17169_v30 = vpop.permute.xlu0 %5176  ;;  %v6126_v63 = vld [vmem:[#allocation3 + $0x33] sm:$0xff] }
 0x2bc   :  { %14237 = vmatprep.subr.bf16.mxu0 %v15551_v45  ;;  %v6132_v1 = vpack.c.bf16 %v6126_v63, %v6125_v60 }
 0x2bf   :  { %14238 = vmatpush3.bf16.msra.mxu0 %v15551_v45  ;;  %v17181_v45 = vpop.permute.xlu0 %9137 }
 0x2c0   :  { %14247 = vmatprep.subr.bf16.mxu0 %v15552_v34 }
 0x2c2   :  { %14240 = vmatmul.mubr.msk.bf16.vlgmr.msra.gmra.mrb[28].mxu0 %vm67_vm3, %v6002_v24 }
 0x2c3   :  { %14243 = vmatprep.mubr.msk.bf16.mxu0 %vm67_vm3, %v6003_v27  ;;  %14248 = vmatpush3.bf16.msra.mxu0 %v15552_v34  ;;  %v6127_v34 = vld [vmem:[#allocation3 + $0x3b] sm:$0xff]  ;;  %v17189_v27 = vpop.permute.xlu0 %9147 }
 0x2c4   :  { %14249 = vmatprep.subr.bf16.mxu0 %v15553_v33  ;;  %v6133_v24 = vpack.c.bf16 %v6128_v32, %v6127_v34 }
 0x2c7   :  { %14250 = vmatpush3.bf16.msra.mxu0 %v15553_v33  ;;  %v17186_v33 = vpop.permute.xlu1 %9152 }
 0x2c8   :  { %14251 = vmatprep.subr.bf16.mxu0 %v15554_v51 }
 0x2ca   :  { %14244 = vmatmul.mubr.msk.bf16.gmra.mrb[32].mxu0 %vm67_vm3, %v6004_v37  ;;  %v15559_v37 = vld [vmem:[%s18505_s6 + $0x118] sm:$0xff]  }
 0x2cb   :  { %14252 = vmatpush3.bf16.msra.mxu0 %v15554_v51  ;;  %14255 = vmatprep.mubr.msk.bf16.mxu0 %vm67_vm3, %v6131_v8  ;;  %v15558_v51 = vld [vmem:[%s18505_s6 + $0x110] sm:$0xff]   ;;  %v17195_v26 = vpop.permute.xlu1 %9162 }
 0x2cc   :  { %14253 = vmatprep.subr.bf16.mxu0 %v15555_v25 }
 0x2cf   :  { %14254 = vmatpush3.bf16.msra.mxu0 %v15555_v25  ;;  %v17200_v25 = vpop.permute.xlu0 %9157  ;;  %v17207_v8 = vpop.permute.xlu1 %9167 }
 0x2d0   :  { %14263 = vmatprep.subr.bf16.mxu0 %v15556_v10 }
 0x2d2   :  { %14256 = vmatmul.mubr.msk.bf16.vlgmr.msra.gmra.mrb[28].mxu0 %vm67_vm3, %v6132_v1 }
 0x2d3   :  { %14259 = vmatprep.mubr.msk.bf16.mxu0 %vm67_vm3, %v6133_v24  ;;  %14264 = vmatpush3.bf16.msra.mxu0 %v15556_v10  ;;  %v5187_v63 = vpop.permute.xlu0 %5186 }
 0x2d4   :  { %14265 = vmatprep.subr.bf16.mxu0 %v15557_v48 }
 0x2d7   :  { %14266 = vmatpush3.bf16.msra.mxu0 %v15557_v48 }
 0x2d8   :  { %14267 = vmatprep.subr.bf16.mxu0 %v15558_v51 }
 0x2da   :  { %14260 = vmatmul.mubr.msk.bf16.gmra.mrb[32].mxu0 %vm67_vm3, %v6134_v39 }
 0x2db   :  { %14268 = vmatpush3.bf16.msra.mxu0 %v15558_v51  ;;  %14271 = vmatprep.mubr.msk.bf16.mxu0 %vm67_vm3, %v6261_v61 }
 0x2dc   :  { %14269 = vmatprep.subr.bf16.mxu0 %v15559_v37 }
 0x2de   :  { %v14021_v10 = vpop.f32.mrb[20].mxu0 }
 0x2df   :  { %v4064_v34 = vadd.f32 %v14021_v10, %v16941_v54  ;;  %v4016_v32 = vpop.f32.mrb[21].mxu0  ;;  %14270 = vmatpush3.bf16.msra.mxu0 %v15559_v37  ;;  %v5192_v10 = vpop.permute.xlu1 %5191 }
 0x2e0   :  { %v4062_v60 = vadd.f32 %v16941_v54, %v4016_v32  ;;  %v14022_v1 = vpop.f32.mrb[22].mxu0  ;;  %v17226_v32 = vld [vmem:[#allocation3 + $0x54] sm:$0xff] }
 0x2e1   :  { %v4072_v48 = vmax.f32 %v4064_v34, 0.0  ;;  %v4065_v24 = vadd.f32 %v14022_v1, %v16941_v54  ;;  %v4019_v51 = vpop.f32.mrb[23].mxu0  ;;  %v17222_v34 = vpop.permute.xlu0 %9172 }
 0x2e2   :  { %v4070_v35 = vmax.f32 %v4062_v60, 0.0  ;;  %v4063_v61 = vadd.f32 %v16941_v54, %v4019_v51  ;;  %14272 = vmatmul.mubr.msk.bf16.vlgmr.msra.gmra.mrb[28].mxu0 %vm67_vm3, %v6262_v18 }
 0x2e3   :  { %v4128_v56 = vmul.f32 %v17129_v58, %v4072_v48  ;;  %v4073_v23 = vmax.f32 %v4065_v24, 0.0  ;;  %14275 = vmatprep.mubr.msk.bf16.mxu0 %vm67_vm3, %v6263_v46 }
 0x2e4   :  { %v4126_v39 = vmul.f32 %v17089_v17, %v4070_v35  ;;  %v4071_v37 = vmax.f32 %v4063_v61, 0.0 }
 0x2e5   :  { %4136 = vst.msk [vmem:[#allocation3 + $0xa0] sm:$0xff] %vm67_vm3, %v4128_v56  ;;  %v4129_v5 = vmul.f32 %v17136_v6, %v4073_v23 }
 0x2e6   :  { %4134 = vst.msk [vmem:[#allocation3 + $0x90] sm:$0xff] %vm67_vm3, %v4126_v39  ;;  %v4127_v44 = vmul.f32 %v17087_v9, %v4071_v37  ;;  %v14025_v52 = vpop.f32.mrb[24].mxu0  ;;  %v6264_v9 = vpack.c.bf16 %v17226_v32, %v17027_v19  ;;  %v17376_v19 = vld [vmem:[#allocation3 + $0x7c] sm:$0xff] }
 0x2e7   :  { %v14129_v18 = vpop.f32.mrb[28].mxu1  ;;  %4137 = vst.msk [vmem:[#allocation3 + $0xa8] sm:$0xff] %vm67_vm3, %v4129_v5  ;;  %v4068_v17 = vadd.f32 %v14025_v52, %v16941_v54  ;;  %v4032_v60 = vpop.f32.mrb[25].mxu0 }
 0x2e8   :  { %v5152_v58 = vadd.f32 %v14129_v18, %v16941_v54  ;;  %v5104_v1 = vpop.f32.mrb[29].mxu1  ;;  %4135 = vst.msk [vmem:[#allocation3 + $0x98] sm:$0xff] %vm67_vm3, %v4127_v44  ;;  %v4066_v6 = vadd.f32 %v16941_v54, %v4032_v60  ;;  %v14026_v24 = vpop.f32.mrb[26].mxu0 }
 0x2e9   :  { %v5150_v48 = vadd.f32 %v16941_v54, %v5104_v1  ;;  %v14130_v51 = vpop.f32.mrb[30].mxu1  ;;  %v4076_v46 = vmax.f32 %v4068_v17, 0.0  ;;  %v4069_v61 = vadd.f32 %v14026_v24, %v16941_v54  ;;  %v4035_v23 = vpop.f32.mrb[27].mxu0 }
 0x2ea   :  { %v5160_v35 = vmax.f32 %v5152_v58, 0.0  ;;  %v5153_v56 = vadd.f32 %v14130_v51, %v16941_v54  ;;  %v5107_v39 = vpop.f32.mrb[31].mxu1  ;;  %v4074_v37 = vmax.f32 %v4066_v6, 0.0  ;;  %v4067_v44 = vadd.f32 %v16941_v54, %v4035_v23  ;;  %14276 = vmatmul.mubr.msk.bf16.gmra.mrb[32].mxu0 %vm67_vm3, %v6264_v9  ;;  %v5197_v58 = vpop.permute.xlu0 %5196 }
 0x2eb   :  { %v5158_v5 = vmax.f32 %v5150_v48, 0.0  ;;  %v5151_v52 = vadd.f32 %v16941_v54, %v5107_v39  ;;  %v4132_v18 = vmul.f32 %v17160_v20, %v4076_v46  ;;  %v4077_v1 = vmax.f32 %v4069_v61, 0.0  ;;  %v5202_v9 = vpop.permute.xlu1 %5201 }
 0x2ec   :  { %v5216_v60 = vmul.f32 %v5187_v63, %v5160_v35  ;;  %v5161_v17 = vmax.f32 %v5153_v56, 0.0  ;;  %v4130_v24 = vmul.f32 %v17149_v3, %v4074_v37  ;;  %v4075_v62 = vmax.f32 %v4067_v44, 0.0 }
 0x2ed   :  { %v5214_v51 = vmul.f32 %v17169_v30, %v5158_v5  ;;  %v5159_v55 = vmax.f32 %v5151_v52, 0.0  ;;  %4140 = vst.msk [vmem:[#allocation3 + $0xc0] sm:$0xff] %vm67_vm3, %v4132_v18  ;;  %v4133_v6 = vmul.f32 %v17155_v0, %v4077_v1 }
 0x2ee   :  { %5224 = vst.msk [vmem:[#allocation3 + $0xe0] sm:$0xff] %vm67_vm3, %v5216_v60  ;;  %v5217_v48 = vmul.f32 %v5192_v10, %v5161_v17  ;;  %4138 = vst.msk [vmem:[#allocation3 + $0xb0] sm:$0xff] %vm67_vm3, %v4130_v24  ;;  %v4131_v20 = vmul.f32 %v17146_v40, %v4075_v62  ;;  %v5207_v61 = vpop.permute.xlu0 %5206 }
 0x2ef   :  { %5222 = vst.msk [vmem:[#allocation3 + $0xd0] sm:$0xff] %vm67_vm3, %v5214_v51  ;;  %v5215_v3 = vmul.f32 %v17167_v16, %v5159_v55  ;;  %v14133_v63 = vpop.f32.mrb[32].mxu1  ;;  %4141 = vst.msk [vmem:[#allocation3 + $0xc8] sm:$0xff] %vm67_vm3, %v4133_v6  ;;  %v17259_v35 = vld [vmem:[#allocation3 + $0x9c] sm:$0xff]  ;;  %v17262_v16 = vld [vmem:[#allocation3 + $0xa4] sm:$0xff]  ;;  %v5212_v44 = vpop.permute.xlu1 %5211 }
 0x2f0   :  { %5225 = vst.msk [vmem:[#allocation3 + $0xe8] sm:$0xff] %vm67_vm3, %v5217_v48  ;;  %v5156_v30 = vadd.f32 %v14133_v63, %v16941_v54  ;;  %v5120_v46 = vpop.f32.mrb[33].mxu1  ;;  %4139 = vst.msk [vmem:[#allocation3 + $0xb8] sm:$0xff] %vm67_vm3, %v4131_v20  ;;  %v8983_v39 = vpack.c.bf16 %v17262_v16, %v17259_v35 }
 0x2f1   :  { %5223 = vst.msk [vmem:[#allocation3 + $0xd8] sm:$0xff] %vm67_vm3, %v5215_v3  ;;  %v5154_v0 = vadd.f32 %v16941_v54, %v5120_v46  ;;  %v14134_v10 = vpop.f32.mrb[34].mxu1  ;;  %v15561_v46 = vld [vmem:[%s18507_s8 + $0x8] sm:$0xff]  }
 0x2f2   :  { %v5164_v62 = vmax.f32 %v5156_v30, 0.0  ;;  %v5157_v55 = vadd.f32 %v14134_v10, %v16941_v54  ;;  %v5123_v40 = vpop.f32.mrb[35].mxu1  ;;  %14281 = vmatprep.subr.bf16.mxu1 %v15561_v46  ;;  %v15563_v10 = vld [vmem:[%s18507_s8 + $0x18] sm:$0xff]  }
 0x2f3   :  { %v5162_v56 = vmax.f32 %v5154_v0, 0.0  ;;  %v5155_v23 = vadd.f32 %v16941_v54, %v5123_v40  ;;  %14282 = vmatpush3.bf16.msra.mxu1 %v15561_v46  ;;  %v15562_v0 = vld [vmem:[%s18507_s8 + $0x10] sm:$0xff]  }
 0x2f4   :  { %v5220_v37 = vmul.f32 %v5207_v61, %v5164_v62  ;;  %v5165_v5 = vmax.f32 %v5157_v55, 0.0  ;;  %14283 = vmatprep.subr.bf16.mxu1 %v15562_v0  ;;  %v15564_v62 = vld [vmem:[%s18505_s6 + $0x20] sm:$0xff]  }
 0x2f5   :  { %v5218_v52 = vmul.f32 %v5197_v58, %v5162_v56  ;;  %v5163_v18 = vmax.f32 %v5155_v23, 0.0  ;;  %v17270_v17 = vld [vmem:[#allocation3 + $0xac] sm:$0xff]  ;;  %v17310_v55 = vld [vmem:[%s18506_s7] ss:$0 sm:$0xff] }
 0x2f6   :  { %5228 = vst.msk [vmem:[#allocation3 + $0x100] sm:$0xff] %vm67_vm3, %v5220_v37  ;;  %v5221_v60 = vmul.f32 %v5212_v44, %v5165_v5  ;;  %v17277_v51 = vld [vmem:[#allocation3 + $0xc4] sm:$0xff]  ;;  %v17279_v58 = vld [vmem:[#allocation3 + $0xcc] sm:$0xff] }
 0x2f7   :  { %5226 = vst.msk [vmem:[#allocation3 + $0xf0] sm:$0xff] %vm67_vm3, %v5218_v52  ;;  %v5219_v1 = vmul.f32 %v5202_v9, %v5163_v18  ;;  %v17272_v24 = vld [vmem:[#allocation3 + $0xb4] sm:$0xff]  ;;  %v17285_v9 = vld [vmem:[#allocation3 + $0xe4] sm:$0xff]  ;;  %14284 = vmatpush3.bf16.msra.mxu1 %v15562_v0 }
 0x2f8   :  { %5229 = vst.msk [vmem:[#allocation3 + $0x108] sm:$0xff] %vm67_vm3, %v5221_v60  ;;  %v17283_v48 = vld [vmem:[#allocation3 + $0xdc] sm:$0xff]  ;;  %14285 = vmatprep.subr.bf16.mxu1 %v15563_v10 }
 0x2f9   :  { %5227 = vst.msk [vmem:[#allocation3 + $0xf8] sm:$0xff] %vm67_vm3, %v5219_v1 }
 0x2fb   :  { %14286 = vmatpush3.bf16.msra.mxu1 %v15563_v10 }
 0x2fc   :  { %14295 = vmatprep.subr.bf16.mxu1 %v15564_v62 }
 0x2fe   :  { %v17287_v20 = vld [vmem:[#allocation3 + $0xec] sm:$0xff] }
 0x300   :  { %v17289_v3 = vld [vmem:[#allocation3 + $0xf4] sm:$0xff] }
 0x3b5   :  { %v14273_v40 = vpop.f32.mrb[28].mxu0 }
 0x3b6   :  { %v6392_v61 = vadd.f32 %v14273_v40, %v17310_v55  ;;  %v6344_v56 = vpop.f32.mrb[29].mxu0 }
 0x3b7   :  { %v6390_v23 = vadd.f32 %v17310_v55, %v6344_v56  ;;  %v14274_v37 = vpop.f32.mrb[30].mxu0 }
 0x3b8   :  { %v6400_v5 = vmax.f32 %v6392_v61, 0.0  ;;  %v6393_v44 = vadd.f32 %v14274_v37, %v17310_v55  ;;  %v6347_v52 = vpop.f32.mrb[31].mxu0 }
 0x3b9   :  { %v6398_v18 = vmax.f32 %v6390_v23, 0.0  ;;  %v6391_v60 = vadd.f32 %v17310_v55, %v6347_v52 }
 0x3ba   :  { %v6401_v1 = vmax.f32 %v6393_v44, 0.0  ;;  %v6456_v0 = vmul.f32 %v16932_v49, %v6400_v5 }
 0x3bb   :  { %v6399_v46 = vmax.f32 %v6391_v60, 0.0  ;;  %v6454_v30 = vmul.f32 %v16928_v42, %v6398_v18 }
 0x3bc   :  { %v6457_v10 = vmul.f32 %v16930_v47, %v6401_v1  ;;  %v15565_v47 = vld [vmem:[%s18505_s6 + $0x28] sm:$0xff]  }
 0x3bd   :  { %v6455_v40 = vmul.f32 %v16926_v41, %v6399_v46  ;;  %v14277_v63 = vpop.f32.mrb[32].mxu0  ;;  %v6619_v46 = vld [vmem:[#allocation3 + $0x45] sm:$0xff] }
 0x3be   :  { %v6463_v56 = vpack.c.bf16 %v6457_v10, %v6456_v0  ;;  %v6396_v61 = vadd.f32 %v14277_v63, %v17310_v55  ;;  %v6360_v6 = vpop.f32.mrb[33].mxu0  ;;  %v6620_v0 = vld [vmem:[#allocation3 + $0x4d] sm:$0xff] }
 0x3bf   :  { %v6462_v37 = vpack.c.bf16 %v6455_v40, %v6454_v30  ;;  %v6394_v23 = vadd.f32 %v17310_v55, %v6360_v6  ;;  %v14278_v54 = vpop.f32.mrb[34].mxu0  ;;  %v6624_v40 = vld [vmem:[#allocation3 + $0x6d] sm:$0xff] }
 0x3c0   :  { %v6404_v52 = vmax.f32 %v6396_v61, 0.0  ;;  %v6397_v44 = vadd.f32 %v14278_v54, %v17310_v55  ;;  %v6363_v60 = vpop.f32.mrb[35].mxu0  ;;  %v15566_v54 = vld [vmem:[%s18505_s6 + $0x30] sm:$0xff]   ;;  %v6623_v61 = vld [vmem:[#allocation3 + $0x65] sm:$0xff] }
 0x3c1   :  { %v6402_v42 = vmax.f32 %v6394_v23, 0.0  ;;  %v6395_v41 = vadd.f32 %v17310_v55, %v6363_v60  ;;  %14287 = vmatprep.mubr.msk.bf16.mxu1 %vm67_vm3, %v6462_v37  ;;  %v15569_v37 = vld [vmem:[%s18505_s6 + $0x8] sm:$0xff]   ;;  %v6629_v23 = vpack.c.bf16 %v6624_v40, %v6623_v61  ;;  %v6626_v60 = vld [vmem:[#allocation3 + $0x7d] sm:$0xff] }
 0x3c2   :  { %v6405_v49 = vmax.f32 %v6397_v44, 0.0  ;;  %14288 = vmatmul.mubr.msk.bf16.vlgmr.msra.gmra.mrb[36].mxu1 %vm67_vm3, %v6463_v56  ;;  %v6460_v6 = vmul.f32 %v16943_v53, %v6404_v52  ;;  %v15567_v53 = vld [vmem:[%s18505_s6 + $0x38] sm:$0xff]   ;;  %v15570_v52 = vld [vmem:[%s18505_s6 + $0x10] sm:$0xff]  }
 0x3c3   :  { %v6403_v63 = vmax.f32 %v6395_v41, 0.0  ;;  %14296 = vmatpush3.bf16.msra.mxu1 %v15564_v62  ;;  %v6458_v5 = vmul.f32 %v16936_v15, %v6402_v42  ;;  %v6621_v15 = vld [vmem:[#allocation3 + $0x55] sm:$0xff]  ;;  %v6622_v62 = vld [vmem:[#allocation3 + $0x5d] sm:$0xff] }
 0x3c4   :  { %v6461_v30 = vmul.f32 %v16951_v13, %v6405_v49  ;;  %14297 = vmatprep.subr.bf16.mxu1 %v15565_v47  ;;  %v6627_v13 = vpack.c.bf16 %v6620_v0, %v6619_v46  ;;  %v6628_v56 = vpack.c.bf16 %v6622_v62, %v6621_v15  ;;  %v6625_v44 = vld [vmem:[#allocation3 + $0x75] sm:$0xff]  ;;  %v15572_v41 = vld [vmem:[%s18505_s6 + $0x40] sm:$0xff]   ;;  %v6608_v49 = vpack.c.bf16 %v17038_v12, %v17226_v32 }
 0x3c5   :  { %v6459_v18 = vmul.f32 %v16934_v50, %v6403_v63  ;;  %v15568_v50 = vld [vmem:[%s18505_s6] sm:$0xff]   ;;  %v15571_v42 = vld [vmem:[%s18505_s6 + $0x18] sm:$0xff]   ;;  %v15573_v63 = vld [vmem:[%s18505_s6 + $0x48] sm:$0xff]  }
 0x3c6   :  { %v6465_v1 = vpack.c.bf16 %v6461_v30, %v6460_v6  ;;  %v6609_v6 = vpack.c.bf16 %v17042_v2, %v17040_v57  ;;  %v6842_v32 = vld [vmem:[#allocation3 + $0x4e] sm:$0xff]  ;;  %v6610_v30 = vpack.c.bf16 %v17376_v19, %v17044_v22  ;;  %v6844_v46 = vld [vmem:[#allocation3 + $0x5e] sm:$0xff]  ;;  %v6847_v62 = vld [vmem:[#allocation3 + $0x76] sm:$0xff] }
 0x3c7   :  { %v6464_v10 = vpack.c.bf16 %v6459_v18, %v6458_v5  ;;  %14298 = vmatpush3.bf16.msra.mxu1 %v15565_v47  ;;  %v6630_v47 = vpack.c.bf16 %v6626_v60, %v6625_v44  ;;  %v15576_v18 = vld [vmem:[%s18505_s6 + $0x60] sm:$0xff]   ;;  %v6846_v0 = vld [vmem:[#allocation3 + $0x6e] sm:$0xff]  ;;  %v6971_v61 = vld [vmem:[#allocation3 + $0x57] sm:$0xff] }
 0x3c8   :  { %14299 = vmatprep.subr.bf16.mxu1 %v15566_v54  ;;  %v15578_v15 = vld [vmem:[%s18505_s6 + $0x70] sm:$0xff]   ;;  %v6848_v40 = vld [vmem:[#allocation3 + $0x7e] sm:$0xff] }
 0x3c9   :  { %14291 = vmatprep.mubr.msk.bf16.mxu1 %vm67_vm3, %v6464_v10  ;;  %v15580_v44 = vld [vmem:[%s18505_s6 + $0x80] sm:$0xff]  }
 0x3ca   :  { %14292 = vmatmul.mubr.msk.bf16.gmra.mrb[40].mxu1 %vm67_vm3, %v6465_v1  ;;  %v6843_v1 = vld [vmem:[#allocation3 + $0x56] sm:$0xff]  ;;  %v6972_v60 = vld [vmem:[#allocation3 + $0x5f] sm:$0xff] }
 0x3cb   :  { %14300 = vmatpush3.bf16.msra.mxu1 %v15566_v54  ;;  %14303 = vmatprep.mubr.msk.bf16.mxu1 %vm67_vm3, %v6627_v13  ;;  %v15575_v54 = vld [vmem:[%s18505_s6 + $0x58] sm:$0xff]   ;;  %v6850_v10 = vpack.c.bf16 %v6844_v46, %v6843_v1  ;;  %v15577_v13 = vld [vmem:[%s18505_s6 + $0x68] sm:$0xff]   ;;  %v15584_v46 = vld [vmem:[%s18505_s6 + $0xa0] sm:$0xff]  }
 0x3cc   :  { %14301 = vmatprep.subr.bf16.mxu1 %v15567_v53  ;;  %v17503_v57 = vld [vmem:[%s18508_s9] ss:$0 sm:$0xff] }
 0x3cf   :  { %14302 = vmatpush3.bf16.msra.mxu1 %v15567_v53  ;;  %v6845_v53 = vld [vmem:[#allocation3 + $0x66] sm:$0xff] }
 0x3d0   :  { %14311 = vmatprep.subr.bf16.mxu1 %v15568_v50 }
 0x3d2   :  { %14304 = vmatmul.mubr.msk.bf16.vlgmr.msra.gmra.mrb[44].mxu1 %vm67_vm3, %v6628_v56  ;;  %v6970_v56 = vld [vmem:[#allocation3 + $0x4f] sm:$0xff] }
 0x3d3   :  { %14307 = vmatprep.mubr.msk.bf16.mxu1 %vm67_vm3, %v6629_v23  ;;  %14312 = vmatpush3.bf16.msra.mxu1 %v15568_v50  ;;  %v6851_v50 = vpack.c.bf16 %v6846_v0, %v6845_v53  ;;  %v15579_v23 = vld [vmem:[%s18505_s6 + $0x78] sm:$0xff]   ;;  %v7102_v0 = vld [vmem:[#allocation3 + $0x68] sm:$0xff]  ;;  %v7101_v53 = vld [vmem:[#allocation3 + $0x60] sm:$0xff] }
 0x3d4   :  { %14313 = vmatprep.subr.bf16.mxu1 %v15569_v37 }
 0x3d7   :  { %14314 = vmatpush3.bf16.msra.mxu1 %v15569_v37  ;;  %v6852_v37 = vpack.c.bf16 %v6848_v40, %v6847_v62  ;;  %v15586_v40 = vld [vmem:[%s18505_s6 + $0xb0] sm:$0xff]  }
 0x3d8   :  { %14315 = vmatprep.subr.bf16.mxu1 %v15570_v52 }
 0x3da   :  { %14308 = vmatmul.mubr.msk.bf16.gmra.mrb[48].mxu1 %vm67_vm3, %v6630_v47  ;;  %v6973_v47 = vld [vmem:[#allocation3 + $0x67] sm:$0xff] }
 0x3db   :  { %14316 = vmatpush3.bf16.msra.mxu1 %v15570_v52  ;;  %14319 = vmatprep.mubr.msk.bf16.mxu1 %vm67_vm3, %v6607_v11  ;;  %v6841_v11 = vld [vmem:[#allocation3 + $0x46] sm:$0xff]  ;;  %v6978_v52 = vpack.c.bf16 %v6971_v61, %v6970_v56  ;;  %v7228_v61 = vld [vmem:[#allocation3 + $0x51] sm:$0xff] }
 0x3dc   :  { %14317 = vmatprep.subr.bf16.mxu1 %v15571_v42  ;;  %v6849_v5 = vpack.c.bf16 %v6842_v32, %v6841_v11  ;;  %v6976_v11 = vld [vmem:[#allocation3 + $0x7f] sm:$0xff]  ;;  %v6977_v32 = vld [vmem:[#allocation3 + $0x87] sm:$0xff] }
 0x3dd   :  { %v7106_v56 = vld [vmem:[#allocation3 + $0x88] sm:$0xff] }
 0x3df   :  { %14318 = vmatpush3.bf16.msra.mxu1 %v15571_v42  ;;  %v6975_v42 = vld [vmem:[#allocation3 + $0x77] sm:$0xff] }
 0x3e0   :  { %14327 = vmatprep.subr.bf16.mxu1 %v15572_v41 }
 0x3e2   :  { %14320 = vmatmul.mubr.msk.bf16.vlgmr.msra.gmra.mrb[44].mxu1 %vm67_vm3, %v6608_v49  ;;  %v6974_v49 = vld [vmem:[#allocation3 + $0x6f] sm:$0xff] }
 0x3e3   :  { %14323 = vmatprep.mubr.msk.bf16.mxu1 %vm67_vm3, %v6609_v6  ;;  %14328 = vmatpush3.bf16.msra.mxu1 %v15572_v41  ;;  %v6979_v41 = vpack.c.bf16 %v6973_v47, %v6972_v60  ;;  %v6980_v6 = vpack.c.bf16 %v6975_v42, %v6974_v49  ;;  %v15588_v47 = vld [vmem:[%s18505_s6 + $0xc0] sm:$0xff]   ;;  %v7231_v42 = vld [vmem:[#allocation3 + $0x69] sm:$0xff] }
 0x3e4   :  { %14329 = vmatprep.subr.bf16.mxu1 %v15573_v63  ;;  %v7233_v49 = vld [vmem:[#allocation3 + $0x79] sm:$0xff] }
 0x3e7   :  { %14330 = vmatpush3.bf16.msra.mxu1 %v15573_v63  ;;  %v15581_v63 = vld [vmem:[%s18505_s6 + $0x88] sm:$0xff]  }
 0x3e8   :  { %14331 = vmatprep.subr.bf16.mxu1 %v15574_v28 }
 0x3ea   :  { %14324 = vmatmul.mubr.msk.bf16.gmra.mrb[48].mxu1 %vm67_vm3, %v6610_v30  ;;  %v7100_v30 = vld [vmem:[#allocation3 + $0x58] sm:$0xff] }
 0x3eb   :  { %14332 = vmatpush3.bf16.msra.mxu1 %v15574_v28  ;;  %14335 = vmatprep.mubr.msk.bf16.mxu1 %vm67_vm3, %v6849_v5  ;;  %v15582_v28 = vld [vmem:[%s18505_s6 + $0x90] sm:$0xff]  }
 0x3ec   :  { %14333 = vmatprep.subr.bf16.mxu1 %v15575_v54  ;;  %v7099_v5 = vld [vmem:[#allocation3 + $0x50] sm:$0xff] }
 0x3ed   :  { %v7107_v1 = vpack.c.bf16 %v7100_v30, %v7099_v5  ;;  %v7235_v30 = vld [vmem:[#allocation3 + $0x89] sm:$0xff] }
 0x3ee   :  { %v7358_v5 = vld [vmem:[#allocation3 + $0x62] sm:$0xff] }
 0x3ef   :  { %14334 = vmatpush3.bf16.msra.mxu1 %v15575_v54  ;;  %v6981_v54 = vpack.c.bf16 %v6977_v32, %v6976_v11  ;;  %v15590_v32 = vld [vmem:[%s18505_s6 + $0xd0] sm:$0xff]  }
 0x3f0   :  { %14343 = vmatprep.subr.bf16.mxu1 %v15576_v18 }
 0x3f2   :  { %14336 = vmatmul.mubr.msk.bf16.vlgmr.msra.gmra.mrb[44].mxu1 %vm67_vm3, %v6850_v10  ;;  %v7104_v10 = vld [vmem:[#allocation3 + $0x78] sm:$0xff] }
 0x3f3   :  { %14339 = vmatprep.mubr.msk.bf16.mxu1 %vm67_vm3, %v6851_v50  ;;  %14344 = vmatpush3.bf16.msra.mxu1 %v15576_v18  ;;  %v15583_v18 = vld [vmem:[%s18505_s6 + $0x98] sm:$0xff]   ;;  %v7103_v50 = vld [vmem:[#allocation3 + $0x70] sm:$0xff] }
 0x3f4   :  { %14345 = vmatprep.subr.bf16.mxu1 %v15577_v13  ;;  %v7109_v62 = vpack.c.bf16 %v7104_v10, %v7103_v50  ;;  %v7361_v50 = vld [vmem:[#allocation3 + $0x7a] sm:$0xff] }
 0x3f7   :  { %14346 = vmatpush3.bf16.msra.mxu1 %v15577_v13  ;;  %v7108_v13 = vpack.c.bf16 %v7102_v0, %v7101_v53  ;;  %v15591_v0 = vld [vmem:[%s18505_s6 + $0xd8] sm:$0xff]   ;;  %v15592_v53 = vld [vmem:[%s18505_s6 + $0xe0] sm:$0xff]  }
 0x3f8   :  { %14347 = vmatprep.subr.bf16.mxu1 %v15578_v15 }
 0x3fa   :  { %14340 = vmatmul.mubr.msk.bf16.gmra.mrb[48].mxu1 %vm67_vm3, %v6852_v37  ;;  %v7229_v37 = vld [vmem:[#allocation3 + $0x59] sm:$0xff] }
 0x3fb   :  { %14348 = vmatpush3.bf16.msra.mxu1 %v15578_v15  ;;  %14351 = vmatprep.mubr.msk.bf16.mxu1 %vm67_vm3, %v6978_v52  ;;  %v15585_v15 = vld [vmem:[%s18505_s6 + $0xa8] sm:$0xff]   ;;  %v7236_v60 = vpack.c.bf16 %v7229_v37, %v7228_v61  ;;  %v15594_v37 = vld [vmem:[%s18505_s6 + $0xf0] sm:$0xff]  }
 0x3fc   :  { %14349 = vmatprep.subr.bf16.mxu1 %v15579_v23 }
 0x3ff   :  { %14350 = vmatpush3.bf16.msra.mxu1 %v15579_v23  ;;  %v7105_v23 = vld [vmem:[#allocation3 + $0x80] sm:$0xff] }
 0x400   :  { %14359 = vmatprep.subr.bf16.mxu1 %v15580_v44  ;;  %v7110_v52 = vpack.c.bf16 %v7106_v56, %v7105_v23  ;;  %v15593_v56 = vld [vmem:[%s18505_s6 + $0xe8] sm:$0xff]   ;;  %v7364_v23 = vld [vmem:[#allocation3 + $0x92] sm:$0xff] }
 0x402   :  { %14352 = vmatmul.mubr.msk.bf16.vlgmr.msra.gmra.mrb[44].mxu1 %vm67_vm3, %v6979_v41  ;;  %v7232_v41 = vld [vmem:[#allocation3 + $0x71] sm:$0xff] }
 0x403   :  { %14355 = vmatprep.mubr.msk.bf16.mxu1 %vm67_vm3, %v6980_v6  ;;  %14360 = vmatpush3.bf16.msra.mxu1 %v15580_v44  ;;  %v15587_v44 = vld [vmem:[%s18505_s6 + $0xb8] sm:$0xff]   ;;  %v7238_v11 = vpack.c.bf16 %v7233_v49, %v7232_v41  ;;  %v15596_v49 = vld [vmem:[%s18505_s6 + $0x100] sm:$0xff]  }
 0x404   :  { %14361 = vmatprep.subr.bf16.mxu1 %v15581_v63 }
 0x407   :  { %14362 = vmatpush3.bf16.msra.mxu1 %v15581_v63  ;;  %v7230_v63 = vld [vmem:[#allocation3 + $0x61] sm:$0xff] }
 0x408   :  { %14363 = vmatprep.subr.bf16.mxu1 %v15582_v28  ;;  %v7237_v6 = vpack.c.bf16 %v7231_v42, %v7230_v63  ;;  %v15595_v42 = vld [vmem:[%s18505_s6 + $0xf8] sm:$0xff]  }
 0x409   :  { %v7489_v63 = vld [vmem:[#allocation3 + $0x73] sm:$0xff] }
 0x40a   :  { %14356 = vmatmul.mubr.msk.bf16.gmra.mrb[48].mxu1 %vm67_vm3, %v6981_v54  ;;  %v7357_v54 = vld [vmem:[#allocation3 + $0x5a] sm:$0xff] }
 0x40b   :  { %14364 = vmatpush3.bf16.msra.mxu1 %v15582_v28  ;;  %14367 = vmatprep.mubr.msk.bf16.mxu1 %vm67_vm3, %v7107_v1  ;;  %v15589_v28 = vld [vmem:[%s18505_s6 + $0xc8] sm:$0xff]   ;;  %v7365_v10 = vpack.c.bf16 %v7358_v5, %v7357_v54  ;;  %v15598_v5 = vld [vmem:[%s18505_s6 + $0x110] sm:$0xff]  }
 0x40c   :  { %14365 = vmatprep.subr.bf16.mxu1 %v15583_v18  ;;  %v7234_v1 = vld [vmem:[#allocation3 + $0x81] sm:$0xff] }
 0x40f   :  { %14366 = vmatpush3.bf16.msra.mxu1 %v15583_v18  ;;  %v15752_v18 = vmov 2  }
 0x410   :  { %14375 = vmatprep.subr.bf16.mxu1 %v15584_v46  ;;  %15420 = vset.pattern.permute.xlu1 %v15752_v18 }
 0x411   :  { %15421 = vset.pattern.permute.xlu0 %v15752_v18  ;;  %v7493_v18 = vld [vmem:[#allocation3 + $0x93] sm:$0xff] }
 0x412   :  { %14368 = vmatmul.mubr.msk.bf16.vlgmr.msra.gmra.mrb[44].mxu1 %vm67_vm3, %v7108_v13  ;;  %v7360_v13 = vld [vmem:[#allocation3 + $0x72] sm:$0xff] }
 0x413   :  { %14371 = vmatprep.mubr.msk.bf16.mxu1 %vm67_vm3, %v7109_v62  ;;  %14376 = vmatpush3.bf16.msra.mxu1 %v15584_v46  ;;  %v7239_v46 = vpack.c.bf16 %v7235_v30, %v7234_v1  ;;  %v7359_v62 = vld [vmem:[#allocation3 + $0x6a] sm:$0xff] }
 0x414   :  { %14377 = vmatprep.subr.bf16.mxu1 %v15585_v15  ;;  %v15597_v30 = vld [vmem:[%s18505_s6 + $0x108] sm:$0xff]  }
 0x415   :  { %v7492_v1 = vld [vmem:[#allocation3 + $0x8b] sm:$0xff] }
 0x417   :  { %14378 = vmatpush3.bf16.msra.mxu1 %v15585_v15  ;;  %v7362_v15 = vld [vmem:[#allocation3 + $0x82] sm:$0xff] }
 0x418   :  { %14379 = vmatprep.subr.bf16.mxu1 %v15586_v40  ;;  %v7367_v61 = vpack.c.bf16 %v7362_v15, %v7361_v50  ;;  %v17493_v50 = vld [vmem:[#allocation3 + $0x94] sm:$0xff]  ;;  %v17495_v15 = vld [vmem:[#allocation3 + $0x8c] sm:$0xff] }
 0x419   :  { %v7626_v12 = vpack.c.bf16 %v17493_v50, %v17495_v15 }
 0x41a   :  { %14372 = vmatmul.mubr.msk.bf16.gmra.mrb[48].mxu1 %vm67_vm3, %v7110_v52  ;;  %v7486_v52 = vld [vmem:[#allocation3 + $0x5b] sm:$0xff] }
 0x41b   :  { %14380 = vmatpush3.bf16.msra.mxu1 %v15586_v40  ;;  %14383 = vmatprep.mubr.msk.bf16.mxu1 %vm67_vm3, %v7236_v60  ;;  %v7366_v40 = vpack.c.bf16 %v7360_v13, %v7359_v62  ;;  %v7363_v60 = vld [vmem:[#allocation3 + $0x8a] sm:$0xff]  ;;  %v18532_v13 = vpack.c.bf16 %v17044_v22, %v17042_v2 }
 0x41c   :  { %14381 = vmatprep.subr.bf16.mxu1 %v15587_v44 }
 0x41f   :  { %14382 = vmatpush3.bf16.msra.mxu1 %v15587_v44  ;;  %v7487_v44 = vld [vmem:[#allocation3 + $0x63] sm:$0xff] }
 0x420   :  { %14391 = vmatprep.subr.bf16.mxu1 %v15588_v47  ;;  %v7494_v41 = vpack.c.bf16 %v7487_v44, %v7486_v52 }
 0x422   :  { %14384 = vmatmul.mubr.msk.bf16.vlgmr.msra.gmra.mrb[44].mxu1 %vm67_vm3, %v7237_v6  ;;  %v7490_v6 = vld [vmem:[#allocation3 + $0x7b] sm:$0xff] }
 0x423   :  { %14387 = vmatprep.mubr.msk.bf16.mxu1 %vm67_vm3, %v7238_v11  ;;  %14392 = vmatpush3.bf16.msra.mxu1 %v15588_v47  ;;  %v7368_v47 = vpack.c.bf16 %v7364_v23, %v7363_v60  ;;  %v7488_v11 = vld [vmem:[#allocation3 + $0x6b] sm:$0xff] }
 0x424   :  { %14393 = vmatprep.subr.bf16.mxu1 %v15589_v28 }
 0x427   :  { %14394 = vmatpush3.bf16.msra.mxu1 %v15589_v28  ;;  %v7491_v28 = vld [vmem:[#allocation3 + $0x83] sm:$0xff] }
 0x428   :  { %14395 = vmatprep.subr.bf16.mxu1 %v15590_v32  ;;  %v7496_v54 = vpack.c.bf16 %v7491_v28, %v7490_v6 }
 0x42a   :  { %14388 = vmatmul.mubr.msk.bf16.gmra.mrb[48].mxu1 %vm67_vm3, %v7239_v46  ;;  %v7497_v46 = vpack.c.bf16 %v7493_v18, %v7492_v1  ;;  %v15600_v18 = vld [vmem:[%s18507_s8] sm:$0xff]  }
 0x42b   :  { %14396 = vmatpush3.bf16.msra.mxu1 %v15590_v32  ;;  %14399 = vmatprep.mubr.msk.bf16.mxu1 %vm67_vm3, %v7365_v10  ;;  %v7495_v32 = vpack.c.bf16 %v7489_v63, %v7488_v11  ;;  %v17484_v10 = vld [vmem:[#allocation3 + $0x84] sm:$0xff] }
 0x42c   :  { %14397 = vmatprep.subr.bf16.mxu1 %v15591_v0  ;;  %14439 = vmatprep.subr.bf16.mxu0 %v15600_v18 }
 0x42d   :  { %14440 = vmatpush3.bf16.msra.mxu0 %v15600_v18 }
 0x42f   :  { %14398 = vmatpush3.bf16.msra.mxu1 %v15591_v0  ;;  %v15599_v0 = vld [vmem:[%s18505_s6 + $0x118] sm:$0xff]  }
 0x430   :  { %14407 = vmatprep.subr.bf16.mxu1 %v15592_v53 }
 0x432   :  { %14400 = vmatmul.mubr.msk.bf16.vlgmr.msra.gmra.mrb[44].mxu1 %vm67_vm3, %v7366_v40 }
 0x433   :  { %14403 = vmatprep.mubr.msk.bf16.mxu1 %vm67_vm3, %v7367_v61  ;;  %14408 = vmatpush3.bf16.msra.mxu1 %v15592_v53  ;;  %v7625_v53 = vpack.c.bf16 %v17484_v10, %v17376_v19 }
 0x434   :  { %14409 = vmatprep.subr.bf16.mxu1 %v15593_v56 }
 0x437   :  { %14410 = vmatpush3.bf16.msra.mxu1 %v15593_v56 }
 0x438   :  { %14411 = vmatprep.subr.bf16.mxu1 %v15594_v37 }
 0x43a   :  { %14404 = vmatmul.mubr.msk.bf16.gmra.mrb[48].mxu1 %vm67_vm3, %v7368_v47 }
 0x43b   :  { %14412 = vmatpush3.bf16.msra.mxu1 %v15594_v37  ;;  %14415 = vmatprep.mubr.msk.bf16.mxu1 %vm67_vm3, %v7494_v41 }
 0x43c   :  { %14413 = vmatprep.subr.bf16.mxu1 %v15595_v42 }
 0x43f   :  { %14414 = vmatpush3.bf16.msra.mxu1 %v15595_v42 }
 0x440   :  { %14423 = vmatprep.subr.bf16.mxu1 %v15596_v49 }
 0x442   :  { %14416 = vmatmul.mubr.msk.bf16.vlgmr.msra.gmra.mrb[44].mxu1 %vm67_vm3, %v7495_v32 }
 0x443   :  { %14419 = vmatprep.mubr.msk.bf16.mxu1 %vm67_vm3, %v7496_v54  ;;  %14424 = vmatpush3.bf16.msra.mxu1 %v15596_v49 }
 0x444   :  { %14425 = vmatprep.subr.bf16.mxu1 %v15597_v30 }
 0x447   :  { %14426 = vmatpush3.bf16.msra.mxu1 %v15597_v30 }
 0x448   :  { %14427 = vmatprep.subr.bf16.mxu1 %v15598_v5 }
 0x44a   :  { %14420 = vmatmul.mubr.msk.bf16.gmra.mrb[48].mxu1 %vm67_vm3, %v7497_v46 }
 0x44b   :  { %14428 = vmatpush3.bf16.msra.mxu1 %v15598_v5  ;;  %14431 = vmatprep.mubr.msk.bf16.mxu1 %vm67_vm3, %v7623_v14 }
 0x44c   :  { %14429 = vmatprep.subr.bf16.mxu1 %v15599_v0 }
 0x44f   :  { %14430 = vmatpush3.bf16.msra.mxu1 %v15599_v0 }
 0x452   :  { %14432 = vmatmul.mubr.msk.bf16.vlgmr.msra.gmra.mrb[44].mxu1 %vm67_vm3, %v18532_v13  ;;  %v15601_v13 = vld [vmem:[%s18507_s8 + $0x8] sm:$0xff]  }
 0x453   :  { %14435 = vmatprep.mubr.msk.bf16.mxu1 %vm67_vm3, %v7625_v53  ;;  %14441 = vmatprep.subr.bf16.mxu0 %v15601_v13 }
 0x454   :  { %14442 = vmatpush3.bf16.msra.mxu0 %v15601_v13 }
 0x45a   :  { %14436 = vmatmul.mubr.msk.bf16.gmra.mrb[48].mxu1 %vm67_vm3, %v7626_v12 }
 0x495   :  { %v14289_v14 = vpop.f32.mrb[36].mxu1 }
 0x496   :  { %v6560_v2 = vadd.f32 %v14289_v14, %v17503_v57  ;;  %v6551_v22 = vpop.f32.mrb[37].mxu1 }
 0x497   :  { %v6552_v19 = vadd.f32 %v17503_v57, %v6551_v22  ;;  %v14290_v62 = vpop.f32.mrb[38].mxu1  ;;  %v15602_v22 = vld [vmem:[%s18507_s8 + $0x10] sm:$0xff]  }
 0x498   :  { %v6584_v40 = vmax.f32 %v6560_v2, 0.0  ;;  %v6563_v56 = vadd.f32 %v14290_v62, %v17503_v57  ;;  %v6554_v61 = vpop.f32.mrb[39].mxu1  ;;  %14443 = vmatprep.subr.bf16.mxu0 %v15602_v22  ;;  %v15604_v62 = vld [vmem:[%s18505_s6 + $0x20] sm:$0xff]  }
 0x499   :  { %v6582_v37 = vmax.f32 %v6552_v19, 0.0  ;;  %v6555_v23 = vadd.f32 %v17503_v57, %v6554_v61  ;;  %14444 = vmatpush3.bf16.msra.mxu0 %v15602_v22  ;;  %v15603_v19 = vld [vmem:[%s18507_s8 + $0x18] sm:$0xff]   ;;  %v15606_v22 = vld [vmem:[%s18505_s6 + $0x30] sm:$0xff]  }
 0x49a   :  { %6593 = vst.msk [vmem:[#allocation4 + $0x10] sm:$0xff] %vm6590_vm4, %v6584_v40  ;;  %v6585_v52 = vmax.f32 %v6563_v56, 0.0  ;;  %14445 = vmatprep.subr.bf16.mxu0 %v15603_v19 }
 0x49b   :  { %6591 = vst.msk [vmem:[#allocation4] sm:$0xff] %vm6590_vm4, %v6582_v37  ;;  %v6583_v44 = vmax.f32 %v6555_v23, 0.0 }
 0x49c   :  { %6594 = vst.msk [vmem:[#allocation4 + $0x18] sm:$0xff] %vm6590_vm4, %v6585_v52 }
 0x49d   :  { %6592 = vst.msk [vmem:[#allocation4 + $0x8] sm:$0xff] %vm6590_vm4, %v6583_v44  ;;  %v14293_v60 = vpop.f32.mrb[40].mxu1  ;;  %14446 = vmatpush3.bf16.msra.mxu0 %v15603_v19 }
 0x49e   :  { %v6576_v47 = vadd.f32 %v14293_v60, %v17503_v57  ;;  %v6567_v42 = vpop.f32.mrb[41].mxu1  ;;  %14455 = vmatprep.subr.bf16.mxu0 %v15604_v62 }
 0x49f   :  { %v6568_v41 = vadd.f32 %v17503_v57, %v6567_v42  ;;  %v14294_v49 = vpop.f32.mrb[42].mxu1 }
 0x4a0   :  { %v6588_v63 = vmax.f32 %v6576_v47, 0.0  ;;  %v6579_v6 = vadd.f32 %v14294_v49, %v17503_v57  ;;  %v6570_v28 = vpop.f32.mrb[43].mxu1 }
 0x4a1   :  { %v6586_v11 = vmax.f32 %v6568_v41, 0.0  ;;  %v6571_v32 = vadd.f32 %v17503_v57, %v6570_v28  ;;  %v10681_v30 = vld [vmem:[#allocation4 + $0x10] sm:$0xff] }
 0x4a2   :  { %6597 = vst.msk [vmem:[#allocation4 + $0x30] sm:$0xff] %vm6590_vm4, %v6588_v63  ;;  %v6589_v54 = vmax.f32 %v6579_v6, 0.0  ;;  %11160 = vperm.xlu1 %15420, %v10681_v30   ;;  %v10679_v5 = vld [vmem:[#allocation4] sm:$0xff] }
 0x4a3   :  { %6595 = vst.msk [vmem:[#allocation4 + $0x20] sm:$0xff] %vm6590_vm4, %v6586_v11  ;;  %v6587_v1 = vmax.f32 %v6571_v32, 0.0  ;;  %11152 = vperm.xlu0 %15421, %v10679_v5   ;;  %v10682_v0 = vld [vmem:[#allocation4 + $0x18] sm:$0xff] }
 0x4a4   :  { %6598 = vst.msk [vmem:[#allocation4 + $0x38] sm:$0xff] %vm6590_vm4, %v6589_v54  ;;  %v10680_v46 = vld [vmem:[#allocation4 + $0x8] sm:$0xff] }
 0x4a5   :  { %6596 = vst.msk [vmem:[#allocation4 + $0x28] sm:$0xff] %vm6590_vm4, %v6587_v1 }
 0x4a6   :  { %11156 = vperm.xlu1 %15420, %v10680_v46  }
 0x4a7   :  { %11164 = vperm.xlu0 %15421, %v10682_v0  }
 0x4a9   :  { %v10685_v53 = vld [vmem:[#allocation4 + $0x30] sm:$0xff] }
 0x4aa   :  { %11176 = vperm.xlu1 %15420, %v10685_v53   ;;  %v10683_v14 = vld [vmem:[#allocation4 + $0x20] sm:$0xff] }
 0x4ab   :  { %v10686_v12 = vld [vmem:[#allocation4 + $0x38] sm:$0xff] }
 0x4ac   :  { %11180 = vperm.xlu0 %15421, %v10686_v12   ;;  %v10684_v2 = vld [vmem:[#allocation4 + $0x28] sm:$0xff] }
 0x4ae   :  { %11168 = vperm.xlu1 %15420, %v10683_v14  }
 0x4b0   :  { %11172 = vperm.xlu0 %15421, %v10684_v2  }
 0x525   :  { %v14433_v40 = vpop.f32.mrb[44].mxu1 }
 0x526   :  { %v7753_v56 = vadd.f32 %v14433_v40, %v17310_v55  ;;  %v7705_v61 = vpop.f32.mrb[45].mxu1 }
 0x527   :  { %v7751_v37 = vadd.f32 %v17310_v55, %v7705_v61  ;;  %v14434_v23 = vpop.f32.mrb[46].mxu1 }
 0x528   :  { %v7761_v52 = vmax.f32 %v7753_v56, 0.0  ;;  %v7754_v44 = vadd.f32 %v14434_v23, %v17310_v55  ;;  %v7708_v60 = vpop.f32.mrb[47].mxu1  ;;  %v7980_v56 = vld [vmem:[#allocation3 + $0x8d] sm:$0xff] }
 0x529   :  { %v7759_v47 = vmax.f32 %v7751_v37, 0.0  ;;  %v7752_v42 = vadd.f32 %v17310_v55, %v7708_v60  ;;  %v7979_v37 = vld [vmem:[#allocation3 + $0x85] sm:$0xff]  ;;  %v7984_v23 = vld [vmem:[#allocation3 + $0xad] sm:$0xff] }
 0x52a   :  { %v7762_v41 = vmax.f32 %v7754_v44, 0.0  ;;  %v7817_v63 = vmul.f32 %v17109_v4, %v7761_v52  ;;  %v7983_v44 = vld [vmem:[#allocation3 + $0xa5] sm:$0xff] }
 0x52b   :  { %v7760_v49 = vmax.f32 %v7752_v42, 0.0  ;;  %v7815_v28 = vmul.f32 %v17101_v7, %v7759_v47  ;;  %v15609_v60 = vld [vmem:[%s18505_s6 + $0x8] sm:$0xff]   ;;  %v7989_v47 = vpack.c.bf16 %v7984_v23, %v7983_v44  ;;  %v15610_v42 = vld [vmem:[%s18505_s6 + $0x10] sm:$0xff]  }
 0x52c   :  { %v7818_v6 = vmul.f32 %v17106_v38, %v7762_v41  ;;  %v15605_v38 = vld [vmem:[%s18505_s6 + $0x28] sm:$0xff]   ;;  %v7985_v41 = vld [vmem:[#allocation3 + $0xb5] sm:$0xff] }
 0x52d   :  { %v7816_v11 = vmul.f32 %v17096_v31, %v7760_v49  ;;  %v14437_v32 = vpop.f32.mrb[48].mxu1  ;;  %v7986_v49 = vld [vmem:[#allocation3 + $0xbd] sm:$0xff]  ;;  %v15621_v23 = vld [vmem:[%s18505_s6 + $0x88] sm:$0xff]   ;;  %v15622_v44 = vld [vmem:[%s18505_s6 + $0x90] sm:$0xff]  }
 0x52e   :  { %v7824_v30 = vpack.c.bf16 %v7818_v6, %v7817_v63  ;;  %v7757_v54 = vadd.f32 %v14437_v32, %v17310_v55  ;;  %v7721_v5 = vpop.f32.mrb[49].mxu1  ;;  %v7990_v63 = vpack.c.bf16 %v7986_v49, %v7985_v41  ;;  %v15611_v6 = vld [vmem:[%s18505_s6 + $0x18] sm:$0xff]   ;;  %v7968_v32 = vpack.c.bf16 %v17259_v35, %v17493_v50  ;;  %v8202_v50 = vld [vmem:[#allocation3 + $0x8e] sm:$0xff] }
 0x52f   :  { %v7823_v18 = vpack.c.bf16 %v7816_v11, %v7815_v28  ;;  %v7755_v1 = vadd.f32 %v17310_v55, %v7721_v5  ;;  %v14438_v46 = vpop.f32.mrb[50].mxu1  ;;  %v7967_v28 = vpack.c.bf16 %v17495_v15, %v17484_v10  ;;  %v15612_v11 = vld [vmem:[%s18505_s6 + $0x40] sm:$0xff]   ;;  %v7969_v10 = vpack.c.bf16 %v17270_v17, %v17262_v16  ;;  %v15614_v15 = vld [vmem:[%s18505_s6 + $0x50] sm:$0xff]  }
 0x530   :  { %v7765_v0 = vmax.f32 %v7757_v54, 0.0  ;;  %v7758_v53 = vadd.f32 %v14438_v46, %v17310_v55  ;;  %v7724_v13 = vpop.f32.mrb[51].mxu1  ;;  %v17599_v54 = vld [vmem:[#allocation3 + $0xbc] sm:$0xff]  ;;  %v8459_v49 = vld [vmem:[#allocation3 + $0x90] sm:$0xff] }
 0x531   :  { %v7763_v7 = vmax.f32 %v7755_v1, 0.0  ;;  %v7756_v31 = vadd.f32 %v17310_v55, %v7724_v13  ;;  %14447 = vmatprep.mubr.msk.bf16.mxu0 %vm67_vm3, %v7823_v18  ;;  %v7970_v5 = vpack.c.bf16 %v17599_v54, %v17272_v24  ;;  %v8201_v18 = vld [vmem:[#allocation3 + $0x86] sm:$0xff]  ;;  %v15615_v1 = vld [vmem:[%s18505_s6 + $0x58] sm:$0xff]  }
 0x532   :  { %v7766_v4 = vmax.f32 %v7758_v53, 0.0  ;;  %14448 = vmatmul.mubr.msk.bf16.vlgmr.msra.gmra.mrb[36].mxu0 %vm67_vm3, %v7824_v30  ;;  %v7821_v14 = vmul.f32 %v17127_v21, %v7765_v0  ;;  %v15607_v21 = vld [vmem:[%s18505_s6 + $0x38] sm:$0xff]   ;;  %v15613_v30 = vld [vmem:[%s18505_s6 + $0x48] sm:$0xff]   ;;  %v8209_v46 = vpack.c.bf16 %v8202_v50, %v8201_v18  ;;  %v15616_v0 = vld [vmem:[%s18505_s6 + $0x60] sm:$0xff]  }
 0x533   :  { %v7764_v12 = vmax.f32 %v7756_v31, 0.0  ;;  %14456 = vmatpush3.bf16.msra.mxu0 %v15604_v62  ;;  %v7819_v19 = vmul.f32 %v17120_v43, %v7763_v7  ;;  %v7981_v43 = vld [vmem:[#allocation3 + $0x95] sm:$0xff]  ;;  %v7982_v62 = vld [vmem:[#allocation3 + $0x9d] sm:$0xff]  ;;  %v8205_v31 = vld [vmem:[#allocation3 + $0xa6] sm:$0xff] }
 0x534   :  { %v7822_v2 = vmul.f32 %v17141_v29, %v7766_v4  ;;  %14457 = vmatprep.subr.bf16.mxu0 %v15605_v38  ;;  %v7987_v29 = vpack.c.bf16 %v7980_v56, %v7979_v37  ;;  %v7988_v52 = vpack.c.bf16 %v7982_v62, %v7981_v43  ;;  %v8203_v53 = vld [vmem:[#allocation3 + $0x96] sm:$0xff]  ;;  %v8204_v13 = vld [vmem:[#allocation3 + $0x9e] sm:$0xff]  ;;  %v15617_v4 = vld [vmem:[%s18505_s6 + $0x68] sm:$0xff]  }
 0x535   :  { %v7820_v55 = vmul.f32 %v17115_v36, %v7764_v12  ;;  %v15608_v36 = vld [vmem:[%s18505_s6] sm:$0xff]   ;;  %v8210_v7 = vpack.c.bf16 %v8204_v13, %v8203_v53  ;;  %v15619_v56 = vld [vmem:[%s18505_s6 + $0x78] sm:$0xff]   ;;  %v8334_v62 = vld [vmem:[#allocation3 + $0xaf] sm:$0xff] }
 0x536   :  { %v7826_v40 = vpack.c.bf16 %v7822_v2, %v7821_v14  ;;  %v15618_v14 = vld [vmem:[%s18505_s6 + $0x70] sm:$0xff]   ;;  %v15620_v37 = vld [vmem:[%s18505_s6 + $0x80] sm:$0xff]   ;;  %v15625_v50 = vld [vmem:[%s18505_s6 + $0xa8] sm:$0xff]  }
 0x537   :  { %v7825_v61 = vpack.c.bf16 %v7820_v55, %v7819_v19  ;;  %14458 = vmatpush3.bf16.msra.mxu0 %v15605_v38  ;;  %v8206_v38 = vld [vmem:[#allocation3 + $0xae] sm:$0xff]  ;;  %v8207_v2 = vld [vmem:[#allocation3 + $0xb6] sm:$0xff]  ;;  %v8465_v53 = vld [vmem:[#allocation3 + $0xc0] sm:$0xff] }
 0x538   :  { %14459 = vmatprep.subr.bf16.mxu0 %v15606_v22  ;;  %v8211_v12 = vpack.c.bf16 %v8206_v38, %v8205_v31  ;;  %v8331_v19 = vld [vmem:[#allocation3 + $0x97] sm:$0xff]  ;;  %v15628_v31 = vld [vmem:[%s18505_s6 + $0xc0] sm:$0xff]  }
 0x539   :  { %14451 = vmatprep.mubr.msk.bf16.mxu0 %vm67_vm3, %v7825_v61  ;;  %v15626_v18 = vld [vmem:[%s18505_s6 + $0xb0] sm:$0xff]   ;;  %v15627_v38 = vld [vmem:[%s18505_s6 + $0xb8] sm:$0xff]  }
 0x53a   :  { %14452 = vmatmul.mubr.msk.bf16.gmra.mrb[40].mxu0 %vm67_vm3, %v7826_v40  ;;  %v8330_v40 = vld [vmem:[#allocation3 + $0x8f] sm:$0xff] }
 0x53b   :  { %14460 = vmatpush3.bf16.msra.mxu0 %v15606_v22  ;;  %14463 = vmatprep.mubr.msk.bf16.mxu0 %vm67_vm3, %v7987_v29  ;;  %v8208_v22 = vld [vmem:[#allocation3 + $0xbe] sm:$0xff]  ;;  %v8338_v61 = vpack.c.bf16 %v8331_v19, %v8330_v40  ;;  %v8333_v29 = vld [vmem:[#allocation3 + $0xa7] sm:$0xff]  ;;  %v15630_v40 = vld [vmem:[%s18505_s6 + $0xd0] sm:$0xff]  }
 0x53c   :  { %14461 = vmatprep.subr.bf16.mxu0 %v15607_v21  ;;  %v8212_v55 = vpack.c.bf16 %v8208_v22, %v8207_v2  ;;  %v8590_v2 = vld [vmem:[#allocation3 + $0xa1] sm:$0xff] }
 0x53d   :  { %v15629_v19 = vld [vmem:[%s18505_s6 + $0xc8] sm:$0xff]  }
 0x53f   :  { %14462 = vmatpush3.bf16.msra.mxu0 %v15607_v21  ;;  %v8332_v21 = vld [vmem:[#allocation3 + $0x9f] sm:$0xff] }
 0x540   :  { %14471 = vmatprep.subr.bf16.mxu0 %v15608_v36  ;;  %v8339_v43 = vpack.c.bf16 %v8333_v29, %v8332_v21  ;;  %v8718_v21 = vld [vmem:[#allocation3 + $0xa2] sm:$0xff] }
 0x542   :  { %14464 = vmatmul.mubr.msk.bf16.vlgmr.msra.gmra.mrb[44].mxu0 %vm67_vm3, %v7988_v52 }
 0x543   :  { %14467 = vmatprep.mubr.msk.bf16.mxu0 %vm67_vm3, %v7989_v47  ;;  %14472 = vmatpush3.bf16.msra.mxu0 %v15608_v36  ;;  %v8335_v36 = vld [vmem:[#allocation3 + $0xb7] sm:$0xff]  ;;  %v8337_v47 = vld [vmem:[#allocation3 + $0xc7] sm:$0xff] }
 0x544   :  { %14473 = vmatprep.subr.bf16.mxu0 %v15609_v60  ;;  %v8340_v52 = vpack.c.bf16 %v8335_v36, %v8334_v62  ;;  %v15631_v36 = vld [vmem:[%s18505_s6 + $0xd8] sm:$0xff]   ;;  %v15632_v62 = vld [vmem:[%s18505_s6 + $0xe0] sm:$0xff]  }
 0x547   :  { %14474 = vmatpush3.bf16.msra.mxu0 %v15609_v60  ;;  %v8336_v60 = vld [vmem:[#allocation3 + $0xbf] sm:$0xff] }
 0x548   :  { %14475 = vmatprep.subr.bf16.mxu0 %v15610_v42  ;;  %v8341_v41 = vpack.c.bf16 %v8337_v47, %v8336_v60  ;;  %v8719_v60 = vld [vmem:[#allocation3 + $0xaa] sm:$0xff] }
 0x54a   :  { %14468 = vmatmul.mubr.msk.bf16.gmra.mrb[48].mxu0 %vm67_vm3, %v7990_v63  ;;  %v15623_v63 = vld [vmem:[%s18505_s6 + $0x98] sm:$0xff]  }
 0x54b   :  { %14476 = vmatpush3.bf16.msra.mxu0 %v15610_v42  ;;  %14479 = vmatprep.mubr.msk.bf16.mxu0 %vm67_vm3, %v7967_v28  ;;  %v8460_v42 = vld [vmem:[#allocation3 + $0x98] sm:$0xff]  ;;  %v15624_v28 = vld [vmem:[%s18505_s6 + $0xa0] sm:$0xff]  }
 0x54c   :  { %14477 = vmatprep.subr.bf16.mxu0 %v15611_v6 }
 0x54f   :  { %14478 = vmatpush3.bf16.msra.mxu0 %v15611_v6  ;;  %v8467_v6 = vpack.c.bf16 %v8460_v42, %v8459_v49  ;;  %v15633_v42 = vld [vmem:[%s18505_s6 + $0xe8] sm:$0xff]   ;;  %v15634_v49 = vld [vmem:[%s18505_s6 + $0xf0] sm:$0xff]  }
 0x550   :  { %14487 = vmatprep.subr.bf16.mxu0 %v15612_v11 }
 0x552   :  { %14480 = vmatmul.mubr.msk.bf16.vlgmr.msra.gmra.mrb[44].mxu0 %vm67_vm3, %v7968_v32  ;;  %v8464_v32 = vld [vmem:[#allocation3 + $0xb8] sm:$0xff] }
 0x553   :  { %14483 = vmatprep.mubr.msk.bf16.mxu0 %vm67_vm3, %v7969_v10  ;;  %14488 = vmatpush3.bf16.msra.mxu0 %v15612_v11  ;;  %v8462_v11 = vld [vmem:[#allocation3 + $0xa8] sm:$0xff] }
 0x554   :  { %14489 = vmatprep.subr.bf16.mxu0 %v15613_v30 }
 0x557   :  { %14490 = vmatpush3.bf16.msra.mxu0 %v15613_v30  ;;  %v8461_v30 = vld [vmem:[#allocation3 + $0xa0] sm:$0xff] }
 0x558   :  { %14491 = vmatprep.subr.bf16.mxu0 %v15614_v15  ;;  %v8468_v10 = vpack.c.bf16 %v8462_v11, %v8461_v30  ;;  %v8847_v11 = vld [vmem:[#allocation3 + $0xa3] sm:$0xff]  ;;  %v15635_v30 = vld [vmem:[%s18505_s6 + $0xf8] sm:$0xff]  }
 0x55a   :  { %14484 = vmatmul.mubr.msk.bf16.gmra.mrb[48].mxu0 %vm67_vm3, %v7970_v5 }
 0x55b   :  { %14492 = vmatpush3.bf16.msra.mxu0 %v15614_v15  ;;  %14495 = vmatprep.mubr.msk.bf16.mxu0 %vm67_vm3, %v8209_v46  ;;  %v8463_v15 = vld [vmem:[#allocation3 + $0xb0] sm:$0xff] }
 0x55c   :  { %14493 = vmatprep.subr.bf16.mxu0 %v15615_v1  ;;  %v8469_v5 = vpack.c.bf16 %v8464_v32, %v8463_v15  ;;  %v8588_v46 = vld [vmem:[#allocation3 + $0x91] sm:$0xff]  ;;  %v15636_v15 = vld [vmem:[%s18505_s6 + $0x100] sm:$0xff]  }
 0x55f   :  { %14494 = vmatpush3.bf16.msra.mxu0 %v15615_v1  ;;  %v8466_v1 = vld [vmem:[#allocation3 + $0xc8] sm:$0xff] }
 0x560   :  { %14503 = vmatprep.subr.bf16.mxu0 %v15616_v0  ;;  %v8470_v13 = vpack.c.bf16 %v8466_v1, %v8465_v53  ;;  %v8848_v1 = vld [vmem:[#allocation3 + $0xab] sm:$0xff] }
 0x562   :  { %14496 = vmatmul.mubr.msk.bf16.vlgmr.msra.gmra.mrb[44].mxu0 %vm67_vm3, %v8210_v7 }
 0x563   :  { %14499 = vmatprep.mubr.msk.bf16.mxu0 %vm67_vm3, %v8211_v12  ;;  %14504 = vmatpush3.bf16.msra.mxu0 %v15616_v0  ;;  %v8589_v0 = vld [vmem:[#allocation3 + $0x99] sm:$0xff]  ;;  %v8592_v12 = vld [vmem:[#allocation3 + $0xb1] sm:$0xff] }
 0x564   :  { %14505 = vmatprep.subr.bf16.mxu0 %v15617_v4  ;;  %v8596_v7 = vpack.c.bf16 %v8589_v0, %v8588_v46  ;;  %v15637_v0 = vld [vmem:[%s18505_s6 + $0x108] sm:$0xff]  }
 0x567   :  { %14506 = vmatpush3.bf16.msra.mxu0 %v15617_v4  ;;  %v8591_v4 = vld [vmem:[#allocation3 + $0xa9] sm:$0xff] }
 0x568   :  { %14507 = vmatprep.subr.bf16.mxu0 %v15618_v14  ;;  %v8597_v22 = vpack.c.bf16 %v8591_v4, %v8590_v2  ;;  %v15639_v4 = vld [vmem:[%s18505_s6 + $0x118] sm:$0xff]   ;;  %v18533_v2 = vpack.c.bf16 %v17272_v24, %v17270_v17 }
 0x56a   :  { %14500 = vmatmul.mubr.msk.bf16.gmra.mrb[48].mxu0 %vm67_vm3, %v8212_v55 }
 0x56b   :  { %14508 = vmatpush3.bf16.msra.mxu0 %v15618_v14  ;;  %14511 = vmatprep.mubr.msk.bf16.mxu0 %vm67_vm3, %v8338_v61  ;;  %v8593_v14 = vld [vmem:[#allocation3 + $0xb9] sm:$0xff]  ;;  %v8595_v61 = vld [vmem:[#allocation3 + $0xc9] sm:$0xff] }
 0x56c   :  { %14509 = vmatprep.subr.bf16.mxu0 %v15619_v56  ;;  %v8598_v55 = vpack.c.bf16 %v8593_v14, %v8592_v12  ;;  %v15706_v12 = vld [vmem:[#allocation3 + $0xc4] sm:$0xff] }
 0x56d   :  { %v8985_v14 = vpack.c.bf16 %v15706_v12, %v17599_v54 }
 0x56f   :  { %14510 = vmatpush3.bf16.msra.mxu0 %v15619_v56  ;;  %v8594_v56 = vld [vmem:[#allocation3 + $0xc1] sm:$0xff] }
 0x570   :  { %14519 = vmatprep.subr.bf16.mxu0 %v15620_v37  ;;  %v8599_v29 = vpack.c.bf16 %v8595_v61, %v8594_v56 }
 0x572   :  { %14512 = vmatmul.mubr.msk.bf16.vlgmr.msra.gmra.mrb[44].mxu0 %vm67_vm3, %v8339_v43 }
 0x573   :  { %14515 = vmatprep.mubr.msk.bf16.mxu0 %vm67_vm3, %v8340_v52  ;;  %14520 = vmatpush3.bf16.msra.mxu0 %v15620_v37  ;;  %v8717_v37 = vld [vmem:[#allocation3 + $0x9a] sm:$0xff] }
 0x574   :  { %14521 = vmatprep.subr.bf16.mxu0 %v15621_v23  ;;  %v8725_v43 = vpack.c.bf16 %v8718_v21, %v8717_v37  ;;  %v8721_v52 = vld [vmem:[#allocation3 + $0xba] sm:$0xff] }
 0x577   :  { %14522 = vmatpush3.bf16.msra.mxu0 %v15621_v23  ;;  %v8720_v23 = vld [vmem:[#allocation3 + $0xb2] sm:$0xff] }
 0x578   :  { %14523 = vmatprep.subr.bf16.mxu0 %v15622_v44  ;;  %v8726_v47 = vpack.c.bf16 %v8720_v23, %v8719_v60 }
 0x57a   :  { %14516 = vmatmul.mubr.msk.bf16.gmra.mrb[48].mxu0 %vm67_vm3, %v8341_v41 }
 0x57b   :  { %14524 = vmatpush3.bf16.msra.mxu0 %v15622_v44  ;;  %14527 = vmatprep.mubr.msk.bf16.mxu0 %vm67_vm3, %v8467_v6  ;;  %v8722_v44 = vld [vmem:[#allocation3 + $0xc2] sm:$0xff]  ;;  %v8724_v6 = vld [vmem:[#allocation3 + $0xd2] sm:$0xff] }
 0x57c   :  { %14525 = vmatprep.subr.bf16.mxu0 %v15623_v63  ;;  %v8727_v41 = vpack.c.bf16 %v8722_v44, %v8721_v52 }
 0x57f   :  { %14526 = vmatpush3.bf16.msra.mxu0 %v15623_v63  ;;  %v8723_v63 = vld [vmem:[#allocation3 + $0xca] sm:$0xff] }
 0x580   :  { %14535 = vmatprep.subr.bf16.mxu0 %v15624_v28  ;;  %v8728_v32 = vpack.c.bf16 %v8724_v6, %v8723_v63  ;;  %v15640_v6 = vld [vmem:[%s18507_s8] sm:$0xff]  }
 0x581   :  { %14599 = vmatprep.subr.bf16.mxu1 %v15640_v6 }
 0x582   :  { %14528 = vmatmul.mubr.msk.bf16.vlgmr.msra.gmra.mrb[44].mxu0 %vm67_vm3, %v8468_v10  ;;  %14600 = vmatpush3.bf16.msra.mxu1 %v15640_v6  ;;  %v9344_v6 = vld [vmem:[#allocation3 + $0xed] sm:$0xff] }
 0x583   :  { %14531 = vmatprep.mubr.msk.bf16.mxu0 %vm67_vm3, %v8469_v5  ;;  %14536 = vmatpush3.bf16.msra.mxu0 %v15624_v28  ;;  %v8846_v28 = vld [vmem:[#allocation3 + $0x9b] sm:$0xff] }
 0x584   :  { %14537 = vmatprep.subr.bf16.mxu0 %v15625_v50  ;;  %v8854_v10 = vpack.c.bf16 %v8847_v11, %v8846_v28  ;;  %v8850_v5 = vld [vmem:[#allocation3 + $0xbb] sm:$0xff] }
 0x587   :  { %14538 = vmatpush3.bf16.msra.mxu0 %v15625_v50  ;;  %v8849_v50 = vld [vmem:[#allocation3 + $0xb3] sm:$0xff] }
 0x588   :  { %14539 = vmatprep.subr.bf16.mxu0 %v15626_v18  ;;  %v8855_v46 = vpack.c.bf16 %v8849_v50, %v8848_v1  ;;  %v15642_v50 = vld [vmem:[%s18507_s8 + $0x10] sm:$0xff]   ;;  %v17751_v1 = vld [vmem:[%s18506_s7] ss:$0 sm:$0xff] }
 0x58a   :  { %14532 = vmatmul.mubr.msk.bf16.gmra.mrb[48].mxu0 %vm67_vm3, %v8470_v13  ;;  %v15638_v13 = vld [vmem:[%s18505_s6 + $0x110] sm:$0xff]  }
 0x58b   :  { %14540 = vmatpush3.bf16.msra.mxu0 %v15626_v18  ;;  %14543 = vmatprep.mubr.msk.bf16.mxu0 %vm67_vm3, %v8596_v7  ;;  %v8851_v18 = vld [vmem:[#allocation3 + $0xc3] sm:$0xff]  ;;  %v8853_v7 = vld [vmem:[#allocation3 + $0xd3] sm:$0xff] }
 0x58c   :  { %14541 = vmatprep.subr.bf16.mxu0 %v15627_v38  ;;  %v8856_v53 = vpack.c.bf16 %v8851_v18, %v8850_v5  ;;  %v15643_v5 = vld [vmem:[%s18507_s8 + $0x18] sm:$0xff]   ;;  %v15644_v18 = vld [vmem:[%s18505_s6 + $0x20] sm:$0xff]  }
 0x58f   :  { %14542 = vmatpush3.bf16.msra.mxu0 %v15627_v38  ;;  %v8852_v38 = vld [vmem:[#allocation3 + $0xcb] sm:$0xff] }
 0x590   :  { %14551 = vmatprep.subr.bf16.mxu0 %v15628_v31 }
 0x592   :  { %14544 = vmatmul.mubr.msk.bf16.vlgmr.msra.gmra.mrb[44].mxu0 %vm67_vm3, %v8597_v22  ;;  %v17713_v22 = vld [vmem:[#allocation3 + $0xd4] sm:$0xff] }
 0x593   :  { %14547 = vmatprep.mubr.msk.bf16.mxu0 %vm67_vm3, %v8598_v55  ;;  %14552 = vmatpush3.bf16.msra.mxu0 %v15628_v31  ;;  %v8857_v31 = vpack.c.bf16 %v8853_v7, %v8852_v38 }
 0x594   :  { %14553 = vmatprep.subr.bf16.mxu0 %v15629_v19 }
 0x597   :  { %14554 = vmatpush3.bf16.msra.mxu0 %v15629_v19  ;;  %v15707_v19 = vld [vmem:[#allocation3 + $0xcc] sm:$0xff] }
 0x598   :  { %14555 = vmatprep.subr.bf16.mxu0 %v15630_v40  ;;  %v8986_v55 = vpack.c.bf16 %v17713_v22, %v15707_v19 }
 0x59a   :  { %14548 = vmatmul.mubr.msk.bf16.gmra.mrb[48].mxu0 %vm67_vm3, %v8599_v29 }
 0x59b   :  { %14556 = vmatpush3.bf16.msra.mxu0 %v15630_v40  ;;  %14559 = vmatprep.mubr.msk.bf16.mxu0 %vm67_vm3, %v8725_v43 }
 0x59c   :  { %14557 = vmatprep.subr.bf16.mxu0 %v15631_v36 }
 0x59f   :  { %14558 = vmatpush3.bf16.msra.mxu0 %v15631_v36 }
 0x5a0   :  { %14567 = vmatprep.subr.bf16.mxu0 %v15632_v62 }
 0x5a2   :  { %14560 = vmatmul.mubr.msk.bf16.vlgmr.msra.gmra.mrb[44].mxu0 %vm67_vm3, %v8726_v47 }
 0x5a3   :  { %14563 = vmatprep.mubr.msk.bf16.mxu0 %vm67_vm3, %v8727_v41  ;;  %14568 = vmatpush3.bf16.msra.mxu0 %v15632_v62 }
 0x5a4   :  { %14569 = vmatprep.subr.bf16.mxu0 %v15633_v42 }
 0x5a7   :  { %14570 = vmatpush3.bf16.msra.mxu0 %v15633_v42 }
 0x5a8   :  { %14571 = vmatprep.subr.bf16.mxu0 %v15634_v49 }
 0x5aa   :  { %14564 = vmatmul.mubr.msk.bf16.gmra.mrb[48].mxu0 %vm67_vm3, %v8728_v32 }
 0x5ab   :  { %14572 = vmatpush3.bf16.msra.mxu0 %v15634_v49  ;;  %14575 = vmatprep.mubr.msk.bf16.mxu0 %vm67_vm3, %v8854_v10  ;;  %v15641_v10 = vld [vmem:[%s18507_s8 + $0x8] sm:$0xff]  }
 0x5ac   :  { %14573 = vmatprep.subr.bf16.mxu0 %v15635_v30  ;;  %14601 = vmatprep.subr.bf16.mxu1 %v15641_v10 }
 0x5ad   :  { %14602 = vmatpush3.bf16.msra.mxu1 %v15641_v10  ;;  %v9345_v10 = vld [vmem:[#allocation3 + $0xf5] sm:$0xff] }
 0x5ae   :  { %14603 = vmatprep.subr.bf16.mxu1 %v15642_v50 }
 0x5af   :  { %14574 = vmatpush3.bf16.msra.mxu0 %v15635_v30 }
 0x5b0   :  { %14583 = vmatprep.subr.bf16.mxu0 %v15636_v15 }
 0x5b1   :  { %14604 = vmatpush3.bf16.msra.mxu1 %v15642_v50 }
 0x5b2   :  { %14576 = vmatmul.mubr.msk.bf16.vlgmr.msra.gmra.mrb[44].mxu0 %vm67_vm3, %v8855_v46  ;;  %14605 = vmatprep.subr.bf16.mxu1 %v15643_v5 }
 0x5b3   :  { %14579 = vmatprep.mubr.msk.bf16.mxu0 %vm67_vm3, %v8856_v53  ;;  %14584 = vmatpush3.bf16.msra.mxu0 %v15636_v15 }
 0x5b4   :  { %14585 = vmatprep.subr.bf16.mxu0 %v15637_v0 }
 0x5b5   :  { %14606 = vmatpush3.bf16.msra.mxu1 %v15643_v5  ;;  %v15651_v5 = vld [vmem:[%s18505_s6 + $0x18] sm:$0xff]  }
 0x5b6   :  { %14615 = vmatprep.subr.bf16.mxu1 %v15644_v18 }
 0x5b7   :  { %14586 = vmatpush3.bf16.msra.mxu0 %v15637_v0 }
 0x5b8   :  { %14587 = vmatprep.subr.bf16.mxu0 %v15638_v13 }
 0x5ba   :  { %14580 = vmatmul.mubr.msk.bf16.gmra.mrb[48].mxu0 %vm67_vm3, %v8857_v31 }
 0x5bb   :  { %14588 = vmatpush3.bf16.msra.mxu0 %v15638_v13  ;;  %14591 = vmatprep.mubr.msk.bf16.mxu0 %vm67_vm3, %v8983_v39 }
 0x5bc   :  { %14589 = vmatprep.subr.bf16.mxu0 %v15639_v4 }
 0x5bf   :  { %14590 = vmatpush3.bf16.msra.mxu0 %v15639_v4 }
 0x5c2   :  { %14592 = vmatmul.mubr.msk.bf16.vlgmr.msra.gmra.mrb[44].mxu0 %vm67_vm3, %v18533_v2 }
 0x5c3   :  { %14595 = vmatprep.mubr.msk.bf16.mxu0 %vm67_vm3, %v8985_v14 }
 0x5ca   :  { %14596 = vmatmul.mubr.msk.bf16.gmra.mrb[48].mxu0 %vm67_vm3, %v8986_v55 }
 0x605   :  { %v14449_v35 = vpop.f32.mrb[36].mxu0 }
 0x606   :  { %v7921_v16 = vadd.f32 %v14449_v35, %v17503_v57  ;;  %v7912_v39 = vpop.f32.mrb[37].mxu0 }
 0x607   :  { %v7913_v54 = vadd.f32 %v17503_v57, %v7912_v39  ;;  %v14450_v40 = vpop.f32.mrb[38].mxu0 }
 0x608   :  { %v7945_v56 = vmax.f32 %v7921_v16, 0.0  ;;  %v7924_v17 = vadd.f32 %v14450_v40, %v17503_v57  ;;  %v7915_v24 = vpop.f32.mrb[39].mxu0 }
 0x609   :  { %v7943_v61 = vmax.f32 %v7913_v54, 0.0  ;;  %v7916_v37 = vadd.f32 %v17503_v57, %v7915_v24 }
 0x60a   :  { %7953 = vst.msk [vmem:[#allocation4 + $0x50] sm:$0xff] %vm6590_vm4, %v7945_v56  ;;  %v7946_v21 = vmax.f32 %v7924_v17, 0.0 }
 0x60b   :  { %7951 = vst.msk [vmem:[#allocation4 + $0x40] sm:$0xff] %vm6590_vm4, %v7943_v61  ;;  %v7944_v29 = vmax.f32 %v7916_v37, 0.0 }
 0x60c   :  { %7954 = vst.msk [vmem:[#allocation4 + $0x58] sm:$0xff] %vm6590_vm4, %v7946_v21 }
 0x60d   :  { %7952 = vst.msk [vmem:[#allocation4 + $0x48] sm:$0xff] %vm6590_vm4, %v7944_v29  ;;  %v14453_v36 = vpop.f32.mrb[40].mxu0 }
 0x60e   :  { %v7937_v43 = vadd.f32 %v14453_v36, %v17503_v57  ;;  %v7928_v62 = vpop.f32.mrb[41].mxu0 }
 0x60f   :  { %v7929_v23 = vadd.f32 %v17503_v57, %v7928_v62  ;;  %v14454_v52 = vpop.f32.mrb[42].mxu0 }
 0x610   :  { %v7949_v44 = vmax.f32 %v7937_v43, 0.0  ;;  %v7940_v60 = vadd.f32 %v14454_v52, %v17503_v57  ;;  %v7931_v47 = vpop.f32.mrb[43].mxu0  ;;  %v15646_v52 = vld [vmem:[%s18505_s6 + $0x30] sm:$0xff]  }
 0x611   :  { %v7947_v42 = vmax.f32 %v7929_v23, 0.0  ;;  %v7932_v41 = vadd.f32 %v17503_v57, %v7931_v47  ;;  %v10689_v49 = vld [vmem:[#allocation4 + $0x50] sm:$0xff] }
 0x612   :  { %7957 = vst.msk [vmem:[#allocation4 + $0x70] sm:$0xff] %vm6590_vm4, %v7949_v44  ;;  %v7950_v63 = vmax.f32 %v7940_v60, 0.0  ;;  %11192 = vperm.xlu1 %15420, %v10689_v49   ;;  %v10687_v57 = vld [vmem:[#allocation4 + $0x40] sm:$0xff] }
 0x613   :  { %7955 = vst.msk [vmem:[#allocation4 + $0x60] sm:$0xff] %vm6590_vm4, %v7947_v42  ;;  %v7948_v28 = vmax.f32 %v7932_v41, 0.0  ;;  %v10690_v11 = vld [vmem:[#allocation4 + $0x58] sm:$0xff]  ;;  %v9339_v42 = vld [vmem:[#allocation3 + $0xc5] sm:$0xff]  ;;  %v9340_v41 = vld [vmem:[#allocation3 + $0xcd] sm:$0xff] }
 0x614   :  { %7958 = vst.msk [vmem:[#allocation4 + $0x78] sm:$0xff] %vm6590_vm4, %v7950_v63  ;;  %11196 = vperm.xlu0 %15421, %v10690_v11   ;;  %v10688_v32 = vld [vmem:[#allocation4 + $0x48] sm:$0xff]  ;;  %v9342_v63 = vld [vmem:[#allocation3 + $0xdd] sm:$0xff] }
 0x615   :  { %7956 = vst.msk [vmem:[#allocation4 + $0x68] sm:$0xff] %vm6590_vm4, %v7948_v28  ;;  %v9343_v11 = vld [vmem:[#allocation3 + $0xe5] sm:$0xff] }
 0x616   :  { %11184 = vperm.xlu1 %15420, %v10687_v57   ;;  %v15649_v57 = vld [vmem:[%s18505_s6 + $0x8] sm:$0xff]  }
 0x618   :  { %11188 = vperm.xlu0 %15421, %v10688_v32   ;;  %v9349_v32 = vpack.c.bf16 %v9344_v6, %v9343_v11  ;;  %v9822_v6 = vld [vmem:[#allocation3 + $0xe8] sm:$0xff]  ;;  %v9821_v11 = vld [vmem:[#allocation3 + $0xe0] sm:$0xff] }
 0x61a   :  { %v10691_v30 = vld [vmem:[#allocation4 + $0x60] sm:$0xff] }
 0x61b   :  { %11200 = vperm.xlu1 %15420, %v10691_v30   ;;  %v15650_v30 = vld [vmem:[%s18505_s6 + $0x10] sm:$0xff]  }
 0x61c   :  { %v10692_v15 = vld [vmem:[#allocation4 + $0x68] sm:$0xff] }
 0x61d   :  { %11204 = vperm.xlu0 %15421, %v10692_v15   ;;  %v9346_v15 = vld [vmem:[#allocation3 + $0xfd] sm:$0xff] }
 0x61e   :  { %v9350_v50 = vpack.c.bf16 %v9346_v15, %v9345_v10  ;;  %v15666_v15 = vld [vmem:[%s18505_s6 + $0xb0] sm:$0xff]  }
 0x695   :  { %v14593_v46 = vpop.f32.mrb[44].mxu0 }
 0x696   :  { %v9113_v0 = vadd.f32 %v14593_v46, %v17751_v1  ;;  %v9065_v53 = vpop.f32.mrb[45].mxu0  ;;  %v15652_v46 = vld [vmem:[%s18505_s6 + $0x40] sm:$0xff]  }
 0x697   :  { %v9111_v13 = vadd.f32 %v17751_v1, %v9065_v53  ;;  %v14594_v38 = vpop.f32.mrb[46].mxu0 }
 0x698   :  { %v9121_v7 = vmax.f32 %v9113_v0, 0.0  ;;  %v9114_v31 = vadd.f32 %v14594_v38, %v17751_v1  ;;  %v9068_v4 = vpop.f32.mrb[47].mxu0  ;;  %v15708_v0 = vld [vmem:[#allocation3 + $0xdc] sm:$0xff]  ;;  %v15709_v38 = vld [vmem:[#allocation3 + $0xe4] sm:$0xff] }
 0x699   :  { %v9119_v12 = vmax.f32 %v9111_v13, 0.0  ;;  %v9112_v14 = vadd.f32 %v17751_v1, %v9068_v4  ;;  %v9328_v53 = vpack.c.bf16 %v15708_v0, %v17713_v22  ;;  %v15653_v13 = vld [vmem:[%s18505_s6 + $0x48] sm:$0xff]  }
 0x69a   :  { %v9122_v2 = vmax.f32 %v9114_v31, 0.0  ;;  %v9177_v55 = vmul.f32 %v17189_v27, %v9121_v7  ;;  %v15710_v7 = vld [vmem:[#allocation3 + $0xec] sm:$0xff] }
 0x69b   :  { %v9120_v19 = vmax.f32 %v9112_v14, 0.0  ;;  %v9175_v16 = vmul.f32 %v17181_v45, %v9119_v12  ;;  %v9329_v31 = vpack.c.bf16 %v15710_v7, %v15709_v38  ;;  %v9561_v22 = vld [vmem:[#allocation3 + $0xc6] sm:$0xff]  ;;  %v9562_v4 = vld [vmem:[#allocation3 + $0xce] sm:$0xff] }
 0x69c   :  { %v9178_v35 = vmul.f32 %v17186_v33, %v9122_v2  ;;  %v15645_v33 = vld [vmem:[%s18505_s6 + $0x28] sm:$0xff]   ;;  %v15711_v12 = vld [vmem:[#allocation3 + $0xf4] sm:$0xff]  ;;  %v15668_v38 = vld [vmem:[%s18505_s6 + $0xc0] sm:$0xff]  }
 0x69d   :  { %v9176_v39 = vmul.f32 %v17176_v59, %v9120_v19  ;;  %v14597_v54 = vpop.f32.mrb[48].mxu0  ;;  %v15655_v2 = vld [vmem:[%s18505_s6 + $0x58] sm:$0xff]   ;;  %v9569_v19 = vpack.c.bf16 %v9562_v4, %v9561_v22  ;;  %v9951_v7 = vld [vmem:[#allocation3 + $0xe9] sm:$0xff]  ;;  %v9950_v22 = vld [vmem:[#allocation3 + $0xe1] sm:$0xff] }
 0x69e   :  { %v9184_v40 = vpack.c.bf16 %v9178_v35, %v9177_v55  ;;  %v9117_v56 = vadd.f32 %v14597_v54, %v17751_v1  ;;  %v9081_v17 = vpop.f32.mrb[49].mxu0  ;;  %v15656_v55 = vld [vmem:[%s18505_s6 + $0x60] sm:$0xff]   ;;  %v9563_v35 = vld [vmem:[#allocation3 + $0xd6] sm:$0xff]  ;;  %v9957_v4 = vpack.c.bf16 %v9951_v7, %v9950_v22 }
 0x69f   :  { %v9183_v24 = vpack.c.bf16 %v9176_v39, %v9175_v16  ;;  %v9115_v61 = vadd.f32 %v17751_v1, %v9081_v17  ;;  %v14598_v37 = vpop.f32.mrb[50].mxu0  ;;  %v9564_v16 = vld [vmem:[#allocation3 + $0xde] sm:$0xff]  ;;  %v9566_v39 = vld [vmem:[#allocation3 + $0xee] sm:$0xff] }
 0x6a0   :  { %v9125_v21 = vmax.f32 %v9117_v56, 0.0  ;;  %v9118_v29 = vadd.f32 %v14598_v37, %v17751_v1  ;;  %v9084_v36 = vpop.f32.mrb[51].mxu0  ;;  %v9570_v54 = vpack.c.bf16 %v9564_v16, %v9563_v35  ;;  %v15657_v56 = vld [vmem:[%s18505_s6 + $0x68] sm:$0xff]   ;;  %v9568_v37 = vld [vmem:[#allocation3 + $0xfe] sm:$0xff] }
 0x6a1   :  { %v9123_v45 = vmax.f32 %v9115_v61, 0.0  ;;  %v9116_v59 = vadd.f32 %v17751_v1, %v9084_v36  ;;  %14607 = vmatprep.mubr.msk.bf16.mxu1 %vm67_vm3, %v9183_v24  ;;  %v15658_v24 = vld [vmem:[%s18505_s6 + $0x70] sm:$0xff]   ;;  %v10077_v35 = vld [vmem:[#allocation3 + $0xda] sm:$0xff]  ;;  %v10078_v16 = vld [vmem:[#allocation3 + $0xe2] sm:$0xff] }
 0x6a2   :  { %v9126_v27 = vmax.f32 %v9118_v29, 0.0  ;;  %14608 = vmatmul.mubr.msk.bf16.vlgmr.msra.gmra.mrb[52].mxu1 %vm67_vm3, %v9184_v40  ;;  %v9181_v62 = vmul.f32 %v17207_v8, %v9125_v21  ;;  %v15647_v8 = vld [vmem:[%s18505_s6 + $0x38] sm:$0xff]   ;;  %v9565_v40 = vld [vmem:[#allocation3 + $0xe6] sm:$0xff]  ;;  %v9690_v21 = vld [vmem:[#allocation3 + $0xcf] sm:$0xff] }
 0x6a3   :  { %v9124_v43 = vmax.f32 %v9116_v59, 0.0  ;;  %14616 = vmatpush3.bf16.msra.mxu1 %v15644_v18  ;;  %v9179_v44 = vmul.f32 %v17200_v25, %v9123_v45  ;;  %v9341_v25 = vld [vmem:[#allocation3 + $0xd5] sm:$0xff]  ;;  %v18534_v18 = vpack.c.bf16 %v17279_v58, %v17277_v51  ;;  %v9571_v17 = vpack.c.bf16 %v9566_v39, %v9565_v40  ;;  %v15660_v59 = vld [vmem:[%s18505_s6 + $0x80] sm:$0xff]  }
 0x6a4   :  { %v9182_v23 = vmul.f32 %v17222_v34, %v9126_v27  ;;  %14617 = vmatprep.subr.bf16.mxu1 %v15645_v33  ;;  %v9347_v34 = vpack.c.bf16 %v9340_v41, %v9339_v42  ;;  %v9348_v28 = vpack.c.bf16 %v9342_v63, %v9341_v25  ;;  %v15654_v51 = vld [vmem:[%s18505_s6 + $0x50] sm:$0xff]   ;;  %v17814_v58 = vld [vmem:[#allocation3 + $0xfc] sm:$0xff]  ;;  %v9697_v41 = vld [vmem:[#allocation3 + $0x107] sm:$0xff]  ;;  %v10085_v40 = vpack.c.bf16 %v10078_v16, %v10077_v35 }
 0x6a5   :  { %v9180_v60 = vmul.f32 %v17195_v26, %v9124_v43  ;;  %v15648_v26 = vld [vmem:[%s18505_s6] sm:$0xff]   ;;  %v9330_v14 = vpack.c.bf16 %v17814_v58, %v15711_v12  ;;  %v9567_v61 = vld [vmem:[#allocation3 + $0xf6] sm:$0xff]  ;;  %v15669_v12 = vld [vmem:[%s18505_s6 + $0xc8] sm:$0xff]  }
 0x6a6   :  { %v9186_v47 = vpack.c.bf16 %v9182_v23, %v9181_v62  ;;  %v9691_v29 = vld [vmem:[#allocation3 + $0xd7] sm:$0xff]  ;;  %v9572_v36 = vpack.c.bf16 %v9568_v37, %v9567_v61  ;;  %v9692_v27 = vld [vmem:[#allocation3 + $0xdf] sm:$0xff]  ;;  %v9693_v43 = vld [vmem:[#allocation3 + $0xe7] sm:$0xff] }
 0x6a7   :  { %v9185_v49 = vpack.c.bf16 %v9180_v60, %v9179_v44  ;;  %14618 = vmatpush3.bf16.msra.mxu1 %v15645_v33  ;;  %v15659_v33 = vld [vmem:[%s18505_s6 + $0x78] sm:$0xff]   ;;  %v9698_v45 = vpack.c.bf16 %v9691_v29, %v9690_v21  ;;  %v9699_v23 = vpack.c.bf16 %v9693_v43, %v9692_v27  ;;  %v15661_v44 = vld [vmem:[%s18505_s6 + $0x88] sm:$0xff]   ;;  %v15664_v63 = vld [vmem:[%s18505_s6 + $0xa0] sm:$0xff]  }
 0x6a8   :  { %14619 = vmatprep.subr.bf16.mxu1 %v15646_v52  ;;  %v9695_v62 = vld [vmem:[#allocation3 + $0xf7] sm:$0xff]  ;;  %v9696_v42 = vld [vmem:[#allocation3 + $0xff] sm:$0xff]  ;;  %v10079_v37 = vld [vmem:[#allocation3 + $0xea] sm:$0xff] }
 0x6a9   :  { %14611 = vmatprep.mubr.msk.bf16.mxu1 %vm67_vm3, %v9185_v49  ;;  %v9820_v49 = vld [vmem:[#allocation3 + $0xd8] sm:$0xff]  ;;  %v10082_v61 = vld [vmem:[#allocation3 + $0x102] sm:$0xff] }
 0x6aa   :  { %14612 = vmatmul.mubr.msk.bf16.gmra.mrb[56].mxu1 %vm67_vm3, %v9186_v47  ;;  %v15662_v47 = vld [vmem:[%s18505_s6 + $0x90] sm:$0xff]   ;;  %v15673_v29 = vld [vmem:[%s18505_s6 + $0xe8] sm:$0xff]   ;;  %v10206_v27 = vld [vmem:[#allocation3 + $0xdb] sm:$0xff] }
 0x6ab   :  { %14620 = vmatpush3.bf16.msra.mxu1 %v15646_v52  ;;  %14623 = vmatprep.mubr.msk.bf16.mxu1 %vm67_vm3, %v9347_v34  ;;  %v9694_v52 = vld [vmem:[#allocation3 + $0xef] sm:$0xff]  ;;  %v10207_v43 = vld [vmem:[#allocation3 + $0xe3] sm:$0xff] }
 0x6ac   :  { %14621 = vmatprep.subr.bf16.mxu1 %v15647_v8  ;;  %v9700_v60 = vpack.c.bf16 %v9695_v62, %v9694_v52  ;;  %v9819_v34 = vld [vmem:[#allocation3 + $0xd0] sm:$0xff]  ;;  %v10214_v52 = vpack.c.bf16 %v10207_v43, %v10206_v27  ;;  %v10498_v27 = vpop.permute.xlu0 %10497 }
 0x6ad   :  { %v9827_v25 = vpack.c.bf16 %v9820_v49, %v9819_v34 }
 0x6af   :  { %14622 = vmatpush3.bf16.msra.mxu1 %v15647_v8  ;;  %v9701_v8 = vpack.c.bf16 %v9697_v41, %v9696_v42  ;;  %v10211_v42 = vld [vmem:[#allocation3 + $0x103] sm:$0xff]  ;;  %v10208_v41 = vld [vmem:[#allocation3 + $0xeb] sm:$0xff] }
 0x6b0   :  { %14631 = vmatprep.subr.bf16.mxu1 %v15648_v26 }
 0x6b2   :  { %14624 = vmatmul.mubr.msk.bf16.vlgmr.msra.gmra.mrb[60].mxu1 %vm67_vm3, %v9348_v28  ;;  %v9824_v28 = vld [vmem:[#allocation3 + $0xf8] sm:$0xff] }
 0x6b3   :  { %14627 = vmatprep.mubr.msk.bf16.mxu1 %vm67_vm3, %v9349_v32  ;;  %14632 = vmatpush3.bf16.msra.mxu1 %v15648_v26  ;;  %v15663_v26 = vld [vmem:[%s18505_s6 + $0x98] sm:$0xff]   ;;  %v9823_v32 = vld [vmem:[#allocation3 + $0xf0] sm:$0xff] }
 0x6b4   :  { %14633 = vmatprep.subr.bf16.mxu1 %v15649_v57  ;;  %v9829_v10 = vpack.c.bf16 %v9824_v28, %v9823_v32  ;;  %v15679_v28 = vld [vmem:[%s18505_s6 + $0x118] sm:$0xff]  }
 0x6b7   :  { %14634 = vmatpush3.bf16.msra.mxu1 %v15649_v57  ;;  %v9828_v57 = vpack.c.bf16 %v9822_v6, %v9821_v11  ;;  %v18535_v11 = vpack.c.bf16 %v17285_v9, %v17283_v48  ;;  %v17931_v48 = vld [vmem:[%s18508_s9] ss:$0 sm:$0xff]  ;;  %s12034_s9 = sshll.u32 %s15755_s5, 4  ;;  %s12035_s9 = int_to_ptr.vmem [resolvable:$true] %s12034_s9 }
 0x6b8   :  { %14635 = vmatprep.subr.bf16.mxu1 %v15650_v30  ;;  %s15726_s21 = scalar_lea.vmem %s12035_s9, 16  ;;  %s15730_s16 = scalar_lea.vmem %s12035_s9, 32 }
 0x6b9   :  { %p15727_p0 = scmp.ne.s32.totalorder %s12035_s9, %s15726_s21  ;;  %p15731_p1 = scmp.lt.s32.totalorder %s12035_s9, %s12035_s9 }
 0x6ba   :  { %14628 = vmatmul.mubr.msk.bf16.gmra.mrb[64].mxu1 %vm67_vm3, %v9350_v50  ;;  %v9826_v50 = vld [vmem:[#allocation3 + $0x108] sm:$0xff]  ;;  %p15732_p2 = scmp.lt.s32.totalorder %s15730_s16, %s15726_s21 }
 0x6bb   :  { %14636 = vmatpush3.bf16.msra.mxu1 %v15650_v30  ;;  %14639 = vmatprep.mubr.msk.bf16.mxu1 %vm67_vm3, %v18534_v18  ;;  %v15665_v30 = vld [vmem:[%s18505_s6 + $0xa8] sm:$0xff]   ;;  %v9949_v18 = vld [vmem:[#allocation3 + $0xd9] sm:$0xff] }
 0x6bc   :  { %14637 = vmatprep.subr.bf16.mxu1 %v15651_v5  ;;  %p15733_p3 = por %p15732_p2, %p15731_p1 }
 0x6be   :  { %p15734_p4 = pnand %p15733_p3, %p15727_p0 }
 0x6bf   :  { %14638 = vmatpush3.bf16.msra.mxu1 %v15651_v5  ;;  %v9948_v5 = vld [vmem:[#allocation3 + $0xd1] sm:$0xff] }
 0x6c0   :  { %14647 = vmatprep.subr.bf16.mxu1 %v15652_v46 }
 0x6c2   :  { %14640 = vmatmul.mubr.msk.bf16.vlgmr.msra.gmra.mrb[60].mxu1 %vm67_vm3, %v9328_v53  ;;  %v15667_v53 = vld [vmem:[%s18505_s6 + $0xb8] sm:$0xff]  }
 0x6c3   :  { %14643 = vmatprep.mubr.msk.bf16.mxu1 %vm67_vm3, %v9329_v31  ;;  %14648 = vmatpush3.bf16.msra.mxu1 %v15652_v46  ;;  %v9825_v46 = vld [vmem:[#allocation3 + $0x100] sm:$0xff]  ;;  %v9952_v31 = vld [vmem:[#allocation3 + $0xf1] sm:$0xff] }
 0x6c4   :  { %14649 = vmatprep.subr.bf16.mxu1 %v15653_v13  ;;  %v9830_v0 = vpack.c.bf16 %v9826_v50, %v9825_v46 }
 0x6c7   :  { %14650 = vmatpush3.bf16.msra.mxu1 %v15653_v13  ;;  %v9956_v13 = vpack.c.bf16 %v9949_v18, %v9948_v5 }
 0x6c8   :  { %14651 = vmatprep.subr.bf16.mxu1 %v15654_v51 }
 0x6ca   :  { %14644 = vmatmul.mubr.msk.bf16.gmra.mrb[64].mxu1 %vm67_vm3, %v9330_v14 }
 0x6cb   :  { %14652 = vmatpush3.bf16.msra.mxu1 %v15654_v51  ;;  %14655 = vmatprep.mubr.msk.bf16.mxu1 %vm67_vm3, %v9569_v19  ;;  %v9953_v51 = vld [vmem:[#allocation3 + $0xf9] sm:$0xff]  ;;  %v9954_v19 = vld [vmem:[#allocation3 + $0x101] sm:$0xff] }
 0x6cc   :  { %14653 = vmatprep.subr.bf16.mxu1 %v15655_v2  ;;  %v9958_v14 = vpack.c.bf16 %v9953_v51, %v9952_v31 }
 0x6cf   :  { %14654 = vmatpush3.bf16.msra.mxu1 %v15655_v2  ;;  %v15670_v2 = vld [vmem:[%s18505_s6 + $0xd0] sm:$0xff]  }
 0x6d0   :  { %14663 = vmatprep.subr.bf16.mxu1 %v15656_v55 }
 0x6d2   :  { %14656 = vmatmul.mubr.msk.bf16.vlgmr.msra.gmra.mrb[60].mxu1 %vm67_vm3, %v9570_v54  ;;  %v15671_v54 = vld [vmem:[%s18505_s6 + $0xd8] sm:$0xff]  }
 0x6d3   :  { %14659 = vmatprep.mubr.msk.bf16.mxu1 %vm67_vm3, %v9571_v17  ;;  %14664 = vmatpush3.bf16.msra.mxu1 %v15656_v55  ;;  %v9955_v55 = vld [vmem:[#allocation3 + $0x109] sm:$0xff]  ;;  %v10080_v17 = vld [vmem:[#allocation3 + $0xf2] sm:$0xff] }
 0x6d4   :  { %14665 = vmatprep.subr.bf16.mxu1 %v15657_v56  ;;  %v9959_v39 = vpack.c.bf16 %v9955_v55, %v9954_v19  ;;  %v10086_v21 = vpack.c.bf16 %v10080_v17, %v10079_v37 }
 0x6d7   :  { %14666 = vmatpush3.bf16.msra.mxu1 %v15657_v56  ;;  %v15672_v56 = vld [vmem:[%s18505_s6 + $0xe0] sm:$0xff]  }
 0x6d8   :  { %14667 = vmatprep.subr.bf16.mxu1 %v15658_v24 }
 0x6da   :  { %14660 = vmatmul.mubr.msk.bf16.gmra.mrb[64].mxu1 %vm67_vm3, %v9572_v36 }
 0x6db   :  { %14668 = vmatpush3.bf16.msra.mxu1 %v15658_v24  ;;  %14671 = vmatprep.mubr.msk.bf16.mxu1 %vm67_vm3, %v9698_v45  ;;  %v10081_v24 = vld [vmem:[#allocation3 + $0xfa] sm:$0xff]  ;;  %v10083_v45 = vld [vmem:[#allocation3 + $0x10a] sm:$0xff] }
 0x6dc   :  { %14669 = vmatprep.subr.bf16.mxu1 %v15659_v33  ;;  %v10087_v36 = vpack.c.bf16 %v10082_v61, %v10081_v24 }
 0x6df   :  { %14670 = vmatpush3.bf16.msra.mxu1 %v15659_v33  ;;  %v15674_v33 = vld [vmem:[%s18505_s6 + $0xf0] sm:$0xff]  }
 0x6e0   :  { %14679 = vmatprep.subr.bf16.mxu1 %v15660_v59 }
 0x6e2   :  { %14672 = vmatmul.mubr.msk.bf16.vlgmr.msra.gmra.mrb[60].mxu1 %vm67_vm3, %v9699_v23  ;;  %v15675_v23 = vld [vmem:[%s18505_s6 + $0xf8] sm:$0xff]  }
 0x6e3   :  { %14675 = vmatprep.mubr.msk.bf16.mxu1 %vm67_vm3, %v9700_v60  ;;  %14680 = vmatpush3.bf16.msra.mxu1 %v15660_v59  ;;  %v10084_v59 = vld [vmem:[#allocation3 + $0x112] sm:$0xff] }
 0x6e4   :  { %14681 = vmatprep.subr.bf16.mxu1 %v15661_v44  ;;  %v10088_v62 = vpack.c.bf16 %v10084_v59, %v10083_v45  ;;  %v10209_v60 = vld [vmem:[#allocation3 + $0xf3] sm:$0xff]  ;;  %v17985_v59 = vpop.permute.xlu1 %10502 }
 0x6e5   :  { %v10215_v49 = vpack.c.bf16 %v10209_v60, %v10208_v41  ;;  %v15683_v45 = vld [vmem:[%s18507_s8 + $0x18] sm:$0xff]  }
 0x6e7   :  { %14682 = vmatpush3.bf16.msra.mxu1 %v15661_v44  ;;  %v15676_v44 = vld [vmem:[%s18505_s6 + $0x100] sm:$0xff]  }
 0x6e8   :  { %14683 = vmatprep.subr.bf16.mxu1 %v15662_v47  ;;  %v10513_v43 = vpop.permute.xlu1 %10512 }
 0x6ea   :  { %14676 = vmatmul.mubr.msk.bf16.gmra.mrb[64].mxu1 %vm67_vm3, %v9701_v8  ;;  %v15677_v8 = vld [vmem:[%s18505_s6 + $0x108] sm:$0xff]  }
 0x6eb   :  { %14684 = vmatpush3.bf16.msra.mxu1 %v15662_v47  ;;  %14687 = vmatprep.mubr.msk.bf16.mxu1 %vm67_vm3, %v9827_v25  ;;  %v10210_v47 = vld [vmem:[#allocation3 + $0xfb] sm:$0xff]  ;;  %v10212_v25 = vld [vmem:[#allocation3 + $0x10b] sm:$0xff] }
 0x6ec   :  { %14685 = vmatprep.subr.bf16.mxu1 %v15663_v26  ;;  %v10216_v34 = vpack.c.bf16 %v10211_v42, %v10210_v47 }
 0x6ef   :  { %14686 = vmatpush3.bf16.msra.mxu1 %v15663_v26  ;;  %v15678_v26 = vld [vmem:[%s18505_s6 + $0x110] sm:$0xff]  }
 0x6f0   :  { %14695 = vmatprep.subr.bf16.mxu1 %v15664_v63 }
 0x6f2   :  { %14688 = vmatmul.mubr.msk.bf16.vlgmr.msra.gmra.mrb[60].mxu1 %vm67_vm3, %v9828_v57  ;;  %v10340_v57 = vld [vmem:[#allocation3 + $0x104] sm:$0xff] }
 0x6f3   :  { %14691 = vmatprep.mubr.msk.bf16.mxu1 %vm67_vm3, %v9829_v10  ;;  %14696 = vmatpush3.bf16.msra.mxu1 %v15664_v63  ;;  %v10213_v63 = vld [vmem:[#allocation3 + $0x113] sm:$0xff]  ;;  %v10345_v32 = vpack.c.bf16 %v10340_v57, %v17814_v58 }
 0x6f4   :  { %14697 = vmatprep.subr.bf16.mxu1 %v15665_v30  ;;  %v10217_v6 = vpack.c.bf16 %v10213_v63, %v10212_v25  ;;  %v10341_v10 = vld [vmem:[#allocation3 + $0x10c] sm:$0xff] }
 0x6f7   :  { %14698 = vmatpush3.bf16.msra.mxu1 %v15665_v30  ;;  %v18536_v30 = vpack.c.bf16 %v17289_v3, %v17287_v20 }
 0x6f8   :  { %14699 = vmatprep.subr.bf16.mxu1 %v15666_v15 }
 0x6fa   :  { %14692 = vmatmul.mubr.msk.bf16.gmra.mrb[64].mxu1 %vm67_vm3, %v9830_v0 }
 0x6fb   :  { %14700 = vmatpush3.bf16.msra.mxu1 %v15666_v15  ;;  %14703 = vmatprep.mubr.msk.bf16.mxu1 %vm67_vm3, %v9956_v13  ;;  %v10342_v15 = vld [vmem:[#allocation3 + $0x114] sm:$0xff] }
 0x6fc   :  { %14701 = vmatprep.subr.bf16.mxu1 %v15667_v53  ;;  %v10346_v50 = vpack.c.bf16 %v10342_v15, %v10341_v10 }
 0x6ff   :  { %14702 = vmatpush3.bf16.msra.mxu1 %v15667_v53 }
 0x700   :  { %14711 = vmatprep.subr.bf16.mxu1 %v15668_v38 }
 0x702   :  { %14704 = vmatmul.mubr.msk.bf16.vlgmr.msra.gmra.mrb[60].mxu1 %vm67_vm3, %v9957_v4 }
 0x703   :  { %14707 = vmatprep.mubr.msk.bf16.mxu1 %vm67_vm3, %v9958_v14  ;;  %14712 = vmatpush3.bf16.msra.mxu1 %v15668_v38 }
 0x704   :  { %14713 = vmatprep.subr.bf16.mxu1 %v15669_v12 }
 0x707   :  { %14714 = vmatpush3.bf16.msra.mxu1 %v15669_v12 }
 0x708   :  { %14715 = vmatprep.subr.bf16.mxu1 %v15670_v2 }
 0x70a   :  { %14708 = vmatmul.mubr.msk.bf16.gmra.mrb[64].mxu1 %vm67_vm3, %v9959_v39 }
 0x70b   :  { %14716 = vmatpush3.bf16.msra.mxu1 %v15670_v2  ;;  %14719 = vmatprep.mubr.msk.bf16.mxu1 %vm67_vm3, %v10085_v40 }
 0x70c   :  { %14717 = vmatprep.subr.bf16.mxu1 %v15671_v54 }
 0x70f   :  { %14718 = vmatpush3.bf16.msra.mxu1 %v15671_v54 }
 0x710   :  { %14727 = vmatprep.subr.bf16.mxu1 %v15672_v56 }
 0x712   :  { %14720 = vmatmul.mubr.msk.bf16.vlgmr.msra.gmra.mrb[60].mxu1 %vm67_vm3, %v10086_v21  ;;  %v15681_v21 = vld [vmem:[%s18507_s8 + $0x8] sm:$0xff]  }
 0x713   :  { %14723 = vmatprep.mubr.msk.bf16.mxu1 %vm67_vm3, %v10087_v36  ;;  %14728 = vmatpush3.bf16.msra.mxu1 %v15672_v56  ;;  %v15680_v56 = vld [vmem:[%s18507_s8] sm:$0xff]  }
 0x714   :  { %14729 = vmatprep.subr.bf16.mxu1 %v15673_v29  ;;  %14759 = vmatprep.subr.bf16.mxu0 %v15680_v56 }
 0x715   :  { %14760 = vmatpush3.bf16.msra.mxu0 %v15680_v56 }
 0x716   :  { %14761 = vmatprep.subr.bf16.mxu0 %v15681_v21 }
 0x717   :  { %14730 = vmatpush3.bf16.msra.mxu1 %v15673_v29 }
 0x718   :  { %14731 = vmatprep.subr.bf16.mxu1 %v15674_v33 }
 0x719   :  { %14762 = vmatpush3.bf16.msra.mxu0 %v15681_v21 }
 0x71a   :  { %14724 = vmatmul.mubr.msk.bf16.gmra.mrb[64].mxu1 %vm67_vm3, %v10088_v62  ;;  %v10508_v62 = vpop.permute.xlu0 %10507 }
 0x71b   :  { %14732 = vmatpush3.bf16.msra.mxu1 %v15674_v33  ;;  %14735 = vmatprep.mubr.msk.bf16.mxu1 %vm67_vm3, %v10214_v52  ;;  %v15682_v33 = vld [vmem:[%s18507_s8 + $0x10] sm:$0xff]  }
 0x71c   :  { %14733 = vmatprep.subr.bf16.mxu1 %v15675_v23  ;;  %14763 = vmatprep.subr.bf16.mxu0 %v15682_v33 }
 0x71d   :  { %14764 = vmatpush3.bf16.msra.mxu0 %v15682_v33 }
 0x71e   :  { %14765 = vmatprep.subr.bf16.mxu0 %v15683_v45  ;;  %v17989_v52 = vpop.permute.xlu0 %10517 }
 0x71f   :  { %14734 = vmatpush3.bf16.msra.mxu1 %v15675_v23  ;;  %v17987_v23 = vpop.permute.xlu1 %10522 }
 0x720   :  { %14743 = vmatprep.subr.bf16.mxu1 %v15676_v44 }
 0x721   :  { %14766 = vmatpush3.bf16.msra.mxu0 %v15683_v45 }
 0x722   :  { %14736 = vmatmul.mubr.msk.bf16.vlgmr.msra.gmra.mrb[60].mxu1 %vm67_vm3, %v10215_v49  ;;  %v17993_v60 = vpop.permute.xlu0 %10527 }
 0x723   :  { %14739 = vmatprep.mubr.msk.bf16.mxu1 %vm67_vm3, %v10216_v34  ;;  %14744 = vmatpush3.bf16.msra.mxu1 %v15676_v44  ;;  %v17991_v44 = vpop.permute.xlu1 %10532 }
 0x724   :  { %14745 = vmatprep.subr.bf16.mxu1 %v15677_v8 }
 0x726   :  { %v11153_v42 = vpop.permute.xlu0 %11152 }
 0x727   :  { %14746 = vmatpush3.bf16.msra.mxu1 %v15677_v8  ;;  %v11161_v47 = vpop.permute.xlu1 %11160 }
 0x728   :  { %14747 = vmatprep.subr.bf16.mxu1 %v15678_v26 }
 0x72a   :  { %14740 = vmatmul.mubr.msk.bf16.gmra.mrb[64].mxu1 %vm67_vm3, %v10217_v6  ;;  %v11165_v49 = vpop.permute.xlu0 %11164 }
 0x72b   :  { %14748 = vmatpush3.bf16.msra.mxu1 %v15678_v26  ;;  %14751 = vmatprep.mubr.msk.bf16.mxu1 %vm67_vm3, %v18535_v11  ;;  %v11157_v41 = vpop.permute.xlu1 %11156  ;;  %v10711_v11 = vlaneseq }
 0x72c   :  { %14749 = vmatprep.subr.bf16.mxu1 %v15679_v28 }
 0x72e   :  { %v11181_v34 = vpop.permute.xlu0 %11180 }
 0x72f   :  { %14750 = vmatpush3.bf16.msra.mxu1 %v15679_v28  ;;  %v17995_v8 = vpop.permute.xlu1 %11176 }
 0x732   :  { %14752 = vmatmul.mubr.msk.bf16.vlgmr.msra.gmra.mrb[60].mxu1 %vm67_vm3, %v18536_v30  ;;  %v11173_v25 = vpop.permute.xlu0 %11172 }
 0x733   :  { %14755 = vmatprep.mubr.msk.bf16.mxu1 %vm67_vm3, %v10345_v32  ;;  %v11169_v26 = vpop.permute.xlu1 %11168  ;;  %v10712_v32 = vand.u32 127, %v10711_v11 }
 0x735   :  { %vm10713_vm5 = vcmp.eq.s32.totalorder %v10712_v32, 0  ;;  %vm10828_vm6 = vcmp.eq.s32.totalorder %v10712_v32, 1 }
 0x736   :  { %v17999_v6 = vpop.permute.xlu0 %11196 }
 0x737   :  { %v17997_v63 = vpop.permute.xlu1 %11192 }
 0x73a   :  { %14756 = vmatmul.mubr.msk.bf16.gmra.mrb[64].mxu1 %vm67_vm3, %v10346_v50  ;;  %v18003_v57 = vpop.permute.xlu0 %11188 }
 0x73b   :  { %v18001_v28 = vpop.permute.xlu1 %11184 }
 0x73e   :  { %v18008_v10 = vpop.permute.xlu0 %11204 }
 0x73f   :  { %v18006_v30 = vpop.permute.xlu1 %11200 }
 0x775   :  { %v14609_v9 = vpop.f32.mrb[52].mxu1 }
 0x776   :  { %v9281_v58 = vadd.f32 %v14609_v9, %v17931_v48  ;;  %v9272_v5 = vpop.f32.mrb[53].mxu1  ;;  %v18537_v9 = vmov 0.0  }
 0x777   :  { %v9273_v20 = vadd.f32 %v17931_v48, %v9272_v5  ;;  %v14610_v3 = vpop.f32.mrb[54].mxu1  ;;  %v18014_v5 = vsel %vm10828_vm6, 1.0, %v18537_v9 }
 0x778   :  { %v9305_v18 = vmax.f32 %v9281_v58, 0.0  ;;  %v9284_v46 = vadd.f32 %v14610_v3, %v17931_v48  ;;  %v9275_v0 = vpop.f32.mrb[55].mxu1  ;;  %v18011_v58 = vsel %vm10713_vm5, 1.0, %v18537_v9 }
 0x779   :  { %v9303_v53 = vmax.f32 %v9273_v20, 0.0  ;;  %v9276_v13 = vadd.f32 %v17931_v48, %v9275_v0 }
 0x77a   :  { %9313 = vst.msk [vmem:[#allocation4 + $0x90] sm:$0xff] %vm6590_vm4, %v9305_v18  ;;  %v9306_v38 = vmax.f32 %v9284_v46, 0.0 }
 0x77b   :  { %9311 = vst.msk [vmem:[#allocation4 + $0x80] sm:$0xff] %vm6590_vm4, %v9303_v53  ;;  %v9304_v7 = vmax.f32 %v9276_v13, 0.0  ;;  %v11215_v13 = vmul.f32 %v18011_v58, %v11153_v42 }
 0x77c   :  { %9314 = vst.msk [vmem:[#allocation4 + $0x98] sm:$0xff] %vm6590_vm4, %v9306_v38  ;;  %v11218_v38 = vmul.f32 %v18011_v58, %v11165_v49 }
 0x77d   :  { %9312 = vst.msk [vmem:[#allocation4 + $0x88] sm:$0xff] %vm6590_vm4, %v9304_v7  ;;  %v14613_v31 = vpop.f32.mrb[56].mxu1 }
 0x77e   :  { %v9297_v51 = vadd.f32 %v14613_v31, %v17931_v48  ;;  %v9288_v22 = vpop.f32.mrb[57].mxu1 }
 0x77f   :  { %v9289_v4 = vadd.f32 %v17931_v48, %v9288_v22  ;;  %v14614_v12 = vpop.f32.mrb[58].mxu1 }
 0x780   :  { %v9309_v14 = vmax.f32 %v9297_v51, 0.0  ;;  %v9300_v2 = vadd.f32 %v14614_v12, %v17931_v48  ;;  %v9291_v19 = vpop.f32.mrb[59].mxu1 }
 0x781   :  { %v9307_v55 = vmax.f32 %v9289_v4, 0.0  ;;  %v9292_v35 = vadd.f32 %v17931_v48, %v9291_v19  ;;  %v17945_v16 = vld [vmem:[#allocation4 + $0x90] sm:$0xff]  ;;  %v11216_v4 = vmul.f32 %v18011_v58, %v11157_v41 }
 0x782   :  { %9317 = vst.msk [vmem:[#allocation4 + $0xb0] sm:$0xff] %vm6590_vm4, %v9309_v14  ;;  %v9310_v39 = vmax.f32 %v9300_v2, 0.0  ;;  %11256 = vperm.xlu1 %15420, %v17945_v16   ;;  %v17958_v17 = vld [vmem:[#allocation4 + $0x80] sm:$0xff] }
 0x783   :  { %9315 = vst.msk [vmem:[#allocation4 + $0xa0] sm:$0xff] %vm6590_vm4, %v9307_v55  ;;  %v9308_v54 = vmax.f32 %v9292_v35, 0.0  ;;  %v17950_v40 = vld [vmem:[#allocation4 + $0x98] sm:$0xff]  ;;  %v11217_v55 = vmul.f32 %v18011_v58, %v11161_v47 }
 0x784   :  { %9318 = vst.msk [vmem:[#allocation4 + $0xb8] sm:$0xff] %vm6590_vm4, %v9310_v39  ;;  %11260 = vperm.xlu0 %15421, %v17950_v40   ;;  %v17961_v24 = vld [vmem:[#allocation4 + $0x88] sm:$0xff] }
 0x785   :  { %9316 = vst.msk [vmem:[#allocation4 + $0xa8] sm:$0xff] %vm6590_vm4, %v9308_v54 }
 0x786   :  { %11248 = vperm.xlu1 %15420, %v17958_v17  }
 0x788   :  { %11252 = vperm.xlu0 %15421, %v17961_v24  }
 0x789   :  { %v17964_v61 = vld [vmem:[#allocation4 + $0xb0] sm:$0xff] }
 0x78a   :  { %11272 = vperm.xlu1 %15420, %v17964_v61   ;;  %v17973_v29 = vld [vmem:[#allocation4 + $0xa0] sm:$0xff] }
 0x78b   :  { %v17967_v37 = vld [vmem:[#allocation4 + $0xb8] sm:$0xff] }
 0x78c   :  { %11276 = vperm.xlu0 %15421, %v17967_v37   ;;  %v17976_v36 = vld [vmem:[#allocation4 + $0xa8] sm:$0xff] }
 0x78e   :  { %11264 = vperm.xlu1 %15420, %v17973_v29  }
 0x790   :  { %11268 = vperm.xlu0 %15421, %v17976_v36  }
 0x801   :  { %v11257_v15 = vpop.permute.xlu1 %11256 }
 0x802   :  { %v11313_v7 = vmul.f32 %v18014_v5, %v11257_v15 }
 0x803   :  { %v11261_v50 = vpop.permute.xlu0 %11260 }
 0x804   :  { %v11314_v20 = vmul.f32 %v18014_v5, %v11261_v50  ;;  %v11329_v42 = vadd.f32 %v11313_v7, %v11217_v55 }
 0x805   :  { %v14753_v3 = vpop.f32.mrb[60].mxu1  ;;  %v11249_v18 = vpop.permute.xlu1 %11248 }
 0x806   :  { %v10473_v46 = vadd.f32 %v14753_v3, %v17751_v1  ;;  %v11311_v0 = vmul.f32 %v18014_v5, %v11249_v18  ;;  %v10425_v53 = vpop.f32.mrb[61].mxu1  ;;  %v11330_v35 = vadd.f32 %v11314_v20, %v11218_v38  ;;  %v11222_v3 = vmul.f32 %v18011_v58, %v11181_v34 }
 0x807   :  { %v10471_v31 = vadd.f32 %v17751_v1, %v10425_v53  ;;  %v14754_v51 = vpop.f32.mrb[62].mxu1  ;;  %v11253_v22 = vpop.permute.xlu0 %11252 }
 0x808   :  { %v10481_v12 = vmax.f32 %v10473_v46, 0.0  ;;  %v10474_v14 = vadd.f32 %v14754_v51, %v17751_v1  ;;  %v11312_v2 = vmul.f32 %v18014_v5, %v11253_v22  ;;  %v10428_v19 = vpop.f32.mrb[63].mxu1  ;;  %v11327_v21 = vadd.f32 %v11311_v0, %v11215_v13 }
 0x809   :  { %v10479_v39 = vmax.f32 %v10471_v31, 0.0  ;;  %v10472_v54 = vadd.f32 %v17751_v1, %v10428_v19  ;;  %v11273_v56 = vpop.permute.xlu1 %11272  ;;  %v11344_v53 = vpack.c.bf16 %v11330_v35, %v11329_v42 }
 0x80a   :  { %v10482_v33 = vmax.f32 %v10474_v14, 0.0  ;;  %v11328_v45 = vadd.f32 %v11312_v2, %v11216_v4  ;;  %v10537_v41 = vmul.f32 %v10508_v62, %v10481_v12  ;;  %v11220_v62 = vmul.f32 %v18011_v58, %v11173_v25 }
 0x80b   :  { %v10480_v49 = vmax.f32 %v10472_v54, 0.0  ;;  %v11277_v32 = vpop.permute.xlu0 %11276  ;;  %v10535_v18 = vmul.f32 %v10498_v27, %v10479_v39  ;;  %v11317_v22 = vmul.f32 %v18014_v5, %v11273_v56 }
 0x80c   :  { %v10538_v15 = vmul.f32 %v10513_v43, %v10482_v33  ;;  %v11343_v50 = vpack.c.bf16 %v11328_v45, %v11327_v21  ;;  %v11318_v31 = vmul.f32 %v18014_v5, %v11277_v32  ;;  %v11219_v43 = vmul.f32 %v18011_v58, %v11169_v26 }
 0x80d   :  { %v10536_v46 = vmul.f32 %v17985_v59, %v10480_v49  ;;  %v14757_v47 = vpop.f32.mrb[64].mxu1  ;;  %v11265_v20 = vpop.permute.xlu1 %11264  ;;  %v11221_v26 = vmul.f32 %v18011_v58, %v17995_v8 }
 0x80e   :  { %v10544_v38 = vpack.c.bf16 %v10538_v15, %v10537_v41  ;;  %v10477_v0 = vadd.f32 %v14757_v47, %v17751_v1  ;;  %v11315_v13 = vmul.f32 %v18014_v5, %v11265_v20  ;;  %v10441_v7 = vpop.f32.mrb[65].mxu1  ;;  %14831 = vmatprep.subr.bf16.mxu1 %v11343_v50  ;;  %v11334_v55 = vadd.f32 %v11318_v31, %v11222_v3 }
 0x80f   :  { %v10543_v34 = vpack.c.bf16 %v10536_v46, %v10535_v18  ;;  %v10475_v27 = vadd.f32 %v17751_v1, %v10441_v7  ;;  %v14758_v59 = vpop.f32.mrb[66].mxu1  ;;  %v11269_v51 = vpop.permute.xlu0 %11268  ;;  %14832 = vmatpush3.bf16.msra.mxu1 %v11343_v50  ;;  %v11333_v21 = vadd.f32 %v11317_v22, %v11221_v26  ;;  %v18081_v26 = vld [vmem:[#allocation4 + $0x78] sm:$0xff] }
 0x810   :  { %v10485_v4 = vmax.f32 %v10477_v0, 0.0  ;;  %v10478_v12 = vadd.f32 %v14758_v59, %v17751_v1  ;;  %v11316_v14 = vmul.f32 %v18014_v5, %v11269_v51  ;;  %v10444_v2 = vpop.f32.mrb[67].mxu1  ;;  %14833 = vmatprep.subr.bf16.mxu1 %v11344_v53  ;;  %v11331_v35 = vadd.f32 %v11315_v13, %v11219_v43 }
 0x811   :  { %v10483_v19 = vmax.f32 %v10475_v27, 0.0  ;;  %v10476_v25 = vadd.f32 %v17751_v1, %v10444_v2  ;;  %14767 = vmatprep.mubr.msk.bf16.mxu0 %vm67_vm3, %v10543_v34  ;;  %v11346_v32 = vpack.c.bf16 %v11334_v55, %v11333_v21  ;;  %v18078_v2 = vld [vmem:[#allocation4 + $0x70] sm:$0xff] }
 0x812   :  { %v10486_v39 = vmax.f32 %v10478_v12, 0.0  ;;  %v11332_v54 = vadd.f32 %v11316_v14, %v11220_v62  ;;  %14768 = vmatmul.mubr.msk.bf16.vlgmr.msra.gmra.mrb[52].mxu0 %vm67_vm3, %v10544_v38  ;;  %v10541_v33 = vmul.f32 %v17993_v60, %v10485_v4  ;;  %v15714_v21 = vld [vmem:[#allocation4 + $0x10] sm:$0xff] }
 0x813   :  { %v10484_v56 = vmax.f32 %v10476_v25, 0.0  ;;  %14834 = vmatpush3.bf16.msra.mxu1 %v11344_v53  ;;  %v10539_v8 = vmul.f32 %v17989_v52, %v10483_v19 }
 0x814   :  { %v10542_v45 = vmul.f32 %v17991_v44, %v10486_v39  ;;  %v11345_v42 = vpack.c.bf16 %v11332_v54, %v11331_v35  ;;  %v15753_v39 = vmov 1   ;;  %v15712_v54 = vld [vmem:[#allocation4] sm:$0xff] }
 0x815   :  { %v10540_v1 = vmul.f32 %v17987_v23, %v10484_v56  ;;  %v15713_v56 = vld [vmem:[#allocation4 + $0x8] sm:$0xff] }
 0x816   :  { %v10546_v49 = vpack.c.bf16 %v10542_v45, %v10541_v33  ;;  %14835 = vmatprep.subr.bf16.mxu1 %v11345_v42  ;;  %v15684_v33 = vld [vmem:[%s18512_s13] sm:$0xff]   ;;  %v15715_v45 = vld [vmem:[#allocation4 + $0x18] sm:$0xff] }
 0x817   :  { %v10545_v41 = vpack.c.bf16 %v10540_v1, %v10539_v8  ;;  %14836 = vmatpush3.bf16.msra.mxu1 %v11345_v42  ;;  %14847 = vmatprep.mubr.bf16.mxu1 %v15684_v33  ;;  %v15716_v42 = vld [vmem:[#allocation4 + $0x20] sm:$0xff]  ;;  %v15717_v8 = vld [vmem:[#allocation4 + $0x28] sm:$0xff]  ;;  %v15718_v1 = vld [vmem:[#allocation4 + $0x30] sm:$0xff] }
 0x818   :  { %14837 = vmatprep.subr.bf16.mxu1 %v11346_v32 }
 0x819   :  { %14771 = vmatprep.mubr.msk.bf16.mxu0 %vm67_vm3, %v10545_v41  ;;  %v15721_v41 = vld [vmem:[#allocation4 + $0x48] sm:$0xff] }
 0x81a   :  { %14772 = vmatmul.mubr.msk.bf16.gmra.mrb[56].mxu0 %vm67_vm3, %v10546_v49  ;;  %v15719_v49 = vld [vmem:[#allocation4 + $0x38] sm:$0xff] }
 0x81b   :  { %14838 = vmatpush3.bf16.msra.mxu1 %v11346_v32  ;;  %v15720_v32 = vld [vmem:[#allocation4 + $0x40] sm:$0xff] }
 0x8e5   :  { %v14769_v15 = vpop.f32.mrb[52].mxu0 }
 0x8e6   :  { %v10641_v60 = vadd.f32 %v14769_v15, %v17931_v48  ;;  %v10632_v44 = vpop.f32.mrb[53].mxu0  ;;  %v18110_v15 = vld [vmem:[#allocation4 + $0x50] sm:$0xff] }
 0x8e7   :  { %v10633_v50 = vadd.f32 %v17931_v48, %v10632_v44  ;;  %v14770_v52 = vpop.f32.mrb[54].mxu0  ;;  %v18115_v44 = vld [vmem:[#allocation4 + $0x60] sm:$0xff] }
 0x8e8   :  { %v10665_v3 = vmax.f32 %v10641_v60, 0.0  ;;  %v10644_v23 = vadd.f32 %v14770_v52, %v17931_v48  ;;  %v10635_v18 = vpop.f32.mrb[55].mxu0  ;;  %v15723_v60 = vld [vmem:[#allocation4 + $0x58] sm:$0xff]  ;;  %v18538_v52 = vmov 0  }
 0x8e9   :  { %v10663_v46 = vmax.f32 %v10633_v50, 0.0  ;;  %v10636_v47 = vadd.f32 %v17931_v48, %v10635_v18  ;;  %v18120_v50 = vld [vmem:[#allocation4 + $0x68] sm:$0xff] }
 0x8ea   :  { %10673 = vst.msk [vmem:[#allocation4 + $0xd0] sm:$0xff] %vm6590_vm4, %v10665_v3  ;;  %v10666_v20 = vmax.f32 %v10644_v23, 0.0  ;;  %v11695_v3 = vld [vmem:[%s18513_s14 + $0x8] sm:$0xff] }
 0x8eb   :  { %10671 = vst.msk [vmem:[#allocation4 + $0xc0] sm:$0xff] %vm6590_vm4, %v10663_v46  ;;  %v10664_v53 = vmax.f32 %v10636_v47, 0.0  ;;  %v11223_v46 = vmul.f32 %v18011_v58, %v18001_v28  ;;  %v11224_v47 = vmul.f32 %v18011_v58, %v18003_v57  ;;  %v11225_v28 = vmul.f32 %v18011_v58, %v17997_v63  ;;  %v11701_v63 = vld [vmem:[%s18513_s14 + $0x38] sm:$0xff] }
 0x8ec   :  { %10674 = vst.msk [vmem:[#allocation4 + $0xd8] sm:$0xff] %vm6590_vm4, %v10666_v20 }
 0x8ed   :  { %10672 = vst.msk [vmem:[#allocation4 + $0xc8] sm:$0xff] %vm6590_vm4, %v10664_v53  ;;  %v14773_v38 = vpop.f32.mrb[56].mxu0  ;;  %v11226_v53 = vmul.f32 %v18011_v58, %v17999_v6 }
 0x8ee   :  { %v10657_v31 = vadd.f32 %v14773_v38, %v17931_v48  ;;  %v10648_v0 = vpop.f32.mrb[57].mxu0 }
 0x8ef   :  { %v10649_v13 = vadd.f32 %v17931_v48, %v10648_v0  ;;  %v14774_v7 = vpop.f32.mrb[58].mxu0 }
 0x8f0   :  { %v10669_v43 = vmax.f32 %v10657_v31, 0.0  ;;  %v10660_v62 = vadd.f32 %v14774_v7, %v17931_v48  ;;  %v10651_v34 = vpop.f32.mrb[59].mxu0 }
 0x8f1   :  { %v10667_v27 = vmax.f32 %v10649_v13, 0.0  ;;  %v10652_v59 = vadd.f32 %v17931_v48, %v10651_v34  ;;  %v18062_v51 = vld [vmem:[#allocation4 + $0xd0] sm:$0xff] }
 0x8f2   :  { %10677 = vst.msk [vmem:[#allocation4 + $0xf0] sm:$0xff] %vm6590_vm4, %v10669_v43  ;;  %v10670_v22 = vmax.f32 %v10660_v62, 0.0  ;;  %11288 = vperm.xlu1 %15420, %v18062_v51   ;;  %v18072_v14 = vld [vmem:[#allocation4 + $0xc0] sm:$0xff] }
 0x8f3   :  { %10675 = vst.msk [vmem:[#allocation4 + $0xe0] sm:$0xff] %vm6590_vm4, %v10667_v27  ;;  %v10668_v4 = vmax.f32 %v10652_v59, 0.0  ;;  %v18067_v12 = vld [vmem:[#allocation4 + $0xd8] sm:$0xff]  ;;  %v11698_v43 = vld [vmem:[%s18513_s14 + $0x20] sm:$0xff] }
 0x8f4   :  { %10678 = vst.msk [vmem:[#allocation4 + $0xf8] sm:$0xff] %vm6590_vm4, %v10670_v22  ;;  %11292 = vperm.xlu0 %15421, %v18067_v12   ;;  %v18075_v48 = vld [vmem:[#allocation4 + $0xc8] sm:$0xff] }
 0x8f5   :  { %10676 = vst.msk [vmem:[#allocation4 + $0xe8] sm:$0xff] %vm6590_vm4, %v10668_v4  ;;  %v11227_v4 = vmul.f32 %v18011_v58, %v18006_v30 }
 0x8f6   :  { %11280 = vperm.xlu1 %15420, %v18072_v14  }
 0x8f8   :  { %11284 = vperm.xlu0 %15421, %v18075_v48  }
 0x8f9   :  { %v18090_v55 = vld [vmem:[#allocation4 + $0xf0] sm:$0xff] }
 0x8fa   :  { %11208 = vperm.xlu1 %15420, %v18078_v2   ;;  %v18084_v19 = vld [vmem:[#allocation4 + $0xe0] sm:$0xff] }
 0x8fb   :  { %v18093_v35 = vld [vmem:[#allocation4 + $0xf8] sm:$0xff] }
 0x8fc   :  { %11212 = vperm.xlu0 %15421, %v18081_v26   ;;  %v18087_v25 = vld [vmem:[#allocation4 + $0xe8] sm:$0xff] }
 0x8fe   :  { %11296 = vperm.xlu1 %15420, %v18084_v19  }
 0x900   :  { %11300 = vperm.xlu0 %15421, %v18087_v25  }
 0x902   :  { %11304 = vperm.xlu1 %15420, %v18090_v55  }
 0x904   :  { %11308 = vperm.xlu0 %15421, %v18093_v35  }
 0x906   :  { %15422 = vset.pattern.permute.xlu1 %v15753_v39 }
 0x907   :  { %10952 = vperm.xlu1 %15422, %v15712_v54  }
 0x908   :  { %15423 = vset.pattern.permute.xlu0 %v15753_v39 }
 0x909   :  { %10956 = vperm.xlu0 %15423, %v15713_v56  }
 0x90b   :  { %11048 = vperm.xlu1 %15422, %v17958_v17  }
 0x90d   :  { %10960 = vperm.xlu0 %15423, %v15714_v21  }
 0x90f   :  { %11052 = vperm.xlu1 %15422, %v17961_v24  }
 0x911   :  { %11056 = vperm.xlu0 %15423, %v17945_v16  }
 0x913   :  { %10964 = vperm.xlu1 %15422, %v15715_v45  }
 0x915   :  { %10968 = vperm.xlu0 %15423, %v15716_v42  }
 0x917   :  { %11060 = vperm.xlu1 %15422, %v17950_v40  }
 0x919   :  { %11064 = vperm.xlu0 %15423, %v17973_v29  }
 0x91b   :  { %10972 = vperm.xlu1 %15422, %v15717_v8  }
 0x91d   :  { %10976 = vperm.xlu0 %15423, %v15718_v1  }
 0x91f   :  { %11068 = vperm.xlu1 %15422, %v17976_v36  }
 0x921   :  { %11072 = vperm.xlu0 %15423, %v17964_v61  }
 0x923   :  { %10980 = vperm.xlu1 %15422, %v15719_v49  }
 0x925   :  { %10984 = vperm.xlu0 %15423, %v15720_v32  }
 0x927   :  { %11076 = vperm.xlu1 %15422, %v17967_v37  }
 0x929   :  { %11080 = vperm.xlu0 %15423, %v18072_v14  }
 0x92b   :  { %10988 = vperm.xlu1 %15422, %v15721_v41  }
 0x92d   :  { %10992 = vperm.xlu0 %15423, %v18110_v15  }
 0x92f   :  { %11084 = vperm.xlu1 %15422, %v18075_v48  }
 0x931   :  { %11088 = vperm.xlu0 %15423, %v18062_v51  }
 0x933   :  { %10996 = vperm.xlu1 %15422, %v15723_v60  }
 0x935   :  { %11000 = vperm.xlu0 %15423, %v18115_v44  }
 0x937   :  { %11092 = vperm.xlu1 %15422, %v18067_v12  }
 0x939   :  { %11096 = vperm.xlu0 %15423, %v18084_v19  }
 0x93b   :  { %11004 = vperm.xlu1 %15422, %v18120_v50  }
 0x93d   :  { %11008 = vperm.xlu0 %15423, %v18078_v2  }
 0x93f   :  { %11012 = vperm.xlu1 %15422, %v18081_v26  }
 0x941   :  { %11104 = vperm.xlu0 %15423, %v18090_v55  }
 0x943   :  { %11108 = vperm.xlu1 %15422, %v18093_v35  }
 0x945   :  { %15424 = vset.pattern.permute.xlu0 %v18538_v52 }
 0x946   :  { %10718 = vperm.xlu0 %15424, %v15712_v54  }
 0x947   :  { %15425 = vset.pattern.permute.xlu1 %v18538_v52 }
 0x948   :  { %10723 = vperm.xlu1 %15425, %v15713_v56  }
 0x94a   :  { %10838 = vperm.xlu0 %15424, %v17961_v24  }
 0x94c   :  { %10833 = vperm.xlu1 %15425, %v17958_v17   ;;  %v11694_v17 = vld [vmem:[%s18513_s14] sm:$0xff] }
 0x94e   :  { %10733 = vperm.xlu0 %15424, %v15715_v45  }
 0x950   :  { %10728 = vperm.xlu1 %15425, %v15714_v21  }
 0x952   :  { %10848 = vperm.xlu0 %15424, %v17950_v40   ;;  %v11696_v40 = vld [vmem:[%s18513_s14 + $0x10] sm:$0xff] }
 0x954   :  { %10843 = vperm.xlu1 %15425, %v17945_v16   ;;  %v11697_v16 = vld [vmem:[%s18513_s14 + $0x18] sm:$0xff] }
 0x956   :  { %10743 = vperm.xlu0 %15424, %v15717_v8  }
 0x958   :  { %10738 = vperm.xlu1 %15425, %v15716_v42  }
 0x95a   :  { %10858 = vperm.xlu0 %15424, %v17976_v36  }
 0x95c   :  { %10853 = vperm.xlu1 %15425, %v17973_v29  }
 0x95e   :  { %11717 = vperm.xlu0 %15424, %v11695_v3   ;;  %v15686_v3 = vld [vmem:[%s18512_s13 + $0x10] sm:$0xff]  }
 0x960   :  { %11712 = vperm.xlu1 %15425, %v11694_v17  }
 0x962   :  { %10753 = vperm.xlu0 %15424, %v15719_v49   ;;  %v11703_v49 = vld [vmem:[%s18513_s14 + $0x48] sm:$0xff] }
 0x964   :  { %10748 = vperm.xlu1 %15425, %v15718_v1  }
 0x966   :  { %10868 = vperm.xlu0 %15424, %v17967_v37   ;;  %v11699_v37 = vld [vmem:[%s18513_s14 + $0x28] sm:$0xff] }
 0x968   :  { %10863 = vperm.xlu1 %15425, %v17964_v61  }
 0x96a   :  { %11727 = vperm.xlu0 %15424, %v11697_v16  }
 0x96c   :  { %11722 = vperm.xlu1 %15425, %v11696_v40  }
 0x96e   :  { %10763 = vperm.xlu0 %15424, %v15721_v41  }
 0x970   :  { %10758 = vperm.xlu1 %15425, %v15720_v32   ;;  %v11700_v32 = vld [vmem:[%s18513_s14 + $0x30] sm:$0xff] }
 0x971   :  { %v11289_v24 = vpop.permute.xlu1 %11288 }
 0x972   :  { %10878 = vperm.xlu0 %15424, %v18075_v48   ;;  %v11321_v38 = vmul.f32 %v18014_v5, %v11289_v24 }
 0x973   :  { %v11293_v29 = vpop.permute.xlu0 %11292 }
 0x974   :  { %10873 = vperm.xlu1 %15425, %v18072_v14   ;;  %v11322_v23 = vmul.f32 %v18014_v5, %v11293_v29  ;;  %v11337_v34 = vadd.f32 %v11321_v38, %v11225_v28  ;;  %v11228_v14 = vmul.f32 %v18011_v58, %v18008_v10 }
 0x975   :  { %v11281_v36 = vpop.permute.xlu1 %11280 }
 0x976   :  { %v11319_v61 = vmul.f32 %v18014_v5, %v11281_v36  ;;  %11737 = vperm.xlu0 %15424, %v11699_v37   ;;  %v11338_v7 = vadd.f32 %v11322_v23, %v11226_v53 }
 0x977   :  { %v11285_v18 = vpop.permute.xlu0 %11284 }
 0x978   :  { %v11320_v20 = vmul.f32 %v18014_v5, %v11285_v18  ;;  %15426 = vset.pattern.permute.xlu1 %v15753_v39  ;;  %v11335_v0 = vadd.f32 %v11319_v61, %v11223_v46  ;;  %v11348_v22 = vpack.c.bf16 %v11338_v7, %v11337_v34  ;;  %v15687_v18 = vld [vmem:[%s18512_s13 + $0x18] sm:$0xff]   ;;  %v15690_v34 = vld [vmem:[%s18512_s13 + $0x30] sm:$0xff]  }
 0x979   :  { %11100 = vperm.xlu1 %15426, %v18087_v25   ;;  %v11209_v31 = vpop.permute.xlu1 %11208 }
 0x97a   :  { %v11336_v13 = vadd.f32 %v11320_v20, %v11224_v47  ;;  %10773 = vperm.xlu0 %15424, %v15723_v60   ;;  %v11229_v33 = vmul.f32 %v18011_v58, %v11209_v31  ;;  %v15692_v60 = vld [vmem:[%s18510_s11] sm:$0xff]   ;;  %v11705_v31 = vld [vmem:[%s18513_s14 + $0x58] sm:$0xff] }
 0x97b   :  { %v11213_v57 = vpop.permute.xlu0 %11212  ;;  %14791 = vmatprep.mubr.bf16.mxu0 %v15692_v60  ;;  %v15688_v47 = vld [vmem:[%s18512_s13 + $0x20] sm:$0xff]  }
 0x97c   :  { %v11347_v62 = vpack.c.bf16 %v11336_v13, %v11335_v0  ;;  %v11230_v30 = vmul.f32 %v18011_v58, %v11213_v57  ;;  %v11707_v57 = vld [vmem:[%s18513_s14 + $0x68] sm:$0xff] }
 0x97d   :  { %15427 = vset.pattern.permute.xlu1 %v18538_v52  ;;  %v11297_v6 = vpop.permute.xlu1 %11296 }
 0x97e   :  { %v11323_v27 = vmul.f32 %v18014_v5, %v11297_v6  ;;  %10888 = vperm.xlu0 %15424, %v18067_v12   ;;  %11732 = vperm.xlu1 %15427, %v11698_v43   ;;  %v15689_v43 = vld [vmem:[%s18512_s13 + $0x28] sm:$0xff]  }
 0x97f   :  { %14839 = vmatprep.subr.bf16.mxu1 %v11347_v62  ;;  %v11301_v59 = vpop.permute.xlu0 %11300 }
 0x980   :  { %v11324_v48 = vmul.f32 %v18014_v5, %v11301_v59  ;;  %14840 = vmatpush3.bf16.msra.mxu1 %v11347_v62  ;;  %v11339_v12 = vadd.f32 %v11323_v27, %v11227_v4  ;;  %v11704_v4 = vld [vmem:[%s18513_s14 + $0x50] sm:$0xff] }
 0x981   :  { %14841 = vmatprep.subr.bf16.mxu1 %v11348_v22  ;;  %v11305_v39 = vpop.permute.xlu1 %11304 }
 0x982   :  { %v11340_v54 = vadd.f32 %v11324_v48, %v11228_v14  ;;  %v11325_v56 = vmul.f32 %v18014_v5, %v11305_v39  ;;  %11747 = vperm.xlu0 %15424, %v11701_v63   ;;  %10768 = vperm.xlu1 %15427, %v18110_v15   ;;  %v11709_v63 = vld [vmem:[%s18513_s14 + $0x78] sm:$0xff] }
 0x983   :  { %v11309_v21 = vpop.permute.xlu0 %11308 }
 0x984   :  { %v11326_v45 = vmul.f32 %v18014_v5, %v11309_v21  ;;  %14842 = vmatpush3.bf16.msra.mxu1 %v11348_v22  ;;  %v11349_v10 = vpack.c.bf16 %v11340_v54, %v11339_v12  ;;  %v11341_v42 = vadd.f32 %v11325_v56, %v11229_v33  ;;  %v11601_v54 = vld [vmem:[%s18511_s12] sm:$0xff]  ;;  %v15691_v56 = vld [vmem:[%s18512_s13 + $0x38] sm:$0xff]  }
 0x985   :  { %v11706_v33 = vld [vmem:[%s18513_s14 + $0x60] sm:$0xff] }
 0x986   :  { %v11342_v8 = vadd.f32 %v11326_v45, %v11230_v30  ;;  %10783 = vperm.xlu0 %15424, %v18120_v50   ;;  %10883 = vperm.xlu1 %15427, %v18062_v51   ;;  %v10953_v1 = vpop.permute.xlu1 %10952  ;;  %v15685_v50 = vld [vmem:[%s18512_s13 + $0x8] sm:$0xff]  }
 0x987   :  { %14843 = vmatprep.subr.bf16.mxu1 %v11349_v10  ;;  %v11015_v40 = vmul.f32 %v18011_v58, %v10953_v1  ;;  %v11603_v1 = vld [vmem:[%s18511_s12 + $0x10] sm:$0xff] }
 0x988   :  { %14844 = vmatpush3.bf16.msra.mxu1 %v11349_v10  ;;  %v10957_v41 = vpop.permute.xlu0 %10956  ;;  %v11350_v15 = vpack.c.bf16 %v11342_v8, %v11341_v42 }
 0x989   :  { %v11016_v24 = vmul.f32 %v18011_v58, %v10957_v41 }
 0x98a   :  { %11757 = vperm.xlu0 %15424, %v11703_v49   ;;  %11742 = vperm.xlu1 %15427, %v11700_v32   ;;  %v11049_v51 = vpop.permute.xlu1 %11048  ;;  %v11708_v32 = vld [vmem:[%s18513_s14 + $0x70] sm:$0xff] }
 0x98b   :  { %14845 = vmatprep.subr.bf16.mxu1 %v11350_v15  ;;  %v11111_v17 = vmul.f32 %v18014_v5, %v11049_v51 }
 0x98c   :  { %14846 = vmatpush3.bf16.msra.mxu1 %v11350_v15  ;;  %v10961_v52 = vpop.permute.xlu0 %10960 }
 0x98d   :  { %14863 = vmatprep.subr.bf16.mxu1 %v18537_v9  ;;  %v11127_v36 = vadd.f32 %v11111_v17, %v11015_v40 }
 0x98e   :  { %10793 = vperm.xlu0 %15424, %v18081_v26   ;;  %10778 = vperm.xlu1 %15427, %v18115_v44   ;;  %v11053_v16 = vpop.permute.xlu1 %11052  ;;  %v11702_v44 = vld [vmem:[%s18513_s14 + $0x40] sm:$0xff] }
 0x98f   :  { %14848 = vmatmul.mubr.bf16.vlgmr.msra.gmra.mrb[68].mxu1 %v15685_v50  ;;  %v11112_v29 = vmul.f32 %v18014_v5, %v11053_v16  ;;  %v11605_v50 = vld [vmem:[%s18511_s12 + $0x20] sm:$0xff] }
 0x990   :  { %v11057_v37 = vpop.permute.xlu0 %11056  ;;  %14851 = vmatprep.mubr.bf16.mxu1 %v15686_v3  ;;  %v11960_v3 = vld [vmem:[#allocation5] sm:$0x1] }
 0x991   :  { %v11128_v61 = vadd.f32 %v11112_v29, %v11016_v24  ;;  %v11113_v20 = vmul.f32 %v18014_v5, %v11057_v37  ;;  %v11607_v37 = vld [vmem:[%s18511_s12 + $0x30] sm:$0xff] }
 0x992   :  { %10898 = vperm.xlu0 %15424, %v18087_v25   ;;  %10893 = vperm.xlu1 %15427, %v18084_v19   ;;  %v10965_v23 = vpop.permute.xlu1 %10964  ;;  %v11017_v25 = vmul.f32 %v18011_v58, %v10961_v52 }
 0x993   :  { %v11143_v26 = vpack.c.bf16 %v11128_v61, %v11127_v36  ;;  %v11018_v53 = vmul.f32 %v18011_v58, %v10965_v23  ;;  %v11602_v61 = vld [vmem:[%s18511_s12 + $0x8] sm:$0xff] }
 0x994   :  { %v10969_v46 = vpop.permute.xlu0 %10968  ;;  %v11129_v13 = vadd.f32 %v11113_v20, %v11017_v25  ;;  %v11604_v20 = vld [vmem:[%s18511_s12 + $0x18] sm:$0xff] }
 0x995   :  { %14775 = vmatprep.subr.bf16.mxu0 %v11143_v26  ;;  %v11019_v27 = vmul.f32 %v18011_v58, %v10969_v46  ;;  %v11609_v46 = vld [vmem:[%s18511_s12 + $0x40] sm:$0xff] }
 0x996   :  { %10908 = vperm.xlu0 %15424, %v18093_v35   ;;  %11752 = vperm.xlu1 %15427, %v11702_v44   ;;  %v11061_v19 = vpop.permute.xlu1 %11060 }
 0x997   :  { %14776 = vmatpush3.bf16.msra.mxu0 %v11143_v26  ;;  %14852 = vmatmul.mubr.bf16.gmra.mrb[72].mxu1 %v15687_v18  ;;  %v11114_v38 = vmul.f32 %v18014_v5, %v11061_v19 }
 0x998   :  { %v11065_v0 = vpop.permute.xlu0 %11064  ;;  %14855 = vmatprep.mubr.bf16.mxu1 %v15688_v47 }
 0x999   :  { %v11130_v28 = vadd.f32 %v11114_v38, %v11018_v53  ;;  %v11115_v6 = vmul.f32 %v18014_v5, %v11065_v0  ;;  %v11611_v0 = vld [vmem:[%s18511_s12 + $0x50] sm:$0x3] }
 0x99a   :  { %11767 = vperm.xlu0 %15424, %v11705_v31   ;;  %10788 = vperm.xlu1 %15427, %v18078_v2   ;;  %v10973_v35 = vpop.permute.xlu1 %10972 }
 0x99b   :  { %v11144_v7 = vpack.c.bf16 %v11130_v28, %v11129_v13  ;;  %v11020_v59 = vmul.f32 %v18011_v58, %v10973_v35  ;;  %v11606_v28 = vld [vmem:[%s18511_s12 + $0x28] sm:$0xff] }
 0x99c   :  { %v10977_v62 = vpop.permute.xlu0 %10976 }
 0x99d   :  { %14777 = vmatprep.subr.bf16.mxu0 %v11144_v7  ;;  %v11021_v10 = vmul.f32 %v18011_v58, %v10977_v62 }
 0x99e   :  { %11777 = vperm.xlu0 %15424, %v11707_v57   ;;  %10903 = vperm.xlu1 %15427, %v18090_v55   ;;  %v11069_v2 = vpop.permute.xlu1 %11068  ;;  %v11131_v55 = vadd.f32 %v11115_v6, %v11019_v27  ;;  %v11610_v27 = vld [vmem:[%s18511_s12 + $0x48] sm:$0xff] }
 0x99f   :  { %14778 = vmatpush3.bf16.msra.mxu0 %v11144_v7  ;;  %14856 = vmatmul.mubr.bf16.gmra.mrb[76].mxu1 %v15689_v43  ;;  %v11116_v22 = vmul.f32 %v18014_v5, %v11069_v2 }
 0x9a0   :  { %v11073_v14 = vpop.permute.xlu0 %11072  ;;  %14859 = vmatprep.mubr.bf16.mxu1 %v15690_v34  ;;  %v11608_v34 = vld [vmem:[%s18511_s12 + $0x38] sm:$0xff] }
 0x9a1   :  { %v11132_v48 = vadd.f32 %v11116_v22, %v11020_v59  ;;  %v11117_v30 = vmul.f32 %v18014_v5, %v11073_v14 }
 0x9a2   :  { %11787 = vperm.xlu0 %15424, %v11709_v63   ;;  %v10981_v39 = vpop.permute.xlu1 %10980  ;;  %11762 = vperm.xlu1 %15427, %v11704_v4  }
 0x9a3   :  { %v11145_v12 = vpack.c.bf16 %v11132_v48, %v11131_v55  ;;  %v11022_v42 = vmul.f32 %v18011_v58, %v10981_v39  ;;  %v11133_v41 = vadd.f32 %v11117_v30, %v11021_v10 }
 0x9a4   :  { %v10985_v21 = vpop.permute.xlu0 %10984 }
 0x9a5   :  { %14779 = vmatprep.subr.bf16.mxu0 %v11145_v12  ;;  %v11023_v40 = vmul.f32 %v18011_v58, %v10985_v21 }
 0x9a6   :  { %11614 = vperm.xlu0 %15424, %v11601_v54   ;;  %14780 = vmatpush3.bf16.msra.mxu0 %v11145_v12  ;;  %v11077_v45 = vpop.permute.xlu1 %11076 }
 0x9a7   :  { %14860 = vmatmul.mubr.bf16.gmra.mrb[80].mxu1 %v15691_v56  ;;  %v11118_v8 = vmul.f32 %v18014_v5, %v11077_v45  ;;  %11772 = vperm.xlu1 %15427, %v11706_v33  }
 0x9a8   :  { %v11081_v49 = vpop.permute.xlu0 %11080  ;;  %14879 = vmatprep.mubr.msk.bf16.mxu1 %vm15754_vm7, %v18537_v9 }
 0x9a9   :  { %v11134_v15 = vadd.f32 %v11118_v8, %v11022_v42  ;;  %v11119_v17 = vmul.f32 %v18014_v5, %v11081_v49 }
 0x9aa   :  { %11624 = vperm.xlu0 %15424, %v11603_v1   ;;  %v10989_v60 = vpop.permute.xlu1 %10988 }
 0x9ab   :  { %v11146_v51 = vpack.c.bf16 %v11134_v15, %v11133_v41  ;;  %11782 = vperm.xlu1 %15427, %v11708_v32   ;;  %v11024_v24 = vmul.f32 %v18011_v58, %v10989_v60  ;;  %v11135_v23 = vadd.f32 %v11119_v17, %v11023_v40 }
 0x9ac   :  { %v10993_v52 = vpop.permute.xlu0 %10992 }
 0x9ad   :  { %14781 = vmatprep.subr.bf16.mxu0 %v11146_v51  ;;  %v11025_v53 = vmul.f32 %v18011_v58, %v10993_v52 }
 0x9ae   :  { %11634 = vperm.xlu0 %15424, %v11605_v50   ;;  %14782 = vmatpush3.bf16.msra.mxu0 %v11146_v51  ;;  %v11085_v16 = vpop.permute.xlu1 %11084 }
 0x9af   :  { %v11120_v29 = vmul.f32 %v18014_v5, %v11085_v16  ;;  %11963 = vperm.xlu1 %15427, %v11960_v3  }
 0x9b0   :  { %v11089_v36 = vpop.permute.xlu0 %11088 }
 0x9b1   :  { %v11136_v26 = vadd.f32 %v11120_v29, %v11024_v24  ;;  %v11121_v19 = vmul.f32 %v18014_v5, %v11089_v36 }
 0x9b2   :  { %11644 = vperm.xlu0 %15424, %v11607_v37   ;;  %v10997_v44 = vpop.permute.xlu1 %10996 }
 0x9b3   :  { %v11147_v18 = vpack.c.bf16 %v11136_v26, %v11135_v23  ;;  %11619 = vperm.xlu1 %15427, %v11602_v61   ;;  %v11026_v38 = vmul.f32 %v18011_v58, %v10997_v44  ;;  %v11137_v35 = vadd.f32 %v11121_v19, %v11025_v53 }
 0x9b4   :  { %v11001_v47 = vpop.permute.xlu0 %11000 }
 0x9b5   :  { %14783 = vmatprep.subr.bf16.mxu0 %v11147_v18  ;;  %v11027_v17 = vmul.f32 %v18011_v58, %v11001_v47 }
 0x9b6   :  { %11654 = vperm.xlu0 %15424, %v11609_v46   ;;  %14784 = vmatpush3.bf16.msra.mxu0 %v11147_v18  ;;  %v11093_v25 = vpop.permute.xlu1 %11092 }
 0x9b7   :  { %v11122_v31 = vmul.f32 %v18014_v5, %v11093_v25  ;;  %11629 = vperm.xlu1 %15427, %v11604_v20  }
 0x9b8   :  { %v11097_v13 = vpop.permute.xlu0 %11096 }
 0x9b9   :  { %v11138_v7 = vadd.f32 %v11122_v31, %v11026_v38  ;;  %v11123_v52 = vmul.f32 %v18014_v5, %v11097_v13 }
 0x9ba   :  { %11664 = vperm.xlu0 %15424, %v11611_v0   ;;  %v11005_v57 = vpop.permute.xlu1 %11004 }
 0x9bb   :  { %v11148_v43 = vpack.c.bf16 %v11138_v7, %v11137_v35  ;;  %11639 = vperm.xlu1 %15427, %v11606_v28   ;;  %v11028_v40 = vmul.f32 %v18011_v58, %v11005_v57  ;;  %v11139_v61 = vadd.f32 %v11123_v52, %v11027_v17 }
 0x9bc   :  { %v11009_v62 = vpop.permute.xlu0 %11008 }
 0x9bd   :  { %14785 = vmatprep.subr.bf16.mxu0 %v11148_v43  ;;  %v11029_v23 = vmul.f32 %v18011_v58, %v11009_v62 }
 0x9be   :  { %14786 = vmatpush3.bf16.msra.mxu0 %v11148_v43  ;;  %v11013_v6 = vpop.permute.xlu1 %11012 }
 0x9bf   :  { %11649 = vperm.xlu1 %15427, %v11608_v34   ;;  %v11030_v24 = vmul.f32 %v18011_v58, %v11013_v6 }
 0x9c0   :  { %v11105_v2 = vpop.permute.xlu0 %11104 }
 0x9c1   :  { %v11125_v29 = vmul.f32 %v18014_v5, %v11105_v2 }
 0x9c2   :  { %v11109_v59 = vpop.permute.xlu1 %11108 }
 0x9c3   :  { %11659 = vperm.xlu1 %15427, %v11610_v27   ;;  %v11126_v3 = vmul.f32 %v18014_v5, %v11109_v59  ;;  %v11141_v46 = vadd.f32 %v11125_v29, %v11029_v23  ;;  %v15693_v27 = vld [vmem:[%s18510_s11 + $0x8] sm:$0xff]   ;;  %v15694_v59 = vld [vmem:[%s18510_s11 + $0x10] sm:$0xff]  }
 0x9c5   :  { %v10719_v22 = vpop.permute.xlu0 %10718  ;;  %v11142_v26 = vadd.f32 %v11126_v3, %v11030_v24 }
 0x9c6   :  { %v10796_v47 = vmul.f32 %v18011_v58, %v10719_v22 }
 0x9c7   :  { %v10724_v63 = vpop.permute.xlu1 %10723  ;;  %v11150_v13 = vpack.c.bf16 %v11142_v26, %v11141_v46 }
 0x9c8   :  { %v10797_v38 = vmul.f32 %v18011_v58, %v10724_v63 }
 0x9c9   :  { %v10839_v4 = vpop.permute.xlu0 %10838 }
 0x9ca   :  { %v10912_v20 = vmul.f32 %v18014_v5, %v10839_v4 }
 0x9cb   :  { %v10834_v14 = vpop.permute.xlu1 %10833 }
 0x9cc   :  { %v10911_v44 = vmul.f32 %v18014_v5, %v10834_v14  ;;  %v10928_v28 = vadd.f32 %v10912_v20, %v10797_v38 }
 0x9cd   :  { %v10734_v55 = vpop.permute.xlu0 %10733 }
 0x9ce   :  { %v10927_v31 = vadd.f32 %v10911_v44, %v10796_v47  ;;  %v10799_v62 = vmul.f32 %v18011_v58, %v10734_v55 }
 0x9cf   :  { %v10729_v48 = vpop.permute.xlu1 %10728 }
 0x9d0   :  { %v10798_v35 = vmul.f32 %v18011_v58, %v10729_v48  ;;  %v10943_v2 = vpack.c.bf16 %v10928_v28, %v10927_v31 }
 0x9d1   :  { %v10849_v39 = vpop.permute.xlu0 %10848 }
 0x9d2   :  { %v10914_v7 = vmul.f32 %v18014_v5, %v10849_v39 }
 0x9d3   :  { %v10844_v12 = vpop.permute.xlu1 %10843 }
 0x9d4   :  { %v10913_v0 = vmul.f32 %v18014_v5, %v10844_v12  ;;  %v10930_v22 = vadd.f32 %v10914_v7, %v10799_v62 }
 0x9d5   :  { %v10744_v54 = vpop.permute.xlu0 %10743 }
 0x9d6   :  { %v10929_v34 = vadd.f32 %v10913_v0, %v10798_v35  ;;  %v10801_v48 = vmul.f32 %v18011_v58, %v10744_v54  ;;  %v15697_v0 = vld [vmem:[%s18510_s11 + $0x28] ss:$0 sps:$4 sm:$0x11]  }
 0x9d7   :  { %v10739_v56 = vpop.permute.xlu1 %10738 }
 0x9d8   :  { %v10800_v63 = vmul.f32 %v18011_v58, %v10739_v56 }
 0x9d9   :  { %v10859_v21 = vpop.permute.xlu0 %10858 }
 0x9da   :  { %v10916_v4 = vmul.f32 %v18014_v5, %v10859_v21 }
 0x9db   :  { %v10854_v33 = vpop.permute.xlu1 %10853 }
 0x9dc   :  { %v10915_v6 = vmul.f32 %v18014_v5, %v10854_v33  ;;  %v10944_v33 = vpack.c.bf16 %v10930_v22, %v10929_v34  ;;  %v10932_v52 = vadd.f32 %v10916_v4, %v10801_v48 }
 0x9dd   :  { %v18305_v30 = vpop.permute.xlu0 %11717 }
 0x9de   :  { %v10931_v39 = vadd.f32 %v10915_v6, %v10800_v63 }
 0x9df   :  { %v18307_v45 = vpop.permute.xlu1 %11712 }
 0x9e1   :  { %v18309_v10 = vpop.permute.xlu0 %10753 }
 0x9e3   :  { %v18311_v42 = vpop.permute.xlu1 %10748 }
 0x9e4   :  { %v10802_v3 = vmul.f32 %v18011_v58, %v18311_v42  ;;  %v15695_v42 = vld [vmem:[%s18510_s11 + $0x18] sm:$0xff]  }
 0x9e5   :  { %v18313_v8 = vpop.permute.xlu0 %10868 }
 0x9e6   :  { %v10918_v56 = vmul.f32 %v18014_v5, %v18313_v8 }
 0x9e7   :  { %v10864_v1 = vpop.permute.xlu1 %10863 }
 0x9e8   :  { %v10917_v12 = vmul.f32 %v18014_v5, %v10864_v1  ;;  %v10803_v1 = vmul.f32 %v18011_v58, %v18309_v10 }
 0x9e9   :  { %v18315_v49 = vpop.permute.xlu0 %11727 }
 0x9ea   :  { %v10934_v29 = vadd.f32 %v10918_v56, %v10803_v1 }
 0x9eb   :  { %v18317_v32 = vpop.permute.xlu1 %11722 }
 0x9ed   :  { %v18319_v41 = vpop.permute.xlu0 %10763 }
 0x9ef   :  { %v18321_v15 = vpop.permute.xlu1 %10758 }
 0x9f0   :  { %v10804_v8 = vmul.f32 %v18011_v58, %v18321_v15 }
 0x9f1   :  { %v18323_v60 = vpop.permute.xlu0 %10878 }
 0x9f2   :  { %v10920_v24 = vmul.f32 %v18014_v5, %v18323_v60 }
 0x9f3   :  { %v10874_v51 = vpop.permute.xlu1 %10873 }
 0x9f4   :  { %v10919_v54 = vmul.f32 %v18014_v5, %v10874_v51  ;;  %v15696_v51 = vld [vmem:[%s18510_s11 + $0x20] sm:$0xff]  }
 0x9f5   :  { %v18325_v50 = vpop.permute.xlu0 %11737 }
 0x9f6   :  { %v10935_v23 = vadd.f32 %v10919_v54, %v10804_v8 }
 0x9f8   :  { %v11101_v16 = vpop.permute.xlu1 %11100 }
 0x9f9   :  { %v11124_v37 = vmul.f32 %v18014_v5, %v11101_v16  ;;  %v18334_v36 = vpop.permute.xlu0 %10773  ;;  %v10933_v16 = vadd.f32 %v10917_v12, %v10802_v3  ;;  %v15700_v12 = vld [vmem:[%s18509_s10 + $0x10] sm:$0xff]  }
 0x9fb   :  { %v11140_v18 = vadd.f32 %v11124_v37, %v11028_v40  ;;  %v10945_v40 = vpack.c.bf16 %v10932_v52, %v10931_v39  ;;  %v10946_v44 = vpack.c.bf16 %v10934_v29, %v10933_v16  ;;  %v15699_v39 = vld [vmem:[%s18509_s10 + $0x8] sm:$0xff]  }
 0x9fd   :  { %v18340_v19 = vpop.permute.xlu0 %10888  ;;  %v18342_v25 = vpop.permute.xlu1 %11732  ;;  %v11149_v53 = vpack.c.bf16 %v11140_v18, %v11139_v61  ;;  %v10805_v61 = vmul.f32 %v18011_v58, %v18319_v41  ;;  %v10807_v41 = vmul.f32 %v18011_v58, %v18334_v36 }
 0x9fe   :  { %v10922_v60 = vmul.f32 %v18014_v5, %v18340_v19  ;;  %v15698_v19 = vld [vmem:[%s18509_s10] sm:$0xff]  }
 0x9ff   :  { %14787 = vmatprep.subr.bf16.mxu0 %v11149_v53  ;;  %v10936_v15 = vadd.f32 %v10920_v24, %v10805_v61 }
 0xa00   :  { %14788 = vmatpush3.bf16.msra.mxu0 %v11149_v53 }
 0xa01   :  { %v18348_v57 = vpop.permute.xlu0 %11747  ;;  %14789 = vmatprep.subr.bf16.mxu0 %v11150_v13  ;;  %v10769_v43 = vpop.permute.xlu1 %10768  ;;  %v10947_v20 = vpack.c.bf16 %v10936_v15, %v10935_v23 }
 0xa02   :  { %v10806_v18 = vmul.f32 %v18011_v58, %v10769_v43 }
 0xa04   :  { %14790 = vmatpush3.bf16.msra.mxu0 %v11150_v13  ;;  %v10938_v13 = vadd.f32 %v10922_v60, %v10807_v41 }
 0xa05   :  { %v10784_v14 = vpop.permute.xlu0 %10783  ;;  %14803 = vmatprep.subr.bf16.mxu0 %v10943_v2  ;;  %v10884_v55 = vpop.permute.xlu1 %10883 }
 0xa06   :  { %v10921_v26 = vmul.f32 %v18014_v5, %v10884_v55  ;;  %v10809_v28 = vmul.f32 %v18011_v58, %v10784_v14 }
 0xa07   :  { %14792 = vmatmul.mubr.bf16.vlgmr.msra.gmra.mrb[60].mxu0 %v15693_v27 }
 0xa08   :  { %14804 = vmatpush3.bf16.msra.mxu0 %v10943_v2  ;;  %14795 = vmatprep.mubr.bf16.mxu0 %v15694_v59  ;;  %v10937_v53 = vadd.f32 %v10921_v26, %v10806_v18 }
 0xa09   :  { %v18366_v21 = vpop.permute.xlu0 %11757  ;;  %14805 = vmatprep.subr.bf16.mxu0 %v10944_v33  ;;  %v18368_v17 = vpop.permute.xlu1 %11742 }
 0xa0a   :  { %v10948_v62 = vpack.c.bf16 %v10938_v13, %v10937_v53 }
 0xa0c   :  { %14806 = vmatpush3.bf16.msra.mxu0 %v10944_v33  ;;  %v15703_v33 = vld [vmem:[%s18509_s10 + $0x28] ss:$0 sps:$4 sm:$0x11]  }
 0xa0d   :  { %v10794_v37 = vpop.permute.xlu0 %10793  ;;  %14807 = vmatprep.subr.bf16.mxu0 %v10945_v40  ;;  %v10779_v10 = vpop.permute.xlu1 %10778 }
 0xa0e   :  { %v10808_v35 = vmul.f32 %v18011_v58, %v10779_v10  ;;  %v10811_v22 = vmul.f32 %v18011_v58, %v10794_v37 }
 0xa0f   :  { %14796 = vmatmul.mubr.bf16.gmra.mrb[64].mxu0 %v15695_v42 }
 0xa10   :  { %14808 = vmatpush3.bf16.msra.mxu0 %v10945_v40  ;;  %14799 = vmatprep.mubr.bf16.mxu0 %v15696_v51 }
 0xa11   :  { %v10899_v46 = vpop.permute.xlu0 %10898  ;;  %14809 = vmatprep.subr.bf16.mxu0 %v10946_v44  ;;  %v10894_v47 = vpop.permute.xlu1 %10893 }
 0xa12   :  { %v10924_v38 = vmul.f32 %v18014_v5, %v10899_v46  ;;  %v10923_v31 = vmul.f32 %v18014_v5, %v10894_v47 }
 0xa14   :  { %14810 = vmatpush3.bf16.msra.mxu0 %v10946_v44  ;;  %v10940_v7 = vadd.f32 %v10924_v38, %v10809_v28  ;;  %v10939_v43 = vadd.f32 %v10923_v31, %v10808_v35 }
 0xa15   :  { %14811 = vmatprep.subr.bf16.mxu0 %v10947_v20  ;;  %v18402_v36 = vpop.permute.xlu1 %11752  ;;  %v10909_v34 = vpop.permute.xlu0 %10908 }
 0xa16   :  { %v10949_v2 = vpack.c.bf16 %v10940_v7, %v10939_v43  ;;  %v10926_v27 = vmul.f32 %v18014_v5, %v10909_v34 }
 0xa17   :  { %14800 = vmatmul.mubr.bf16.gmra.mrb[68].mxu0 %v15697_v0 }
 0xa18   :  { %14812 = vmatpush3.bf16.msra.mxu0 %v10947_v20  ;;  %14819 = vmatprep.mubr.bf16.mxu0 %v15698_v19  ;;  %v10942_v14 = vadd.f32 %v10926_v27, %v10811_v22 }
 0xa19   :  { %14813 = vmatprep.subr.bf16.mxu0 %v10948_v62  ;;  %v10789_v6 = vpop.permute.xlu1 %10788  ;;  %v11768_v46 = vpop.permute.xlu0 %11767 }
 0xa1a   :  { %v10810_v63 = vmul.f32 %v18011_v58, %v10789_v6  ;;  %v15701_v58 = vld [vmem:[%s18509_s10 + $0x18] sm:$0xff]  }
 0xa1c   :  { %14814 = vmatpush3.bf16.msra.mxu0 %v10948_v62 }
 0xa1d   :  { %14815 = vmatprep.subr.bf16.mxu0 %v10949_v2  ;;  %v10904_v59 = vpop.permute.xlu1 %10903  ;;  %v11778_v13 = vpop.permute.xlu0 %11777 }
 0xa1e   :  { %v10925_v4 = vmul.f32 %v18014_v5, %v10904_v59  ;;  %v15702_v5 = vld [vmem:[%s18509_s10 + $0x20] sm:$0xff]  }
 0xa20   :  { %v10941_v55 = vadd.f32 %v10925_v4, %v10810_v63  ;;  %14816 = vmatpush3.bf16.msra.mxu0 %v10949_v2 }
 0xa21   :  { %v11788_v22 = vpop.permute.xlu0 %11787 }
 0xa22   :  { %v10950_v48 = vpack.c.bf16 %v10942_v14, %v10941_v55 }
 0xa24   :  { %14817 = vmatprep.subr.bf16.mxu0 %v10950_v48 }
 0xa25   :  { %14818 = vmatpush3.bf16.msra.mxu0 %v10950_v48 }
 0xa28   :  { %14820 = vmatmul.mubr.bf16.vlgmr.msra.gmra.mrb[60].mxu0 %v15699_v39 }
 0xa29   :  { %14823 = vmatprep.mubr.bf16.mxu0 %v15700_v12 }
 0xa30   :  { %14824 = vmatmul.mubr.bf16.gmra.mrb[64].mxu0 %v15701_v58 }
 0xa31   :  { %14827 = vmatprep.mubr.bf16.mxu0 %v15702_v5 }
 0xa38   :  { %14828 = vmatmul.mubr.bf16.gmra.mrb[72].mxu0 %v15703_v33 }
 0xa62   :  { %v14849_v52 = vpop.f32.mrb[68].mxu1 }
 0xa63   :  { %v11881_v3 = vadd.f32 %v14849_v52, %v18317_v32  ;;  %v11872_v56 = vpop.f32.mrb[69].mxu1  ;;  %v11951_v52 = vld [vmem:[%s18514_s15] sm:$0x1] }
 0xa64   :  { %v11873_v54 = vadd.f32 %v11872_v56, %v18307_v45  ;;  %v14850_v1 = vpop.f32.mrb[70].mxu1 }
 0xa65   :  { %v11884_v16 = vadd.f32 %v14850_v1, %v18315_v49  ;;  %v11875_v40 = vpop.f32.mrb[71].mxu1  ;;  %v11937_v8 = vmax.f32 %v11881_v3, 0.0 }
 0xa66   :  { %v11876_v42 = vadd.f32 %v11875_v40, %v18305_v30  ;;  %v11935_v51 = vmax.f32 %v11873_v54, 0.0  ;;  %v11763_v30 = vpop.permute.xlu1 %11762  ;;  %v11615_v40 = vpop.permute.xlu0 %11614 }
 0xa67   :  { %v11938_v24 = vmax.f32 %v11884_v16, 0.0 }
 0xa68   :  { %v11936_v29 = vmax.f32 %v11876_v42, 0.0 }
 0xa69   :  { %v11953_v37 = vpack.c.bf16 %v11938_v24, %v11937_v8 }
 0xa6a   :  { %v11952_v10 = vpack.c.bf16 %v11936_v29, %v11935_v51  ;;  %v14853_v61 = vpop.f32.mrb[72].mxu1  ;;  %v11625_v8 = vpop.permute.xlu0 %11624 }
 0xa6b   :  { %v11897_v23 = vadd.f32 %v14853_v61, %v18368_v17  ;;  %v11888_v26 = vpop.f32.mrb[73].mxu1 }
 0xa6c   :  { %v11889_v32 = vadd.f32 %v11888_v26, %v18342_v25  ;;  %v14854_v44 = vpop.f32.mrb[74].mxu1  ;;  %14864 = vmatpush3.bf16.msra.mxu1 %v11952_v10 }
 0xa6d   :  { %v11900_v45 = vadd.f32 %v14854_v44, %v18348_v57  ;;  %v11891_v49 = vpop.f32.mrb[75].mxu1  ;;  %14865 = vmatprep.subr.bf16.mxu1 %v18537_v9  ;;  %v11941_v60 = vmax.f32 %v11897_v23, 0.0  ;;  %v11773_v57 = vpop.permute.xlu1 %11772 }
 0xa6e   :  { %v11892_v15 = vadd.f32 %v11891_v49, %v18325_v50  ;;  %v11939_v47 = vmax.f32 %v11889_v32, 0.0  ;;  %v11635_v51 = vpop.permute.xlu0 %11634 }
 0xa6f   :  { %v11942_v18 = vmax.f32 %v11900_v45, 0.0 }
 0xa70   :  { %v11940_v20 = vmax.f32 %v11892_v15, 0.0  ;;  %14866 = vmatpush3.bf16.msra.mxu1 %v11953_v37 }
 0xa71   :  { %v11955_v17 = vpack.c.bf16 %v11942_v18, %v11941_v60  ;;  %14867 = vmatprep.subr.bf16.mxu1 %v18537_v9  ;;  %v11783_v6 = vpop.permute.xlu1 %11782 }
 0xa72   :  { %v11954_v25 = vpack.c.bf16 %v11940_v20, %v11939_v47  ;;  %v14857_v41 = vpop.f32.mrb[76].mxu1  ;;  %v11645_v45 = vpop.permute.xlu0 %11644 }
 0xa73   :  { %v11913_v53 = vadd.f32 %v14857_v41, %v11763_v30  ;;  %v11904_v38 = vpop.f32.mrb[77].mxu1 }
 0xa74   :  { %v11905_v31 = vadd.f32 %v11904_v38, %v18402_v36  ;;  %v14858_v0 = vpop.f32.mrb[78].mxu1  ;;  %14868 = vmatpush3.bf16.msra.mxu1 %v11954_v25 }
 0xa75   :  { %v11916_v19 = vadd.f32 %v14858_v0, %v11768_v46  ;;  %v11907_v50 = vpop.f32.mrb[79].mxu1  ;;  %14869 = vmatprep.subr.bf16.mxu1 %v18537_v9  ;;  %v11945_v35 = vmax.f32 %v11913_v53, 0.0  ;;  %v11964_v1 = vpop.permute.xlu1 %11963 }
 0xa76   :  { %v11908_v28 = vadd.f32 %v11907_v50, %v18366_v21  ;;  %v11943_v43 = vmax.f32 %v11905_v31, 0.0 }
 0xa77   :  { %v11946_v7 = vmax.f32 %v11916_v19, 0.0 }
 0xa78   :  { %v11944_v62 = vmax.f32 %v11908_v28, 0.0  ;;  %14870 = vmatpush3.bf16.msra.mxu1 %v11955_v17  ;;  %v11655_v17 = vpop.permute.xlu0 %11654 }
 0xa79   :  { %v11957_v34 = vpack.c.bf16 %v11946_v7, %v11945_v35  ;;  %14871 = vmatprep.subr.bf16.mxu1 %v18537_v9  ;;  %v11620_v42 = vpop.permute.xlu1 %11619 }
 0xa7a   :  { %v11956_v2 = vpack.c.bf16 %v11944_v62, %v11943_v43  ;;  %v14861_v36 = vpop.f32.mrb[80].mxu1  ;;  %v11967_v43 = vshrl.u32 %v10711_v11, 7 }
 0xa7b   :  { %v11929_v27 = vadd.f32 %v14861_v36, %v11783_v6  ;;  %v11920_v59 = vpop.f32.mrb[81].mxu1 }
 0xa7c   :  { %v11921_v63 = vadd.f32 %v11920_v59, %v11773_v57  ;;  %v14862_v4 = vpop.f32.mrb[82].mxu1  ;;  %14872 = vmatpush3.bf16.msra.mxu1 %v11956_v2  ;;  %v11665_v57 = vpop.permute.xlu0 %11664  ;;  %v11968_v62 = vsub.s32 0, %v11967_v43 }
 0xa7d   :  { %v11932_v14 = vadd.f32 %v14862_v4, %v11788_v22  ;;  %v11923_v55 = vpop.f32.mrb[83].mxu1  ;;  %14873 = vmatprep.subr.bf16.mxu1 %v18537_v9  ;;  %v11949_v48 = vmax.f32 %v11929_v27, 0.0  ;;  %v11630_v24 = vpop.permute.xlu1 %11629 }
 0xa7e   :  { %v11924_v21 = vadd.f32 %v11923_v55, %v11778_v13  ;;  %v11947_v12 = vmax.f32 %v11921_v63, 0.0 }
 0xa7f   :  { %v11950_v39 = vmax.f32 %v11932_v14, 0.0 }
 0xa80   :  { %v11948_v58 = vmax.f32 %v11924_v21, 0.0  ;;  %14874 = vmatpush3.bf16.msra.mxu1 %v11957_v34  ;;  %v11969_v34 = vrot.slane %v11964_v1, %v11968_v62 }
 0xa81   :  { %v11959_v5 = vpack.c.bf16 %v11950_v39, %v11949_v48  ;;  %14875 = vmatprep.subr.bf16.mxu1 %v18537_v9  ;;  %v11640_v32 = vpop.permute.xlu1 %11639 }
 0xa82   :  { %v11958_v33 = vpack.c.bf16 %v11948_v58, %v11947_v12 }
 0xa84   :  { %14876 = vmatpush3.bf16.msra.mxu1 %v11958_v33 }
 0xa85   :  { %14877 = vmatprep.subr.bf16.mxu1 %v18537_v9  ;;  %v11650_v60 = vpop.permute.xlu1 %11649 }
 0xa88   :  { %14878 = vmatpush3.bf16.msra.mxu1 %v11959_v5 }
 0xa89   :  { %v11660_v35 = vpop.permute.xlu1 %11659 }
 0xa8b   :  { %14880 = vmatmul.mubr.bf16.vlgmr.msra.gmra.mrb[84].mxu1 %v11951_v52 }
 0xaea   :  { %v14801_v3 = vpop.f32.mrb[68].mxu0 }
 0xaeb   :  { %v11473_v56 = vpop.f32.mrb[69].mxu0 }
 0xaec   :  { %v14802_v54 = vpop.f32.mrb[70].mxu0 }
 0xaed   :  { %v11476_v16 = vpop.f32.mrb[71].mxu0 }
 0xafb   :  { %v14821_v29 = vpop.f32.mrb[60].mxu0 }
 0xafc   :  { %v11669_v37 = vadd.f32 %v14821_v29, %v11625_v8  ;;  %v11555_v9 = vpop.f32.mrb[61].mxu0 }
 0xafd   :  { %v11667_v10 = vadd.f32 %v11615_v40, %v11555_v9  ;;  %v14822_v61 = vpop.f32.mrb[62].mxu0 }
 0xafe   :  { %12014 = vst.msk [vmem:[%s18516_s17 + $0x10] sm:$0xff] %vm12011_vm8, %v11669_v37  ;;  %v11670_v23 = vadd.f32 %v14822_v61, %v11630_v24  ;;  %v11558_v26 = vpop.f32.mrb[63].mxu0 }
 0xaff   :  { %12012 = vst.msk [vmem:[%s18516_s17] sm:$0xff] %vm12011_vm8, %v11667_v10  ;;  %v11668_v44 = vadd.f32 %v11620_v42, %v11558_v26 }
 0xb00   :  { %12015 = vst.msk [vmem:[%s18516_s17 + $0x18] sm:$0xff] %vm12011_vm8, %v11670_v23 }
 0xb01   :  { %12013 = vst.msk [vmem:[%s18516_s17 + $0x8] sm:$0xff] %vm12011_vm8, %v11668_v44 }
 0xb03   :  { %v14825_v49 = vpop.f32.mrb[64].mxu0 }
 0xb04   :  { %v11673_v30 = vadd.f32 %v14825_v49, %v11645_v45  ;;  %v11571_v15 = vpop.f32.mrb[65].mxu0 }
 0xb05   :  { %v11671_v18 = vadd.f32 %v11635_v51, %v11571_v15  ;;  %v14826_v46 = vpop.f32.mrb[66].mxu0 }
 0xb06   :  { %12018 = vst.msk [vmem:[%s18516_s17 + $0x30] sm:$0xff] %vm12011_vm8, %v11673_v30  ;;  %v11674_v47 = vadd.f32 %v14826_v46, %v11650_v60  ;;  %v11574_v20 = vpop.f32.mrb[67].mxu0 }
 0xb07   :  { %12016 = vst.msk [vmem:[%s18516_s17 + $0x20] sm:$0xff] %vm12011_vm8, %v11671_v18  ;;  %v11672_v25 = vadd.f32 %v11640_v32, %v11574_v20 }
 0xb08   :  { %12019 = vst.msk [vmem:[%s18516_s17 + $0x38] sm:$0xff] %vm12011_vm8, %v11674_v47 }
 0xb09   :  { %12017 = vst.msk [vmem:[%s18516_s17 + $0x28] sm:$0xff] %vm12011_vm8, %v11672_v25 }
 0xb0b   :  { %v14829_v41 = vpop.f32.mrb[72].mxu0 }
 0xb0c   :  { %v11596_v53 = vadd.f32 %v14829_v41, %v14801_v3  ;;  %v11587_v38 = vpop.f32.mrb[73].mxu0 }
 0xb0d   :  { %v11588_v31 = vadd.f32 %v11587_v38, %v11473_v56  ;;  %v14830_v0 = vpop.f32.mrb[74].mxu0 }
 0xb0e   :  { %v11677_v19 = vadd.f32 %v11665_v57, %v11596_v53  ;;  %v11590_v50 = vpop.f32.mrb[75].mxu0 }
 0xb0f   :  { %v11675_v13 = vadd.f32 %v11655_v17, %v11588_v31  ;;  %v11591_v28 = vadd.f32 %v11590_v50, %v11476_v16 }
 0xb10   :  { %12023 = vst.msk [vmem:[%s18516_s17 + $0x50] sm:$0x3] %vm12022_vm9, %v11677_v19 }
 0xb11   :  { %12020 = vst.msk [vmem:[%s18516_s17 + $0x40] sm:$0xff] %vm12011_vm8, %v11675_v13  ;;  %v11676_v7 = vadd.f32 %v11660_v35, %v11591_v28 }
 0xb13   :  { %12021 = vst.msk [vmem:[%s18516_s17 + $0x48] sm:$0xff] %vm12011_vm8, %v11676_v7 }
 0xb5e   :  { %v12004_v6 = vpop.f32.mrb[84].mxu1 }
 0xb5f   :  { %v12005_v2 = vadd.f32 %v12004_v6, %v11969_v34  ;;  %v14881_v36 = vpop.f32.mrb[85].mxu1 }
 0xb60   :  { %v12007_v27 = vpop.f32.mrb[86].mxu1 }
 0xb61   :  { %15704 = vtanh.f32 %v12005_v2  ;;  %v14882_v59 = vpop.f32.mrb[87].mxu1 }
 0xb6b   :  { %v15705_v22 = vpop.eup %15704 }
 0xb6c   :  { %12025 = vst.msk [vmem:[#allocation6] sm:$0x1] %vm12024_vm10, %v15705_v22 }
 0xb6d   :  { %15737 = shalt.err (!%p15734_p4)
}
 0xb6e   :  { %s15738_s10 = scalar_lea.hbm %s18517_s18, 16 }
 0xb6f   :  { %p15739_p5 = scmp.ne.s32.totalorder %s18517_s18, %s15738_s10  ;;  %p15742_p6 = scmp.lt.u32.totalorder %s15738_s10, %s18517_s18 }
 0xb71   :  { %p15744_p7 = pnand %p15742_p6, %p15739_p5 }
 0xb73   :  { %15747 = shalt.err (!%p15744_p7)
}
 0xb74   :  { %12037 = dma.vmem_to_hbm [thread:$0]  %s12035_s9, 16, %s18517_s18, [#allocation7]  }
 0xb75   :  { %15748 = dma.done.wait [#allocation7], 16  }
 0xb76   :  { %15749 = vsyncadd [#allocation7], 4294967280 }
 0xb77   :  { %12043 = vsyncpa [#allocation7], 1 }

</bundles_post_ra>
